<compile_context>
chip_gen: v7x
topology: tpu7x:2x2x1
jax: 0.10.0
libtpu: 0.0.40
codegen_flags: <defaults>
</compile_context>

<pallas_src>
import re

import jax
import jax.numpy as jnp
import numpy as np
from jax import lax
from jax.experimental import pallas as pl
from jax.experimental.pallas import tpu as pltpu

EPS = 1e-5  # torch.nn.GroupNorm default


# ---------------------------------------------------------------------------
# Host-side helpers
# ---------------------------------------------------------------------------
def _make_assign(C, G):
    """One-hot (C, G) channel->group matrix and its transpose (host-side)."""
    gs = C // G
    a = (np.arange(C)[:, None] // gs == np.arange(G)[None, :]).astype(np.float32)
    return jnp.asarray(a), jnp.asarray(np.ascontiguousarray(a.T))


def _make_selector(TB, N):
    """One-hot (TB, TB*N) per-sample row selector (host-side)."""
    sel = (np.arange(TB * N)[None, :] // N == np.arange(TB)[:, None])
    return jnp.asarray(sel.astype(np.float32))


def _tpu_generation():
    try:
        kind = jax.devices()[0].device_kind.lower()
    except Exception:
        return 0
    m = re.search(r"(\d+)", kind)
    return int(m.group(1)) if m else 0


def _chip_tuning():
    gen = _tpu_generation()
    if gen >= 7:
        # v7x: 64 MiB VMEM / TC, 2 TCs -> keep headroom, split batch over cores.
        return dict(row_cap=4096, vmem_limit=52 * 1024 * 1024, split_cores=True)
    if gen in (5, 6):
        # v5e / v6e: 128 MiB VMEM, 1 TC -> big blocks amortize per-step overhead.
        return dict(row_cap=8192, vmem_limit=100 * 1024 * 1024, split_cores=False)
    # Unknown / older chips: conservative (matches previously-validated config).
    return dict(row_cap=2048, vmem_limit=64 * 1024 * 1024, split_cores=False)


def _pick_block_batch(B, N, row_cap, max_tb):
    """Largest divisor TB of B with TB <= max_tb and TB*N <= row_cap."""
    if N % 8 != 0:
        return 1
    tb = 1
    for d in range(1, B + 1):
        if B % d == 0 and d <= max_tb and d * N <= row_cap:
            tb = d
    return tb


# ---------------------------------------------------------------------------
# In-kernel GroupNorm helpers
# ---------------------------------------------------------------------------
def _gn_relu_rows(h, assign, assign_t, gamma, beta):
    """GroupNorm + ReLU on fc features h: (M, C) f32.  Stats per row over the
    channels of each group (torch GroupNorm on 2-D input)."""
    C = h.shape[-1]
    G = assign.shape[-1]
    gs = C // G
    sum_g = jnp.dot(h, assign, preferred_element_type=jnp.float32)        # (M, G)
    sumsq_g = jnp.dot(h * h, assign, preferred_element_type=jnp.float32)  # (M, G)
    mean_g = sum_g / gs
    var_g = sumsq_g / gs - mean_g * mean_g
    rstd_g = lax.rsqrt(var_g + EPS)
    mean_c = jnp.dot(mean_g, assign_t, preferred_element_type=jnp.float32)
    rstd_c = jnp.dot(rstd_g, assign_t, preferred_element_type=jnp.float32)
    scale = gamma * rstd_c
    shift = beta - mean_c * scale
    return jnp.maximum(h * scale + shift, 0.0)


# ---------------------------------------------------------------------------
# Fused kernel: point MLP + GN + max-pool + fc head -> (TB, 128)
# ---------------------------------------------------------------------------
def stn_fused_kernel(x_ref, sel_ref,
                     w1_ref, b1_ref, g1_ref, be1_ref, a1_ref, at1_ref,
                     w2_ref, b2_ref, g2_ref, be2_ref, a2_ref, at2_ref,
                     w3_ref, b3_ref, g3_ref, be3_ref, a3_ref, at3_ref,
                     w4_ref, b4_ref, g4_ref, be4_ref, a4_ref, at4_ref,
                     w5_ref, b5_ref, g5_ref, be5_ref, a5_ref, at5_ref,
                     w6_ref, b6_ref,
                     out_ref):
    x = x_ref[...]                                   # (TB, N, Cp) bf16
    TB, N, Cp = x.shape
    R = TB * N
    sel = sel_ref[...]                               # (TB, R) f32 one-hot

    def conv_stats(h_in_bf, w_ref, b_ref, a_ref, at_ref, g_ref, be_ref):
        """conv (no bias add) + GroupNorm stats.  Returns the raw conv output
        h (R, C) in f32 and per-sample (TB, C) scale/shift with the conv bias
        and the GN affine folded in:   gn_relu(h + b) == relu(h*scale + shift).
        Per-sample reductions over N go through the MXU via `sel`."""
        h = jnp.dot(h_in_bf, w_ref[...], preferred_element_type=jnp.float32)  # (R, C)
        C = h.shape[-1]
        G = a_ref.shape[-1]
        gs = C // G
        cnt = float(N * gs)
        b = b_ref[...]                                                     # (1, C)
        s = jnp.dot(sel, h, preferred_element_type=jnp.float32)            # (TB, C)
        ss = jnp.dot(sel, h * h, preferred_element_type=jnp.float32)       # (TB, C)
        # fold the conv bias into the per-channel statistics analytically
        sum_c = s + N * b
        sumsq_c = ss + (2.0 * b) * s + N * (b * b)
        sum_g = jnp.dot(sum_c, a_ref[...], preferred_element_type=jnp.float32)   # (TB, G)
        sumsq_g = jnp.dot(sumsq_c, a_ref[...], preferred_element_type=jnp.float32)
        mean_g = sum_g / cnt
        var_g = sumsq_g / cnt - mean_g * mean_g
        rstd_g = lax.rsqrt(var_g + EPS)
        mean_c = jnp.dot(mean_g, at_ref[...], preferred_element_type=jnp.float32)  # (TB, C)
        rstd_c = jnp.dot(rstd_g, at_ref[...], preferred_element_type=jnp.float32)
        scale = g_ref[...] * rstd_c                                        # (TB, C)
        shift = be_ref[...] + scale * (b - mean_c)                         # (TB, C)
        return h, scale, shift

    # ---- layer 1: conv1 -> GN -> ReLU -------------------------------------
    h1, sc1, sh1 = conv_stats(x.reshape(R, Cp),
                              w1_ref, b1_ref, a1_ref, at1_ref, g1_ref, be1_ref)
    C1 = h1.shape[-1]
    h1n = jnp.maximum(h1.reshape(TB, N, C1) * sc1.reshape(TB, 1, C1)
                      + sh1.reshape(TB, 1, C1), 0.0)

    # ---- layer 2: conv2 -> GN -> ReLU -------------------------------------
    h2, sc2, sh2 = conv_stats(h1n.reshape(R, C1).astype(jnp.bfloat16),
                              w2_ref, b2_ref, a2_ref, at2_ref, g2_ref, be2_ref)
    C2 = h2.shape[-1]
    h2n = jnp.maximum(h2.reshape(TB, N, C2) * sc2.reshape(TB, 1, C2)
                      + sh2.reshape(TB, 1, C2), 0.0)

    # ---- layer 3: conv3 -> GN -> ReLU -> max over points, fused -----------
    # relu(scale*h + shift) maxed over N == relu(scale*max(h) + shift) when
    # scale >= 0, and relu(scale*min(h) + shift) when scale < 0, so only the
    # (TB, 1024) max/min tensors get normalized.
    h3, sc3, sh3 = conv_stats(h2n.reshape(R, C2).astype(jnp.bfloat16),
                              w3_ref, b3_ref, a3_ref, at3_ref, g3_ref, be3_ref)
    C3 = h3.shape[-1]
    h3r = h3.reshape(TB, N, C3)
    mx = jnp.max(h3r, axis=1)                                             # (TB, 1024)
    mn = jnp.min(h3r, axis=1)                                             # (TB, 1024)
    pooled = jnp.maximum(jnp.where(sc3 >= 0.0, sc3 * mx, sc3 * mn) + sh3, 0.0)

    # ---- fc head: fc1 -> GN -> ReLU, fc2 -> GN -> ReLU, fc3(+iden) --------
    h4 = jnp.dot(pooled.astype(jnp.bfloat16), w4_ref[...],
                 preferred_element_type=jnp.float32) + b4_ref[...]
    h4 = _gn_relu_rows(h4, a4_ref[...], at4_ref[...], g4_ref[...], be4_ref[...])
    h5 = jnp.dot(h4.astype(jnp.bfloat16), w5_ref[...],
                 preferred_element_type=jnp.float32) + b5_ref[...]
    h5 = _gn_relu_rows(h5, a5_ref[...], at5_ref[...], g5_ref[...], be5_ref[...])
    # fc3: weight/bias pre-padded to 128 lanes; identity folded into b6.
    out = jnp.dot(h5.astype(jnp.bfloat16), w6_ref[...],
                  preferred_element_type=jnp.float32) + b6_ref[...]       # (TB, 128)
    out_ref[...] = out.astype(out_ref.dtype)


# ---------------------------------------------------------------------------
# Wrapper
# ---------------------------------------------------------------------------
def stn3d_gn_forward(x_ncw, params):
    (w1t, b1, g1, be1,
     w2t, b2, g2, be2,
     w3t, b3, g3, be3,
     w4t, b4, g4, be4,
     w5t, b5, g5, be5,
     w6t, b6) = params

    B, C, N = x_ncw.shape
    bf = jnp.bfloat16

    # ---- layout / dtype prep (done once in the wrapper) -------------------
    Cp = max(8, ((C + 7) // 8) * 8)
    x_nc = jnp.transpose(x_ncw, (0, 2, 1))                    # (B, N, C)
    if Cp != C:
        x_nc = jnp.pad(x_nc, ((0, 0), (0, 0), (0, Cp - C)))
        w1t = jnp.pad(w1t, ((0, Cp - C), (0, 0)))
    x_nc = x_nc.astype(bf)
    w1b, w2b, w3b = w1t.astype(bf), w2t.astype(bf), w3t.astype(bf)
    w4b, w5b = w4t.astype(bf), w5t.astype(bf)

    # fc3: pad to a lane-dense 128-wide output and fold the identity into b6.
    OUTP = 128
    w6p = jnp.pad(w6t, ((0, 0), (0, OUTP - 9))).astype(bf)                 # (256, 128)
    iden = jnp.array([1, 0, 0, 0, 1, 0, 0, 0, 1], jnp.float32).reshape(1, 9)
    b6p = jnp.pad(b6 + iden, ((0, 0), (0, OUTP - 9)))                      # (1, 128)

    # precomputed one-hot group-assignment matrices (f32, small, VMEM-resident)
    a1, at1 = _make_assign(64, 4)
    a2, at2 = _make_assign(128, 8)
    a3, at3 = _make_assign(1024, 64)
    a4, at4 = _make_assign(512, 32)
    a5, at5 = _make_assign(256, 16)

    # ---- chip-aware tiling -------------------------------------------------
    tune = _chip_tuning()
    max_tb = max(1, B // 2) if (tune["split_cores"] and B >= 2) else B
    TB = _pick_block_batch(B, N, tune["row_cap"], max_tb)
    sel = _make_selector(TB, N)                                            # (TB, TB*N)

    full = lambda shape: pl.BlockSpec(shape, lambda i: (0,) * len(shape))

    out_pad = pl.pallas_call(
        stn_fused_kernel,
        out_shape=jax.ShapeDtypeStruct((B, OUTP), jnp.float32),
        grid_spec=pltpu.PrefetchScalarGridSpec(
            num_scalar_prefetch=0,
            grid=(B // TB,),
            in_specs=[
                pl.BlockSpec((TB, N, Cp), lambda i: (i, 0, 0)),
                full((TB, TB * N)),
                full((Cp, 64)), full((1, 64)), full((1, 64)), full((1, 64)),
                full((64, 4)), full((4, 64)),
                full((64, 128)), full((1, 128)), full((1, 128)), full((1, 128)),
                full((128, 8)), full((8, 128)),
                full((128, 1024)), full((1, 1024)), full((1, 1024)), full((1, 1024)),
                full((1024, 64)), full((64, 1024)),
                full((1024, 512)), full((1, 512)), full((1, 512)), full((1, 512)),
                full((512, 32)), full((32, 512)),
                full((512, 256)), full((1, 256)), full((1, 256)), full((1, 256)),
                full((256, 16)), full((16, 256)),
                full((256, OUTP)), full((1, OUTP)),
            ],
            out_specs=pl.BlockSpec((TB, OUTP), lambda i: (i, 0)),
        ),
        compiler_params=pltpu.CompilerParams(
            dimension_semantics=("parallel",),
            vmem_limit_bytes=tune["vmem_limit"],
        ),
    )(x_nc, sel,
      w1b, b1, g1, be1, a1, at1,
      w2b, b2, g2, be2, a2, at2,
      w3b, b3, g3, be3, a3, at3,
      w4b, b4, g4, be4, a4, at4,
      w5b, b5, g5, be5, a5, at5,
      w6p, b6p)

    return out_pad[:, :9].reshape(B, 3, 3)


# ---------------------------------------------------------------------------
# Pure-JAX reference (PyTorch forward semantics; matmul operands cast to bf16
# with f32 accumulation to mirror the kernel's MXU precision)
# ---------------------------------------------------------------------------
def _gn_ref_points(h, G, gamma, beta):
    B, N, C = h.shape
    hg = h.reshape(B, N, G, C // G)
    mean = hg.mean(axis=(1, 3), keepdims=True)
    var = ((hg - mean) ** 2).mean(axis=(1, 3), keepdims=True)
    hn = ((hg - mean) / jnp.sqrt(var + EPS)).reshape(B, N, C)
    return hn * gamma.reshape(1, 1, C) + beta.reshape(1, 1, C)


def _gn_ref_rows(h, G, gamma, beta):
    B, C = h.shape
    hg = h.reshape(B, G, C // G)
    mean = hg.mean(-1, keepdims=True)
    var = ((hg - mean) ** 2).mean(-1, keepdims=True)
    hn = ((hg - mean) / jnp.sqrt(var + EPS)).reshape(B, C)
    return hn * gamma.reshape(1, C) + beta.reshape(1, C)


def reference_forward(x_ncw, params):
    (w1t, b1, g1, be1, w2t, b2, g2, be2, w3t, b3, g3, be3,
     w4t, b4, g4, be4, w5t, b5, g5, be5, w6t, b6) = params
    B = x_ncw.shape[0]
    bf = jnp.bfloat16
    mm = lambda a, w: jnp.dot(a.astype(bf), w.astype(bf),
                              preferred_element_type=jnp.float32)

    x = jnp.transpose(x_ncw, (0, 2, 1))                          # (B, N, C)
    h = jax.nn.relu(_gn_ref_points(mm(x, w1t) + b1, 4, g1, be1))
    h = jax.nn.relu(_gn_ref_points(mm(h, w2t) + b2, 8, g2, be2))
    h = jax.nn.relu(_gn_ref_points(mm(h, w3t) + b3, 64, g3, be3))
    f = jnp.max(h, axis=1)                                       # (B, 1024)
    h = jax.nn.relu(_gn_ref_rows(mm(f, w4t) + b4, 32, g4, be4))
    h = jax.nn.relu(_gn_ref_rows(mm(h, w5t) + b5, 16, g5, be5))
    out = mm(h, w6t) + b6
    iden = jnp.tile(jnp.array([1, 0, 0, 0, 1, 0, 0, 0, 1], jnp.float32)[None, :], (B, 1))
    return (out + iden).reshape(B, 3, 3)


# ---------------------------------------------------------------------------
# Deterministic parameter init (synthetic; shapes from STN3d_gn.__init__)
# ---------------------------------------------------------------------------
def init_params(channel, key):
    keys = jax.random.split(key, 12)

    def lin(kw, kb, fan_in, fan_out):
        w = jax.random.normal(kw, (fan_in, fan_out), jnp.float32) / jnp.sqrt(fan_in)
        b = 0.01 * jax.random.normal(kb, (1, fan_out), jnp.float32)
        return w, b

    w1t, b1 = lin(keys[0], keys[1], channel, 64)
    w2t, b2 = lin(keys[2], keys[3], 64, 128)
    w3t, b3 = lin(keys[4], keys[5], 128, 1024)
    w4t, b4 = lin(keys[6], keys[7], 1024, 512)
    w5t, b5 = lin(keys[8], keys[9], 512, 256)
    w6t, b6 = lin(keys[10], keys[11], 256, 9)

    gn = lambda C: (jnp.ones((1, C), jnp.float32), jnp.zeros((1, C), jnp.float32))
    g1, be1 = gn(64)
    g2, be2 = gn(128)
    g3, be3 = gn(1024)
    g4, be4 = gn(512)
    g5, be5 = gn(256)

    return (w1t, b1, g1, be1, w2t, b2, g2, be2, w3t, b3, g3, be3,
            w4t, b4, g4, be4, w5t, b5, g5, be5, w6t, b6)


if __name__ == "__main__":
    B, CH, NPTS = 2, 3, 16                   # PyTorch input: (B, channel, N_points)
    key = jax.random.PRNGKey(0)
    kx, kp = jax.random.split(key)
    x = jax.random.normal(kx, (B, CH, NPTS), jnp.float32)
    params = init_params(CH, kp)

    out = jax.block_until_ready(stn3d_gn_forward(x, params))
    ref = jax.block_until_ready(reference_forward(x, params))

    assert out.shape == (B, 3, 3)
    assert jnp.allclose(out, ref, rtol=2e-2, atol=2e-2), (out, ref)
    print("KERNEL_OK")
</pallas_src>

<mosaic_0001>
module attributes {stable_mosaic.version = 11 : i64} {
  func.func @stn_fused_kernel(%arg0: i32, %arg1: memref<2x16x8xbf16, #tpu.memory_space<vmem>>, %arg2: memref<2x32xf32, #tpu.memory_space<vmem>>, %arg3: memref<8x64xbf16, #tpu.memory_space<vmem>>, %arg4: memref<1x64xf32, #tpu.memory_space<vmem>>, %arg5: memref<1x64xf32, #tpu.memory_space<vmem>>, %arg6: memref<1x64xf32, #tpu.memory_space<vmem>>, %arg7: memref<64x4xf32, #tpu.memory_space<vmem>>, %arg8: memref<4x64xf32, #tpu.memory_space<vmem>>, %arg9: memref<64x128xbf16, #tpu.memory_space<vmem>>, %arg10: memref<1x128xf32, #tpu.memory_space<vmem>>, %arg11: memref<1x128xf32, #tpu.memory_space<vmem>>, %arg12: memref<1x128xf32, #tpu.memory_space<vmem>>, %arg13: memref<128x8xf32, #tpu.memory_space<vmem>>, %arg14: memref<8x128xf32, #tpu.memory_space<vmem>>, %arg15: memref<128x1024xbf16, #tpu.memory_space<vmem>>, %arg16: memref<1x1024xf32, #tpu.memory_space<vmem>>, %arg17: memref<1x1024xf32, #tpu.memory_space<vmem>>, %arg18: memref<1x1024xf32, #tpu.memory_space<vmem>>, %arg19: memref<1024x64xf32, #tpu.memory_space<vmem>>, %arg20: memref<64x1024xf32, #tpu.memory_space<vmem>>, %arg21: memref<1024x512xbf16, #tpu.memory_space<vmem>>, %arg22: memref<1x512xf32, #tpu.memory_space<vmem>>, %arg23: memref<1x512xf32, #tpu.memory_space<vmem>>, %arg24: memref<1x512xf32, #tpu.memory_space<vmem>>, %arg25: memref<512x32xf32, #tpu.memory_space<vmem>>, %arg26: memref<32x512xf32, #tpu.memory_space<vmem>>, %arg27: memref<512x256xbf16, #tpu.memory_space<vmem>>, %arg28: memref<1x256xf32, #tpu.memory_space<vmem>>, %arg29: memref<1x256xf32, #tpu.memory_space<vmem>>, %arg30: memref<1x256xf32, #tpu.memory_space<vmem>>, %arg31: memref<256x16xf32, #tpu.memory_space<vmem>>, %arg32: memref<16x256xf32, #tpu.memory_space<vmem>>, %arg33: memref<256x128xbf16, #tpu.memory_space<vmem>>, %arg34: memref<1x128xf32, #tpu.memory_space<vmem>>, %arg35: memref<2x128xf32, #tpu.memory_space<vmem>>) attributes {dimension_semantics = [#tpu.dimension_semantics<parallel>], iteration_bounds = array<i64: 1>, scalar_prefetch = 0 : i64, scratch_operands = 0 : i64, tpu.core_type = #tpu.core_type<tc>, window_params = [{transform_indices = @transform_0, window_bounds = array<i64: 2, 16, 8>}, {pipeline_mode = #tpu.pipeline_mode<synchronous>, transform_indices = @transform_1, window_bounds = array<i64: 2, 32>}, {pipeline_mode = #tpu.pipeline_mode<synchronous>, transform_indices = @transform_2, window_bounds = array<i64: 8, 64>}, {pipeline_mode = #tpu.pipeline_mode<synchronous>, transform_indices = @transform_3, window_bounds = array<i64: 1, 64>}, {pipeline_mode = #tpu.pipeline_mode<synchronous>, transform_indices = @transform_4, window_bounds = array<i64: 1, 64>}, {pipeline_mode = #tpu.pipeline_mode<synchronous>, transform_indices = @transform_5, window_bounds = array<i64: 1, 64>}, {pipeline_mode = #tpu.pipeline_mode<synchronous>, transform_indices = @transform_6, window_bounds = array<i64: 64, 4>}, {pipeline_mode = #tpu.pipeline_mode<synchronous>, transform_indices = @transform_7, window_bounds = array<i64: 4, 64>}, {pipeline_mode = #tpu.pipeline_mode<synchronous>, transform_indices = @transform_8, window_bounds = array<i64: 64, 128>}, {pipeline_mode = #tpu.pipeline_mode<synchronous>, transform_indices = @transform_9, window_bounds = array<i64: 1, 128>}, {pipeline_mode = #tpu.pipeline_mode<synchronous>, transform_indices = @transform_10, window_bounds = array<i64: 1, 128>}, {pipeline_mode = #tpu.pipeline_mode<synchronous>, transform_indices = @transform_11, window_bounds = array<i64: 1, 128>}, {pipeline_mode = #tpu.pipeline_mode<synchronous>, transform_indices = @transform_12, window_bounds = array<i64: 128, 8>}, {pipeline_mode = #tpu.pipeline_mode<synchronous>, transform_indices = @transform_13, window_bounds = array<i64: 8, 128>}, {pipeline_mode = #tpu.pipeline_mode<synchronous>, transform_indices = @transform_14, window_bounds = array<i64: 128, 1024>}, {pipeline_mode = #tpu.pipeline_mode<synchronous>, transform_indices = @transform_15, window_bounds = array<i64: 1, 1024>}, {pipeline_mode = #tpu.pipeline_mode<synchronous>, transform_indices = @transform_16, window_bounds = array<i64: 1, 1024>}, {pipeline_mode = #tpu.pipeline_mode<synchronous>, transform_indices = @transform_17, window_bounds = array<i64: 1, 1024>}, {pipeline_mode = #tpu.pipeline_mode<synchronous>, transform_indices = @transform_18, window_bounds = array<i64: 1024, 64>}, {pipeline_mode = #tpu.pipeline_mode<synchronous>, transform_indices = @transform_19, window_bounds = array<i64: 64, 1024>}, {pipeline_mode = #tpu.pipeline_mode<synchronous>, transform_indices = @transform_20, window_bounds = array<i64: 1024, 512>}, {pipeline_mode = #tpu.pipeline_mode<synchronous>, transform_indices = @transform_21, window_bounds = array<i64: 1, 512>}, {pipeline_mode = #tpu.pipeline_mode<synchronous>, transform_indices = @transform_22, window_bounds = array<i64: 1, 512>}, {pipeline_mode = #tpu.pipeline_mode<synchronous>, transform_indices = @transform_23, window_bounds = array<i64: 1, 512>}, {pipeline_mode = #tpu.pipeline_mode<synchronous>, transform_indices = @transform_24, window_bounds = array<i64: 512, 32>}, {pipeline_mode = #tpu.pipeline_mode<synchronous>, transform_indices = @transform_25, window_bounds = array<i64: 32, 512>}, {pipeline_mode = #tpu.pipeline_mode<synchronous>, transform_indices = @transform_26, window_bounds = array<i64: 512, 256>}, {pipeline_mode = #tpu.pipeline_mode<synchronous>, transform_indices = @transform_27, window_bounds = array<i64: 1, 256>}, {pipeline_mode = #tpu.pipeline_mode<synchronous>, transform_indices = @transform_28, window_bounds = array<i64: 1, 256>}, {pipeline_mode = #tpu.pipeline_mode<synchronous>, transform_indices = @transform_29, window_bounds = array<i64: 1, 256>}, {pipeline_mode = #tpu.pipeline_mode<synchronous>, transform_indices = @transform_30, window_bounds = array<i64: 256, 16>}, {pipeline_mode = #tpu.pipeline_mode<synchronous>, transform_indices = @transform_31, window_bounds = array<i64: 16, 256>}, {pipeline_mode = #tpu.pipeline_mode<synchronous>, transform_indices = @transform_32, window_bounds = array<i64: 256, 128>}, {pipeline_mode = #tpu.pipeline_mode<synchronous>, transform_indices = @transform_33, window_bounds = array<i64: 1, 128>}, {transform_indices = @transform_34, window_bounds = array<i64: 2, 128>}]} {
    %c0 = arith.constant 0 : index
    %c0_0 = arith.constant 0 : index
    %c0_1 = arith.constant 0 : index
    %0 = vector.load %arg1[%c0, %c0_0, %c0_1] : memref<2x16x8xbf16, #tpu.memory_space<vmem>>, vector<2x16x8xbf16>
    %c0_2 = arith.constant 0 : index
    %c0_3 = arith.constant 0 : index
    %1 = vector.load %arg2[%c0_2, %c0_3] : memref<2x32xf32, #tpu.memory_space<vmem>>, vector<2x32xf32>
    %2 = vector.shape_cast %0 : vector<2x16x8xbf16> to vector<32x8xbf16>
    %c0_4 = arith.constant 0 : index
    %c0_5 = arith.constant 0 : index
    %3 = vector.load %arg3[%c0_4, %c0_5] : memref<8x64xbf16, #tpu.memory_space<vmem>>, vector<8x64xbf16>
    %cst = arith.constant dense<0.000000e+00> : vector<32x64xf32>
    %4 = tpu.matmul %2, %3, %cst {dimension_numbers = #tpu.dot_dimension_numbers<[1], [0], [0], [1], [0, 0, 1, 1], [], []>} : vector<32x8xbf16>, vector<8x64xbf16>, vector<32x64xf32> -> vector<32x64xf32>
    %c0_6 = arith.constant 0 : index
    %c0_7 = arith.constant 0 : index
    %5 = vector.load %arg4[%c0_6, %c0_7] : memref<1x64xf32, #tpu.memory_space<vmem>>, vector<1x64xf32>
    %cst_8 = arith.constant dense<0.000000e+00> : vector<2x64xf32>
    %6 = tpu.matmul %1, %4, %cst_8 {dimension_numbers = #tpu.dot_dimension_numbers<[1], [0], [0], [1], [0, 0, 1, 1], [], []>} : vector<2x32xf32>, vector<32x64xf32>, vector<2x64xf32> -> vector<2x64xf32>
    %7 = arith.mulf %4, %4 : vector<32x64xf32>
    %cst_9 = arith.constant dense<0.000000e+00> : vector<2x64xf32>
    %8 = tpu.matmul %1, %7, %cst_9 {dimension_numbers = #tpu.dot_dimension_numbers<[1], [0], [0], [1], [0, 0, 1, 1], [], []>} : vector<2x32xf32>, vector<32x64xf32>, vector<2x64xf32> -> vector<2x64xf32>
    %cst_10 = arith.constant 1.600000e+01 : f32
    %9 = vector.broadcast %cst_10 : f32 to vector<1x64xf32>
    %10 = arith.mulf %9, %5 : vector<1x64xf32>
    %11 = vector.broadcast %10 : vector<1x64xf32> to vector<2x64xf32>
    %12 = arith.addf %6, %11 : vector<2x64xf32>
    %cst_11 = arith.constant 2.000000e+00 : f32
    %13 = vector.broadcast %cst_11 : f32 to vector<1x64xf32>
    %14 = arith.mulf %13, %5 : vector<1x64xf32>
    %15 = vector.broadcast %14 : vector<1x64xf32> to vector<2x64xf32>
    %16 = arith.mulf %15, %6 : vector<2x64xf32>
    %17 = arith.addf %8, %16 : vector<2x64xf32>
    %18 = arith.mulf %5, %5 : vector<1x64xf32>
    %cst_12 = arith.constant 1.600000e+01 : f32
    %19 = vector.broadcast %cst_12 : f32 to vector<1x64xf32>
    %20 = arith.mulf %19, %18 : vector<1x64xf32>
    %21 = vector.broadcast %20 : vector<1x64xf32> to vector<2x64xf32>
    %22 = arith.addf %17, %21 : vector<2x64xf32>
    %c0_13 = arith.constant 0 : index
    %c0_14 = arith.constant 0 : index
    %23 = vector.load %arg7[%c0_13, %c0_14] : memref<64x4xf32, #tpu.memory_space<vmem>>, vector<64x4xf32>
    %cst_15 = arith.constant dense<0.000000e+00> : vector<2x4xf32>
    %24 = tpu.matmul %12, %23, %cst_15 {dimension_numbers = #tpu.dot_dimension_numbers<[1], [0], [0], [1], [0, 0, 1, 1], [], []>} : vector<2x64xf32>, vector<64x4xf32>, vector<2x4xf32> -> vector<2x4xf32>
    %c0_16 = arith.constant 0 : index
    %c0_17 = arith.constant 0 : index
    %25 = vector.load %arg7[%c0_16, %c0_17] : memref<64x4xf32, #tpu.memory_space<vmem>>, vector<64x4xf32>
    %cst_18 = arith.constant dense<0.000000e+00> : vector<2x4xf32>
    %26 = tpu.matmul %22, %25, %cst_18 {dimension_numbers = #tpu.dot_dimension_numbers<[1], [0], [0], [1], [0, 0, 1, 1], [], []>} : vector<2x64xf32>, vector<64x4xf32>, vector<2x4xf32> -> vector<2x4xf32>
    %cst_19 = arith.constant 2.560000e+02 : f32
    %27 = vector.broadcast %cst_19 : f32 to vector<2x4xf32>
    %28 = arith.divf %24, %27 : vector<2x4xf32>
    %cst_20 = arith.constant 2.560000e+02 : f32
    %29 = vector.broadcast %cst_20 : f32 to vector<2x4xf32>
    %30 = arith.divf %26, %29 : vector<2x4xf32>
    %31 = arith.mulf %28, %28 : vector<2x4xf32>
    %32 = arith.subf %30, %31 : vector<2x4xf32>
    %cst_21 = arith.constant 9.99999974E-6 : f32
    %33 = vector.broadcast %cst_21 : f32 to vector<2x4xf32>
    %34 = arith.addf %32, %33 : vector<2x4xf32>
    %35 = math.rsqrt %34 : vector<2x4xf32>
    %c0_22 = arith.constant 0 : index
    %c0_23 = arith.constant 0 : index
    %36 = vector.load %arg8[%c0_22, %c0_23] : memref<4x64xf32, #tpu.memory_space<vmem>>, vector<4x64xf32>
    %cst_24 = arith.constant dense<0.000000e+00> : vector<2x64xf32>
    %37 = tpu.matmul %28, %36, %cst_24 {dimension_numbers = #tpu.dot_dimension_numbers<[1], [0], [0], [1], [0, 0, 1, 1], [], []>} : vector<2x4xf32>, vector<4x64xf32>, vector<2x64xf32> -> vector<2x64xf32>
    %c0_25 = arith.constant 0 : index
    %c0_26 = arith.constant 0 : index
    %38 = vector.load %arg8[%c0_25, %c0_26] : memref<4x64xf32, #tpu.memory_space<vmem>>, vector<4x64xf32>
    %cst_27 = arith.constant dense<0.000000e+00> : vector<2x64xf32>
    %39 = tpu.matmul %35, %38, %cst_27 {dimension_numbers = #tpu.dot_dimension_numbers<[1], [0], [0], [1], [0, 0, 1, 1], [], []>} : vector<2x4xf32>, vector<4x64xf32>, vector<2x64xf32> -> vector<2x64xf32>
    %c0_28 = arith.constant 0 : index
    %c0_29 = arith.constant 0 : index
    %40 = vector.load %arg5[%c0_28, %c0_29] : memref<1x64xf32, #tpu.memory_space<vmem>>, vector<1x64xf32>
    %41 = vector.broadcast %40 : vector<1x64xf32> to vector<2x64xf32>
    %42 = arith.mulf %41, %39 : vector<2x64xf32>
    %c0_30 = arith.constant 0 : index
    %c0_31 = arith.constant 0 : index
    %43 = vector.load %arg6[%c0_30, %c0_31] : memref<1x64xf32, #tpu.memory_space<vmem>>, vector<1x64xf32>
    %44 = vector.broadcast %5 : vector<1x64xf32> to vector<2x64xf32>
    %45 = arith.subf %44, %37 : vector<2x64xf32>
    %46 = arith.mulf %42, %45 : vector<2x64xf32>
    %47 = vector.broadcast %43 : vector<1x64xf32> to vector<2x64xf32>
    %48 = arith.addf %47, %46 : vector<2x64xf32>
    %49 = vector.shape_cast %4 : vector<32x64xf32> to vector<2x16x64xf32>
    %50 = vector.shape_cast %42 : vector<2x64xf32> to vector<2x1x64xf32>
    %51 = vector.broadcast %50 : vector<2x1x64xf32> to vector<2x16x64xf32>
    %52 = arith.mulf %49, %51 : vector<2x16x64xf32>
    %53 = vector.shape_cast %48 : vector<2x64xf32> to vector<2x1x64xf32>
    %54 = vector.broadcast %53 : vector<2x1x64xf32> to vector<2x16x64xf32>
    %55 = arith.addf %52, %54 : vector<2x16x64xf32>
    %cst_32 = arith.constant 0.000000e+00 : f32
    %56 = vector.broadcast %cst_32 : f32 to vector<2x16x64xf32>
    %57 = arith.maximumf %55, %56 : vector<2x16x64xf32>
    %58 = vector.shape_cast %57 : vector<2x16x64xf32> to vector<32x64xf32>
    %59 = arith.truncf %58 : vector<32x64xf32> to vector<32x64xbf16>
    %c0_33 = arith.constant 0 : index
    %c0_34 = arith.constant 0 : index
    %60 = vector.load %arg9[%c0_33, %c0_34] : memref<64x128xbf16, #tpu.memory_space<vmem>>, vector<64x128xbf16>
    %cst_35 = arith.constant dense<0.000000e+00> : vector<32x128xf32>
    %61 = tpu.matmul %59, %60, %cst_35 {dimension_numbers = #tpu.dot_dimension_numbers<[1], [0], [0], [1], [0, 0, 1, 1], [], []>} : vector<32x64xbf16>, vector<64x128xbf16>, vector<32x128xf32> -> vector<32x128xf32>
    %c0_36 = arith.constant 0 : index
    %c0_37 = arith.constant 0 : index
    %62 = vector.load %arg10[%c0_36, %c0_37] : memref<1x128xf32, #tpu.memory_space<vmem>>, vector<1x128xf32>
    %cst_38 = arith.constant dense<0.000000e+00> : vector<2x128xf32>
    %63 = tpu.matmul %1, %61, %cst_38 {dimension_numbers = #tpu.dot_dimension_numbers<[1], [0], [0], [1], [0, 0, 1, 1], [], []>} : vector<2x32xf32>, vector<32x128xf32>, vector<2x128xf32> -> vector<2x128xf32>
    %64 = arith.mulf %61, %61 : vector<32x128xf32>
    %cst_39 = arith.constant dense<0.000000e+00> : vector<2x128xf32>
    %65 = tpu.matmul %1, %64, %cst_39 {dimension_numbers = #tpu.dot_dimension_numbers<[1], [0], [0], [1], [0, 0, 1, 1], [], []>} : vector<2x32xf32>, vector<32x128xf32>, vector<2x128xf32> -> vector<2x128xf32>
    %cst_40 = arith.constant 1.600000e+01 : f32
    %66 = vector.broadcast %cst_40 : f32 to vector<1x128xf32>
    %67 = arith.mulf %66, %62 : vector<1x128xf32>
    %68 = vector.broadcast %67 : vector<1x128xf32> to vector<2x128xf32>
    %69 = arith.addf %63, %68 : vector<2x128xf32>
    %cst_41 = arith.constant 2.000000e+00 : f32
    %70 = vector.broadcast %cst_41 : f32 to vector<1x128xf32>
    %71 = arith.mulf %70, %62 : vector<1x128xf32>
    %72 = vector.broadcast %71 : vector<1x128xf32> to vector<2x128xf32>
    %73 = arith.mulf %72, %63 : vector<2x128xf32>
    %74 = arith.addf %65, %73 : vector<2x128xf32>
    %75 = arith.mulf %62, %62 : vector<1x128xf32>
    %cst_42 = arith.constant 1.600000e+01 : f32
    %76 = vector.broadcast %cst_42 : f32 to vector<1x128xf32>
    %77 = arith.mulf %76, %75 : vector<1x128xf32>
    %78 = vector.broadcast %77 : vector<1x128xf32> to vector<2x128xf32>
    %79 = arith.addf %74, %78 : vector<2x128xf32>
    %c0_43 = arith.constant 0 : index
    %c0_44 = arith.constant 0 : index
    %80 = vector.load %arg13[%c0_43, %c0_44] : memref<128x8xf32, #tpu.memory_space<vmem>>, vector<128x8xf32>
    %cst_45 = arith.constant dense<0.000000e+00> : vector<2x8xf32>
    %81 = tpu.matmul %69, %80, %cst_45 {dimension_numbers = #tpu.dot_dimension_numbers<[1], [0], [0], [1], [0, 0, 1, 1], [], []>} : vector<2x128xf32>, vector<128x8xf32>, vector<2x8xf32> -> vector<2x8xf32>
    %c0_46 = arith.constant 0 : index
    %c0_47 = arith.constant 0 : index
    %82 = vector.load %arg13[%c0_46, %c0_47] : memref<128x8xf32, #tpu.memory_space<vmem>>, vector<128x8xf32>
    %cst_48 = arith.constant dense<0.000000e+00> : vector<2x8xf32>
    %83 = tpu.matmul %79, %82, %cst_48 {dimension_numbers = #tpu.dot_dimension_numbers<[1], [0], [0], [1], [0, 0, 1, 1], [], []>} : vector<2x128xf32>, vector<128x8xf32>, vector<2x8xf32> -> vector<2x8xf32>
    %cst_49 = arith.constant 2.560000e+02 : f32
    %84 = vector.broadcast %cst_49 : f32 to vector<2x8xf32>
    %85 = arith.divf %81, %84 : vector<2x8xf32>
    %cst_50 = arith.constant 2.560000e+02 : f32
    %86 = vector.broadcast %cst_50 : f32 to vector<2x8xf32>
    %87 = arith.divf %83, %86 : vector<2x8xf32>
    %88 = arith.mulf %85, %85 : vector<2x8xf32>
    %89 = arith.subf %87, %88 : vector<2x8xf32>
    %cst_51 = arith.constant 9.99999974E-6 : f32
    %90 = vector.broadcast %cst_51 : f32 to vector<2x8xf32>
    %91 = arith.addf %89, %90 : vector<2x8xf32>
    %92 = math.rsqrt %91 : vector<2x8xf32>
    %c0_52 = arith.constant 0 : index
    %c0_53 = arith.constant 0 : index
    %93 = vector.load %arg14[%c0_52, %c0_53] : memref<8x128xf32, #tpu.memory_space<vmem>>, vector<8x128xf32>
    %cst_54 = arith.constant dense<0.000000e+00> : vector<2x128xf32>
    %94 = tpu.matmul %85, %93, %cst_54 {dimension_numbers = #tpu.dot_dimension_numbers<[1], [0], [0], [1], [0, 0, 1, 1], [], []>} : vector<2x8xf32>, vector<8x128xf32>, vector<2x128xf32> -> vector<2x128xf32>
    %c0_55 = arith.constant 0 : index
    %c0_56 = arith.constant 0 : index
    %95 = vector.load %arg14[%c0_55, %c0_56] : memref<8x128xf32, #tpu.memory_space<vmem>>, vector<8x128xf32>
    %cst_57 = arith.constant dense<0.000000e+00> : vector<2x128xf32>
    %96 = tpu.matmul %92, %95, %cst_57 {dimension_numbers = #tpu.dot_dimension_numbers<[1], [0], [0], [1], [0, 0, 1, 1], [], []>} : vector<2x8xf32>, vector<8x128xf32>, vector<2x128xf32> -> vector<2x128xf32>
    %c0_58 = arith.constant 0 : index
    %c0_59 = arith.constant 0 : index
    %97 = vector.load %arg11[%c0_58, %c0_59] : memref<1x128xf32, #tpu.memory_space<vmem>>, vector<1x128xf32>
    %98 = vector.broadcast %97 : vector<1x128xf32> to vector<2x128xf32>
    %99 = arith.mulf %98, %96 : vector<2x128xf32>
    %c0_60 = arith.constant 0 : index
    %c0_61 = arith.constant 0 : index
    %100 = vector.load %arg12[%c0_60, %c0_61] : memref<1x128xf32, #tpu.memory_space<vmem>>, vector<1x128xf32>
    %101 = vector.broadcast %62 : vector<1x128xf32> to vector<2x128xf32>
    %102 = arith.subf %101, %94 : vector<2x128xf32>
    %103 = arith.mulf %99, %102 : vector<2x128xf32>
    %104 = vector.broadcast %100 : vector<1x128xf32> to vector<2x128xf32>
    %105 = arith.addf %104, %103 : vector<2x128xf32>
    %106 = vector.shape_cast %61 : vector<32x128xf32> to vector<2x16x128xf32>
    %107 = vector.shape_cast %99 : vector<2x128xf32> to vector<2x1x128xf32>
    %108 = vector.broadcast %107 : vector<2x1x128xf32> to vector<2x16x128xf32>
    %109 = arith.mulf %106, %108 : vector<2x16x128xf32>
    %110 = vector.shape_cast %105 : vector<2x128xf32> to vector<2x1x128xf32>
    %111 = vector.broadcast %110 : vector<2x1x128xf32> to vector<2x16x128xf32>
    %112 = arith.addf %109, %111 : vector<2x16x128xf32>
    %cst_62 = arith.constant 0.000000e+00 : f32
    %113 = vector.broadcast %cst_62 : f32 to vector<2x16x128xf32>
    %114 = arith.maximumf %112, %113 : vector<2x16x128xf32>
    %115 = vector.shape_cast %114 : vector<2x16x128xf32> to vector<32x128xf32>
    %116 = arith.truncf %115 : vector<32x128xf32> to vector<32x128xbf16>
    %c0_63 = arith.constant 0 : index
    %c0_64 = arith.constant 0 : index
    %117 = vector.load %arg15[%c0_63, %c0_64] : memref<128x1024xbf16, #tpu.memory_space<vmem>>, vector<128x1024xbf16>
    %cst_65 = arith.constant dense<0.000000e+00> : vector<32x1024xf32>
    %118 = tpu.matmul %116, %117, %cst_65 {dimension_numbers = #tpu.dot_dimension_numbers<[1], [0], [0], [1], [0, 0, 1, 1], [], []>} : vector<32x128xbf16>, vector<128x1024xbf16>, vector<32x1024xf32> -> vector<32x1024xf32>
    %c0_66 = arith.constant 0 : index
    %c0_67 = arith.constant 0 : index
    %119 = vector.load %arg16[%c0_66, %c0_67] : memref<1x1024xf32, #tpu.memory_space<vmem>>, vector<1x1024xf32>
    %cst_68 = arith.constant dense<0.000000e+00> : vector<2x1024xf32>
    %120 = tpu.matmul %1, %118, %cst_68 {dimension_numbers = #tpu.dot_dimension_numbers<[1], [0], [0], [1], [0, 0, 1, 1], [], []>} : vector<2x32xf32>, vector<32x1024xf32>, vector<2x1024xf32> -> vector<2x1024xf32>
    %121 = arith.mulf %118, %118 : vector<32x1024xf32>
    %cst_69 = arith.constant dense<0.000000e+00> : vector<2x1024xf32>
    %122 = tpu.matmul %1, %121, %cst_69 {dimension_numbers = #tpu.dot_dimension_numbers<[1], [0], [0], [1], [0, 0, 1, 1], [], []>} : vector<2x32xf32>, vector<32x1024xf32>, vector<2x1024xf32> -> vector<2x1024xf32>
    %cst_70 = arith.constant 1.600000e+01 : f32
    %123 = vector.broadcast %cst_70 : f32 to vector<1x1024xf32>
    %124 = arith.mulf %123, %119 : vector<1x1024xf32>
    %125 = vector.broadcast %124 : vector<1x1024xf32> to vector<2x1024xf32>
    %126 = arith.addf %120, %125 : vector<2x1024xf32>
    %cst_71 = arith.constant 2.000000e+00 : f32
    %127 = vector.broadcast %cst_71 : f32 to vector<1x1024xf32>
    %128 = arith.mulf %127, %119 : vector<1x1024xf32>
    %129 = vector.broadcast %128 : vector<1x1024xf32> to vector<2x1024xf32>
    %130 = arith.mulf %129, %120 : vector<2x1024xf32>
    %131 = arith.addf %122, %130 : vector<2x1024xf32>
    %132 = arith.mulf %119, %119 : vector<1x1024xf32>
    %cst_72 = arith.constant 1.600000e+01 : f32
    %133 = vector.broadcast %cst_72 : f32 to vector<1x1024xf32>
    %134 = arith.mulf %133, %132 : vector<1x1024xf32>
    %135 = vector.broadcast %134 : vector<1x1024xf32> to vector<2x1024xf32>
    %136 = arith.addf %131, %135 : vector<2x1024xf32>
    %c0_73 = arith.constant 0 : index
    %c0_74 = arith.constant 0 : index
    %137 = vector.load %arg19[%c0_73, %c0_74] : memref<1024x64xf32, #tpu.memory_space<vmem>>, vector<1024x64xf32>
    %cst_75 = arith.constant dense<0.000000e+00> : vector<2x64xf32>
    %138 = tpu.matmul %126, %137, %cst_75 {dimension_numbers = #tpu.dot_dimension_numbers<[1], [0], [0], [1], [0, 0, 1, 1], [], []>} : vector<2x1024xf32>, vector<1024x64xf32>, vector<2x64xf32> -> vector<2x64xf32>
    %c0_76 = arith.constant 0 : index
    %c0_77 = arith.constant 0 : index
    %139 = vector.load %arg19[%c0_76, %c0_77] : memref<1024x64xf32, #tpu.memory_space<vmem>>, vector<1024x64xf32>
    %cst_78 = arith.constant dense<0.000000e+00> : vector<2x64xf32>
    %140 = tpu.matmul %136, %139, %cst_78 {dimension_numbers = #tpu.dot_dimension_numbers<[1], [0], [0], [1], [0, 0, 1, 1], [], []>} : vector<2x1024xf32>, vector<1024x64xf32>, vector<2x64xf32> -> vector<2x64xf32>
    %cst_79 = arith.constant 2.560000e+02 : f32
    %141 = vector.broadcast %cst_79 : f32 to vector<2x64xf32>
    %142 = arith.divf %138, %141 : vector<2x64xf32>
    %cst_80 = arith.constant 2.560000e+02 : f32
    %143 = vector.broadcast %cst_80 : f32 to vector<2x64xf32>
    %144 = arith.divf %140, %143 : vector<2x64xf32>
    %145 = arith.mulf %142, %142 : vector<2x64xf32>
    %146 = arith.subf %144, %145 : vector<2x64xf32>
    %cst_81 = arith.constant 9.99999974E-6 : f32
    %147 = vector.broadcast %cst_81 : f32 to vector<2x64xf32>
    %148 = arith.addf %146, %147 : vector<2x64xf32>
    %149 = math.rsqrt %148 : vector<2x64xf32>
    %c0_82 = arith.constant 0 : index
    %c0_83 = arith.constant 0 : index
    %150 = vector.load %arg20[%c0_82, %c0_83] : memref<64x1024xf32, #tpu.memory_space<vmem>>, vector<64x1024xf32>
    %cst_84 = arith.constant dense<0.000000e+00> : vector<2x1024xf32>
    %151 = tpu.matmul %142, %150, %cst_84 {dimension_numbers = #tpu.dot_dimension_numbers<[1], [0], [0], [1], [0, 0, 1, 1], [], []>} : vector<2x64xf32>, vector<64x1024xf32>, vector<2x1024xf32> -> vector<2x1024xf32>
    %c0_85 = arith.constant 0 : index
    %c0_86 = arith.constant 0 : index
    %152 = vector.load %arg20[%c0_85, %c0_86] : memref<64x1024xf32, #tpu.memory_space<vmem>>, vector<64x1024xf32>
    %cst_87 = arith.constant dense<0.000000e+00> : vector<2x1024xf32>
    %153 = tpu.matmul %149, %152, %cst_87 {dimension_numbers = #tpu.dot_dimension_numbers<[1], [0], [0], [1], [0, 0, 1, 1], [], []>} : vector<2x64xf32>, vector<64x1024xf32>, vector<2x1024xf32> -> vector<2x1024xf32>
    %c0_88 = arith.constant 0 : index
    %c0_89 = arith.constant 0 : index
    %154 = vector.load %arg17[%c0_88, %c0_89] : memref<1x1024xf32, #tpu.memory_space<vmem>>, vector<1x1024xf32>
    %155 = vector.broadcast %154 : vector<1x1024xf32> to vector<2x1024xf32>
    %156 = arith.mulf %155, %153 : vector<2x1024xf32>
    %c0_90 = arith.constant 0 : index
    %c0_91 = arith.constant 0 : index
    %157 = vector.load %arg18[%c0_90, %c0_91] : memref<1x1024xf32, #tpu.memory_space<vmem>>, vector<1x1024xf32>
    %158 = vector.broadcast %119 : vector<1x1024xf32> to vector<2x1024xf32>
    %159 = arith.subf %158, %151 : vector<2x1024xf32>
    %160 = arith.mulf %156, %159 : vector<2x1024xf32>
    %161 = vector.broadcast %157 : vector<1x1024xf32> to vector<2x1024xf32>
    %162 = arith.addf %161, %160 : vector<2x1024xf32>
    %163 = vector.shape_cast %118 : vector<32x1024xf32> to vector<2x16x1024xf32>
    %cst_92 = arith.constant dense<0xFF800000> : vector<2x1024xf32>
    %164 = vector.multi_reduction <maximumf>, %163, %cst_92 [1] : vector<2x16x1024xf32> to vector<2x1024xf32>
    %cst_93 = arith.constant dense<0x7F800000> : vector<2x1024xf32>
    %165 = vector.multi_reduction <minimumf>, %163, %cst_93 [1] : vector<2x16x1024xf32> to vector<2x1024xf32>
    %cst_94 = arith.constant 0.000000e+00 : f32
    %166 = vector.broadcast %cst_94 : f32 to vector<2x1024xf32>
    %167 = arith.cmpf oge, %156, %166 : vector<2x1024xf32>
    %168 = arith.mulf %156, %164 : vector<2x1024xf32>
    %169 = arith.mulf %156, %165 : vector<2x1024xf32>
    %170 = arith.select %167, %168, %169 : vector<2x1024xi1>, vector<2x1024xf32>
    %171 = arith.addf %170, %162 : vector<2x1024xf32>
    %cst_95 = arith.constant 0.000000e+00 : f32
    %172 = vector.broadcast %cst_95 : f32 to vector<2x1024xf32>
    %173 = arith.maximumf %171, %172 : vector<2x1024xf32>
    %174 = arith.truncf %173 : vector<2x1024xf32> to vector<2x1024xbf16>
    %c0_96 = arith.constant 0 : index
    %c0_97 = arith.constant 0 : index
    %175 = vector.load %arg21[%c0_96, %c0_97] : memref<1024x512xbf16, #tpu.memory_space<vmem>>, vector<1024x512xbf16>
    %cst_98 = arith.constant dense<0.000000e+00> : vector<2x512xf32>
    %176 = tpu.matmul %174, %175, %cst_98 {dimension_numbers = #tpu.dot_dimension_numbers<[1], [0], [0], [1], [0, 0, 1, 1], [], []>} : vector<2x1024xbf16>, vector<1024x512xbf16>, vector<2x512xf32> -> vector<2x512xf32>
    %c0_99 = arith.constant 0 : index
    %c0_100 = arith.constant 0 : index
    %177 = vector.load %arg22[%c0_99, %c0_100] : memref<1x512xf32, #tpu.memory_space<vmem>>, vector<1x512xf32>
    %178 = vector.broadcast %177 : vector<1x512xf32> to vector<2x512xf32>
    %179 = arith.addf %176, %178 : vector<2x512xf32>
    %c0_101 = arith.constant 0 : index
    %c0_102 = arith.constant 0 : index
    %180 = vector.load %arg25[%c0_101, %c0_102] : memref<512x32xf32, #tpu.memory_space<vmem>>, vector<512x32xf32>
    %c0_103 = arith.constant 0 : index
    %c0_104 = arith.constant 0 : index
    %181 = vector.load %arg26[%c0_103, %c0_104] : memref<32x512xf32, #tpu.memory_space<vmem>>, vector<32x512xf32>
    %c0_105 = arith.constant 0 : index
    %c0_106 = arith.constant 0 : index
    %182 = vector.load %arg23[%c0_105, %c0_106] : memref<1x512xf32, #tpu.memory_space<vmem>>, vector<1x512xf32>
    %c0_107 = arith.constant 0 : index
    %c0_108 = arith.constant 0 : index
    %183 = vector.load %arg24[%c0_107, %c0_108] : memref<1x512xf32, #tpu.memory_space<vmem>>, vector<1x512xf32>
    %cst_109 = arith.constant dense<0.000000e+00> : vector<2x32xf32>
    %184 = tpu.matmul %179, %180, %cst_109 {dimension_numbers = #tpu.dot_dimension_numbers<[1], [0], [0], [1], [0, 0, 1, 1], [], []>} : vector<2x512xf32>, vector<512x32xf32>, vector<2x32xf32> -> vector<2x32xf32>
    %185 = arith.mulf %179, %179 : vector<2x512xf32>
    %cst_110 = arith.constant dense<0.000000e+00> : vector<2x32xf32>
    %186 = tpu.matmul %185, %180, %cst_110 {dimension_numbers = #tpu.dot_dimension_numbers<[1], [0], [0], [1], [0, 0, 1, 1], [], []>} : vector<2x512xf32>, vector<512x32xf32>, vector<2x32xf32> -> vector<2x32xf32>
    %cst_111 = arith.constant 1.600000e+01 : f32
    %187 = vector.broadcast %cst_111 : f32 to vector<2x32xf32>
    %188 = arith.divf %184, %187 : vector<2x32xf32>
    %cst_112 = arith.constant 1.600000e+01 : f32
    %189 = vector.broadcast %cst_112 : f32 to vector<2x32xf32>
    %190 = arith.divf %186, %189 : vector<2x32xf32>
    %191 = arith.mulf %188, %188 : vector<2x32xf32>
    %192 = arith.subf %190, %191 : vector<2x32xf32>
    %cst_113 = arith.constant 9.99999974E-6 : f32
    %193 = vector.broadcast %cst_113 : f32 to vector<2x32xf32>
    %194 = arith.addf %192, %193 : vector<2x32xf32>
    %195 = math.rsqrt %194 : vector<2x32xf32>
    %cst_114 = arith.constant dense<0.000000e+00> : vector<2x512xf32>
    %196 = tpu.matmul %188, %181, %cst_114 {dimension_numbers = #tpu.dot_dimension_numbers<[1], [0], [0], [1], [0, 0, 1, 1], [], []>} : vector<2x32xf32>, vector<32x512xf32>, vector<2x512xf32> -> vector<2x512xf32>
    %cst_115 = arith.constant dense<0.000000e+00> : vector<2x512xf32>
    %197 = tpu.matmul %195, %181, %cst_115 {dimension_numbers = #tpu.dot_dimension_numbers<[1], [0], [0], [1], [0, 0, 1, 1], [], []>} : vector<2x32xf32>, vector<32x512xf32>, vector<2x512xf32> -> vector<2x512xf32>
    %198 = vector.broadcast %182 : vector<1x512xf32> to vector<2x512xf32>
    %199 = arith.mulf %198, %197 : vector<2x512xf32>
    %200 = arith.mulf %196, %199 : vector<2x512xf32>
    %201 = vector.broadcast %183 : vector<1x512xf32> to vector<2x512xf32>
    %202 = arith.subf %201, %200 : vector<2x512xf32>
    %203 = arith.mulf %179, %199 : vector<2x512xf32>
    %204 = arith.addf %203, %202 : vector<2x512xf32>
    %cst_116 = arith.constant 0.000000e+00 : f32
    %205 = vector.broadcast %cst_116 : f32 to vector<2x512xf32>
    %206 = arith.maximumf %204, %205 : vector<2x512xf32>
    %207 = arith.truncf %206 : vector<2x512xf32> to vector<2x512xbf16>
    %c0_117 = arith.constant 0 : index
    %c0_118 = arith.constant 0 : index
    %208 = vector.load %arg27[%c0_117, %c0_118] : memref<512x256xbf16, #tpu.memory_space<vmem>>, vector<512x256xbf16>
    %cst_119 = arith.constant dense<0.000000e+00> : vector<2x256xf32>
    %209 = tpu.matmul %207, %208, %cst_119 {dimension_numbers = #tpu.dot_dimension_numbers<[1], [0], [0], [1], [0, 0, 1, 1], [], []>} : vector<2x512xbf16>, vector<512x256xbf16>, vector<2x256xf32> -> vector<2x256xf32>
    %c0_120 = arith.constant 0 : index
    %c0_121 = arith.constant 0 : index
    %210 = vector.load %arg28[%c0_120, %c0_121] : memref<1x256xf32, #tpu.memory_space<vmem>>, vector<1x256xf32>
    %211 = vector.broadcast %210 : vector<1x256xf32> to vector<2x256xf32>
    %212 = arith.addf %209, %211 : vector<2x256xf32>
    %c0_122 = arith.constant 0 : index
    %c0_123 = arith.constant 0 : index
    %213 = vector.load %arg31[%c0_122, %c0_123] : memref<256x16xf32, #tpu.memory_space<vmem>>, vector<256x16xf32>
    %c0_124 = arith.constant 0 : index
    %c0_125 = arith.constant 0 : index
    %214 = vector.load %arg32[%c0_124, %c0_125] : memref<16x256xf32, #tpu.memory_space<vmem>>, vector<16x256xf32>
    %c0_126 = arith.constant 0 : index
    %c0_127 = arith.constant 0 : index
    %215 = vector.load %arg29[%c0_126, %c0_127] : memref<1x256xf32, #tpu.memory_space<vmem>>, vector<1x256xf32>
    %c0_128 = arith.constant 0 : index
    %c0_129 = arith.constant 0 : index
    %216 = vector.load %arg30[%c0_128, %c0_129] : memref<1x256xf32, #tpu.memory_space<vmem>>, vector<1x256xf32>
    %cst_130 = arith.constant dense<0.000000e+00> : vector<2x16xf32>
    %217 = tpu.matmul %212, %213, %cst_130 {dimension_numbers = #tpu.dot_dimension_numbers<[1], [0], [0], [1], [0, 0, 1, 1], [], []>} : vector<2x256xf32>, vector<256x16xf32>, vector<2x16xf32> -> vector<2x16xf32>
    %218 = arith.mulf %212, %212 : vector<2x256xf32>
    %cst_131 = arith.constant dense<0.000000e+00> : vector<2x16xf32>
    %219 = tpu.matmul %218, %213, %cst_131 {dimension_numbers = #tpu.dot_dimension_numbers<[1], [0], [0], [1], [0, 0, 1, 1], [], []>} : vector<2x256xf32>, vector<256x16xf32>, vector<2x16xf32> -> vector<2x16xf32>
    %cst_132 = arith.constant 1.600000e+01 : f32
    %220 = vector.broadcast %cst_132 : f32 to vector<2x16xf32>
    %221 = arith.divf %217, %220 : vector<2x16xf32>
    %cst_133 = arith.constant 1.600000e+01 : f32
    %222 = vector.broadcast %cst_133 : f32 to vector<2x16xf32>
    %223 = arith.divf %219, %222 : vector<2x16xf32>
    %224 = arith.mulf %221, %221 : vector<2x16xf32>
    %225 = arith.subf %223, %224 : vector<2x16xf32>
    %cst_134 = arith.constant 9.99999974E-6 : f32
    %226 = vector.broadcast %cst_134 : f32 to vector<2x16xf32>
    %227 = arith.addf %225, %226 : vector<2x16xf32>
    %228 = math.rsqrt %227 : vector<2x16xf32>
    %cst_135 = arith.constant dense<0.000000e+00> : vector<2x256xf32>
    %229 = tpu.matmul %221, %214, %cst_135 {dimension_numbers = #tpu.dot_dimension_numbers<[1], [0], [0], [1], [0, 0, 1, 1], [], []>} : vector<2x16xf32>, vector<16x256xf32>, vector<2x256xf32> -> vector<2x256xf32>
    %cst_136 = arith.constant dense<0.000000e+00> : vector<2x256xf32>
    %230 = tpu.matmul %228, %214, %cst_136 {dimension_numbers = #tpu.dot_dimension_numbers<[1], [0], [0], [1], [0, 0, 1, 1], [], []>} : vector<2x16xf32>, vector<16x256xf32>, vector<2x256xf32> -> vector<2x256xf32>
    %231 = vector.broadcast %215 : vector<1x256xf32> to vector<2x256xf32>
    %232 = arith.mulf %231, %230 : vector<2x256xf32>
    %233 = arith.mulf %229, %232 : vector<2x256xf32>
    %234 = vector.broadcast %216 : vector<1x256xf32> to vector<2x256xf32>
    %235 = arith.subf %234, %233 : vector<2x256xf32>
    %236 = arith.mulf %212, %232 : vector<2x256xf32>
    %237 = arith.addf %236, %235 : vector<2x256xf32>
    %cst_137 = arith.constant 0.000000e+00 : f32
    %238 = vector.broadcast %cst_137 : f32 to vector<2x256xf32>
    %239 = arith.maximumf %237, %238 : vector<2x256xf32>
    %240 = arith.truncf %239 : vector<2x256xf32> to vector<2x256xbf16>
    %c0_138 = arith.constant 0 : index
    %c0_139 = arith.constant 0 : index
    %241 = vector.load %arg33[%c0_138, %c0_139] : memref<256x128xbf16, #tpu.memory_space<vmem>>, vector<256x128xbf16>
    %cst_140 = arith.constant dense<0.000000e+00> : vector<2x128xf32>
    %242 = tpu.matmul %240, %241, %cst_140 {dimension_numbers = #tpu.dot_dimension_numbers<[1], [0], [0], [1], [0, 0, 1, 1], [], []>} : vector<2x256xbf16>, vector<256x128xbf16>, vector<2x128xf32> -> vector<2x128xf32>
    %c0_141 = arith.constant 0 : index
    %c0_142 = arith.constant 0 : index
    %243 = vector.load %arg34[%c0_141, %c0_142] : memref<1x128xf32, #tpu.memory_space<vmem>>, vector<1x128xf32>
    %244 = vector.broadcast %243 : vector<1x128xf32> to vector<2x128xf32>
    %245 = arith.addf %242, %244 : vector<2x128xf32>
    %c0_143 = arith.constant 0 : index
    %c0_144 = arith.constant 0 : index
    %246 = vector.load %arg35[%c0_143, %c0_144] : memref<2x128xf32, #tpu.memory_space<vmem>>, vector<2x128xf32>
    tpu.vector_store %arg35[%c0_143, %c0_144], %245 {strides = array<i32>} : memref<2x128xf32, #tpu.memory_space<vmem>>, vector<2x128xf32>,
    return
  }
  func.func @transform_0(%arg0: i32) -> (i32, i32, i32) {
    %c0_i32 = arith.constant 0 : i32
    %c0_i32_0 = arith.constant 0 : i32
    %c0_i32_1 = arith.constant 0 : i32
    return %arg0, %c0_i32, %c0_i32_0 : i32, i32, i32
  }
  func.func @transform_1(%arg0: i32) -> (i32, i32) {
    %c0_i32 = arith.constant 0 : i32
    %c0_i32_0 = arith.constant 0 : i32
    %c0_i32_1 = arith.constant 0 : i32
    return %c0_i32, %c0_i32_0 : i32, i32
  }
  func.func @transform_2(%arg0: i32) -> (i32, i32) {
    %c0_i32 = arith.constant 0 : i32
    %c0_i32_0 = arith.constant 0 : i32
    %c0_i32_1 = arith.constant 0 : i32
    return %c0_i32, %c0_i32_0 : i32, i32
  }
  func.func @transform_3(%arg0: i32) -> (i32, i32) {
    %c0_i32 = arith.constant 0 : i32
    %c0_i32_0 = arith.constant 0 : i32
    %c0_i32_1 = arith.constant 0 : i32
    return %c0_i32, %c0_i32_0 : i32, i32
  }
  func.func @transform_4(%arg0: i32) -> (i32, i32) {
    %c0_i32 = arith.constant 0 : i32
    %c0_i32_0 = arith.constant 0 : i32
    %c0_i32_1 = arith.constant 0 : i32
    return %c0_i32, %c0_i32_0 : i32, i32
  }
  func.func @transform_5(%arg0: i32) -> (i32, i32) {
    %c0_i32 = arith.constant 0 : i32
    %c0_i32_0 = arith.constant 0 : i32
    %c0_i32_1 = arith.constant 0 : i32
    return %c0_i32, %c0_i32_0 : i32, i32
  }
  func.func @transform_6(%arg0: i32) -> (i32, i32) {
    %c0_i32 = arith.constant 0 : i32
    %c0_i32_0 = arith.constant 0 : i32
    %c0_i32_1 = arith.constant 0 : i32
    return %c0_i32, %c0_i32_0 : i32, i32
  }
  func.func @transform_7(%arg0: i32) -> (i32, i32) {
    %c0_i32 = arith.constant 0 : i32
    %c0_i32_0 = arith.constant 0 : i32
    %c0_i32_1 = arith.constant 0 : i32
    return %c0_i32, %c0_i32_0 : i32, i32
  }
  func.func @transform_8(%arg0: i32) -> (i32, i32) {
    %c0_i32 = arith.constant 0 : i32
    %c0_i32_0 = arith.constant 0 : i32
    %c0_i32_1 = arith.constant 0 : i32
    return %c0_i32, %c0_i32_0 : i32, i32
  }
  func.func @transform_9(%arg0: i32) -> (i32, i32) {
    %c0_i32 = arith.constant 0 : i32
    %c0_i32_0 = arith.constant 0 : i32
    %c0_i32_1 = arith.constant 0 : i32
    return %c0_i32, %c0_i32_0 : i32, i32
  }
  func.func @transform_10(%arg0: i32) -> (i32, i32) {
    %c0_i32 = arith.constant 0 : i32
    %c0_i32_0 = arith.constant 0 : i32
    %c0_i32_1 = arith.constant 0 : i32
    return %c0_i32, %c0_i32_0 : i32, i32
  }
  func.func @transform_11(%arg0: i32) -> (i32, i32) {
    %c0_i32 = arith.constant 0 : i32
    %c0_i32_0 = arith.constant 0 : i32
    %c0_i32_1 = arith.constant 0 : i32
    return %c0_i32, %c0_i32_0 : i32, i32
  }
  func.func @transform_12(%arg0: i32) -> (i32, i32) {
    %c0_i32 = arith.constant 0 : i32
    %c0_i32_0 = arith.constant 0 : i32
    %c0_i32_1 = arith.constant 0 : i32
    return %c0_i32, %c0_i32_0 : i32, i32
  }
  func.func @transform_13(%arg0: i32) -> (i32, i32) {
    %c0_i32 = arith.constant 0 : i32
    %c0_i32_0 = arith.constant 0 : i32
    %c0_i32_1 = arith.constant 0 : i32
    return %c0_i32, %c0_i32_0 : i32, i32
  }
  func.func @transform_14(%arg0: i32) -> (i32, i32) {
    %c0_i32 = arith.constant 0 : i32
    %c0_i32_0 = arith.constant 0 : i32
    %c0_i32_1 = arith.constant 0 : i32
    return %c0_i32, %c0_i32_0 : i32, i32
  }
  func.func @transform_15(%arg0: i32) -> (i32, i32) {
    %c0_i32 = arith.constant 0 : i32
    %c0_i32_0 = arith.constant 0 : i32
    %c0_i32_1 = arith.constant 0 : i32
    return %c0_i32, %c0_i32_0 : i32, i32
  }
  func.func @transform_16(%arg0: i32) -> (i32, i32) {
    %c0_i32 = arith.constant 0 : i32
    %c0_i32_0 = arith.constant 0 : i32
    %c0_i32_1 = arith.constant 0 : i32
    return %c0_i32, %c0_i32_0 : i32, i32
  }
  func.func @transform_17(%arg0: i32) -> (i32, i32) {
    %c0_i32 = arith.constant 0 : i32
    %c0_i32_0 = arith.constant 0 : i32
    %c0_i32_1 = arith.constant 0 : i32
    return %c0_i32, %c0_i32_0 : i32, i32
  }
  func.func @transform_18(%arg0: i32) -> (i32, i32) {
    %c0_i32 = arith.constant 0 : i32
    %c0_i32_0 = arith.constant 0 : i32
    %c0_i32_1 = arith.constant 0 : i32
    return %c0_i32, %c0_i32_0 : i32, i32
  }
  func.func @transform_19(%arg0: i32) -> (i32, i32) {
    %c0_i32 = arith.constant 0 : i32
    %c0_i32_0 = arith.constant 0 : i32
    %c0_i32_1 = arith.constant 0 : i32
    return %c0_i32, %c0_i32_0 : i32, i32
  }
  func.func @transform_20(%arg0: i32) -> (i32, i32) {
    %c0_i32 = arith.constant 0 : i32
    %c0_i32_0 = arith.constant 0 : i32
    %c0_i32_1 = arith.constant 0 : i32
    return %c0_i32, %c0_i32_0 : i32, i32
  }
  func.func @transform_21(%arg0: i32) -> (i32, i32) {
    %c0_i32 = arith.constant 0 : i32
    %c0_i32_0 = arith.constant 0 : i32
    %c0_i32_1 = arith.constant 0 : i32
    return %c0_i32, %c0_i32_0 : i32, i32
  }
  func.func @transform_22(%arg0: i32) -> (i32, i32) {
    %c0_i32 = arith.constant 0 : i32
    %c0_i32_0 = arith.constant 0 : i32
    %c0_i32_1 = arith.constant 0 : i32
    return %c0_i32, %c0_i32_0 : i32, i32
  }
  func.func @transform_23(%arg0: i32) -> (i32, i32) {
    %c0_i32 = arith.constant 0 : i32
    %c0_i32_0 = arith.constant 0 : i32
    %c0_i32_1 = arith.constant 0 : i32
    return %c0_i32, %c0_i32_0 : i32, i32
  }
  func.func @transform_24(%arg0: i32) -> (i32, i32) {
    %c0_i32 = arith.constant 0 : i32
    %c0_i32_0 = arith.constant 0 : i32
    %c0_i32_1 = arith.constant 0 : i32
    return %c0_i32, %c0_i32_0 : i32, i32
  }
  func.func @transform_25(%arg0: i32) -> (i32, i32) {
    %c0_i32 = arith.constant 0 : i32
    %c0_i32_0 = arith.constant 0 : i32
    %c0_i32_1 = arith.constant 0 : i32
    return %c0_i32, %c0_i32_0 : i32, i32
  }
  func.func @transform_26(%arg0: i32) -> (i32, i32) {
    %c0_i32 = arith.constant 0 : i32
    %c0_i32_0 = arith.constant 0 : i32
    %c0_i32_1 = arith.constant 0 : i32
    return %c0_i32, %c0_i32_0 : i32, i32
  }
  func.func @transform_27(%arg0: i32) -> (i32, i32) {
    %c0_i32 = arith.constant 0 : i32
    %c0_i32_0 = arith.constant 0 : i32
    %c0_i32_1 = arith.constant 0 : i32
    return %c0_i32, %c0_i32_0 : i32, i32
  }
  func.func @transform_28(%arg0: i32) -> (i32, i32) {
    %c0_i32 = arith.constant 0 : i32
    %c0_i32_0 = arith.constant 0 : i32
    %c0_i32_1 = arith.constant 0 : i32
    return %c0_i32, %c0_i32_0 : i32, i32
  }
  func.func @transform_29(%arg0: i32) -> (i32, i32) {
    %c0_i32 = arith.constant 0 : i32
    %c0_i32_0 = arith.constant 0 : i32
    %c0_i32_1 = arith.constant 0 : i32
    return %c0_i32, %c0_i32_0 : i32, i32
  }
  func.func @transform_30(%arg0: i32) -> (i32, i32) {
    %c0_i32 = arith.constant 0 : i32
    %c0_i32_0 = arith.constant 0 : i32
    %c0_i32_1 = arith.constant 0 : i32
    return %c0_i32, %c0_i32_0 : i32, i32
  }
  func.func @transform_31(%arg0: i32) -> (i32, i32) {
    %c0_i32 = arith.constant 0 : i32
    %c0_i32_0 = arith.constant 0 : i32
    %c0_i32_1 = arith.constant 0 : i32
    return %c0_i32, %c0_i32_0 : i32, i32
  }
  func.func @transform_32(%arg0: i32) -> (i32, i32) {
    %c0_i32 = arith.constant 0 : i32
    %c0_i32_0 = arith.constant 0 : i32
    %c0_i32_1 = arith.constant 0 : i32
    return %c0_i32, %c0_i32_0 : i32, i32
  }
  func.func @transform_33(%arg0: i32) -> (i32, i32) {
    %c0_i32 = arith.constant 0 : i32
    %c0_i32_0 = arith.constant 0 : i32
    %c0_i32_1 = arith.constant 0 : i32
    return %c0_i32, %c0_i32_0 : i32, i32
  }
  func.func @transform_34(%arg0: i32) -> (i32, i32) {
    %c0_i32 = arith.constant 0 : i32
    %c0_i32_0 = arith.constant 0 : i32
    return %arg0, %c0_i32 : i32, i32
  }
}

</mosaic_0001>

<bundles_post_ra>
// kernel: tpu_custom_call.1
= control target key start
LH: loop header
LB: loop body
LE: loop exit
PB: predicated region body
PF: predicated region fallthrough
CT: control target
= control target key end

     0   :  { %s12249_s6 = smov 1   ;;  %s12250_s10 = smov 2   ;;  %s14243_s0 = inlined_call_operand.smem [shape: u32[35], index: -1, kind: input, shape index: {}] }
   0x1   :  { %s12340_s5 = sld [smem:[%s14243_s0]]   ;;  %s12251_s14 = smov 3  }
   0x2   :  { %s12345_s9 = sld [smem:[%s14243_s0 + %s12249_s6]]   ;;  %s12252_s18 = smov 4  }
   0x3   :  { %s12350_s13 = sld [smem:[%s14243_s0 + %s12250_s10]]   ;;  %s12253_s22 = smov 5  }
   0x4   :  { %s12355_s17 = sld [smem:[%s14243_s0 + %s12251_s14]]   ;;  %s12254_s26 = smov 6  }
   0x5   :  { %s12360_s21 = sld [smem:[%s14243_s0 + %s12252_s18]]   ;;  %s12255_s30 = smov 7  }
   0x6   :  { %s12365_s25 = sld [smem:[%s14243_s0 + %s12253_s22]]   ;;  %s12256_s4 = smov 8  }
   0x7   :  { %14302 = sst [smem:[#allocation75_spill]] %s12340_s5  ;;  %s12257_s10 = smov 9  }
   0x8   :  { %s12370_s29 = sld [smem:[%s14243_s0 + %s12254_s26]]   ;;  %s12258_s15 = smov 10  }
   0x9   :  { %14303 = sst [smem:[#allocation76_spill]] %s12350_s13  ;;  %s12259_s20 = smov 11  }
   0xa   :  { %s12375_s3 = sld [smem:[%s14243_s0 + %s12255_s30]]   ;;  %s12260_s26 = smov 12  }
   0xb   :  { %14304 = sst [smem:[#allocation77_spill]] %s12360_s21  ;;  %s12261_s1 = smov 13  }
   0xc   :  { %s12380_s8 = sld [smem:[%s14243_s0 + %s12256_s4]]   ;;  %s12262_s7 = smov 14  }
   0xd   :  { %s12385_s14 = sld [smem:[%s14243_s0 + %s12257_s10]]   ;;  %s12264_s22 = smov 16  }
   0xe   :  { %14305 = sst [smem:[#allocation78_spill]] %s12370_s29  ;;  %s12265_s28 = smov 17  }
   0xf   :  { %s12390_s19 = sld [smem:[%s14243_s0 + %s12258_s15]]   ;;  %s12263_s15 = smov 15  }
  0x10   :  { %s12395_s24 = sld [smem:[%s14243_s0 + %s12259_s20]]  }
  0x11   :  { %s12400_s30 = sld [smem:[%s14243_s0 + %s12260_s26]]  }
  0x12   :  { %14306 = sst [smem:[#allocation79_spill]] %s12380_s8 }
  0x13   :  { %s12405_s6 = sld [smem:[%s14243_s0 + %s12261_s1]]  }
  0x14   :  { %s12410_s12 = sld [smem:[%s14243_s0 + %s12262_s7]]   ;;  %s12266_s7 = smov 18  }
  0x15   :  { %14307 = sst [smem:[#allocation80_spill]] %s12390_s19 }
  0x16   :  { %s12415_s20 = sld [smem:[%s14243_s0 + %s12263_s15]]   ;;  %s12267_s15 = smov 19  }
  0x17   :  { %14308 = sst [smem:[#allocation81_spill]] %s12400_s30 }
  0x18   :  { %s12420_s27 = sld [smem:[%s14243_s0 + %s12264_s22]]   ;;  %s12268_s22 = smov 20  }
  0x19   :  { %s12425_s4 = sld [smem:[%s14243_s0 + %s12265_s28]]   ;;  %s12269_s28 = smov 21  }
  0x1a   :  { %14309 = sst [smem:[#allocation82_spill]] %s12410_s12 }
  0x1b   :  { %s12430_s12 = sld [smem:[%s14243_s0 + %s12266_s7]]   ;;  %s12270_s7 = smov 22  }
  0x1c   :  { %s12435_s30 = sld [smem:[%s14243_s0 + %s12267_s15]]   ;;  %s12271_s15 = smov 23  }
  0x1d   :  { %s12445_s19 = sld [smem:[%s14243_s0 + %s12269_s28]]   ;;  %s12273_s28 = smov 25  }
  0x1e   :  { %14310 = sst [smem:[#allocation83_spill]] %s12420_s27 }
  0x1f   :  { %s12440_s27 = sld [smem:[%s14243_s0 + %s12268_s22]]   ;;  %s12272_s22 = smov 24  }
  0x20   :  { %s12455_s8 = sld [smem:[%s14243_s0 + %s12271_s15]]   ;;  %s12275_s15 = smov 27  }
  0x21   :  { %14311 = sst [smem:[#allocation84_spill]] %s12430_s12 }
  0x22   :  { %s12450_s12 = sld [smem:[%s14243_s0 + %s12270_s7]]   ;;  %s12274_s7 = smov 26  }
  0x23   :  { %s12465_s29 = sld [smem:[%s14243_s0 + %s12273_s28]]   ;;  %s12277_s28 = smov 29  }
  0x24   :  { %s12475_s21 = sld [smem:[%s14243_s0 + %s12275_s15]]   ;;  %s12279_s15 = smov 31  }
  0x25   :  { %14312 = sst [smem:[#allocation85_spill]] %s12440_s27 }
  0x26   :  { %s12460_s27 = sld [smem:[%s14243_s0 + %s12272_s22]]   ;;  %s12276_s22 = smov 28  }
  0x27   :  { %s12485_s13 = sld [smem:[%s14243_s0 + %s12277_s28]]   ;;  %s12281_s28 = smov 33  }
  0x28   :  { %14313 = sst [smem:[#allocation86_spill]] %s12450_s12 }
  0x29   :  { %s12470_s12 = sld [smem:[%s14243_s0 + %s12274_s7]]   ;;  %s12278_s7 = smov 30  }
  0x2a   :  { %s12495_s5 = sld [smem:[%s14243_s0 + %s12279_s15]]  }
  0x2c   :  { %14314 = sst [smem:[#allocation87_spill]] %s12460_s27 }
  0x2d   :  { %s12480_s27 = sld [smem:[%s14243_s0 + %s12276_s22]]   ;;  %s12280_s22 = smov 32  }
  0x2e   :  { %14317 = sst [smem:[#allocation90_spill]] %s12485_s13 }
  0x2f   :  { %14315 = sst [smem:[#allocation88_spill]] %s12470_s12 }
  0x30   :  { %s12490_s12 = sld [smem:[%s14243_s0 + %s12278_s7]]   ;;  %s12282_s7 = smov 34  }
  0x31   :  { %s12505_s13 = sld [smem:[%s14243_s0 + %s12281_s28]]  }
  0x33   :  { %14316 = sst [smem:[#allocation89_spill]] %s12480_s27 }
  0x34   :  { %s12500_s27 = sld [smem:[%s14243_s0 + %s12280_s22]]  }
  0x36   :  { %14318 = sst [smem:[#allocation91_spill]] %s12490_s12 }
  0x37   :  { %s12510_s12 = sld [smem:[%s14243_s0 + %s12282_s7]]  }
  0x38   :  { %74 = vsyncpa [#allocation3], 0 }
  0x39   :  { %75 = vsyncpa [#allocation6], 0 }
  0x3a   :  { %76 = vsyncpa [#allocation9], 0 }
  0x3b   :  { %77 = vsyncpa [#allocation12], 0 }
  0x3c   :  { %78 = vsyncpa [#allocation15], 0 }
  0x3d   :  { %79 = vsyncpa [#allocation18], 0 }
  0x3e   :  { %80 = vsyncpa [#allocation21], 0 }
  0x3f   :  { %81 = vsyncpa [#allocation24], 0 }
  0x40   :  { %82 = vsyncpa [#allocation27], 0 }
  0x41   :  { %83 = vsyncpa [#allocation30], 0 }
  0x42   :  { %84 = vsyncpa [#allocation33], 0 }
  0x43   :  { %85 = vsyncpa [#allocation36], 0 }
  0x44   :  { %86 = vsyncpa [#allocation39], 0 }
  0x45   :  { %87 = vsyncpa [#allocation42], 0 }
  0x46   :  { %88 = vsyncpa [#allocation45], 0 }
  0x47   :  { %89 = vsyncpa [#allocation48], 0 }
  0x48   :  { %90 = vsyncpa [#allocation51], 0 }
  0x49   :  { %91 = vsyncpa [#allocation54], 0 }
  0x4a   :  { %92 = vsyncpa [#allocation4], 0  ;;  %s12283_s0 = smov [#allocation5]   ;;  %s12284_s16 = smov [#allocation8]  }
  0x4b   :  { %s111_s15 = sshll.u32 %s12283_s0, 4  ;;  %s131_s18 = sshll.u32 %s12284_s16, 4  ;;  %s112_s15 = int_to_ptr.vmem [resolvable:$true] %s111_s15  ;;  %s132_s18 = int_to_ptr.vmem [resolvable:$true] %s131_s18 }
  0x4c   :  { %s11441_s22 = scalar_lea.hbm %s12345_s9, 32 }
  0x4d   :  { %p11442_p0 = scmp.ne.s32.totalorder %s12345_s9, %s11441_s22  ;;  %p11445_p1 = scmp.lt.u32.totalorder %s11441_s22, %s12345_s9 }
  0x4f   :  { %p11447_p2 = pnand %p11445_p1, %p11442_p0 }
  0x51   :  { %11450 = shalt.err (!%p11447_p2)
}
  0x52   :  { %s11451_s23 = scalar_lea.vmem %s112_s15, 32  ;;  %p11456_p4 = scmp.lt.s32.totalorder %s112_s15, %s112_s15 }
  0x53   :  { %p11452_p3 = scmp.ne.s32.totalorder %s112_s15, %s11451_s23  ;;  %p11457_p5 = scmp.lt.s32.totalorder %s11451_s23, %s11451_s23 }
  0x55   :  { %p11458_p6 = por %p11457_p5, %p11456_p4 }
  0x57   :  { %p11459_p7 = pnand %p11458_p6, %p11452_p3 }
  0x59   :  { %11462 = shalt.err (!%p11459_p7)
}
  0x5a   :  { %114 = dma.hbm_to_vmem [thread:$0]  %s12345_s9, 32, %s112_s15, [#allocation6]  }
  0x5b   :  { %s11463_s26 = scalar_lea.hbm %s12355_s17, 16 }
  0x5c   :  { %p11464_p8 = scmp.ne.s32.totalorder %s12355_s17, %s11463_s26  ;;  %p11467_p9 = scmp.lt.u32.totalorder %s11463_s26, %s12355_s17 }
  0x5e   :  { %p11469_p10 = pnand %p11467_p9, %p11464_p8 }
  0x60   :  { %11472 = shalt.err (!%p11469_p10)
}
  0x61   :  { %s11473_s28 = scalar_lea.vmem %s132_s18, 16  ;;  %s11477_s1 = scalar_lea.vmem %s132_s18, 32 }
  0x62   :  { %p11474_p11 = scmp.ne.s32.totalorder %s132_s18, %s11473_s28  ;;  %p11478_p12 = scmp.lt.s32.totalorder %s132_s18, %s132_s18 }
  0x63   :  { %p11479_p13 = scmp.lt.s32.totalorder %s11477_s1, %s11473_s28 }
  0x65   :  { %p11480_p0 = por %p11479_p13, %p11478_p12 }
  0x67   :  { %p11481_p1 = pnand %p11480_p0, %p11474_p11 }
  0x69   :  { %11484 = shalt.err (!%p11481_p1)
}
  0x6a   :  { %134 = dma.hbm_to_vmem [thread:$0]  %s12355_s17, 16, %s132_s18, [#allocation9]  }
  0x6b   :  { %s12285_s2 = smov [#allocation11]   ;;  %s12286_s7 = smov [#allocation14]  }
  0x6c   :  { %s151_s9 = sshll.u32 %s12285_s2, 4  ;;  %s173_s10 = sshll.u32 %s12286_s7, 4  ;;  %s152_s9 = int_to_ptr.vmem [resolvable:$true] %s151_s9  ;;  %s174_s10 = int_to_ptr.vmem [resolvable:$true] %s173_s10 }
  0x6d   :  { %s11485_s11 = scalar_lea.hbm %s12365_s25, 16 }
  0x6e   :  { %p11486_p2 = scmp.ne.s32.totalorder %s12365_s25, %s11485_s11  ;;  %p11489_p3 = scmp.lt.u32.totalorder %s11485_s11, %s12365_s25 }
  0x70   :  { %p11491_p4 = pnand %p11489_p3, %p11486_p2 }
  0x72   :  { %11494 = shalt.err (!%p11491_p4)
}
  0x73   :  { %s11495_s0 = scalar_lea.vmem %s152_s9, 16  ;;  %s11499_s15 = scalar_lea.vmem %s152_s9, 32 }
  0x74   :  { %p11496_p5 = scmp.ne.s32.totalorder %s152_s9, %s11495_s0  ;;  %p11500_p6 = scmp.lt.s32.totalorder %s152_s9, %s152_s9 }
  0x75   :  { %p11501_p7 = scmp.lt.s32.totalorder %s11499_s15, %s11495_s0 }
  0x77   :  { %p11502_p8 = por %p11501_p7, %p11500_p6 }
  0x79   :  { %p11503_p9 = pnand %p11502_p8, %p11496_p5 }
  0x7b   :  { %11506 = shalt.err (!%p11503_p9)
}
  0x7c   :  { %154 = dma.hbm_to_vmem [thread:$0]  %s12365_s25, 16, %s152_s9, [#allocation12]  }
  0x7d   :  { %s11507_s17 = scalar_lea.hbm %s12375_s3, 64 }
  0x7e   :  { %p11508_p10 = scmp.ne.s32.totalorder %s12375_s3, %s11507_s17  ;;  %p11511_p11 = scmp.lt.u32.totalorder %s11507_s17, %s12375_s3 }
  0x80   :  { %p11513_p12 = pnand %p11511_p11, %p11508_p10 }
  0x82   :  { %11516 = shalt.err (!%p11513_p12)
}
  0x83   :  { %s11517_s16 = scalar_lea.vmem %s174_s10, 64  ;;  %p11522_p0 = scmp.lt.s32.totalorder %s174_s10, %s174_s10 }
  0x84   :  { %p11518_p13 = scmp.ne.s32.totalorder %s174_s10, %s11517_s16  ;;  %p11523_p1 = scmp.lt.s32.totalorder %s11517_s16, %s11517_s16 }
  0x86   :  { %p11524_p2 = por %p11523_p1, %p11522_p0 }
  0x88   :  { %p11525_p3 = pnand %p11524_p2, %p11518_p13 }
  0x8a   :  { %11528 = shalt.err (!%p11525_p3)
}
  0x8b   :  { %176 = dma.hbm_to_vmem [thread:$0]  %s12375_s3, 64, %s174_s10, [#allocation15]  }
  0x8c   :  { %s12287_s18 = smov [#allocation17]   ;;  %s12288_s25 = smov [#allocation20]  }
  0x8d   :  { %s195_s22 = sshll.u32 %s12287_s18, 4  ;;  %s215_s23 = sshll.u32 %s12288_s25, 4  ;;  %s196_s22 = int_to_ptr.vmem [resolvable:$true] %s195_s22  ;;  %s216_s23 = int_to_ptr.vmem [resolvable:$true] %s215_s23 }
  0x8e   :  { %s11529_s26 = scalar_lea.hbm %s12385_s14, 16 }
  0x8f   :  { %p11530_p4 = scmp.ne.s32.totalorder %s12385_s14, %s11529_s26  ;;  %p11533_p5 = scmp.lt.u32.totalorder %s11529_s26, %s12385_s14 }
  0x91   :  { %p11535_p6 = pnand %p11533_p5, %p11530_p4 }
  0x93   :  { %11538 = shalt.err (!%p11535_p6)
}
  0x94   :  { %s11539_s28 = scalar_lea.vmem %s196_s22, 16  ;;  %s11543_s1 = scalar_lea.vmem %s196_s22, 32 }
  0x95   :  { %p11540_p7 = scmp.ne.s32.totalorder %s196_s22, %s11539_s28  ;;  %p11544_p8 = scmp.lt.s32.totalorder %s196_s22, %s196_s22 }
  0x96   :  { %p11545_p9 = scmp.lt.s32.totalorder %s11543_s1, %s11539_s28 }
  0x98   :  { %p11546_p10 = por %p11545_p9, %p11544_p8 }
  0x9a   :  { %p11547_p11 = pnand %p11546_p10, %p11540_p7 }
  0x9c   :  { %11550 = shalt.err (!%p11547_p11)
}
  0x9d   :  { %198 = dma.hbm_to_vmem [thread:$0]  %s12385_s14, 16, %s196_s22, [#allocation18]  }
  0x9e   :  { %s11551_s3 = scalar_lea.hbm %s12395_s24, 16 }
  0x9f   :  { %p11552_p12 = scmp.ne.s32.totalorder %s12395_s24, %s11551_s3  ;;  %p11555_p13 = scmp.lt.u32.totalorder %s11551_s3, %s12395_s24 }
  0xa1   :  { %p11557_p0 = pnand %p11555_p13, %p11552_p12 }
  0xa3   :  { %11560 = shalt.err (!%p11557_p0)
}
  0xa4   :  { %s11561_s2 = scalar_lea.vmem %s216_s23, 16  ;;  %s11565_s9 = scalar_lea.vmem %s216_s23, 32 }
  0xa5   :  { %p11562_p1 = scmp.ne.s32.totalorder %s216_s23, %s11561_s2  ;;  %p11566_p2 = scmp.lt.s32.totalorder %s216_s23, %s216_s23 }
  0xa6   :  { %p11567_p3 = scmp.lt.s32.totalorder %s11565_s9, %s11561_s2 }
  0xa8   :  { %p11568_p4 = por %p11567_p3, %p11566_p2 }
  0xaa   :  { %p11569_p5 = pnand %p11568_p4, %p11562_p1 }
  0xac   :  { %11572 = shalt.err (!%p11569_p5)
}
  0xad   :  { %218 = dma.hbm_to_vmem [thread:$0]  %s12395_s24, 16, %s216_s23, [#allocation21]  }
  0xae   :  { %s12289_s7 = smov [#allocation23]   ;;  %s12290_s10 = smov [#allocation26]  }
  0xaf   :  { %s237_s14 = sshll.u32 %s12289_s7, 4  ;;  %s259_s11 = sshll.u32 %s12290_s10, 4  ;;  %s238_s14 = int_to_ptr.vmem [resolvable:$true] %s237_s14  ;;  %s260_s11 = int_to_ptr.vmem [resolvable:$true] %s259_s11 }
  0xb0   :  { %s11573_s0 = scalar_lea.hbm %s12405_s6, 128 }
  0xb1   :  { %p11574_p6 = scmp.ne.s32.totalorder %s12405_s6, %s11573_s0  ;;  %p11577_p7 = scmp.lt.u32.totalorder %s11573_s0, %s12405_s6 }
  0xb3   :  { %p11579_p8 = pnand %p11577_p7, %p11574_p6 }
  0xb5   :  { %11582 = shalt.err (!%p11579_p8)
}
  0xb6   :  { %s11583_s15 = scalar_lea.vmem %s238_s14, 128  ;;  %p11588_p10 = scmp.lt.s32.totalorder %s238_s14, %s238_s14 }
  0xb7   :  { %p11584_p9 = scmp.ne.s32.totalorder %s238_s14, %s11583_s15  ;;  %p11589_p11 = scmp.lt.s32.totalorder %s11583_s15, %s11583_s15 }
  0xb9   :  { %p11590_p12 = por %p11589_p11, %p11588_p10 }
  0xbb   :  { %p11591_p13 = pnand %p11590_p12, %p11584_p9 }
  0xbd   :  { %11594 = shalt.err (!%p11591_p13)
}
  0xbe   :  { %240 = dma.hbm_to_vmem [thread:$0]  %s12405_s6, 128, %s238_s14, [#allocation24]  }
  0xbf   :  { %s11595_s24 = scalar_lea.hbm %s12415_s20, 128 }
  0xc0   :  { %p11596_p0 = scmp.ne.s32.totalorder %s12415_s20, %s11595_s24  ;;  %p11599_p1 = scmp.lt.u32.totalorder %s11595_s24, %s12415_s20 }
  0xc2   :  { %p11601_p2 = pnand %p11599_p1, %p11596_p0 }
  0xc4   :  { %11604 = shalt.err (!%p11601_p2)
}
  0xc5   :  { %s11605_s17 = scalar_lea.vmem %s260_s11, 128  ;;  %p11610_p4 = scmp.lt.s32.totalorder %s260_s11, %s260_s11 }
  0xc6   :  { %p11606_p3 = scmp.ne.s32.totalorder %s260_s11, %s11605_s17  ;;  %p11611_p5 = scmp.lt.s32.totalorder %s11605_s17, %s11605_s17 }
  0xc8   :  { %p11612_p6 = por %p11611_p5, %p11610_p4 }
  0xca   :  { %p11613_p7 = pnand %p11612_p6, %p11606_p3 }
  0xcc   :  { %11616 = shalt.err (!%p11613_p7)
}
  0xcd   :  { %262 = dma.hbm_to_vmem [thread:$0]  %s12415_s20, 128, %s260_s11, [#allocation27]  }
  0xce   :  { %s12291_s16 = smov [#allocation29]   ;;  %s12292_s6 = smov [#allocation32]  }
  0xcf   :  { %s279_s18 = sshll.u32 %s12291_s16, 4  ;;  %s300_s22 = sshll.u32 %s12292_s6, 4  ;;  %s280_s18 = int_to_ptr.vmem [resolvable:$true] %s279_s18  ;;  %s301_s22 = int_to_ptr.vmem [resolvable:$true] %s300_s22 }
  0xd0   :  { %s11617_s25 = scalar_lea.hbm %s12425_s4, 128 }
  0xd1   :  { %p11618_p8 = scmp.ne.s32.totalorder %s12425_s4, %s11617_s25  ;;  %p11621_p9 = scmp.lt.u32.totalorder %s11617_s25, %s12425_s4 }
  0xd3   :  { %p11623_p10 = pnand %p11621_p9, %p11618_p8 }
  0xd5   :  { %11626 = shalt.err (!%p11623_p10)
}
  0xd6   :  { %s11627_s23 = scalar_lea.vmem %s280_s18, 128  ;;  %p11632_p12 = scmp.lt.s32.totalorder %s280_s18, %s280_s18 }
  0xd7   :  { %p11628_p11 = scmp.ne.s32.totalorder %s280_s18, %s11627_s23  ;;  %p11633_p13 = scmp.lt.s32.totalorder %s11627_s23, %s11627_s23 }
  0xd9   :  { %p11634_p0 = por %p11633_p13, %p11632_p12 }
  0xdb   :  { %p11635_p1 = pnand %p11634_p0, %p11628_p11 }
  0xdd   :  { %11638 = shalt.err (!%p11635_p1)
}
  0xde   :  { %282 = dma.hbm_to_vmem [thread:$0]  %s12425_s4, 128, %s280_s18, [#allocation30]  }
  0xdf   :  { %s11639_s20 = scalar_lea.hbm %s12435_s30, 8192 }
  0xe0   :  { %p11640_p2 = scmp.ne.s32.totalorder %s12435_s30, %s11639_s20  ;;  %p11643_p3 = scmp.lt.u32.totalorder %s11639_s20, %s12435_s30 }
  0xe2   :  { %p11645_p4 = pnand %p11643_p3, %p11640_p2 }
  0xe4   :  { %11648 = shalt.err (!%p11645_p4)
}
  0xe5   :  { %s11649_s26 = scalar_lea.vmem %s301_s22, 8192  ;;  %p11654_p6 = scmp.lt.s32.totalorder %s301_s22, %s301_s22 }
  0xe6   :  { %p11650_p5 = scmp.ne.s32.totalorder %s301_s22, %s11649_s26  ;;  %p11655_p7 = scmp.lt.s32.totalorder %s11649_s26, %s11649_s26 }
  0xe8   :  { %p11656_p8 = por %p11655_p7, %p11654_p6 }
  0xea   :  { %p11657_p9 = pnand %p11656_p8, %p11650_p5 }
  0xec   :  { %11660 = shalt.err (!%p11657_p9)
}
  0xed   :  { %s12293_s28 = smov 1024   ;;  %s12294_s1 = smov 64  }
  0xee   :  { %306 = dma.hbm_to_vmem [thread:$0]  %s12435_s30, 8192, %s301_s22, [#allocation33], %s12293_s28, %s12293_s28, %s12294_s1  }
  0xef   :  { %s12295_s4 = smov [#allocation35]   ;;  %s12296_s2 = smov [#allocation38]  }
  0xf0   :  { %s325_s3 = sshll.u32 %s12295_s4, 4  ;;  %s345_s9 = sshll.u32 %s12296_s2, 4  ;;  %s326_s3 = int_to_ptr.vmem [resolvable:$true] %s325_s3  ;;  %s346_s9 = int_to_ptr.vmem [resolvable:$true] %s345_s9 }
  0xf1   :  { %s11661_s7 = scalar_lea.hbm %s12445_s19, 64 }
  0xf2   :  { %p11662_p10 = scmp.ne.s32.totalorder %s12445_s19, %s11661_s7  ;;  %p11665_p11 = scmp.lt.u32.totalorder %s11661_s7, %s12445_s19 }
  0xf4   :  { %p11667_p12 = pnand %p11665_p11, %p11662_p10 }
  0xf6   :  { %11670 = shalt.err (!%p11667_p12)
}
  0xf7   :  { %s11671_s14 = scalar_lea.vmem %s326_s3, 64  ;;  %p11676_p0 = scmp.lt.s32.totalorder %s326_s3, %s326_s3 }
  0xf8   :  { %p11672_p13 = scmp.ne.s32.totalorder %s326_s3, %s11671_s14  ;;  %p11677_p1 = scmp.lt.s32.totalorder %s11671_s14, %s11671_s14 }
  0xfa   :  { %p11678_p2 = por %p11677_p1, %p11676_p0 }
  0xfc   :  { %p11679_p3 = pnand %p11678_p2, %p11672_p13 }
  0xfe   :  { %11682 = shalt.err (!%p11679_p3)
}
  0xff   :  { %328 = dma.hbm_to_vmem [thread:$0]  %s12445_s19, 64, %s326_s3, [#allocation36]  }
 0x100   :  { %s11683_s30 = scalar_lea.hbm %s12455_s8, 64 }
 0x101   :  { %p11684_p4 = scmp.ne.s32.totalorder %s12455_s8, %s11683_s30  ;;  %p11687_p5 = scmp.lt.u32.totalorder %s11683_s30, %s12455_s8 }
 0x103   :  { %p11689_p6 = pnand %p11687_p5, %p11684_p4 }
 0x105   :  { %11692 = shalt.err (!%p11689_p6)
}
 0x106   :  { %s11693_s10 = scalar_lea.vmem %s346_s9, 64  ;;  %p11698_p8 = scmp.lt.s32.totalorder %s346_s9, %s346_s9 }
 0x107   :  { %p11694_p7 = scmp.ne.s32.totalorder %s346_s9, %s11693_s10  ;;  %p11699_p9 = scmp.lt.s32.totalorder %s11693_s10, %s11693_s10 }
 0x109   :  { %p11700_p10 = por %p11699_p9, %p11698_p8 }
 0x10b   :  { %p11701_p11 = pnand %p11700_p10, %p11694_p7 }
 0x10d   :  { %11704 = shalt.err (!%p11701_p11)
}
 0x10e   :  { %348 = dma.hbm_to_vmem [thread:$0]  %s12455_s8, 64, %s346_s9, [#allocation39]  }
 0x10f   :  { %s12297_s11 = smov [#allocation41]   ;;  %s12298_s19 = smov [#allocation44]  }
 0x110   :  { %s366_s0 = sshll.u32 %s12297_s11, 4  ;;  %s391_s15 = sshll.u32 %s12298_s19, 4  ;;  %s367_s0 = int_to_ptr.vmem [resolvable:$true] %s366_s0  ;;  %s392_s15 = int_to_ptr.vmem [resolvable:$true] %s391_s15 }
 0x111   :  { %s11705_s24 = scalar_lea.hbm %s12465_s29, 2048 }
 0x112   :  { %p11706_p12 = scmp.ne.s32.totalorder %s12465_s29, %s11705_s24  ;;  %p11709_p13 = scmp.lt.u32.totalorder %s11705_s24, %s12465_s29 }
 0x114   :  { %p11711_p0 = pnand %p11709_p13, %p11706_p12 }
 0x116   :  { %11714 = shalt.err (!%p11711_p0)
}
 0x117   :  { %s11715_s17 = scalar_lea.vmem %s367_s0, 2048  ;;  %p11720_p2 = scmp.lt.s32.totalorder %s367_s0, %s367_s0 }
 0x118   :  { %p11716_p1 = scmp.ne.s32.totalorder %s367_s0, %s11715_s17  ;;  %p11721_p3 = scmp.lt.s32.totalorder %s11715_s17, %s11715_s17 }
 0x11a   :  { %p11722_p4 = por %p11721_p3, %p11720_p2 }
 0x11c   :  { %p11723_p5 = pnand %p11722_p4, %p11716_p1 }
 0x11e   :  { %11726 = shalt.err (!%p11723_p5)
}
 0x11f   :  { %s12299_s16 = smov 512   ;;  %s12300_s8 = smov 32  }
 0x120   :  { %372 = dma.hbm_to_vmem [thread:$0]  %s12465_s29, 2048, %s367_s0, [#allocation42], %s12299_s16, %s12299_s16, %s12300_s8  }
 0x121   :  { %s11727_s18 = scalar_lea.hbm %s12475_s21, 32 }
 0x122   :  { %p11728_p6 = scmp.ne.s32.totalorder %s12475_s21, %s11727_s18  ;;  %p11731_p7 = scmp.lt.u32.totalorder %s11727_s18, %s12475_s21 }
 0x124   :  { %p11733_p8 = pnand %p11731_p7, %p11728_p6 }
 0x126   :  { %11736 = shalt.err (!%p11733_p8)
}
 0x127   :  { %s11737_s6 = scalar_lea.vmem %s392_s15, 32  ;;  %p11742_p10 = scmp.lt.s32.totalorder %s392_s15, %s392_s15 }
 0x128   :  { %p11738_p9 = scmp.ne.s32.totalorder %s392_s15, %s11737_s6  ;;  %p11743_p11 = scmp.lt.s32.totalorder %s11737_s6, %s11737_s6 }
 0x12a   :  { %p11744_p12 = por %p11743_p11, %p11742_p10 }
 0x12c   :  { %p11745_p13 = pnand %p11744_p12, %p11738_p9 }
 0x12e   :  { %11748 = shalt.err (!%p11745_p13)
}
 0x12f   :  { %s14319_s22 = sld [smem:[#allocation90_spill]]  ;;  %s12301_s25 = smov [#allocation47]  }
 0x130   :  { %394 = dma.hbm_to_vmem [thread:$0]  %s12475_s21, 32, %s392_s15, [#allocation45]  }
 0x131   :  { %s411_s23 = sshll.u32 %s12301_s25, 4  ;;  %s412_s23 = int_to_ptr.vmem [resolvable:$true] %s411_s23 }
 0x135   :  { %s11749_s29 = scalar_lea.hbm %s14319_s22, 32 }
 0x136   :  { %p11750_p0 = scmp.ne.s32.totalorder %s14319_s22, %s11749_s29  ;;  %p11753_p1 = scmp.lt.u32.totalorder %s11749_s29, %s14319_s22 }
 0x138   :  { %p11755_p2 = pnand %p11753_p1, %p11750_p0 }
 0x13a   :  { %11758 = shalt.err (!%p11755_p2)
}
 0x13b   :  { %s11759_s20 = scalar_lea.vmem %s412_s23, 32  ;;  %p11764_p4 = scmp.lt.s32.totalorder %s412_s23, %s412_s23 }
 0x13c   :  { %p11760_p3 = scmp.ne.s32.totalorder %s412_s23, %s11759_s20  ;;  %p11765_p5 = scmp.lt.s32.totalorder %s11759_s20, %s11759_s20 }
 0x13e   :  { %p11766_p6 = por %p11765_p5, %p11764_p4 }
 0x140   :  { %p11767_p7 = pnand %p11766_p6, %p11760_p3 }
 0x142   :  { %11770 = shalt.err (!%p11767_p7)
}
 0x143   :  { %414 = dma.hbm_to_vmem [thread:$0]  %s14319_s22, 32, %s412_s23, [#allocation48]  }
 0x144   :  { %s12302_s21 = smov [#allocation50]   ;;  %s12303_s28 = smov [#allocation2]  }
 0x145   :  { %s432_s26 = sshll.u32 %s12302_s21, 4  ;;  %s98_s4 = sshll.u32 %s12303_s28, 4  ;;  %s433_s26 = int_to_ptr.vmem [resolvable:$true] %s432_s26  ;;  %s99_s4 = int_to_ptr.vmem [resolvable:$true] %s98_s4 }
 0x146   :  { %s11771_s3 = scalar_lea.hbm %s12495_s5, 512 }
 0x147   :  { %p11772_p8 = scmp.ne.s32.totalorder %s12495_s5, %s11771_s3  ;;  %p11775_p9 = scmp.lt.u32.totalorder %s11771_s3, %s12495_s5 }
 0x149   :  { %p11777_p10 = pnand %p11775_p9, %p11772_p8 }
 0x14b   :  { %11780 = shalt.err (!%p11777_p10)
}
 0x14c   :  { %s11781_s2 = scalar_lea.vmem %s433_s26, 512  ;;  %p11786_p12 = scmp.lt.s32.totalorder %s433_s26, %s433_s26 }
 0x14d   :  { %p11782_p11 = scmp.ne.s32.totalorder %s433_s26, %s11781_s2  ;;  %p11787_p13 = scmp.lt.s32.totalorder %s11781_s2, %s11781_s2 }
 0x14f   :  { %p11788_p0 = por %p11787_p13, %p11786_p12 }
 0x151   :  { %p11789_p1 = pnand %p11788_p0, %p11782_p11 }
 0x153   :  { %11792 = shalt.err (!%p11789_p1)
}
 0x154   :  { %s12304_s9 = smov 256   ;;  %s14320_s7 = sld [smem:[#allocation75_spill]] }
 0x155   :  { %s12305_s14 = smov 16  }
 0x156   :  { %438 = dma.hbm_to_vmem [thread:$0]  %s12495_s5, 512, %s433_s26, [#allocation51], %s12304_s9, %s12304_s9, %s12305_s14  }
 0x15a   :  { %s11793_s30 = scalar_lea.hbm %s14320_s7, 256 }
 0x15b   :  { %p11794_p2 = scmp.ne.s32.totalorder %s14320_s7, %s11793_s30  ;;  %p11797_p3 = scmp.lt.u32.totalorder %s11793_s30, %s14320_s7 }
 0x15d   :  { %p11799_p4 = pnand %p11797_p3, %p11794_p2 }
 0x15f   :  { %11802 = shalt.err (!%p11799_p4)
}
 0x160   :  { %s11803_s10 = scalar_lea.vmem %s99_s4, 256  ;;  %p11808_p6 = scmp.lt.s32.totalorder %s99_s4, %s99_s4 }
 0x161   :  { %p11804_p5 = scmp.ne.s32.totalorder %s99_s4, %s11803_s10  ;;  %p11809_p7 = scmp.lt.s32.totalorder %s11803_s10, %s11803_s10 }
 0x163   :  { %p11810_p8 = por %p11809_p7, %p11808_p6 }
 0x165   :  { %p11811_p9 = pnand %p11810_p8, %p11804_p5 }
 0x167   :  { %11814 = shalt.err (!%p11811_p9)
}
 0x168   :  { %s12306_s11 = smov 4   ;;  %s14321_s0 = sld [smem:[#allocation76_spill]] }
 0x169   :  { %104 = dma.hbm_to_vmem [thread:$0]  %s14320_s7, 256, %s99_s4, [#allocation3], %s12294_s1, %s12294_s1, %s12306_s11  }
 0x16a   :  { %s12307_s5 = smov [#allocation7]   ;;  %s12308_s15 = smov [#allocation10]  }
 0x16b   :  { %s121_s19 = sshll.u32 %s12307_s5, 4  ;;  %s141_s24 = sshll.u32 %s12308_s15, 4  ;;  %s122_s19 = int_to_ptr.vmem [resolvable:$true] %s121_s19  ;;  %s142_s24 = int_to_ptr.vmem [resolvable:$true] %s141_s24 }
 0x16e   :  { %s11815_s17 = scalar_lea.hbm %s14321_s0, 64 }
 0x16f   :  { %p11816_p10 = scmp.ne.s32.totalorder %s14321_s0, %s11815_s17  ;;  %p11819_p11 = scmp.lt.u32.totalorder %s11815_s17, %s14321_s0 }
 0x171   :  { %p11821_p12 = pnand %p11819_p11, %p11816_p10 }
 0x173   :  { %11824 = shalt.err (!%p11821_p12)
}
 0x174   :  { %s11825_s18 = scalar_lea.vmem %s122_s19, 64  ;;  %p11830_p0 = scmp.lt.s32.totalorder %s122_s19, %s122_s19 }
 0x175   :  { %p11826_p13 = scmp.ne.s32.totalorder %s122_s19, %s11825_s18  ;;  %p11831_p1 = scmp.lt.s32.totalorder %s11825_s18, %s11825_s18 }
 0x177   :  { %p11832_p2 = por %p11831_p1, %p11830_p0 }
 0x179   :  { %p11833_p3 = pnand %p11832_p2, %p11826_p13 }
 0x17b   :  { %11836 = shalt.err (!%p11833_p3)
}
 0x17c   :  { %s14322_s6 = sld [smem:[#allocation77_spill]] }
 0x17d   :  { %124 = dma.hbm_to_vmem [thread:$0]  %s14321_s0, 64, %s122_s19, [#allocation6]  }
 0x182   :  { %s11837_s22 = scalar_lea.hbm %s14322_s6, 16 }
 0x183   :  { %p11838_p4 = scmp.ne.s32.totalorder %s14322_s6, %s11837_s22  ;;  %p11841_p5 = scmp.lt.u32.totalorder %s11837_s22, %s14322_s6 }
 0x185   :  { %p11843_p6 = pnand %p11841_p5, %p11838_p4 }
 0x187   :  { %11846 = shalt.err (!%p11843_p6)
}
 0x188   :  { %s11847_s25 = scalar_lea.vmem %s142_s24, 16  ;;  %s11851_s23 = scalar_lea.vmem %s142_s24, 32 }
 0x189   :  { %p11848_p7 = scmp.ne.s32.totalorder %s142_s24, %s11847_s25  ;;  %p11852_p8 = scmp.lt.s32.totalorder %s142_s24, %s142_s24 }
 0x18a   :  { %p11853_p9 = scmp.lt.s32.totalorder %s11851_s23, %s11847_s25 }
 0x18c   :  { %p11854_p10 = por %p11853_p9, %p11852_p8 }
 0x18e   :  { %p11855_p11 = pnand %p11854_p10, %p11848_p7 }
 0x190   :  { %11858 = shalt.err (!%p11855_p11)
}
 0x191   :  { %s14323_s29 = sld [smem:[#allocation78_spill]]  ;;  %s12309_s20 = smov [#allocation13]  }
 0x192   :  { %144 = dma.hbm_to_vmem [thread:$0]  %s14322_s6, 16, %s142_s24, [#allocation9]  }
 0x193   :  { %s160_s21 = sshll.u32 %s12309_s20, 4  ;;  %s161_s21 = int_to_ptr.vmem [resolvable:$true] %s160_s21 }
 0x197   :  { %s11859_s26 = scalar_lea.hbm %s14323_s29, 1024 }
 0x198   :  { %p11860_p12 = scmp.ne.s32.totalorder %s14323_s29, %s11859_s26  ;;  %p11863_p13 = scmp.lt.u32.totalorder %s11859_s26, %s14323_s29 }
 0x19a   :  { %p11865_p0 = pnand %p11863_p13, %p11860_p12 }
 0x19c   :  { %11868 = shalt.err (!%p11865_p0)
}
 0x19d   :  { %s11869_s28 = scalar_lea.vmem %s161_s21, 1024  ;;  %p11874_p2 = scmp.lt.s32.totalorder %s161_s21, %s161_s21 }
 0x19e   :  { %p11870_p1 = scmp.ne.s32.totalorder %s161_s21, %s11869_s28  ;;  %p11875_p3 = scmp.lt.s32.totalorder %s11869_s28, %s11869_s28 }
 0x1a0   :  { %p11876_p4 = por %p11875_p3, %p11874_p2 }
 0x1a2   :  { %p11877_p5 = pnand %p11876_p4, %p11870_p1 }
 0x1a4   :  { %11880 = shalt.err (!%p11877_p5)
}
 0x1a5   :  { %s12310_s4 = smov 128   ;;  %s14324_s3 = sld [smem:[#allocation79_spill]] }
 0x1a6   :  { %s12311_s2 = smov 8   ;;  %s12312_s7 = smov [#allocation16]  }
 0x1a7   :  { %166 = dma.hbm_to_vmem [thread:$0]  %s14323_s29, 1024, %s161_s21, [#allocation12], %s12310_s4, %s12310_s4, %s12311_s2  }
 0x1a8   :  { %s182_s30 = sshll.u32 %s12312_s7, 4  ;;  %s12313_s10 = smov [#allocation19]   ;;  %s183_s30 = int_to_ptr.vmem [resolvable:$true] %s182_s30 }
 0x1a9   :  { %s205_s0 = sshll.u32 %s12313_s10, 4  ;;  %s206_s0 = int_to_ptr.vmem [resolvable:$true] %s205_s0 }
 0x1ab   :  { %s11881_s5 = scalar_lea.hbm %s14324_s3, 512 }
 0x1ac   :  { %p11882_p6 = scmp.ne.s32.totalorder %s14324_s3, %s11881_s5  ;;  %p11885_p7 = scmp.lt.u32.totalorder %s11881_s5, %s14324_s3 }
 0x1ae   :  { %p11887_p8 = pnand %p11885_p7, %p11882_p6 }
 0x1b0   :  { %11890 = shalt.err (!%p11887_p8)
}
 0x1b1   :  { %s11891_s19 = scalar_lea.vmem %s183_s30, 512  ;;  %p11896_p10 = scmp.lt.s32.totalorder %s183_s30, %s183_s30 }
 0x1b2   :  { %p11892_p9 = scmp.ne.s32.totalorder %s183_s30, %s11891_s19  ;;  %p11897_p11 = scmp.lt.s32.totalorder %s11891_s19, %s11891_s19 }
 0x1b4   :  { %p11898_p12 = por %p11897_p11, %p11896_p10 }
 0x1b6   :  { %p11899_p13 = pnand %p11898_p12, %p11892_p9 }
 0x1b8   :  { %11902 = shalt.err (!%p11899_p13)
}
 0x1b9   :  { %s14325_s15 = sld [smem:[#allocation80_spill]] }
 0x1ba   :  { %188 = dma.hbm_to_vmem [thread:$0]  %s14324_s3, 512, %s183_s30, [#allocation15], %s12294_s1, %s12294_s1, %s12306_s11  }
 0x1bf   :  { %s11903_s24 = scalar_lea.hbm %s14325_s15, 16 }
 0x1c0   :  { %p11904_p0 = scmp.ne.s32.totalorder %s14325_s15, %s11903_s24  ;;  %p11907_p1 = scmp.lt.u32.totalorder %s11903_s24, %s14325_s15 }
 0x1c2   :  { %p11909_p2 = pnand %p11907_p1, %p11904_p0 }
 0x1c4   :  { %11912 = shalt.err (!%p11909_p2)
}
 0x1c5   :  { %s11913_s17 = scalar_lea.vmem %s206_s0, 16  ;;  %s11917_s18 = scalar_lea.vmem %s206_s0, 32 }
 0x1c6   :  { %p11914_p3 = scmp.ne.s32.totalorder %s206_s0, %s11913_s17  ;;  %p11918_p4 = scmp.lt.s32.totalorder %s206_s0, %s206_s0 }
 0x1c7   :  { %p11919_p5 = scmp.lt.s32.totalorder %s11917_s18, %s11913_s17 }
 0x1c9   :  { %p11920_p6 = por %p11919_p5, %p11918_p4 }
 0x1cb   :  { %p11921_p7 = pnand %p11920_p6, %p11914_p3 }
 0x1cd   :  { %11924 = shalt.err (!%p11921_p7)
}
 0x1ce   :  { %s14326_s6 = sld [smem:[#allocation81_spill]]  ;;  %s12314_s22 = smov [#allocation22]  }
 0x1cf   :  { %208 = dma.hbm_to_vmem [thread:$0]  %s14325_s15, 16, %s206_s0, [#allocation18]  }
 0x1d0   :  { %s224_s25 = sshll.u32 %s12314_s22, 4  ;;  %s12315_s23 = smov [#allocation25]   ;;  %s225_s25 = int_to_ptr.vmem [resolvable:$true] %s224_s25 }
 0x1d1   :  { %s246_s29 = sshll.u32 %s12315_s23, 4  ;;  %s247_s29 = int_to_ptr.vmem [resolvable:$true] %s246_s29 }
 0x1d4   :  { %s11925_s20 = scalar_lea.hbm %s14326_s6, 2048 }
 0x1d5   :  { %p11926_p8 = scmp.ne.s32.totalorder %s14326_s6, %s11925_s20  ;;  %p11929_p9 = scmp.lt.u32.totalorder %s11925_s20, %s14326_s6 }
 0x1d7   :  { %p11931_p10 = pnand %p11929_p9, %p11926_p8 }
 0x1d9   :  { %11934 = shalt.err (!%p11931_p10)
}
 0x1da   :  { %s11935_s21 = scalar_lea.vmem %s225_s25, 2048  ;;  %p11940_p12 = scmp.lt.s32.totalorder %s225_s25, %s225_s25 }
 0x1db   :  { %p11936_p11 = scmp.ne.s32.totalorder %s225_s25, %s11935_s21  ;;  %p11941_p13 = scmp.lt.s32.totalorder %s11935_s21, %s11935_s21 }
 0x1dd   :  { %p11942_p0 = por %p11941_p13, %p11940_p12 }
 0x1df   :  { %p11943_p1 = pnand %p11942_p0, %p11936_p11 }
 0x1e1   :  { %11946 = shalt.err (!%p11943_p1)
}
 0x1e2   :  { %s14327_s26 = sld [smem:[#allocation82_spill]] }
 0x1e3   :  { %230 = dma.hbm_to_vmem [thread:$0]  %s14326_s6, 2048, %s225_s25, [#allocation21], %s12310_s4, %s12310_s4, %s12311_s2  }
 0x1e8   :  { %s11947_s28 = scalar_lea.hbm %s14327_s26, 8192 }
 0x1e9   :  { %p11948_p2 = scmp.ne.s32.totalorder %s14327_s26, %s11947_s28  ;;  %p11951_p3 = scmp.lt.u32.totalorder %s11947_s28, %s14327_s26 }
 0x1eb   :  { %p11953_p4 = pnand %p11951_p3, %p11948_p2 }
 0x1ed   :  { %11956 = shalt.err (!%p11953_p4)
}
 0x1ee   :  { %s11957_s3 = scalar_lea.vmem %s247_s29, 8192  ;;  %p11962_p6 = scmp.lt.s32.totalorder %s247_s29, %s247_s29 }
 0x1ef   :  { %p11958_p5 = scmp.ne.s32.totalorder %s247_s29, %s11957_s3  ;;  %p11963_p7 = scmp.lt.s32.totalorder %s11957_s3, %s11957_s3 }
 0x1f1   :  { %p11964_p8 = por %p11963_p7, %p11962_p6 }
 0x1f3   :  { %p11965_p9 = pnand %p11964_p8, %p11958_p5 }
 0x1f5   :  { %11968 = shalt.err (!%p11965_p9)
}
 0x1f6   :  { %s14328_s7 = sld [smem:[#allocation83_spill]]  ;;  %s12316_s30 = smov [#allocation28]  }
 0x1f7   :  { %252 = dma.hbm_to_vmem [thread:$0]  %s14327_s26, 8192, %s247_s29, [#allocation24], %s12299_s16, %s12299_s16, %s12300_s8  }
 0x1f8   :  { %s269_s10 = sshll.u32 %s12316_s30, 4  ;;  %s12317_s0 = smov [#allocation31]   ;;  %s270_s10 = int_to_ptr.vmem [resolvable:$true] %s269_s10 }
 0x1f9   :  { %s288_s5 = sshll.u32 %s12317_s0, 4  ;;  %s289_s5 = int_to_ptr.vmem [resolvable:$true] %s288_s5 }
 0x1fc   :  { %s11969_s19 = scalar_lea.hbm %s14328_s7, 128 }
 0x1fd   :  { %p11970_p10 = scmp.ne.s32.totalorder %s14328_s7, %s11969_s19  ;;  %p11973_p11 = scmp.lt.u32.totalorder %s11969_s19, %s14328_s7 }
 0x1ff   :  { %p11975_p12 = pnand %p11973_p11, %p11970_p10 }
 0x201   :  { %11978 = shalt.err (!%p11975_p12)
}
 0x202   :  { %s11979_s15 = scalar_lea.vmem %s270_s10, 128  ;;  %p11984_p0 = scmp.lt.s32.totalorder %s270_s10, %s270_s10 }
 0x203   :  { %p11980_p13 = scmp.ne.s32.totalorder %s270_s10, %s11979_s15  ;;  %p11985_p1 = scmp.lt.s32.totalorder %s11979_s15, %s11979_s15 }
 0x205   :  { %p11986_p2 = por %p11985_p1, %p11984_p0 }
 0x207   :  { %p11987_p3 = pnand %p11986_p2, %p11980_p13 }
 0x209   :  { %11990 = shalt.err (!%p11987_p3)
}
 0x20a   :  { %s14329_s24 = sld [smem:[#allocation84_spill]] }
 0x20b   :  { %272 = dma.hbm_to_vmem [thread:$0]  %s14328_s7, 128, %s270_s10, [#allocation27]  }
 0x210   :  { %s11991_s16 = scalar_lea.hbm %s14329_s24, 16384 }
 0x211   :  { %p11992_p4 = scmp.ne.s32.totalorder %s14329_s24, %s11991_s16  ;;  %p11995_p5 = scmp.lt.u32.totalorder %s11991_s16, %s14329_s24 }
 0x213   :  { %p11997_p6 = pnand %p11995_p5, %p11992_p4 }
 0x215   :  { %12000 = shalt.err (!%p11997_p6)
}
 0x216   :  { %s12001_s8 = scalar_lea.vmem %s289_s5, 16384  ;;  %p12006_p8 = scmp.lt.s32.totalorder %s289_s5, %s289_s5 }
 0x217   :  { %p12002_p7 = scmp.ne.s32.totalorder %s289_s5, %s12001_s8  ;;  %p12007_p9 = scmp.lt.s32.totalorder %s12001_s8, %s12001_s8 }
 0x219   :  { %p12008_p10 = por %p12007_p9, %p12006_p8 }
 0x21b   :  { %p12009_p11 = pnand %p12008_p10, %p12002_p7 }
 0x21d   :  { %12012 = shalt.err (!%p12009_p11)
}
 0x21e   :  { %s14330_s17 = sld [smem:[#allocation85_spill]]  ;;  %s12318_s18 = smov [#allocation34]  }
 0x21f   :  { %294 = dma.hbm_to_vmem [thread:$0]  %s14329_s24, 16384, %s289_s5, [#allocation30], %s12310_s4, %s12310_s4, %s12311_s2  }
 0x220   :  { %s312_s6 = sshll.u32 %s12318_s18, 4  ;;  %s12319_s22 = smov [#allocation37]   ;;  %s313_s6 = int_to_ptr.vmem [resolvable:$true] %s312_s6 }
 0x221   :  { %s335_s25 = sshll.u32 %s12319_s22, 4  ;;  %s336_s25 = int_to_ptr.vmem [resolvable:$true] %s335_s25 }
 0x224   :  { %s12013_s23 = scalar_lea.hbm %s14330_s17, 32768 }
 0x225   :  { %p12014_p12 = scmp.ne.s32.totalorder %s14330_s17, %s12013_s23  ;;  %p12017_p13 = scmp.lt.u32.totalorder %s12013_s23, %s14330_s17 }
 0x227   :  { %p12019_p0 = pnand %p12017_p13, %p12014_p12 }
 0x229   :  { %12022 = shalt.err (!%p12019_p0)
}
 0x22a   :  { %s12023_s29 = scalar_lea.vmem %s313_s6, 32768  ;;  %p12028_p2 = scmp.lt.s32.totalorder %s313_s6, %s313_s6 }
 0x22b   :  { %p12024_p1 = scmp.ne.s32.totalorder %s313_s6, %s12023_s29  ;;  %p12029_p3 = scmp.lt.s32.totalorder %s12023_s29, %s12023_s29 }
 0x22d   :  { %p12030_p4 = por %p12029_p3, %p12028_p2 }
 0x22f   :  { %p12031_p5 = pnand %p12030_p4, %p12024_p1 }
 0x231   :  { %12034 = shalt.err (!%p12031_p5)
}
 0x232   :  { %s14331_s20 = sld [smem:[#allocation86_spill]] }
 0x233   :  { %318 = dma.hbm_to_vmem [thread:$0]  %s14330_s17, 32768, %s313_s6, [#allocation33], %s12304_s9, %s12304_s9, %s12305_s14  }
 0x238   :  { %s12035_s21 = scalar_lea.hbm %s14331_s20, 64 }
 0x239   :  { %p12036_p6 = scmp.ne.s32.totalorder %s14331_s20, %s12035_s21  ;;  %p12039_p7 = scmp.lt.u32.totalorder %s12035_s21, %s14331_s20 }
 0x23b   :  { %p12041_p8 = pnand %p12039_p7, %p12036_p6 }
 0x23d   :  { %12044 = shalt.err (!%p12041_p8)
}
 0x23e   :  { %s12045_s26 = scalar_lea.vmem %s336_s25, 64  ;;  %p12050_p10 = scmp.lt.s32.totalorder %s336_s25, %s336_s25 }
 0x23f   :  { %p12046_p9 = scmp.ne.s32.totalorder %s336_s25, %s12045_s26  ;;  %p12051_p11 = scmp.lt.s32.totalorder %s12045_s26, %s12045_s26 }
 0x241   :  { %p12052_p12 = por %p12051_p11, %p12050_p10 }
 0x243   :  { %p12053_p13 = pnand %p12052_p12, %p12046_p9 }
 0x245   :  { %12056 = shalt.err (!%p12053_p13)
}
 0x246   :  { %s14332_s28 = sld [smem:[#allocation87_spill]]  ;;  %s12320_s3 = smov [#allocation40]  }
 0x247   :  { %338 = dma.hbm_to_vmem [thread:$0]  %s14331_s20, 64, %s336_s25, [#allocation36]  }
 0x248   :  { %s354_s9 = sshll.u32 %s12320_s3, 4  ;;  %s12321_s14 = smov [#allocation43]   ;;  %s355_s9 = int_to_ptr.vmem [resolvable:$true] %s354_s9 }
 0x249   :  { %s378_s7 = sshll.u32 %s12321_s14, 4  ;;  %s379_s7 = int_to_ptr.vmem [resolvable:$true] %s378_s7 }
 0x24c   :  { %s12057_s30 = scalar_lea.hbm %s14332_s28, 8192 }
 0x24d   :  { %p12058_p0 = scmp.ne.s32.totalorder %s14332_s28, %s12057_s30  ;;  %p12061_p1 = scmp.lt.u32.totalorder %s12057_s30, %s14332_s28 }
 0x24f   :  { %p12063_p2 = pnand %p12061_p1, %p12058_p0 }
 0x251   :  { %12066 = shalt.err (!%p12063_p2)
}
 0x252   :  { %s12067_s10 = scalar_lea.vmem %s355_s9, 8192  ;;  %p12072_p4 = scmp.lt.s32.totalorder %s355_s9, %s355_s9 }
 0x253   :  { %p12068_p3 = scmp.ne.s32.totalorder %s355_s9, %s12067_s10  ;;  %p12073_p5 = scmp.lt.s32.totalorder %s12067_s10, %s12067_s10 }
 0x255   :  { %p12074_p6 = por %p12073_p5, %p12072_p4 }
 0x257   :  { %p12075_p7 = pnand %p12074_p6, %p12068_p3 }
 0x259   :  { %12078 = shalt.err (!%p12075_p7)
}
 0x25a   :  { %s14333_s0 = sld [smem:[#allocation88_spill]] }
 0x25b   :  { %360 = dma.hbm_to_vmem [thread:$0]  %s14332_s28, 8192, %s355_s9, [#allocation39], %s12310_s4, %s12310_s4, %s12311_s2  }
 0x260   :  { %s12079_s5 = scalar_lea.hbm %s14333_s0, 8192 }
 0x261   :  { %p12080_p8 = scmp.ne.s32.totalorder %s14333_s0, %s12079_s5  ;;  %p12083_p9 = scmp.lt.u32.totalorder %s12079_s5, %s14333_s0 }
 0x263   :  { %p12085_p10 = pnand %p12083_p9, %p12080_p8 }
 0x265   :  { %12088 = shalt.err (!%p12085_p10)
}
 0x266   :  { %s12089_s19 = scalar_lea.vmem %s379_s7, 8192  ;;  %p12094_p12 = scmp.lt.s32.totalorder %s379_s7, %s379_s7 }
 0x267   :  { %p12090_p11 = scmp.ne.s32.totalorder %s379_s7, %s12089_s19  ;;  %p12095_p13 = scmp.lt.s32.totalorder %s12089_s19, %s12089_s19 }
 0x269   :  { %p12096_p0 = por %p12095_p13, %p12094_p12 }
 0x26b   :  { %p12097_p1 = pnand %p12096_p0, %p12090_p11 }
 0x26d   :  { %12100 = shalt.err (!%p12097_p1)
}
 0x26e   :  { %s14334_s15 = sld [smem:[#allocation89_spill]]  ;;  %s12322_s24 = smov [#allocation46]  }
 0x26f   :  { %384 = dma.hbm_to_vmem [thread:$0]  %s14333_s0, 8192, %s379_s7, [#allocation42], %s12310_s4, %s12310_s4, %s12311_s2  }
 0x270   :  { %s401_s16 = sshll.u32 %s12322_s24, 4  ;;  %s12323_s8 = smov [#allocation49]   ;;  %s402_s16 = int_to_ptr.vmem [resolvable:$true] %s401_s16 }
 0x271   :  { %s420_s17 = sshll.u32 %s12323_s8, 4  ;;  %s421_s17 = int_to_ptr.vmem [resolvable:$true] %s420_s17 }
 0x274   :  { %s12101_s18 = scalar_lea.hbm %s14334_s15, 32 }
 0x275   :  { %p12102_p2 = scmp.ne.s32.totalorder %s14334_s15, %s12101_s18  ;;  %p12105_p3 = scmp.lt.u32.totalorder %s12101_s18, %s14334_s15 }
 0x277   :  { %p12107_p4 = pnand %p12105_p3, %p12102_p2 }
 0x279   :  { %12110 = shalt.err (!%p12107_p4)
}
 0x27a   :  { %s12111_s6 = scalar_lea.vmem %s402_s16, 32  ;;  %p12116_p6 = scmp.lt.s32.totalorder %s402_s16, %s402_s16 }
 0x27b   :  { %p12112_p5 = scmp.ne.s32.totalorder %s402_s16, %s12111_s6  ;;  %p12117_p7 = scmp.lt.s32.totalorder %s12111_s6, %s12111_s6 }
 0x27d   :  { %p12118_p8 = por %p12117_p7, %p12116_p6 }
 0x27f   :  { %p12119_p9 = pnand %p12118_p8, %p12112_p5 }
 0x281   :  { %12122 = shalt.err (!%p12119_p9)
}
 0x282   :  { %s14335_s22 = sld [smem:[#allocation91_spill]] }
 0x283   :  { %404 = dma.hbm_to_vmem [thread:$0]  %s14334_s15, 32, %s402_s16, [#allocation45]  }
 0x288   :  { %s12123_s25 = scalar_lea.hbm %s14335_s22, 4096 }
 0x289   :  { %p12124_p10 = scmp.ne.s32.totalorder %s14335_s22, %s12123_s25  ;;  %p12127_p11 = scmp.lt.u32.totalorder %s12123_s25, %s14335_s22 }
 0x28b   :  { %p12129_p12 = pnand %p12127_p11, %p12124_p10 }
 0x28d   :  { %12132 = shalt.err (!%p12129_p12)
}
 0x28e   :  { %s12133_s23 = scalar_lea.vmem %s421_s17, 4096  ;;  %p12138_p0 = scmp.lt.s32.totalorder %s421_s17, %s421_s17 }
 0x28f   :  { %p12134_p13 = scmp.ne.s32.totalorder %s421_s17, %s12133_s23  ;;  %p12139_p1 = scmp.lt.s32.totalorder %s12133_s23, %s12133_s23 }
 0x291   :  { %p12140_p2 = por %p12139_p1, %p12138_p0 }
 0x293   :  { %p12141_p3 = pnand %p12140_p2, %p12134_p13 }
 0x295   :  { %12144 = shalt.err (!%p12141_p3)
}
 0x296   :  { %426 = dma.hbm_to_vmem [thread:$0]  %s14335_s22, 4096, %s421_s17, [#allocation48], %s12310_s4, %s12310_s4, %s12311_s2  }
 0x297   :  { %s12324_s29 = smov [#allocation52]   ;;  %s12325_s21 = smov [#allocation53]  }
 0x298   :  { %s444_s20 = sshll.u32 %s12324_s29, 4  ;;  %s457_s26 = sshll.u32 %s12325_s21, 4  ;;  %s445_s20 = int_to_ptr.vmem [resolvable:$true] %s444_s20  ;;  %s458_s26 = int_to_ptr.vmem [resolvable:$true] %s457_s26 }
 0x299   :  { %s12145_s28 = scalar_lea.hbm %s12500_s27, 2048 }
 0x29a   :  { %p12146_p4 = scmp.ne.s32.totalorder %s12500_s27, %s12145_s28  ;;  %p12149_p5 = scmp.lt.u32.totalorder %s12145_s28, %s12500_s27 }
 0x29c   :  { %p12151_p6 = pnand %p12149_p5, %p12146_p4 }
 0x29e   :  { %12154 = shalt.err (!%p12151_p6)
}
 0x29f   :  { %s12155_s3 = scalar_lea.vmem %s445_s20, 2048  ;;  %p12160_p8 = scmp.lt.s32.totalorder %s445_s20, %s445_s20 }
 0x2a0   :  { %p12156_p7 = scmp.ne.s32.totalorder %s445_s20, %s12155_s3  ;;  %p12161_p9 = scmp.lt.s32.totalorder %s12155_s3, %s12155_s3 }
 0x2a2   :  { %p12162_p10 = por %p12161_p9, %p12160_p8 }
 0x2a4   :  { %p12163_p11 = pnand %p12162_p10, %p12156_p7 }
 0x2a6   :  { %12166 = shalt.err (!%p12163_p11)
}
 0x2a7   :  { %450 = dma.hbm_to_vmem [thread:$0]  %s12500_s27, 2048, %s445_s20, [#allocation51], %s12294_s1, %s12294_s1, %s12306_s11  }
 0x2a8   :  { %s12167_s4 = scalar_lea.hbm %s12505_s13, 16 }
 0x2a9   :  { %p12168_p12 = scmp.ne.s32.totalorder %s12505_s13, %s12167_s4  ;;  %p12171_p13 = scmp.lt.u32.totalorder %s12167_s4, %s12505_s13 }
 0x2ab   :  { %p12173_p0 = pnand %p12171_p13, %p12168_p12 }
 0x2ad   :  { %12176 = shalt.err (!%p12173_p0)
}
 0x2ae   :  { %s12177_s2 = scalar_lea.vmem %s458_s26, 16  ;;  %s12181_s9 = scalar_lea.vmem %s458_s26, 32 }
 0x2af   :  { %p12178_p1 = scmp.ne.s32.totalorder %s458_s26, %s12177_s2  ;;  %p12182_p2 = scmp.lt.s32.totalorder %s458_s26, %s458_s26 }
 0x2b0   :  { %p12183_p3 = scmp.lt.s32.totalorder %s12181_s9, %s12177_s2 }
 0x2b2   :  { %p12184_p4 = por %p12183_p3, %p12182_p2 }
 0x2b4   :  { %p12185_p5 = pnand %p12184_p4, %p12178_p1 }
 0x2b6   :  { %12188 = shalt.err (!%p12185_p5)
}
 0x2b7   :  { %460 = dma.hbm_to_vmem [thread:$0]  %s12505_s13, 16, %s458_s26, [#allocation54]  }
 0x2b8   :  { %12211 = dma.done.wait [#allocation3], 256  }
 0x2b9   :  { %12212 = vsyncadd [#allocation3], 4294967040 }
 0x2ba   :  { %12213 = dma.done.wait [#allocation6], 96  }
 0x2bb   :  { %12214 = vsyncadd [#allocation6], 4294967200 }
 0x2bc   :  { %12215 = dma.done.wait [#allocation9], 32  }
 0x2bd   :  { %12216 = vsyncadd [#allocation9], 4294967264 }
 0x2be   :  { %12217 = dma.done.wait [#allocation12], 1040  }
 0x2bf   :  { %12218 = vsyncadd [#allocation12], 4294966256 }
 0x2c0   :  { %12219 = dma.done.wait [#allocation15], 576  }
 0x2c1   :  { %12220 = vsyncadd [#allocation15], 4294966720 }
 0x2c2   :  { %12221 = dma.done.wait [#allocation18], 32  }
 0x2c3   :  { %12222 = vsyncadd [#allocation18], 4294967264 }
 0x2c4   :  { %12223 = dma.done.wait [#allocation21], 2064  }
 0x2c5   :  { %12224 = vsyncadd [#allocation21], 4294965232 }
 0x2c6   :  { %12225 = dma.done.wait [#allocation24], 8320  }
 0x2c7   :  { %12226 = vsyncadd [#allocation24], 4294958976 }
 0x2c8   :  { %12227 = dma.done.wait [#allocation27], 256  }
 0x2c9   :  { %12228 = vsyncadd [#allocation27], 4294967040 }
 0x2ca   :  { %12229 = dma.done.wait [#allocation30], 16512  }
 0x2cb   :  { %12230 = vsyncadd [#allocation30], 4294950784 }
 0x2cc   :  { %12231 = dma.done.wait [#allocation33], 40960  }
 0x2cd   :  { %12232 = vsyncadd [#allocation33], 4294926336 }
 0x2ce   :  { %12233 = dma.done.wait [#allocation36], 128  }
 0x2cf   :  { %12234 = vsyncadd [#allocation36], 4294967168 }
 0x2d0   :  { %12235 = dma.done.wait [#allocation39], 8256  }
 0x2d1   :  { %12236 = vsyncadd [#allocation39], 4294959040 }
 0x2d2   :  { %12237 = dma.done.wait [#allocation42], 10240  }
 0x2d3   :  { %12238 = vsyncadd [#allocation42], 4294957056 }
 0x2d4   :  { %12239 = dma.done.wait [#allocation45], 64  }
 0x2d5   :  { %12240 = vsyncadd [#allocation45], 4294967232 }
 0x2d6   :  { %12241 = dma.done.wait [#allocation48], 4128  }
 0x2d7   :  { %12242 = vsyncadd [#allocation48], 4294963168 }
 0x2d8   :  { %12243 = dma.done.wait [#allocation51], 2560  }
 0x2d9   :  { %12244 = vsyncadd [#allocation51], 4294964736 }
 0x2da   :  { %12245 = dma.done.wait [#allocation54], 16  }
 0x2db   :  { %12246 = vsyncadd [#allocation54], 4294967280  ;;  %vm587_vm0 = vcmask 1043456   ;;  %vm580_vm1 = vcmask 64512   ;;  %v569_v0 = vld [vmem:[#allocation7] sm:$0xf]  ;;  %v721_v31 = vlaneseq }
 0x2dc   :  { %10843 = vmatprep.subr.msk.bf16.mxu0 %vm587_vm0, %v569_v0  ;;  %v589_v1 = vsel %vm587_vm0, %v569_v0, 0  ;;  %v10927_v2 = vld [vmem:[#allocation2] sm:$0xff]   ;;  %v10928_v3 = vld [vmem:[#allocation2 + $0x8] sm:$0xff]   ;;  %v12326_v4 = vmov 0.0|0.0   ;;  %vm12327_vm2 = vmmov 0   ;;  %v14261_v5 = vmov 0.0  }
 0x2dd   :  { %9844 = vmatpush3.bf16.msra.mxu0 %v589_v1  ;;  %9845 = vmatprep.mubr.msk.bf16.mxu0 %vm580_vm1, %v10927_v2  ;;  %v814_v6 = vld [vmem:[#allocation13] sm:$0xff]  ;;  %v815_v7 = vld [vmem:[#allocation13 + $0x8] sm:$0xff]  ;;  %v816_v8 = vld [vmem:[#allocation13 + $0x10] sm:$0xff]  ;;  %vm641_vm3 = vcmask 261120   ;;  %v12740_v32 = vshrl.u32 %v721_v31, 7  ;;  %vm822_vm4 = vcmask 523264  }
 0x2de   :  { %10033 = vmatprep.subr.bf16.mxu0 %v12326_v4  ;;  %10045 = vmatprep.subr.bf16.mxu1 %v12326_v4  ;;  %v10046_v9 = vpack.c.bf16 %v815_v7, %v814_v6  ;;  %v817_v10 = vld [vmem:[#allocation13 + $0x18] sm:$0xff]  ;;  %v818_v11 = vld [vmem:[#allocation13 + $0x20] sm:$0xff]  ;;  %v819_v12 = vld [vmem:[#allocation13 + $0x28] sm:$0xff]  ;;  %vm977_vm5 = vcmask 31744   ;;  %vm4986_vm6 = vcmask 1041409   ;;  %vm8366_vm15 = vcmask 130048  }
 0x2df   :  { %9887 = vmatprep.mubr.msk.f32.mxu1 %vm12327_vm2, %v14261_v5  ;;  %v10049_v13 = vpack.c.bf16 %v817_v10, %v816_v8  ;;  %v10052_v14 = vpack.c.bf16 %v819_v12, %v818_v11  ;;  %v12722_v27 = vld [vmem:[#allocation5] sm:$0x3]  ;;  %v821_v29 = vld [vmem:[#allocation13 + $0x38] sm:$0xff]  ;;  %14336 = vst [vmem:[#allocation92_spill] sm:$0xff] %v12740_v32  ;;  %v12746_v35 = vsub.s32 0, %v12740_v32  ;;  %v10929_v61 = vld [vmem:[#allocation16] sm:$0xff]  }
 0x2e0   :  { %9846 = vmatmul.mubr.msk.bf16.vlgmr.msra.gmra.mrb[0].mxu0 %vm580_vm1, %v10928_v3  ;;  %10047 = vmatpush3.bf16.msra.mxu1 %v10046_v9  ;;  %v820_v28 = vld [vmem:[#allocation13 + $0x30] sm:$0xff]  ;;  %v12742_v33 = vld [vmem:[#allocation8] sm:$0x1]  ;;  %v976_v50 = vld [vmem:[#allocation14] sm:$0xf]  ;;  %s12331_s13 = smov [#allocation55]  }
 0x2e1   :  { %9857 = vmatprep.mubr.msk.f32.mxu0 %vm12327_vm2, %v14261_v5  ;;  %10048 = vmatprep.subr.bf16.mxu1 %v12326_v4  ;;  %v10055_v30 = vpack.c.bf16 %v821_v29, %v820_v28  ;;  %v719_v34 = vmul.f32 16.0, %v12742_v33  ;;  %14337 = vst [vmem:[#allocation93_spill] sm:$0xff] %v12746_v35  ;;  %v727_v37 = vmul.f32 2.0, %v12742_v33  ;;  %v805_v38 = vmul.f32 %v12742_v33, %v12742_v33  ;;  %v10930_v62 = vld [vmem:[#allocation16 + $0x8] sm:$0xff]   ;;  %v10931_v63 = vld [vmem:[#allocation16 + $0x10] sm:$0xff]   ;;  %v10932_v0 = vld [vmem:[#allocation16 + $0x18] sm:$0xff]  }
 0x2e2   :  { %v12329_v3 = vmov 1966171168   ;;  %v1140_v8 = vrot.slane %v12742_v33, %v12746_v35  ;;  %s8733_s27 = sshll.u32 %s12331_s13, 4  ;;  %s8734_s27 = int_to_ptr.vmem [resolvable:$true] %s8733_s27 }
 0x2e3   :  { %v724_v36 = vrot.slane %v719_v34, %v12746_v35  ;;  %v732_v42 = vrot.slane %v727_v37, %v12746_v35  ;;  %v806_v43 = vmul.f32 16.0, %v805_v38  ;;  %v1153_v6 = vunpack.c.l.s4 %v12329_v3  ;;  %s12189_s1 = scalar_lea.vmem %s8734_s27, 32  ;;  %p12194_p7 = scmp.lt.s32.totalorder %s8734_s27, %s8734_s27 }
 0x2e4   :  { %10050 = vmatpush3.bf16.msra.mxu1 %v10049_v13  ;;  %p12190_p6 = scmp.ne.s32.totalorder %s8734_s27, %s12189_s1  ;;  %p12195_p8 = scmp.lt.s32.totalorder %s12189_s1, %s12189_s1 }
 0x2e5   :  { %10051 = vmatprep.subr.bf16.mxu1 %v12326_v4  ;;  %v811_v45 = vrot.slane %v806_v43, %v12746_v35  ;;  %v1154_v7 = vunpack.c.0.s8 %v1153_v6 }
 0x2e6   :  { %p12196_p9 = por %p12195_p8, %p12194_p7 }
 0x2e7   :  { %v12769_v10 = vsub.s32 %v1154_v7, %v12740_v32 }
 0x2e8   :  { %10053 = vmatpush3.bf16.msra.mxu1 %v10052_v14  ;;  %p12197_p10 = pnand %p12196_p9, %p12190_p6 }
 0x2e9   :  { %10054 = vmatprep.subr.bf16.mxu1 %v12326_v4 }
 0x2ec   :  { %10056 = vmatpush3.bf16.msra.mxu1 %v10055_v30 }
 0x2ed   :  { %9909 = vmatprep.subr.mxu1 %v14261_v5 }
 0x3b3   :  { %v12701_v15 = vpop.f32.mrb[0].mxu0 }
 0x3b4   :  { %v12703_v16 = vpop.f32.mrb[1].mxu0  ;;  %v717_v18 = vmul.f32 %v12701_v15, %v12701_v15 }
 0x3b5   :  { %v12705_v17 = vpop.f32.mrb[2].mxu0  ;;  %v715_v22 = vmul.f32 %v12703_v16, %v12703_v16 }
 0x3b6   :  { %v10037_v19 = vpack.c.bf16 %v12705_v17, %v12701_v15  ;;  %v718_v20 = vmul.f32 %v12705_v17, %v12705_v17  ;;  %v12713_v21 = vpop.f32.mrb[3].mxu0 }
 0x3b7   :  { %v10034_v23 = vpack.c.bf16 %v12713_v21, %v12703_v16  ;;  %v716_v24 = vmul.f32 %v12713_v21, %v12713_v21 }
 0x3b8   :  { %v10043_v25 = vpack.c.bf16 %v718_v20, %v717_v18  ;;  %v8806_v18 = vld [vmem:[#allocation11] ss:$0 sm:$0xff] }
 0x3b9   :  { %v10040_v26 = vpack.c.bf16 %v716_v24, %v715_v22  ;;  %10035 = vmatpush3.bf16.msra.mxu0 %v10034_v23 }
 0x3ba   :  { %10036 = vmatprep.subr.bf16.mxu0 %v12326_v4 }
 0x3bd   :  { %10038 = vmatpush3.bf16.msra.mxu0 %v10037_v19 }
 0x3be   :  { %10039 = vmatprep.subr.bf16.mxu0 %v12326_v4 }
 0x3c0   :  { %9858 = vmatmul.mubr.msk.f32.vlgmr.msra.gmra.mrb[4].mxu0 %vm641_vm3, %v12722_v27 }
 0x3c1   :  { %10041 = vmatpush3.bf16.msra.mxu0 %v10040_v26  ;;  %9868 = vmatprep.mubr.msk.f32.mxu0 %vm12327_vm2, %v14261_v5 }
 0x3c2   :  { %10042 = vmatprep.subr.bf16.mxu0 %v12326_v4 }
 0x3c5   :  { %10044 = vmatpush3.bf16.msra.mxu0 %v10043_v25 }
 0x3c6   :  { %10057 = vmatprep.subr.bf16.mxu0 %v12326_v4 }
 0x3c8   :  { %9869 = vmatmul.mubr.msk.f32.vlgmr.msra.gmra.mrb[6].mxu0 %vm641_vm3, %v12722_v27 }
 0x3c9   :  { %10059 = vmatpush3.bf16.msra.mxu0 %v10046_v9  ;;  %9906 = vmatprep.mubr.msk.f32.mxu0 %vm12327_vm2, %v14261_v5  ;;  %v8805_v9 = vld [vmem:[#allocation10] ss:$0 sm:$0xff] }
 0x3ca   :  { %10060 = vmatprep.subr.bf16.mxu0 %v12326_v4 }
 0x3cd   :  { %10062 = vmatpush3.bf16.msra.mxu0 %v10049_v13 }
 0x3ce   :  { %10063 = vmatprep.subr.bf16.mxu0 %v12326_v4 }
 0x3d1   :  { %10065 = vmatpush3.bf16.msra.mxu0 %v10052_v14 }
 0x3d2   :  { %10066 = vmatprep.subr.bf16.mxu0 %v12326_v4 }
 0x3d5   :  { %10068 = vmatpush3.bf16.msra.mxu0 %v10055_v30 }
 0x3d6   :  { %9914 = vmatprep.subr.mxu0 %v14261_v5 }
 0x493   :  { %v711_v39 = vpop.f32.mrb[4].mxu0 }
 0x494   :  { %v726_v40 = vadd.f32 %v724_v36, %v711_v39  ;;  %v9859_v41 = vpop.f32.mrb[5].mxu0  ;;  %v734_v44 = vmul.f32 %v732_v42, %v711_v39 }
 0x496   :  { %9888 = vmatmul.mubr.msk.f32.vlgmr.msra.gmra.mrb[0].mxu1 %vm822_vm4, %v726_v40 }
 0x497   :  { %9911 = vmatprep.mubr.msk.f32.mxu1 %vm12327_vm2, %v14261_v5  ;;  %9910 = vmatpush3.msk.msra.mxu1 %vm587_vm0, %v976_v50 }
 0x498   :  { %9919 = vmatprep.subr.bf16.mxu1 %v10929_v61 }
 0x49b   :  { %v801_v46 = vpop.f32.mrb[6].mxu0 }
 0x49c   :  { %v802_v47 = vadd.f32 %v801_v46, %v734_v44  ;;  %v9870_v48 = vpop.f32.mrb[7].mxu0 }
 0x49e   :  { %v813_v49 = vadd.f32 %v811_v45, %v802_v47 }
 0x4a0   :  { %9907 = vmatmul.mubr.msk.f32.vlgmr.msra.gmra.mrb[8].mxu0 %vm822_vm4, %v813_v49  ;;  %v1490_v49 = vld [vmem:[#allocation22 + $0x10] sm:$0xff] }
 0x4a1   :  { %9916 = vmatprep.mubr.msk.f32.mxu0 %vm12327_vm2, %v14261_v5  ;;  %9915 = vmatpush3.msk.msra.mxu0 %vm587_vm0, %v976_v50 }
 0x4a2   :  { %10069 = vmatprep.subr.bf16.mxu0 %v12326_v4 }
 0x569   :  { %v892_v51 = vpop.f32.mrb[0].mxu1 }
 0x56a   :  { %v970_v52 = vmul.f32 0.00390625, %v892_v51  ;;  %v9889_v53 = vpop.f32.mrb[1].mxu1  ;;  %v1491_v51 = vld [vmem:[#allocation22 + $0x18] sm:$0xff] }
 0x56b   :  { %v1492_v53 = vld [vmem:[#allocation22 + $0x20] sm:$0xff] }
 0x56c   :  { %9912 = vmatmul.mubr.msk.f32.vlgmr.msra.gmra.mrb[2].mxu1 %vm977_vm5, %v970_v52  ;;  %v972_v55 = vmul.f32 %v970_v52, %v970_v52  ;;  %v10085_v52 = vpack.c.bf16 %v1491_v51, %v1490_v49  ;;  %v1905_v51 = vld [vmem:[#allocation25 + $0x20] sm:$0xff] }
 0x56d   :  { %9920 = vmatpush3.bf16.msra.mxu1 %v10929_v61 }
 0x56e   :  { %9921 = vmatprep.subr.bf16.mxu1 %v10930_v62 }
 0x571   :  { %9922 = vmatpush3.bf16.msra.mxu1 %v10930_v62  ;;  %v1498_v62 = vld [vmem:[#allocation22 + $0x50] sm:$0xff] }
 0x572   :  { %9923 = vmatprep.subr.bf16.mxu1 %v10931_v63 }
 0x573   :  { %v965_v54 = vpop.f32.mrb[8].mxu0 }
 0x574   :  { %v971_v56 = vmul.f32 0.00390625, %v965_v54  ;;  %v9908_v57 = vpop.f32.mrb[9].mxu0  ;;  %v1493_v54 = vld [vmem:[#allocation22 + $0x28] sm:$0xff] }
 0x575   :  { %9924 = vmatpush3.bf16.msra.mxu1 %v10931_v63  ;;  %v1495_v57 = vld [vmem:[#allocation22 + $0x38] sm:$0xff] }
 0x576   :  { %v973_v58 = vsub.f32 %v971_v56, %v972_v55  ;;  %9925 = vmatprep.subr.bf16.mxu1 %v10932_v0  ;;  %v10088_v55 = vpack.c.bf16 %v1493_v54, %v1492_v53  ;;  %v1494_v56 = vld [vmem:[#allocation22 + $0x30] sm:$0xff]  ;;  %v1499_v63 = vld [vmem:[#allocation22 + $0x58] sm:$0xff] }
 0x578   :  { %v974_v59 = vadd.f32 1e-05, %v973_v58  ;;  %v10091_v58 = vpack.c.bf16 %v1495_v57, %v1494_v56  ;;  %v1909_v56 = vld [vmem:[#allocation25 + $0x40] sm:$0xff] }
 0x579   :  { %9926 = vmatpush3.bf16.msra.mxu1 %v10932_v0  ;;  %v10097_v0 = vpack.c.bf16 %v1499_v63, %v1498_v62  ;;  %v1913_v57 = vld [vmem:[#allocation25 + $0x60] sm:$0xff]  ;;  %v1914_v62 = vld [vmem:[#allocation25 + $0x68] sm:$0xff] }
 0x57a   :  { %11429 = vrsqrt.f32 %v974_v59  ;;  %10081 = vmatprep.subr.bf16.mxu1 %v12326_v4  ;;  %v1496_v59 = vld [vmem:[#allocation22 + $0x40] sm:$0xff]  ;;  %v1917_v63 = vld [vmem:[#allocation25 + $0x80] sm:$0xff] }
 0x584   :  { %v11430_v60 = vpop.eup %11429 }
 0x585   :  { %9917 = vmatmul.mubr.msk.f32.vlgmr.msra.gmra.mrb[10].mxu0 %vm977_vm5, %v11430_v60  ;;  %v1497_v60 = vld [vmem:[#allocation22 + $0x48] sm:$0xff] }
 0x586   :  { %9939 = vmatprep.mubr.msk.f32.mxu0 %vm12327_vm2, %v14261_v5  ;;  %v10094_v61 = vpack.c.bf16 %v1497_v60, %v1496_v59  ;;  %v8828_v60 = vcombine.high %v1909_v56, %v1913_v57 }
 0x63f   :  { %v1050_v1 = vpop.f32.mrb[2].mxu1 }
 0x640   :  { %v9913_v2 = vpop.f32.mrb[3].mxu1  ;;  %v1142_v12 = vsub.f32 %v1140_v8, %v1050_v1  ;;  %v1500_v1 = vld [vmem:[#allocation22 + $0x60] sm:$0xff] }
 0x641   :  { %v1501_v2 = vld [vmem:[#allocation22 + $0x68] sm:$0xff] }
 0x642   :  { %v10100_v3 = vpack.c.bf16 %v1501_v2, %v1500_v1  ;;  %v1921_v1 = vld [vmem:[#allocation25 + $0xa0] sm:$0xff]  ;;  %v1918_v2 = vld [vmem:[#allocation25 + $0x88] sm:$0xff] }
 0x658   :  { %v1123_v11 = vpop.f32.mrb[10].mxu0 }
 0x659   :  { %v1134_v13 = vmul.f32 %v8805_v9, %v1123_v11  ;;  %v9918_v14 = vpop.f32.mrb[11].mxu0 }
 0x65b   :  { %v1143_v19 = vmul.f32 %v1142_v12, %v1134_v13  ;;  %v1158_v20 = vrot.slane %v1134_v13, %v12769_v10 }
 0x65d   :  { %v1150_v22 = vadd.f32 %v8806_v18, %v1143_v19  ;;  %v1159_v23 = vcombine.high %v1158_v20, %v1158_v20  ;;  %v1166_v24 = vrot.slane %v1158_v20, %v12769_v10 }
 0x65f   :  { %v1173_v25 = vrot.slane %v1159_v23, %v12769_v10  ;;  %v1177_v26 = vrot.slane %v1166_v24, %v12746_v35  ;;  %v1195_v28 = vrot.slane %v1150_v22, %v12769_v10  ;;  %v1503_v23 = vld [vmem:[#allocation22 + $0x78] sm:$0xff] }
 0x661   :  { %v1181_v29 = vrot.slane %v1173_v25, %v12746_v35  ;;  %v1184_v30 = vmul.f32 %v1177_v26, %v12703_v16  ;;  %v1185_v31 = vmul.f32 %v1177_v26, %v12713_v21  ;;  %v1196_v33 = vcombine.high %v1195_v28, %v1195_v28  ;;  %v12837_v25 = vld [vmem:[#allocation17] sm:$0x1] }
 0x662   :  { %v1203_v34 = vrot.slane %v1195_v28, %v12769_v10  ;;  %v1393_v26 = vmul.f32 16.0, %v12837_v25 }
 0x663   :  { %v1186_v36 = vmul.f32 %v12701_v15, %v1181_v29  ;;  %v1187_v37 = vmul.f32 %v12705_v17, %v1181_v29  ;;  %v1210_v38 = vrot.slane %v1196_v33, %v12769_v10  ;;  %v1488_v15 = vld [vmem:[#allocation22] sm:$0xff]  ;;  %v1489_v17 = vld [vmem:[#allocation22 + $0x8] sm:$0xff]  ;;  %v1401_v29 = vmul.f32 2.0, %v12837_v25 }
 0x664   :  { %v1214_v39 = vrot.slane %v1203_v34, %v12746_v35  ;;  %v10082_v50 = vpack.c.bf16 %v1489_v17, %v1488_v15  ;;  %v1398_v28 = vrot.slane %v1393_v26, %v12746_v35 }
 0x665   :  { %v1218_v40 = vrot.slane %v1210_v38, %v12746_v35  ;;  %v1406_v34 = vrot.slane %v1401_v29, %v12746_v35 }
 0x666   :  { %v1221_v41 = vadd.f32 %v1214_v39, %v1184_v30  ;;  %v1222_v42 = vadd.f32 %v1214_v39, %v1185_v31 }
 0x667   :  { %v1223_v43 = vadd.f32 %v1218_v40, %v1186_v36  ;;  %v1224_v44 = vadd.f32 %v1218_v40, %v1187_v37 }
 0x668   :  { %v1225_v16 = vmax.f32 %v1221_v41, 0.0  ;;  %v1226_v45 = vmax.f32 %v1222_v42, 0.0 }
 0x669   :  { %v1227_v21 = vmax.f32 %v1223_v43, 0.0  ;;  %v1228_v46 = vmax.f32 %v1224_v44, 0.0  ;;  %v1650_v43 = vld [vmem:[#allocation23] sm:$0xff] }
 0x66a   :  { %v1229_v47 = vpack.c.bf16 %v1226_v45, %v1225_v16 }
 0x66b   :  { %v1230_v48 = vpack.c.bf16 %v1228_v46, %v1227_v21 }
 0x66c   :  { %9927 = vmatprep.mubr.msk.bf16.mxu1 %vm822_vm4, %v1229_v47 }
 0x66d   :  { %9928 = vmatmul.mubr.msk.bf16.vlgmr.msra.gmra.mrb[4].mxu1 %vm822_vm4, %v1230_v48 }
 0x66e   :  { %9985 = vmatprep.mubr.msk.f32.mxu1 %vm12327_vm2, %v14261_v5  ;;  %10083 = vmatpush3.bf16.msra.mxu1 %v10082_v50 }
 0x66f   :  { %10084 = vmatprep.subr.bf16.mxu1 %v12326_v4 }
 0x672   :  { %10086 = vmatpush3.bf16.msra.mxu1 %v10085_v52 }
 0x673   :  { %10087 = vmatprep.subr.bf16.mxu1 %v12326_v4 }
 0x676   :  { %10089 = vmatpush3.bf16.msra.mxu1 %v10088_v55 }
 0x677   :  { %10090 = vmatprep.subr.bf16.mxu1 %v12326_v4 }
 0x67a   :  { %10092 = vmatpush3.bf16.msra.mxu1 %v10091_v58 }
 0x67b   :  { %10093 = vmatprep.subr.bf16.mxu1 %v12326_v4 }
 0x67e   :  { %10095 = vmatpush3.bf16.msra.mxu1 %v10094_v61 }
 0x67f   :  { %10096 = vmatprep.subr.bf16.mxu1 %v12326_v4 }
 0x682   :  { %10098 = vmatpush3.bf16.msra.mxu1 %v10097_v0 }
 0x683   :  { %10099 = vmatprep.subr.bf16.mxu1 %v12326_v4 }
 0x686   :  { %10101 = vmatpush3.bf16.msra.mxu1 %v10100_v3 }
 0x687   :  { %10102 = vmatprep.subr.bf16.mxu1 %v12326_v4 }
 0x740   :  { %v12796_v6 = vpop.f32.mrb[4].mxu1 }
 0x741   :  { %v12798_v7 = vpop.f32.mrb[5].mxu1  ;;  %v1391_v9 = vmul.f32 %v12796_v6, %v12796_v6 }
 0x742   :  { %v12800_v8 = vpop.f32.mrb[6].mxu1  ;;  %v1389_v14 = vmul.f32 %v12798_v7, %v12798_v7 }
 0x743   :  { %v10073_v11 = vpack.c.bf16 %v12800_v8, %v12796_v6  ;;  %v1392_v12 = vmul.f32 %v12800_v8, %v12800_v8  ;;  %v12808_v13 = vpop.f32.mrb[7].mxu1 }
 0x744   :  { %v10070_v18 = vpack.c.bf16 %v12808_v13, %v12798_v7  ;;  %v1390_v19 = vmul.f32 %v12808_v13, %v12808_v13 }
 0x745   :  { %v10079_v20 = vpack.c.bf16 %v1392_v12, %v1391_v9  ;;  %v8827_v9 = vcombine.low %v1909_v56, %v1913_v57  ;;  %v8836_v12 = vcombine.high %v1917_v63, %v1921_v1  ;;  %v1962_v56 = vld [vmem:[#allocation25 + $0x1e8] sm:$0xff]  ;;  %v12330_v57 = vmov 0  }
 0x746   :  { %v10076_v22 = vpack.c.bf16 %v1390_v19, %v1389_v14  ;;  %10071 = vmatpush3.bf16.msra.mxu0 %v10070_v18  ;;  %v1925_v18 = vld [vmem:[#allocation25 + $0xc0] sm:$0xff] }
 0x747   :  { %10072 = vmatprep.subr.bf16.mxu0 %v12326_v4  ;;  %v1929_v19 = vld [vmem:[#allocation25 + $0xe0] sm:$0xff] }
 0x74a   :  { %10074 = vmatpush3.bf16.msra.mxu0 %v10073_v11 }
 0x74b   :  { %10075 = vmatprep.subr.bf16.mxu0 %v12326_v4 }
 0x74d   :  { %9940 = vmatmul.mubr.msk.f32.vlgmr.msra.gmra.mrb[12].mxu0 %vm641_vm3, %v12722_v27 }
 0x74e   :  { %10077 = vmatpush3.bf16.msra.mxu0 %v10076_v22  ;;  %9950 = vmatprep.mubr.msk.f32.mxu0 %vm12327_vm2, %v14261_v5  ;;  %v1930_v22 = vld [vmem:[#allocation25 + $0xe8] sm:$0xff] }
 0x74f   :  { %10078 = vmatprep.subr.bf16.mxu0 %v12326_v4 }
 0x752   :  { %10080 = vmatpush3.bf16.msra.mxu0 %v10079_v20  ;;  %v1926_v20 = vld [vmem:[#allocation25 + $0xc8] sm:$0xff] }
 0x753   :  { %10105 = vmatprep.subr.bf16.mxu0 %v12326_v4  ;;  %v8846_v26 = vcombine.high %v1926_v20, %v1930_v22  ;;  %v8845_v29 = vcombine.low %v1926_v20, %v1930_v22 }
 0x755   :  { %9951 = vmatmul.mubr.msk.f32.vlgmr.msra.gmra.mrb[14].mxu0 %vm641_vm3, %v12722_v27  ;;  %v1502_v27 = vld [vmem:[#allocation22 + $0x70] sm:$0xff] }
 0x756   :  { %10107 = vmatpush3.bf16.msra.mxu0 %v10082_v50  ;;  %10020 = vmatprep.mubr.msk.f32.mxu0 %vm12327_vm2, %v14261_v5  ;;  %v10103_v24 = vpack.c.bf16 %v1503_v23, %v1502_v27  ;;  %v1901_v50 = vld [vmem:[#allocation25] sm:$0xff]  ;;  %v8835_v27 = vcombine.low %v1917_v63, %v1921_v1  ;;  %v1908_v1 = vld [vmem:[#allocation25 + $0x38] sm:$0xff] }
 0x757   :  { %10108 = vmatprep.subr.bf16.mxu0 %v12326_v4  ;;  %v8819_v53 = vcombine.low %v1901_v50, %v1905_v51  ;;  %v8820_v54 = vcombine.high %v1901_v50, %v1905_v51  ;;  %v1957_v51 = vld [vmem:[#allocation25 + $0x1c0] sm:$0xff] }
 0x758   :  { %10104 = vmatpush3.bf16.msra.mxu1 %v10103_v24 }
 0x759   :  { %10023 = vmatprep.subr.mxu1 %v14261_v5 }
 0x75a   :  { %10110 = vmatpush3.bf16.msra.mxu0 %v10085_v52  ;;  %v1902_v52 = vld [vmem:[#allocation25 + $0x8] sm:$0xff] }
 0x75b   :  { %10111 = vmatprep.subr.bf16.mxu0 %v12326_v4 }
 0x75e   :  { %10113 = vmatpush3.bf16.msra.mxu0 %v10088_v55  ;;  %v1906_v55 = vld [vmem:[#allocation25 + $0x28] sm:$0xff] }
 0x75f   :  { %10114 = vmatprep.subr.bf16.mxu0 %v12326_v4  ;;  %v8822_v59 = vcombine.high %v1902_v52, %v1906_v55 }
 0x762   :  { %10116 = vmatpush3.bf16.msra.mxu0 %v10091_v58  ;;  %v8821_v58 = vcombine.low %v1902_v52, %v1906_v55  ;;  %v1961_v52 = vld [vmem:[#allocation25 + $0x1e0] sm:$0xff] }
 0x763   :  { %10117 = vmatprep.subr.bf16.mxu0 %v12326_v4  ;;  %v8876_v55 = vcombine.high %v1957_v51, %v1961_v52 }
 0x766   :  { %10119 = vmatpush3.bf16.msra.mxu0 %v10094_v61  ;;  %v1910_v61 = vld [vmem:[#allocation25 + $0x48] sm:$0xff] }
 0x767   :  { %10120 = vmatprep.subr.bf16.mxu0 %v12326_v4  ;;  %v8829_v11 = vcombine.low %v1910_v61, %v1914_v62 }
 0x76a   :  { %10122 = vmatpush3.bf16.msra.mxu0 %v10097_v0  ;;  %v8830_v0 = vcombine.high %v1910_v61, %v1914_v62 }
 0x76b   :  { %10123 = vmatprep.subr.bf16.mxu0 %v12326_v4 }
 0x76e   :  { %10125 = vmatpush3.bf16.msra.mxu0 %v10100_v3  ;;  %v1922_v3 = vld [vmem:[#allocation25 + $0xa8] sm:$0xff] }
 0x76f   :  { %10126 = vmatprep.subr.bf16.mxu0 %v12326_v4  ;;  %v1479_v4 = vmul.f32 %v12837_v25, %v12837_v25  ;;  %v8838_v14 = vcombine.high %v1918_v2, %v1922_v3  ;;  %v8837_v23 = vcombine.low %v1918_v2, %v1922_v3 }
 0x771   :  { %v1480_v36 = vmul.f32 16.0, %v1479_v4  ;;  %v1933_v4 = vld [vmem:[#allocation25 + $0x100] sm:$0xff] }
 0x772   :  { %10128 = vmatpush3.bf16.msra.mxu0 %v10103_v24  ;;  %v8844_v24 = vcombine.high %v1925_v18, %v1929_v19 }
 0x773   :  { %10028 = vmatprep.subr.mxu0 %v14261_v5  ;;  %v1485_v38 = vrot.slane %v1480_v36, %v12746_v35 }
 0x820   :  { %v1385_v30 = vpop.f32.mrb[12].mxu0 }
 0x821   :  { %v1400_v31 = vadd.f32 %v1398_v28, %v1385_v30  ;;  %v9941_v33 = vpop.f32.mrb[13].mxu0  ;;  %v1408_v37 = vmul.f32 %v1406_v34, %v1385_v30  ;;  %v8843_v28 = vcombine.low %v1925_v18, %v1929_v19  ;;  %v1937_v30 = vld [vmem:[#allocation25 + $0x120] sm:$0xff]  ;;  %v1938_v34 = vld [vmem:[#allocation25 + $0x128] sm:$0xff] }
 0x822   :  { %v1934_v33 = vld [vmem:[#allocation25 + $0x108] sm:$0xff]  ;;  %v8851_v36 = vcombine.low %v1933_v4, %v1937_v30 }
 0x823   :  { %9986 = vmatmul.mubr.f32.vlgmr.msra.gmra.mrb[8].mxu1 %v1400_v31  ;;  %v8852_v31 = vcombine.high %v1933_v4, %v1937_v30 }
 0x824   :  { %10025 = vmatprep.mubr.msk.f32.mxu1 %vm12327_vm2, %v14261_v5  ;;  %10024 = vmatpush3.msra.mxu1 %v1650_v43 }
 0x825   :  { %2285 = vmatprep.subr.bf16.mxu1 %v8820_v54  ;;  %v8875_v54 = vcombine.low %v1957_v51, %v1961_v52  ;;  %v1920_v51 = vld [vmem:[#allocation25 + $0x98] sm:$0xff] }
 0x826   :  { %v1924_v52 = vld [vmem:[#allocation25 + $0xb8] sm:$0xff] }
 0x828   :  { %v1475_v39 = vpop.f32.mrb[14].mxu0 }
 0x829   :  { %v1476_v40 = vadd.f32 %v1475_v39, %v1408_v37  ;;  %v9952_v41 = vpop.f32.mrb[15].mxu0  ;;  %v8853_v37 = vcombine.low %v1934_v33, %v1938_v34  ;;  %v1941_v39 = vld [vmem:[#allocation25 + $0x140] sm:$0xff] }
 0x82a   :  { %v1942_v41 = vld [vmem:[#allocation25 + $0x148] sm:$0xff] }
 0x82b   :  { %v1487_v42 = vadd.f32 %v1485_v38, %v1476_v40  ;;  %v8854_v38 = vcombine.high %v1934_v33, %v1938_v34  ;;  %v1945_v40 = vld [vmem:[#allocation25 + $0x160] sm:$0xff] }
 0x82d   :  { %10021 = vmatmul.mubr.f32.vlgmr.msra.gmra.mrb[16].mxu0 %v1487_v42  ;;  %v8860_v42 = vcombine.high %v1941_v39, %v1945_v40 }
 0x82e   :  { %10030 = vmatprep.mubr.msk.f32.mxu0 %vm12327_vm2, %v14261_v5  ;;  %10029 = vmatpush3.msra.mxu0 %v1650_v43  ;;  %v1946_v43 = vld [vmem:[#allocation25 + $0x168] sm:$0xff] }
 0x82f   :  { %2338 = vmatprep.subr.bf16.mxu0 %v8822_v59  ;;  %v12855_v59 = vld [vmem:[#allocation25 + $0x30] sm:$0xff] }
 0x8f6   :  { %v1570_v44 = vpop.f32.mrb[8].mxu1 }
 0x8f7   :  { %v1644_v16 = vmul.f32 0.00390625, %v1570_v44  ;;  %v9987_v45 = vpop.f32.mrb[9].mxu1  ;;  %v8859_v44 = vcombine.low %v1941_v39, %v1945_v40 }
 0x8f8   :  { %v8862_v45 = vcombine.high %v1942_v41, %v1946_v43 }
 0x8f9   :  { %10026 = vmatmul.mubr.msk.f32.vlgmr.msra.gmra.mrb[10].mxu1 %vm580_vm1, %v1644_v16  ;;  %v1646_v46 = vmul.f32 %v1644_v16, %v1644_v16  ;;  %v8861_v16 = vcombine.low %v1942_v41, %v1946_v43 }
 0x8fa   :  { %2286 = vmatpush1.bf16.msra.mxu1 %v8819_v53  ;;  %v1958_v53 = vld [vmem:[#allocation25 + $0x1c8] sm:$0xff]  ;;  %2317 = vmatprep.mubr.bf16.mxu1 %v12330_v57 }
 0x8fb   :  { %2287 = vmatprep.subr.bf16.mxu1 %v8828_v60  ;;  %v8877_v60 = vcombine.low %v1958_v53, %v1962_v56  ;;  %v8878_v61 = vcombine.high %v1958_v53, %v1962_v56 }
 0x8fe   :  { %2288 = vmatpush1.bf16.msra.mxu1 %v8827_v9 }
 0x8ff   :  { %2289 = vmatprep.subr.bf16.mxu1 %v8836_v12  ;;  %v1810_v12 = vrot.slane %v12837_v25, %v12746_v35 }
 0x900   :  { %v1640_v21 = vpop.f32.mrb[16].mxu0 }
 0x901   :  { %v1645_v47 = vmul.f32 0.00390625, %v1640_v21  ;;  %v10022_v48 = vpop.f32.mrb[17].mxu0  ;;  %v1949_v21 = vld [vmem:[#allocation25 + $0x180] sm:$0xff] }
 0x902   :  { %2290 = vmatpush1.bf16.msra.mxu1 %v8835_v27  ;;  %v8818_v27 = vld [vmem:[#allocation20] ss:$0 sm:$0xff] }
 0x903   :  { %v1647_v15 = vsub.f32 %v1645_v47, %v1646_v46  ;;  %2291 = vmatprep.subr.bf16.mxu1 %v8844_v24  ;;  %v1953_v46 = vld [vmem:[#allocation25 + $0x1a0] sm:$0xff]  ;;  %v1950_v47 = vld [vmem:[#allocation25 + $0x188] sm:$0xff] }
 0x904   :  { %v8868_v48 = vcombine.high %v1949_v21, %v1953_v46 }
 0x905   :  { %v1648_v17 = vadd.f32 1e-05, %v1647_v15  ;;  %v1954_v15 = vld [vmem:[#allocation25 + $0x1a8] sm:$0xff] }
 0x906   :  { %2292 = vmatpush1.bf16.msra.mxu1 %v8843_v28  ;;  %v8870_v50 = vcombine.high %v1950_v47, %v1954_v15 }
 0x907   :  { %11431 = vrsqrt.f32 %v1648_v17  ;;  %2293 = vmatprep.subr.bf16.mxu1 %v8852_v31  ;;  %v8867_v17 = vcombine.low %v1949_v21, %v1953_v46  ;;  %v1916_v21 = vld [vmem:[#allocation25 + $0x78] sm:$0xff] }
 0x90a   :  { %2294 = vmatpush1.bf16.msra.mxu1 %v8851_v36 }
 0x90b   :  { %2295 = vmatprep.subr.bf16.mxu1 %v8860_v42 }
 0x90e   :  { %2296 = vmatpush1.bf16.msra.mxu1 %v8859_v44 }
 0x90f   :  { %2297 = vmatprep.subr.bf16.mxu1 %v8868_v48 }
 0x911   :  { %v11432_v49 = vpop.eup %11431 }
 0x912   :  { %10031 = vmatmul.mubr.msk.f32.vlgmr.msra.gmra.mrb[18].mxu0 %vm580_vm1, %v11432_v49  ;;  %v8869_v49 = vcombine.low %v1950_v47, %v1954_v15  ;;  %2298 = vmatpush1.bf16.msra.mxu1 %v8867_v17 }
 0x913   :  { %2339 = vmatpush1.bf16.msra.mxu0 %v8821_v58  ;;  %v12853_v58 = vld [vmem:[#allocation25 + $0x10] sm:$0xff]  ;;  %2370 = vmatprep.mubr.bf16.mxu0 %v12330_v57 }
 0x914   :  { %2340 = vmatprep.subr.bf16.mxu0 %v8830_v0  ;;  %v8823_v62 = vcombine.low %v12853_v58, %v12855_v59  ;;  %v8824_v63 = vcombine.high %v12853_v58, %v12855_v59  ;;  %v1904_v0 = vld [vmem:[#allocation25 + $0x18] sm:$0xff]  ;;  %2299 = vmatprep.subr.bf16.mxu1 %v8876_v55  ;;  %v8842_v58 = vcombine.high %v1920_v51, %v1924_v52  ;;  %v1927_v59 = vld [vmem:[#allocation25 + $0xd0] sm:$0xff] }
 0x915   :  { %v8825_v2 = vcombine.low %v1904_v0, %v1908_v1  ;;  %v8826_v3 = vcombine.high %v1904_v0, %v1908_v1  ;;  %v8841_v1 = vcombine.low %v1920_v51, %v1924_v52 }
 0x916   :  { %2300 = vmatpush1.bf16.msra.mxu1 %v8875_v54 }
 0x917   :  { %2341 = vmatpush1.bf16.msra.mxu0 %v8829_v11  ;;  %2391 = vmatprep.subr.bf16.mxu1 %v8824_v63  ;;  %v1932_v63 = vld [vmem:[#allocation25 + $0xf8] sm:$0xff] }
 0x918   :  { %2342 = vmatprep.subr.bf16.mxu0 %v8838_v14  ;;  %v8817_v14 = vld [vmem:[#allocation19] ss:$0 sm:$0xff] }
 0x91b   :  { %2343 = vmatpush1.bf16.msra.mxu0 %v8837_v23 }
 0x91c   :  { %2344 = vmatprep.subr.bf16.mxu0 %v8846_v26 }
 0x91f   :  { %2345 = vmatpush1.bf16.msra.mxu0 %v8845_v29 }
 0x920   :  { %2346 = vmatprep.subr.bf16.mxu0 %v8854_v38 }
 0x923   :  { %2347 = vmatpush1.bf16.msra.mxu0 %v8853_v37 }
 0x924   :  { %2348 = vmatprep.subr.bf16.mxu0 %v8862_v45  ;;  %v1915_v45 = vld [vmem:[#allocation25 + $0x70] sm:$0xff] }
 0x927   :  { %2349 = vmatpush1.bf16.msra.mxu0 %v8861_v16  ;;  %v1911_v16 = vld [vmem:[#allocation25 + $0x50] sm:$0xff] }
 0x928   :  { %2350 = vmatprep.subr.bf16.mxu0 %v8870_v50  ;;  %v1923_v50 = vld [vmem:[#allocation25 + $0xb0] sm:$0xff]  ;;  %v8831_v54 = vcombine.low %v1911_v16, %v1915_v45 }
 0x92b   :  { %2351 = vmatpush1.bf16.msra.mxu0 %v8869_v49  ;;  %v1919_v49 = vld [vmem:[#allocation25 + $0x90] sm:$0xff] }
 0x92c   :  { %2352 = vmatprep.subr.bf16.mxu0 %v8878_v61  ;;  %v8840_v56 = vcombine.high %v1919_v49, %v1923_v50  ;;  %v1928_v61 = vld [vmem:[#allocation25 + $0xd8] sm:$0xff]  ;;  %v8839_v0 = vcombine.low %v1919_v49, %v1923_v50 }
 0x92f   :  { %2353 = vmatpush1.bf16.msra.mxu0 %v8877_v60  ;;  %v1931_v60 = vld [vmem:[#allocation25 + $0xf0] sm:$0xff] }
 0x930   :  { %2444 = vmatprep.subr.bf16.mxu0 %v8826_v3  ;;  %v1935_v3 = vld [vmem:[#allocation25 + $0x110] sm:$0xff] }
 0x9cc   :  { %v1720_v9 = vpop.f32.mrb[10].mxu1 }
 0x9cd   :  { %v10027_v11 = vpop.f32.mrb[11].mxu1  ;;  %v1812_v19 = vsub.f32 %v1810_v12, %v1720_v9  ;;  %v1939_v9 = vld [vmem:[#allocation25 + $0x130] sm:$0xff]  ;;  %v1940_v12 = vld [vmem:[#allocation25 + $0x138] sm:$0xff] }
 0x9ce   :  { %v1936_v11 = vld [vmem:[#allocation25 + $0x118] sm:$0xff] }
 0x9e5   :  { %v1793_v18 = vpop.f32.mrb[18].mxu0 }
 0x9e6   :  { %v1804_v20 = vmul.f32 %v8817_v14, %v1793_v18  ;;  %v10032_v22 = vpop.f32.mrb[19].mxu0  ;;  %v8847_v14 = vcombine.low %v1927_v59, %v1931_v60  ;;  %v8849_v18 = vcombine.low %v1928_v61, %v1932_v63 }
 0x9e7   :  { %v1943_v22 = vld [vmem:[#allocation25 + $0x150] sm:$0xff] }
 0x9e8   :  { %v1813_v23 = vmul.f32 %v1812_v19, %v1804_v20  ;;  %v1828_v24 = vrot.slane %v1804_v20, %v12769_v10  ;;  %v8856_v19 = vcombine.high %v1935_v3, %v1939_v9  ;;  %v8858_v20 = vcombine.high %v1936_v11, %v1940_v12 }
 0x9ea   :  { %v1820_v26 = vadd.f32 %v8818_v27, %v1813_v23  ;;  %v1829_v28 = vcombine.high %v1828_v24, %v1828_v24  ;;  %v1836_v29 = vrot.slane %v1828_v24, %v12769_v10  ;;  %v1947_v27 = vld [vmem:[#allocation25 + $0x170] sm:$0xff]  ;;  %v1944_v23 = vld [vmem:[#allocation25 + $0x158] sm:$0xff] }
 0x9eb   :  { %v1948_v24 = vld [vmem:[#allocation25 + $0x178] sm:$0xff] }
 0x9ec   :  { %v1843_v4 = vrot.slane %v1829_v28, %v12769_v10  ;;  %v1847_v30 = vrot.slane %v1836_v29, %v12746_v35  ;;  %v1865_v31 = vrot.slane %v1820_v26, %v12769_v10  ;;  %v8855_v26 = vcombine.low %v1935_v3, %v1939_v9 }
 0x9ed   :  { %v8857_v28 = vcombine.low %v1936_v11, %v1940_v12  ;;  %v8864_v29 = vcombine.high %v1943_v22, %v1947_v27 }
 0x9ee   :  { %v1851_v25 = vrot.slane %v1843_v4, %v12746_v35  ;;  %v1854_v33 = vmul.f32 %v1847_v30, %v12798_v7  ;;  %v1855_v34 = vmul.f32 %v1847_v30, %v12808_v13  ;;  %v1866_v36 = vcombine.high %v1865_v31, %v1865_v31  ;;  %v1912_v7 = vld [vmem:[#allocation25 + $0x58] sm:$0xff]  ;;  %v1951_v30 = vld [vmem:[#allocation25 + $0x190] sm:$0xff] }
 0x9ef   :  { %v1873_v37 = vrot.slane %v1865_v31, %v12769_v10  ;;  %v8833_v55 = vcombine.low %v1912_v7, %v1916_v21  ;;  %v8866_v4 = vcombine.high %v1944_v23, %v1948_v24  ;;  %v1955_v31 = vld [vmem:[#allocation25 + $0x1b0] sm:$0xff] }
 0x9f0   :  { %v1856_v38 = vmul.f32 %v12796_v6, %v1851_v25  ;;  %v1857_v39 = vmul.f32 %v12800_v8, %v1851_v25  ;;  %v1880_v40 = vrot.slane %v1866_v36, %v12769_v10  ;;  %v8832_v8 = vcombine.high %v1911_v16, %v1915_v45  ;;  %v1952_v25 = vld [vmem:[#allocation25 + $0x198] sm:$0xff] }
 0x9f1   :  { %v1884_v41 = vrot.slane %v1873_v37, %v12746_v35  ;;  %v8834_v10 = vcombine.high %v1912_v7, %v1916_v21  ;;  %v8865_v36 = vcombine.low %v1944_v23, %v1948_v24  ;;  %v8872_v37 = vcombine.high %v1951_v30, %v1955_v31 }
 0x9f2   :  { %v1888_v42 = vrot.slane %v1880_v40, %v12746_v35  ;;  %v1963_v40 = vld [vmem:[#allocation25 + $0x1f0] sm:$0xff] }
 0x9f3   :  { %v1891_v43 = vadd.f32 %v1884_v41, %v1854_v33  ;;  %v1892_v44 = vadd.f32 %v1884_v41, %v1855_v34  ;;  %v1956_v33 = vld [vmem:[#allocation25 + $0x1b8] sm:$0xff]  ;;  %v8863_v34 = vcombine.low %v1943_v22, %v1947_v27 }
 0x9f4   :  { %v1893_v13 = vadd.f32 %v1888_v42, %v1856_v38  ;;  %v1894_v46 = vadd.f32 %v1888_v42, %v1857_v39  ;;  %v8874_v38 = vcombine.high %v1952_v25, %v1956_v33  ;;  %v1959_v39 = vld [vmem:[#allocation25 + $0x1d0] sm:$0xff]  ;;  %v1960_v41 = vld [vmem:[#allocation25 + $0x1d8] sm:$0xff] }
 0x9f5   :  { %v1895_v47 = vmax.f32 %v1891_v43, 0.0  ;;  %v1896_v48 = vmax.f32 %v1892_v44, 0.0  ;;  %v1964_v42 = vld [vmem:[#allocation25 + $0x1f8] sm:$0xff]  ;;  %v8871_v43 = vcombine.low %v1951_v30, %v1955_v31  ;;  %v8873_v44 = vcombine.low %v1952_v25, %v1956_v33 }
 0x9f6   :  { %v1897_v15 = vmax.f32 %v1893_v13, 0.0  ;;  %v1898_v6 = vmax.f32 %v1894_v46, 0.0  ;;  %v8880_v16 = vcombine.high %v1959_v39, %v1963_v40  ;;  %v8882_v45 = vcombine.high %v1960_v41, %v1964_v42 }
 0x9f7   :  { %v12878_v17 = vpack.c.bf16 %v1896_v48, %v1895_v47  ;;  %v8879_v7 = vcombine.low %v1959_v39, %v1963_v40  ;;  %v8881_v21 = vcombine.low %v1960_v41, %v1964_v42 }
 0x9f8   :  { %v12880_v53 = vpack.c.bf16 %v1898_v6, %v1897_v15 }
 0x9f9   :  { %2318 = vmatmul.mubr.bf16.vlgmr.msra.gmra.mrb[12].mxu1 %v12878_v17  ;;  %2371 = vmatmul.mubr.bf16.vlgmr.msra.gmra.mrb[20].mxu0 %v12878_v17 }
 0x9fa   :  { %2392 = vmatpush1.bf16.msra.mxu1 %v8823_v62  ;;  %2445 = vmatpush1.bf16.msra.mxu0 %v8825_v2  ;;  %v8848_v62 = vcombine.high %v1927_v59, %v1931_v60  ;;  %v8850_v2 = vcombine.high %v1928_v61, %v1932_v63 }
 0x9fb   :  { %2393 = vmatprep.subr.bf16.mxu1 %v8832_v8  ;;  %2446 = vmatprep.subr.bf16.mxu0 %v8834_v10 }
 0x9fc   :  { %2327 = vmatprep.mubr.bf16.mxu1 %v12330_v57  ;;  %2380 = vmatprep.mubr.bf16.mxu0 %v12330_v57 }
 0x9fe   :  { %2394 = vmatpush1.bf16.msra.mxu1 %v8831_v54  ;;  %2447 = vmatpush1.bf16.msra.mxu0 %v8833_v55 }
 0x9ff   :  { %2395 = vmatprep.subr.bf16.mxu1 %v8840_v56  ;;  %2448 = vmatprep.subr.bf16.mxu0 %v8842_v58 }
 0xa01   :  { %2328 = vmatmul.mubr.bf16.gmra.mrb[16].mxu1 %v12880_v53  ;;  %2381 = vmatmul.mubr.bf16.gmra.mrb[24].mxu0 %v12880_v53 }
 0xa02   :  { %2396 = vmatpush1.bf16.msra.mxu1 %v8839_v0  ;;  %2449 = vmatpush1.bf16.msra.mxu0 %v8841_v1 }
 0xa03   :  { %2397 = vmatprep.subr.bf16.mxu1 %v8848_v62  ;;  %2450 = vmatprep.subr.bf16.mxu0 %v8850_v2 }
 0xa04   :  { %2423 = vmatprep.mubr.bf16.mxu1 %v12330_v57  ;;  %2476 = vmatprep.mubr.bf16.mxu0 %v12330_v57 }
 0xa06   :  { %2398 = vmatpush1.bf16.msra.mxu1 %v8847_v14  ;;  %2451 = vmatpush1.bf16.msra.mxu0 %v8849_v18 }
 0xa07   :  { %2399 = vmatprep.subr.bf16.mxu1 %v8856_v19  ;;  %2452 = vmatprep.subr.bf16.mxu0 %v8858_v20 }
 0xa0a   :  { %2400 = vmatpush1.bf16.msra.mxu1 %v8855_v26  ;;  %2453 = vmatpush1.bf16.msra.mxu0 %v8857_v28 }
 0xa0b   :  { %2401 = vmatprep.subr.bf16.mxu1 %v8864_v29  ;;  %2454 = vmatprep.subr.bf16.mxu0 %v8866_v4 }
 0xa0e   :  { %2402 = vmatpush1.bf16.msra.mxu1 %v8863_v34  ;;  %2455 = vmatpush1.bf16.msra.mxu0 %v8865_v36 }
 0xa0f   :  { %2403 = vmatprep.subr.bf16.mxu1 %v8872_v37  ;;  %2456 = vmatprep.subr.bf16.mxu0 %v8874_v38 }
 0xa12   :  { %2404 = vmatpush1.bf16.msra.mxu1 %v8871_v43  ;;  %2457 = vmatpush1.bf16.msra.mxu0 %v8873_v44 }
 0xa13   :  { %2405 = vmatprep.subr.bf16.mxu1 %v8880_v16  ;;  %2458 = vmatprep.subr.bf16.mxu0 %v8882_v45 }
 0xa16   :  { %2406 = vmatpush1.bf16.msra.mxu1 %v8879_v7  ;;  %2459 = vmatpush1.bf16.msra.mxu0 %v8881_v21 }
 0xa19   :  { %2424 = vmatmul.mubr.bf16.vlgmr.msra.gmra.mrb[20].mxu1 %v12878_v17  ;;  %2477 = vmatmul.mubr.bf16.vlgmr.msra.gmra.mrb[28].mxu0 %v12878_v17 }
 0xa1a   :  { %2433 = vmatprep.mubr.bf16.mxu1 %v12330_v57  ;;  %2486 = vmatprep.mubr.bf16.mxu0 %v12330_v57 }
 0xa21   :  { %2434 = vmatmul.mubr.bf16.gmra.mrb[24].mxu1 %v12880_v53  ;;  %2487 = vmatmul.mubr.bf16.gmra.mrb[32].mxu0 %v12880_v53 }
 0xa22   :  { %2562 = vmatprep.mubr.f32.mxu1 %v14261_v5  ;;  %2633 = vmatprep.mubr.f32.mxu0 %v14261_v5 }
 0xacc   :  { %v12898_v13 = vpop.f32.mrb[12].mxu1  ;;  %v12900_v46 = vpop.f32.mrb[20].mxu0 }
 0xacd   :  { %v12902_v47 = vpop.f32.mrb[13].mxu1  ;;  %v12904_v48 = vpop.f32.mrb[21].mxu0  ;;  %v12908_v15 = vmul.f32 %v12898_v13, %v12898_v13  ;;  %v12912_v57 = vmul.f32 %v12900_v46, %v12900_v46 }
 0xace   :  { %v12916_v6 = vmul.f32 %v12902_v47, %v12902_v47  ;;  %v12920_v17 = vmul.f32 %v12904_v48, %v12904_v48  ;;  %v12922_v8 = vpop.f32.mrb[14].mxu1  ;;  %v12924_v10 = vpop.f32.mrb[22].mxu0 }
 0xacf   :  { %v10131_v49 = vpack.c.bf16 %v12922_v8, %v12898_v13  ;;  %v12930_v50 = vmul.f32 %v12922_v8, %v12922_v8  ;;  %v4738_v51 = vmax.f32 %v12898_v13, %v12922_v8  ;;  %v4850_v52 = vmin.f32 %v12898_v13, %v12922_v8  ;;  %v12936_v53 = vpop.f32.mrb[15].mxu1  ;;  %v12938_v54 = vpop.f32.mrb[23].mxu0 }
 0xad0   :  { %v10139_v55 = vpack.c.bf16 %v12924_v10, %v12900_v46  ;;  %v12944_v56 = vmul.f32 %v12924_v10, %v12924_v10  ;;  %v4752_v58 = vmax.f32 %v12900_v46, %v12924_v10  ;;  %v4864_v59 = vmin.f32 %v12900_v46, %v12924_v10 }
 0xad1   :  { %v4739_v60 = vrot.slane %v4738_v51, 4  ;;  %v4851_v61 = vrot.slane %v4850_v52, 4  ;;  %v12952_v63 = vmul.f32 %v12936_v53, %v12936_v53  ;;  %v4745_v0 = vmax.f32 %v12902_v47, %v12936_v53 }
 0xad2   :  { %v4753_v1 = vrot.slane %v4752_v58, 4  ;;  %v4865_v62 = vrot.slane %v4864_v59, 4  ;;  %v4857_v2 = vmin.f32 %v12902_v47, %v12936_v53  ;;  %v12960_v3 = vmul.f32 %v12938_v54, %v12938_v54 }
 0xad3   :  { %v4740_v9 = vmax.f32 %v4738_v51, %v4739_v60  ;;  %v4852_v11 = vmin.f32 %v4850_v52, %v4851_v61  ;;  %v4746_v12 = vrot.slane %v4745_v0, 4  ;;  %v4759_v14 = vmax.f32 %v12904_v48, %v12938_v54 }
 0xad4   :  { %v4754_v18 = vmax.f32 %v4752_v58, %v4753_v1  ;;  %v4866_v19 = vmin.f32 %v4864_v59, %v4865_v62  ;;  %v4858_v20 = vrot.slane %v4857_v2, 4  ;;  %v4871_v22 = vmin.f32 %v12904_v48, %v12938_v54  ;;  %v12966_v27 = vpop.f32.mrb[16].mxu1  ;;  %v12968_v23 = vpop.f32.mrb[24].mxu0 }
 0xad5   :  { %v4741_v24 = vrot.slane %v4740_v9, 2  ;;  %v4853_v26 = vrot.slane %v4852_v11, 2  ;;  %v4747_v28 = vmax.f32 %v4745_v0, %v4746_v12  ;;  %v4760_v29 = vrot.slane %v4759_v14, 4  ;;  %v12970_v4 = vpop.f32.mrb[17].mxu1  ;;  %v12972_v30 = vpop.f32.mrb[25].mxu0 }
 0xad6   :  { %v4755_v31 = vrot.slane %v4754_v18, 2  ;;  %v4867_v25 = vrot.slane %v4866_v19, 2  ;;  %v4859_v33 = vmin.f32 %v4857_v2, %v4858_v20  ;;  %v4872_v34 = vrot.slane %v4871_v22, 4  ;;  %v12974_v36 = vpop.f32.mrb[18].mxu1  ;;  %v12976_v37 = vpop.f32.mrb[26].mxu0 }
 0xad7   :  { %v4742_v38 = vmax.f32 %v4740_v9, %v4741_v24  ;;  %v4854_v39 = vmin.f32 %v4852_v11, %v4853_v26  ;;  %v4748_v40 = vrot.slane %v4747_v28, 2  ;;  %v4761_v41 = vmax.f32 %v4759_v14, %v4760_v29  ;;  %v12978_v42 = vpop.f32.mrb[19].mxu1  ;;  %v12980_v43 = vpop.f32.mrb[27].mxu0 }
 0xad8   :  { %v4756_v44 = vmax.f32 %v4754_v18, %v4755_v31  ;;  %v4868_v16 = vmin.f32 %v4866_v19, %v4867_v25  ;;  %v4860_v45 = vrot.slane %v4859_v33, 2  ;;  %v4873_v7 = vmin.f32 %v4871_v22, %v4872_v34 }
 0xad9   :  { %v4743_v21 = vrot.slane %v4742_v38, 1  ;;  %v4855_v51 = vrot.slane %v4854_v39, 1  ;;  %v4749_v52 = vmax.f32 %v4747_v28, %v4748_v40  ;;  %v4762_v58 = vrot.slane %v4761_v41, 2 }
 0xada   :  { %v4757_v59 = vrot.slane %v4756_v44, 1  ;;  %v4869_v60 = vrot.slane %v4868_v16, 1  ;;  %v4861_v61 = vmin.f32 %v4859_v33, %v4860_v45  ;;  %v4874_v0 = vrot.slane %v4873_v7, 2 }
 0xadb   :  { %v12982_v1 = vmax.f32 %v4742_v38, %v4743_v21  ;;  %v12984_v62 = vmin.f32 %v4854_v39, %v4855_v51  ;;  %v4750_v2 = vrot.slane %v4749_v52, 1  ;;  %v4763_v9 = vmax.f32 %v4761_v41, %v4762_v58 }
 0xadc   :  { %v12986_v11 = vmax.f32 %v4756_v44, %v4757_v59  ;;  %v12988_v12 = vmin.f32 %v4868_v16, %v4869_v60  ;;  %v4862_v14 = vrot.slane %v4861_v61, 1  ;;  %v4875_v18 = vmin.f32 %v4873_v7, %v4874_v0 }
 0xadd   :  { %14338 = vst [vmem:[#allocation94_spill] sm:$0xff] %v12982_v1  ;;  %14339 = vst [vmem:[#allocation95_spill] sm:$0xff] %v12984_v62  ;;  %v12990_v19 = vmax.f32 %v4749_v52, %v4750_v2  ;;  %v4764_v20 = vrot.slane %v4763_v9, 1  ;;  %v10129_v22 = vpack.c.bf16 %v12936_v53, %v12902_v47  ;;  %v10137_v24 = vpack.c.bf16 %v12938_v54, %v12904_v48 }
 0xade   :  { %14340 = vst [vmem:[#allocation96_spill] sm:$0xff] %v12986_v11  ;;  %14341 = vst [vmem:[#allocation97_spill] sm:$0xff] %v12988_v12  ;;  %v12996_v26 = vmin.f32 %v4861_v61, %v4862_v14  ;;  %v4876_v28 = vrot.slane %v4875_v18, 1  ;;  %v13000_v29 = vmul.f32 %v12966_v27, %v12966_v27  ;;  %v13004_v31 = vmul.f32 %v12968_v23, %v12968_v23 }
 0xadf   :  { %14342 = vst [vmem:[#allocation98_spill] sm:$0xff] %v12990_v19  ;;  %v13006_v25 = vmax.f32 %v4763_v9, %v4764_v20  ;;  %10130 = vmatprep.subr.bf16.mxu1 %v10129_v22  ;;  %10138 = vmatprep.subr.bf16.mxu0 %v10137_v24  ;;  %v13010_v47 = vmul.f32 %v12970_v4, %v12970_v4 }
 0xae0   :  { %14343 = vst [vmem:[#allocation99_spill] sm:$0xff] %v12996_v26  ;;  %v13014_v48 = vmul.f32 %v12972_v30, %v12972_v30  ;;  %v13016_v53 = vmin.f32 %v4875_v18, %v4876_v28  ;;  %10132 = vmatpush1.bf16.msra.mxu1 %v10131_v49  ;;  %10140 = vmatpush1.bf16.msra.mxu0 %v10139_v55  ;;  %v14366_v26 = vmov 0.0  }
 0xae1   :  { %14344 = vst [vmem:[#allocation100_spill] sm:$0xff] %v13006_v25  ;;  %v13028_v33 = vmul.f32 %v12974_v36, %v12974_v36  ;;  %v4794_v34 = vmax.f32 %v12966_v27, %v12974_v36  ;;  %v4906_v38 = vmin.f32 %v12966_v27, %v12974_v36  ;;  %v13038_v46 = vmul.f32 %v12976_v37, %v12976_v37 }
 0xae2   :  { %14345 = vst [vmem:[#allocation101_spill] sm:$0xff] %v13016_v53  ;;  %v4808_v8 = vmax.f32 %v12968_v23, %v12976_v37  ;;  %v4920_v10 = vmin.f32 %v12968_v23, %v12976_v37  ;;  %v13046_v49 = vmul.f32 %v12978_v42, %v12978_v42  ;;  %v4801_v55 = vmax.f32 %v12970_v4, %v12978_v42 }
 0xae3   :  { %14346 = vst [vmem:[#allocation102_spill] sm:$0xff] %v13038_v46  ;;  %v4795_v39 = vrot.slane %v4794_v34, 4  ;;  %v4907_v40 = vrot.slane %v4906_v38, 4  ;;  %v4913_v41 = vmin.f32 %v12970_v4, %v12978_v42  ;;  %v13054_v44 = vmul.f32 %v12980_v43, %v12980_v43 }
 0xae4   :  { %v4809_v16 = vrot.slane %v4808_v8, 4  ;;  %v4921_v45 = vrot.slane %v4920_v10, 4  ;;  %v4802_v7 = vrot.slane %v4801_v55, 4  ;;  %v4815_v21 = vmax.f32 %v12972_v30, %v12980_v43 }
 0xae5   :  { %v4796_v51 = vmax.f32 %v4794_v34, %v4795_v39  ;;  %v4908_v52 = vmin.f32 %v4906_v38, %v4907_v40  ;;  %v4914_v58 = vrot.slane %v4913_v41, 4  ;;  %v4927_v59 = vmin.f32 %v12972_v30, %v12980_v43 }
 0xae6   :  { %v4810_v60 = vmax.f32 %v4808_v8, %v4809_v16  ;;  %v4922_v61 = vmin.f32 %v4920_v10, %v4921_v45  ;;  %v4803_v0 = vmax.f32 %v4801_v55, %v4802_v7  ;;  %v4816_v2 = vrot.slane %v4815_v21, 4 }
 0xae7   :  { %v4797_v9 = vrot.slane %v4796_v51, 2  ;;  %v4909_v14 = vrot.slane %v4908_v52, 2  ;;  %v4915_v18 = vmin.f32 %v4913_v41, %v4914_v58  ;;  %v4928_v20 = vrot.slane %v4927_v59, 4 }
 0xae8   :  { %v4811_v22 = vrot.slane %v4810_v60, 2  ;;  %v4923_v24 = vrot.slane %v4922_v61, 2  ;;  %v4804_v28 = vrot.slane %v4803_v0, 2  ;;  %v4817_v5 = vmax.f32 %v4815_v21, %v4816_v2 }
 0xae9   :  { %v4798_v13 = vmax.f32 %v4796_v51, %v4797_v9  ;;  %v4910_v54 = vmin.f32 %v4908_v52, %v4909_v14  ;;  %v4916_v34 = vrot.slane %v4915_v18, 2  ;;  %v4929_v38 = vmin.f32 %v4927_v59, %v4928_v20 }
 0xaea   :  { %v4812_v39 = vmax.f32 %v4810_v60, %v4811_v22  ;;  %v4924_v40 = vmin.f32 %v4922_v61, %v4923_v24  ;;  %v4805_v35 = vmax.f32 %v4803_v0, %v4804_v28  ;;  %v4818_v32 = vrot.slane %v4817_v5, 2 }
 0xaeb   :  { %v4799_v8 = vrot.slane %v4798_v13, 1  ;;  %v4911_v10 = vrot.slane %v4910_v54, 1  ;;  %v4917_v55 = vmin.f32 %v4915_v18, %v4916_v34  ;;  %v4930_v16 = vrot.slane %v4929_v38, 2 }
 0xaec   :  { %v4813_v45 = vrot.slane %v4812_v39, 1  ;;  %v4925_v7 = vrot.slane %v4924_v40, 1  ;;  %v4806_v41 = vrot.slane %v4805_v35, 1  ;;  %v4819_v58 = vmax.f32 %v4817_v5, %v4818_v32  ;;  %v13060_v53 = vpop.f32.mrb[20].mxu1  ;;  %v13062_v25 = vpop.f32.mrb[28].mxu0 }
 0xaed   :  { %v13064_v21 = vmax.f32 %v4798_v13, %v4799_v8  ;;  %v13066_v51 = vmin.f32 %v4910_v54, %v4911_v10  ;;  %v4918_v52 = vrot.slane %v4917_v55, 1  ;;  %v4931_v59 = vmin.f32 %v4929_v38, %v4930_v16  ;;  %v13068_v60 = vpop.f32.mrb[21].mxu1  ;;  %v13070_v61 = vpop.f32.mrb[29].mxu0 }
 0xaee   :  { %v13072_v0 = vmax.f32 %v4812_v39, %v4813_v45  ;;  %v13074_v2 = vmin.f32 %v4924_v40, %v4925_v7  ;;  %v13076_v9 = vmax.f32 %v4805_v35, %v4806_v41  ;;  %v4820_v5 = vrot.slane %v4819_v58, 1  ;;  %v13078_v32 = vpop.f32.mrb[22].mxu1  ;;  %v13080_v14 = vpop.f32.mrb[30].mxu0 }
 0xaef   :  { %14347 = vst [vmem:[#allocation103_spill] sm:$0xff] %v13064_v21  ;;  %14348 = vst [vmem:[#allocation104_spill] sm:$0xff] %v13066_v51  ;;  %v13082_v13 = vmin.f32 %v4917_v55, %v4918_v52  ;;  %v4932_v54 = vrot.slane %v4931_v59, 1  ;;  %v10133_v18 = vpack.c.bf16 %v12978_v42, %v12970_v4  ;;  %v10141_v20 = vpack.c.bf16 %v12980_v43, %v12972_v30  ;;  %v13088_v22 = vpop.f32.mrb[23].mxu1  ;;  %v13090_v24 = vpop.f32.mrb[31].mxu0 }
 0xaf0   :  { %14349 = vst [vmem:[#allocation105_spill] sm:$0xff] %v13072_v0  ;;  %14350 = vst [vmem:[#allocation106_spill] sm:$0xff] %v13074_v2  ;;  %v13092_v35 = vmax.f32 %v4819_v58, %v4820_v5  ;;  %v13096_v28 = vmul.f32 %v13060_v53, %v13060_v53  ;;  %v13100_v34 = vmul.f32 %v13062_v25, %v13062_v25  ;;  %v13148_v52 = vld [vmem:[#allocation5] sm:$0x3] }
 0xaf1   :  { %14351 = vst [vmem:[#allocation107_spill] sm:$0xff] %v13076_v9  ;;  %14352 = vst [vmem:[#allocation108_spill] sm:$0xff] %v13082_v13  ;;  %v13104_v4 = vmul.f32 %v13068_v60, %v13068_v60  ;;  %v13106_v42 = vmin.f32 %v4931_v59, %v4932_v54  ;;  %10134 = vmatprep.subr.bf16.mxu1 %v10133_v18  ;;  %10142 = vmatprep.subr.bf16.mxu0 %v10141_v20 }
 0xaf2   :  { %14353 = vst [vmem:[#allocation109_spill] sm:$0xff] %v13092_v35  ;;  %14354 = vst [vmem:[#allocation110_spill] sm:$0xff] %v13096_v28  ;;  %v13110_v30 = vmul.f32 %v13070_v61, %v13070_v61  ;;  %v14359_v38 = vpack.c.bf16 %v12974_v36, %v12966_v27  ;;  %v14360_v39 = vpack.c.bf16 %v12976_v37, %v12968_v23 }
 0xaf3   :  { %14355 = vst [vmem:[#allocation111_spill] sm:$0xff] %v13100_v34  ;;  %14356 = vst [vmem:[#allocation112_spill] sm:$0xff] %v13104_v4  ;;  %v13122_v40 = vmul.f32 %v13078_v32, %v13078_v32  ;;  %v4766_v8 = vmax.f32 %v13060_v53, %v13078_v32  ;;  %v4878_v10 = vmin.f32 %v13060_v53, %v13078_v32 }
 0xaf4   :  { %14357 = vst [vmem:[#allocation113_spill] sm:$0xff] %v13106_v42  ;;  %14358 = vst [vmem:[#allocation114_spill] sm:$0xff] %v13110_v30  ;;  %10136 = vmatpush1.bf16.msra.mxu1 %v14359_v38  ;;  %10144 = vmatpush1.bf16.msra.mxu0 %v14360_v39  ;;  %v13132_v27 = vmul.f32 %v13080_v14, %v13080_v14  ;;  %v4780_v23 = vmax.f32 %v13062_v25, %v13080_v14  ;;  %v13144_v41 = vpop.f32.mrb[24].mxu1  ;;  %v13146_v58 = vpop.f32.mrb[32].mxu0 }
 0xaf5   :  { %14361 = vst [vmem:[#allocation115_spill] sm:$0xff] %v13122_v40  ;;  %v4892_v36 = vmin.f32 %v13062_v25, %v13080_v14  ;;  %v4767_v37 = vrot.slane %v4766_v8, 4  ;;  %v4879_v16 = vrot.slane %v4878_v10, 4  ;;  %v13140_v45 = vmul.f32 %v13088_v22, %v13088_v22  ;;  %14364 = vst [vmem:[#allocation118_spill] sm:$0xff] %v13148_v52  ;;  %v13160_v20 = vpop.f32.mrb[25].mxu1  ;;  %v13162_v38 = vpop.f32.mrb[33].mxu0 }
 0xaf6   :  { %14362 = vst [vmem:[#allocation116_spill] sm:$0xff] %v13132_v27  ;;  %v4773_v7 = vmax.f32 %v13068_v60, %v13088_v22  ;;  %v4781_v59 = vrot.slane %v4780_v23, 4  ;;  %v4885_v54 = vmin.f32 %v13068_v60, %v13088_v22  ;;  %v13158_v18 = vmul.f32 %v13090_v24, %v13090_v24  ;;  %v13166_v35 = vpop.f32.mrb[26].mxu1  ;;  %v13168_v13 = vpop.f32.mrb[34].mxu0 }
 0xaf7   :  { %14363 = vst [vmem:[#allocation117_spill] sm:$0xff] %v13140_v45  ;;  %8883 = vmatmul.mubr.msk.f32.vlgmr.msra.gmra.mrb[28].mxu1 %vm641_vm3, %v13148_v52  ;;  %8884 = vmatmul.mubr.msk.f32.vlgmr.msra.gmra.mrb[36].mxu0 %vm641_vm3, %v13148_v52  ;;  %v4893_v5 = vrot.slane %v4892_v36, 4  ;;  %v4768_v39 = vmax.f32 %v4766_v8, %v4767_v37  ;;  %v4880_v55 = vmin.f32 %v4878_v10, %v4879_v16  ;;  %v13174_v8 = vpop.f32.mrb[27].mxu1  ;;  %v13176_v10 = vpop.f32.mrb[35].mxu0 }
 0xaf8   :  { %14365 = vst [vmem:[#allocation119_spill] sm:$0xff] %v13158_v18  ;;  %v4774_v43 = vrot.slane %v4773_v7, 4  ;;  %v4787_v42 = vmax.f32 %v13070_v61, %v13090_v24  ;;  %2704 = vmatprep.mubr.f32.mxu1 %v14366_v26  ;;  %2775 = vmatprep.mubr.f32.mxu0 %v14366_v26  ;;  %v4782_v9 = vmax.f32 %v4780_v23, %v4781_v59  ;;  %v4886_v2 = vrot.slane %v4885_v54, 4 }
 0xaf9   :  { %v4894_v19 = vmin.f32 %v4892_v36, %v4893_v5  ;;  %v4899_v12 = vmin.f32 %v13070_v61, %v13090_v24  ;;  %v4769_v37 = vrot.slane %v4768_v39, 2  ;;  %v4881_v16 = vrot.slane %v4880_v55, 2 }
 0xafa   :  { %v4775_v0 = vmax.f32 %v4773_v7, %v4774_v43  ;;  %v4788_v11 = vrot.slane %v4787_v42, 4  ;;  %v4783_v51 = vrot.slane %v4782_v9, 2  ;;  %v4887_v21 = vmin.f32 %v4885_v54, %v4886_v2 }
 0xafb   :  { %v4895_v62 = vrot.slane %v4894_v19, 2  ;;  %v4900_v1 = vrot.slane %v4899_v12, 4  ;;  %v4770_v52 = vmax.f32 %v4768_v39, %v4769_v37  ;;  %v4882_v26 = vmin.f32 %v4880_v55, %v4881_v16 }
 0xafc   :  { %v4776_v23 = vrot.slane %v4775_v0, 2  ;;  %v4789_v36 = vmax.f32 %v4787_v42, %v4788_v11  ;;  %v4784_v59 = vmax.f32 %v4782_v9, %v4783_v51  ;;  %v4888_v27 = vrot.slane %v4887_v21, 2 }
 0xafd   :  { %v4896_v5 = vmin.f32 %v4894_v19, %v4895_v62  ;;  %v4901_v34 = vmin.f32 %v4899_v12, %v4900_v1  ;;  %v4771_v40 = vrot.slane %v4770_v52, 1  ;;  %v4883_v28 = vrot.slane %v4882_v26, 1 }
 0xafe   :  { %v4777_v18 = vmax.f32 %v4775_v0, %v4776_v23  ;;  %v4790_v30 = vrot.slane %v4789_v36, 2  ;;  %v4785_v45 = vrot.slane %v4784_v59, 1  ;;  %v4889_v43 = vmin.f32 %v4887_v21, %v4888_v27 }
 0xaff   :  { %v4897_v4 = vrot.slane %v4896_v5, 1  ;;  %v4902_v7 = vrot.slane %v4901_v34, 2  ;;  %v13178_v46 = vmax.f32 %v4770_v52, %v4771_v40  ;;  %v13180_v2 = vmin.f32 %v4882_v26, %v4883_v28 }
 0xb00   :  { %v4778_v54 = vrot.slane %v4777_v18, 1  ;;  %v4791_v55 = vmax.f32 %v4789_v36, %v4790_v30  ;;  %v13182_v39 = vmax.f32 %v4784_v59, %v4785_v45  ;;  %v4890_v62 = vrot.slane %v4889_v43, 1 }
 0xb01   :  { %14367 = vst [vmem:[#allocation120_spill] sm:$0xff] %v13178_v46  ;;  %14368 = vst [vmem:[#allocation121_spill] sm:$0xff] %v13180_v2  ;;  %v13184_v11 = vmin.f32 %v4896_v5, %v4897_v4  ;;  %v4903_v1 = vmin.f32 %v4901_v34, %v4902_v7  ;;  %v10145_v51 = vpack.c.bf16 %v13088_v22, %v13068_v60 }
 0xb02   :  { %14369 = vst [vmem:[#allocation122_spill] sm:$0xff] %v13182_v39  ;;  %v13186_v12 = vmax.f32 %v4777_v18, %v4778_v54  ;;  %v4792_v19 = vrot.slane %v4791_v55, 1  ;;  %v10153_v21 = vpack.c.bf16 %v13090_v24, %v13070_v61  ;;  %v13192_v0 = vmin.f32 %v4889_v43, %v4890_v62 }
 0xb03   :  { %14370 = vst [vmem:[#allocation123_spill] sm:$0xff] %v13184_v11  ;;  %v4904_v26 = vrot.slane %v4903_v1, 1  ;;  %v13196_v9 = vmul.f32 %v13144_v41, %v13144_v41  ;;  %v13200_v28 = vmul.f32 %v13146_v58, %v13146_v58  ;;  %10146 = vmatprep.subr.bf16.mxu1 %v10145_v51  ;;  %v13206_v60 = vmul.f32 %v13160_v20, %v13160_v20 }
 0xb04   :  { %14371 = vst [vmem:[#allocation124_spill] sm:$0xff] %v13186_v12  ;;  %14372 = vst [vmem:[#allocation125_spill] sm:$0xff] %v13192_v0  ;;  %v13202_v34 = vmax.f32 %v4791_v55, %v4792_v19  ;;  %10154 = vmatprep.subr.bf16.mxu0 %v10153_v21  ;;  %v13210_v61 = vmul.f32 %v13162_v38, %v13162_v38  ;;  %v14376_v24 = vpack.c.bf16 %v13078_v32, %v13060_v53 }
 0xb05   :  { %14373 = vst [vmem:[#allocation126_spill] sm:$0xff] %v13200_v28  ;;  %v13212_v22 = vmin.f32 %v4903_v1, %v4904_v26  ;;  %v14377_v4 = vpack.c.bf16 %v13080_v14, %v13062_v25  ;;  %v13224_v30 = vmul.f32 %v13166_v35, %v13166_v35  ;;  %v4822_v40 = vmax.f32 %v13144_v41, %v13166_v35 }
 0xb06   :  { %14374 = vst [vmem:[#allocation127_spill] sm:$0xff] %v13202_v34  ;;  %10148 = vmatpush1.bf16.msra.mxu1 %v14376_v24  ;;  %v4934_v27 = vmin.f32 %v13144_v41, %v13166_v35  ;;  %v13234_v25 = vmul.f32 %v13168_v13, %v13168_v13  ;;  %v4836_v32 = vmax.f32 %v13146_v58, %v13168_v13 }
 0xb07   :  { %14375 = vst [vmem:[#allocation128_spill] sm:$0xff] %v13212_v22  ;;  %10156 = vmatpush1.bf16.msra.mxu0 %v14377_v4  ;;  %v4948_v14 = vmin.f32 %v13146_v58, %v13168_v13  ;;  %v13242_v45 = vmul.f32 %v13174_v8, %v13174_v8  ;;  %v4829_v52 = vmax.f32 %v13160_v20, %v13174_v8  ;;  %v4823_v18 = vrot.slane %v4822_v40, 4 }
 0xb08   :  { %14378 = vst [vmem:[#allocation129_spill] sm:$0xff] %v13234_v25  ;;  %v4935_v37 = vrot.slane %v4934_v27, 4  ;;  %v4941_v16 = vmin.f32 %v13160_v20, %v13174_v8  ;;  %v13250_v23 = vmul.f32 %v13176_v10, %v13176_v10  ;;  %v4837_v36 = vrot.slane %v4836_v32, 4 }
 0xb09   :  { %v4949_v59 = vrot.slane %v4948_v14, 4  ;;  %v4830_v5 = vrot.slane %v4829_v52, 4  ;;  %v4843_v43 = vmax.f32 %v13162_v38, %v13176_v10  ;;  %v4824_v7 = vmax.f32 %v4822_v40, %v4823_v18 }
 0xb0a   :  { %v4936_v54 = vmin.f32 %v4934_v27, %v4935_v37  ;;  %v4942_v55 = vrot.slane %v4941_v16, 4  ;;  %v4955_v62 = vmin.f32 %v13162_v38, %v13176_v10  ;;  %v4838_v1 = vmax.f32 %v4836_v32, %v4837_v36 }
 0xb0b   :  { %v4950_v19 = vmin.f32 %v4948_v14, %v4949_v59  ;;  %v4831_v51 = vmax.f32 %v4829_v52, %v4830_v5  ;;  %v4844_v21 = vrot.slane %v4843_v43, 4  ;;  %v4825_v26 = vrot.slane %v4824_v7, 2 }
 0xb0c   :  { %v4937_v24 = vrot.slane %v4936_v54, 2  ;;  %v4943_v4 = vmin.f32 %v4941_v16, %v4942_v55  ;;  %v4956_v53 = vrot.slane %v4955_v62, 4  ;;  %v4839_v42 = vrot.slane %v4838_v1, 2 }
 0xb0d   :  { %v4951_v22 = vrot.slane %v4950_v19, 2  ;;  %v4832_v34 = vrot.slane %v4831_v51, 2  ;;  %v4845_v0 = vmax.f32 %v4843_v43, %v4844_v21  ;;  %v4826_v12 = vmax.f32 %v4824_v7, %v4825_v26  ;;  %v14393_v26 = vld [vmem:[#allocation94_spill] sm:$0xff] }
 0xb0e   :  { %v4938_v11 = vmin.f32 %v4936_v54, %v4937_v24  ;;  %v4944_v40 = vrot.slane %v4943_v4, 2  ;;  %v4957_v27 = vmin.f32 %v4955_v62, %v4956_v53  ;;  %v4840_v18 = vmax.f32 %v4838_v1, %v4839_v42  ;;  %v14394_v24 = vld [vmem:[#allocation103_spill] sm:$0xff] }
 0xb0f   :  { %v4952_v37 = vmin.f32 %v4950_v19, %v4951_v22  ;;  %v4833_v39 = vmax.f32 %v4831_v51, %v4832_v34  ;;  %v4846_v2 = vrot.slane %v4845_v0, 2  ;;  %v4827_v32 = vrot.slane %v4826_v12, 1  ;;  %v14392_v19 = vld [vmem:[#allocation129_spill] sm:$0xff] }
 0xb10   :  { %v4939_v14 = vrot.slane %v4938_v11, 1  ;;  %v4945_v52 = vmin.f32 %v4943_v4, %v4944_v40  ;;  %v4958_v36 = vrot.slane %v4957_v27, 2  ;;  %v4841_v59 = vrot.slane %v4840_v18, 1  ;;  %v14402_v40 = vld [vmem:[#allocation97_spill] sm:$0xff] }
 0xb11   :  { %v4953_v5 = vrot.slane %v4952_v37, 1  ;;  %v4834_v16 = vrot.slane %v4833_v39, 1  ;;  %v4847_v55 = vmax.f32 %v4845_v0, %v4846_v2  ;;  %v4828_v46 = vmax.f32 %v4826_v12, %v4827_v32  ;;  %v14406_v32 = vld [vmem:[#allocation107_spill] sm:$0xff] }
 0xb12   :  { %v4940_v25 = vmin.f32 %v4938_v11, %v4939_v14  ;;  %v4946_v28 = vrot.slane %v4945_v52, 1  ;;  %v4959_v43 = vmin.f32 %v4957_v27, %v4958_v36  ;;  %v4842_v7 = vmax.f32 %v4840_v18, %v4841_v59  ;;  %v14403_v27 = vld [vmem:[#allocation106_spill] sm:$0xff]  ;;  %v14409_v36 = vld [vmem:[#allocation108_spill] sm:$0xff] }
 0xb13   :  { %v4954_v54 = vmin.f32 %v4952_v37, %v4953_v5  ;;  %v4835_v21 = vmax.f32 %v4833_v39, %v4834_v16  ;;  %v4848_v53 = vrot.slane %v4847_v55, 1  ;;  %v10149_v34 = vpack.c.bf16 %v13174_v8, %v13160_v20  ;;  %v14388_v8 = vld [vmem:[#allocation111_spill] sm:$0xff]  ;;  %v14405_v37 = vld [vmem:[#allocation98_spill] sm:$0xff]  ;;  %v14411_v5 = vld [vmem:[#allocation100_spill] sm:$0xff] }
 0xb14   :  { %v4947_v42 = vmin.f32 %v4945_v52, %v4946_v28  ;;  %v4960_v22 = vrot.slane %v4959_v43, 1  ;;  %v10157_v62 = vpack.c.bf16 %v13176_v10, %v13162_v38  ;;  %v10161_v2 = vpack.c.bf16 %v12952_v63, %v12916_v6  ;;  %v14383_v63 = vld [vmem:[#allocation117_spill] sm:$0xff]  ;;  %v14390_v10 = vld [vmem:[#allocation118_spill] sm:$0xff]  ;;  %v14408_v52 = vld [vmem:[#allocation99_spill] sm:$0xff] }
 0xb15   :  { %v4849_v1 = vmax.f32 %v4847_v55, %v4848_v53  ;;  %v10169_v11 = vpack.c.bf16 %v12960_v3, %v12920_v17  ;;  %v10163_v12 = vpack.c.bf16 %v12930_v50, %v12908_v15  ;;  %10150 = vmatprep.subr.bf16.mxu1 %v10149_v34  ;;  %v10171_v0 = vpack.c.bf16 %v12944_v56, %v12912_v57  ;;  %v14381_v50 = vld [vmem:[#allocation102_spill] sm:$0xff]  ;;  %v14382_v56 = vld [vmem:[#allocation112_spill] sm:$0xff]  ;;  %v14412_v16 = vld [vmem:[#allocation109_spill] sm:$0xff] }
 0xb16   :  { %v4961_v39 = vmin.f32 %v4959_v43, %v4960_v22  ;;  %10158 = vmatprep.subr.bf16.mxu0 %v10157_v62  ;;  %v10165_v20 = vpack.c.bf16 %v13046_v49, %v13010_v47  ;;  %v14379_v38 = vpack.c.bf16 %v13166_v35, %v13144_v41  ;;  %v14380_v6 = vpack.c.bf16 %v13168_v13, %v13146_v58  ;;  %v14384_v47 = vld [vmem:[#allocation114_spill] sm:$0xff]  ;;  %v14385_v49 = vld [vmem:[#allocation119_spill] sm:$0xff]  ;;  %v14414_v43 = vld [vmem:[#allocation101_spill] sm:$0xff] }
 0xb17   :  { %v10173_v15 = vpack.c.bf16 %v13054_v44, %v13014_v48  ;;  %v10167_v17 = vpack.c.bf16 %v13028_v33, %v13000_v29  ;;  %v10175_v57 = vpack.c.bf16 %v14381_v50, %v13004_v31  ;;  %v10177_v3 = vpack.c.bf16 %v14383_v63, %v14382_v56  ;;  %v14386_v13 = vld [vmem:[#allocation110_spill] sm:$0xff]  ;;  %v14387_v41 = vld [vmem:[#allocation115_spill] sm:$0xff]  ;;  %v14389_v48 = vld [vmem:[#allocation116_spill] sm:$0xff] }
 0xb18   :  { %10152 = vmatpush1.bf16.msra.mxu1 %v14379_v38  ;;  %10160 = vmatpush1.bf16.msra.mxu0 %v14380_v6  ;;  %v10185_v35 = vpack.c.bf16 %v14385_v49, %v14384_v47  ;;  %v10179_v58 = vpack.c.bf16 %v14387_v41, %v14386_v13  ;;  %v10187_v44 = vpack.c.bf16 %v14389_v48, %v14388_v8  ;;  %v14391_v28 = vld [vmem:[#allocation126_spill] sm:$0xff]  ;;  %v14415_v53 = vld [vmem:[#allocation113_spill] sm:$0xff]  ;;  %v14417_v34 = vmov 0.0   ;;  %v14418_v62 = vld [vmem:[#allocation120_spill] sm:$0xff] }
 0xb19   :  { %10162 = vmatprep.subr.bf16.mxu1 %v10161_v2  ;;  %10170 = vmatprep.subr.bf16.mxu0 %v10169_v11  ;;  %v10181_v29 = vpack.c.bf16 %v13242_v45, %v13206_v60  ;;  %v10189_v31 = vpack.c.bf16 %v13250_v23, %v13210_v61  ;;  %v10183_v33 = vpack.c.bf16 %v13224_v30, %v13196_v9  ;;  %v14396_v60 = vld [vmem:[#allocation95_spill] sm:$0xff]  ;;  %v14397_v45 = vld [vmem:[#allocation104_spill] sm:$0xff]  ;;  %v14400_v30 = vld [vmem:[#allocation105_spill] sm:$0xff] }
 0xb1a   :  { %v10191_v51 = vpack.c.bf16 %v14392_v19, %v14391_v28  ;;  %v13305_v4 = vsel %vm4986_vm6, %v14394_v24, %v14393_v26  ;;  %v13310_v61 = vsel %vm4986_vm6, %v14397_v45, %v14396_v60  ;;  %v14399_v9 = vld [vmem:[#allocation96_spill] sm:$0xff]  ;;  %v13320_v18 = vsel %vm4986_vm6, %v14403_v27, %v14402_v40  ;;  %v14420_v11 = vld [vmem:[#allocation121_spill] sm:$0xff]  ;;  %v14424_v38 = vld [vmem:[#allocation123_spill] sm:$0xff] }
 0xb1b   :  { %8885 = vmatmul.mubr.msk.f32.vlgmr.msra.gmra.mrb[30].mxu1 %vm641_vm3, %v14390_v10  ;;  %8886 = vmatmul.mubr.msk.f32.vlgmr.msra.gmra.mrb[38].mxu0 %vm641_vm3, %v14390_v10  ;;  %14395 = vst [vmem:[#allocation102_spill] sm:$0xff] %v13305_v4  ;;  %14398 = vst [vmem:[#allocation112_spill] sm:$0xff] %v13310_v61  ;;  %v13315_v23 = vsel %vm4986_vm6, %v14400_v30, %v14399_v9  ;;  %v13325_v14 = vsel %vm4986_vm6, %v14406_v32, %v14405_v37  ;;  %v14428_v56 = vld [vmem:[#allocation125_spill] sm:$0xff]  ;;  %v14430_v63 = vld [vmem:[#allocation127_spill] sm:$0xff] }
 0xb1c   :  { %10164 = vmatpush1.bf16.msra.mxu1 %v10163_v12  ;;  %10172 = vmatpush1.bf16.msra.mxu0 %v10171_v0  ;;  %14401 = vst [vmem:[#allocation117_spill] sm:$0xff] %v13315_v23  ;;  %14404 = vst [vmem:[#allocation114_spill] sm:$0xff] %v13320_v18  ;;  %v13330_v59 = vsel %vm4986_vm6, %v14409_v36, %v14408_v52  ;;  %v13335_v55 = vsel %vm4986_vm6, %v14412_v16, %v14411_v5  ;;  %v14422_v0 = vld [vmem:[#allocation122_spill] sm:$0xff]  ;;  %v3268_v41 = vld [vmem:[#allocation31 + $0x98] sm:$0xff] }
 0xb1d   :  { %14407 = vst [vmem:[#allocation119_spill] sm:$0xff] %v13325_v14  ;;  %10166 = vmatprep.subr.bf16.mxu1 %v10165_v20  ;;  %10174 = vmatprep.subr.bf16.mxu0 %v10173_v15  ;;  %14410 = vst [vmem:[#allocation110_spill] sm:$0xff] %v13330_v59  ;;  %v13340_v22 = vsel %vm4986_vm6, %v14415_v53, %v14414_v43  ;;  %v13346_v2 = vsel %vm4986_vm6, %v4828_v46, %v14418_v62  ;;  %v14426_v15 = vld [vmem:[#allocation124_spill] sm:$0xff]  ;;  %v3266_v49 = vld [vmem:[#allocation31 + $0x88] sm:$0xff] }
 0xb1e   :  { %14413 = vst [vmem:[#allocation115_spill] sm:$0xff] %v13335_v55  ;;  %14416 = vst [vmem:[#allocation111_spill] sm:$0xff] %v13340_v22  ;;  %2978 = vmatprep.mubr.f32.mxu1 %v14417_v34  ;;  %3049 = vmatprep.mubr.f32.mxu0 %v14417_v34  ;;  %v13350_v12 = vsel %vm4986_vm6, %v4940_v25, %v14420_v11  ;;  %v13354_v20 = vsel %vm4986_vm6, %v4842_v7, %v14422_v0  ;;  %v14432_v7 = vld [vmem:[#allocation128_spill] sm:$0xff]  ;;  %v3298_v13 = vld [vmem:[#allocation31 + $0x188] sm:$0xff] }
 0xb1f   :  { %14419 = vst [vmem:[#allocation116_spill] sm:$0xff] %v13346_v2  ;;  %14421 = vst [vmem:[#allocation118_spill] sm:$0xff] %v13350_v12  ;;  %v13358_v6 = vsel %vm4986_vm6, %v4954_v54, %v14424_v38  ;;  %v13362_v50 = vsel %vm4986_vm6, %v4835_v21, %v14426_v15  ;;  %v13366_v46 = vsel %vm4986_vm6, %v4947_v42, %v14428_v56  ;;  %v3265_v54 = vld [vmem:[#allocation31 + $0x80] sm:$0xff]  ;;  %v3299_v8 = vld [vmem:[#allocation31 + $0x190] sm:$0xff] }
 0xb20   :  { %14423 = vst [vmem:[#allocation126_spill] sm:$0xff] %v13354_v20  ;;  %14425 = vst [vmem:[#allocation129_spill] sm:$0xff] %v13358_v6  ;;  %v13370_v25 = vsel %vm4986_vm6, %v4849_v1, %v14430_v63  ;;  %10168 = vmatpush1.bf16.msra.mxu1 %v10167_v17  ;;  %10176 = vmatpush1.bf16.msra.mxu0 %v10175_v57  ;;  %v13374_v47 = vsel %vm4986_vm6, %v4961_v39, %v14432_v7  ;;  %v3297_v21 = vld [vmem:[#allocation31 + $0x180] sm:$0xff]  ;;  %v3250_v1 = vld [vmem:[#allocation31 + $0x8] sm:$0xff] }
 0xb21   :  { %14427 = vst [vmem:[#allocation94_spill] sm:$0xff] %v13362_v50  ;;  %14429 = vst [vmem:[#allocation103_spill] sm:$0xff] %v13366_v46  ;;  %10178 = vmatprep.subr.bf16.mxu1 %v10177_v3  ;;  %10186 = vmatprep.subr.bf16.mxu0 %v10185_v35  ;;  %v3249_v42 = vld [vmem:[#allocation31] sm:$0xff]  ;;  %v13380_v39 = vpack.c.bf16 %v3266_v49, %v3265_v54  ;;  %v13382_v17 = vpack.c.bf16 %v3298_v13, %v3297_v21  ;;  %v3282_v3 = vld [vmem:[#allocation31 + $0x108] sm:$0xff] }
 0xb22   :  { %14431 = vst [vmem:[#allocation95_spill] sm:$0xff] %v13370_v25  ;;  %14433 = vst [vmem:[#allocation104_spill] sm:$0xff] %v13374_v47  ;;  %v3281_v57 = vld [vmem:[#allocation31 + $0x100] sm:$0xff]  ;;  %v3267_v35 = vld [vmem:[#allocation31 + $0x90] sm:$0xff] }
 0xb23   :  { %8887 = vmatmul.mubr.msk.f32.vlgmr.msra.gmra.mrb[32].mxu1 %vm641_vm3, %v14390_v10  ;;  %8888 = vmatmul.mubr.msk.f32.vlgmr.msra.gmra.mrb[40].mxu0 %vm641_vm3, %v14390_v10  ;;  %v3300_v48 = vld [vmem:[#allocation31 + $0x198] sm:$0xff]  ;;  %v13392_v28 = vpack.c.bf16 %v3268_v41, %v3267_v35  ;;  %v3283_v26 = vld [vmem:[#allocation31 + $0x110] sm:$0xff]  ;;  %v3269_v60 = vld [vmem:[#allocation31 + $0xa0] sm:$0xff] }
 0xb24   :  { %10180 = vmatpush1.bf16.msra.mxu1 %v10179_v58  ;;  %10188 = vmatpush1.bf16.msra.mxu0 %v10187_v44  ;;  %v13386_v58 = vpack.c.bf16 %v3250_v1, %v3249_v42  ;;  %v13388_v44 = vpack.c.bf16 %v3282_v3, %v3281_v57  ;;  %v13394_v19 = vpack.c.bf16 %v3300_v48, %v3299_v8  ;;  %v3284_v24 = vld [vmem:[#allocation31 + $0x118] sm:$0xff]  ;;  %v3270_v45 = vld [vmem:[#allocation31 + $0xa8] sm:$0xff]  ;;  %v3253_v40 = vld [vmem:[#allocation31 + $0x20] sm:$0xff] }
 0xb25   :  { %10182 = vmatprep.subr.bf16.mxu1 %v10181_v29  ;;  %10190 = vmatprep.subr.bf16.mxu0 %v10189_v31  ;;  %v3251_v29 = vld [vmem:[#allocation31 + $0x10] sm:$0xff]  ;;  %v3252_v31 = vld [vmem:[#allocation31 + $0x18] sm:$0xff]  ;;  %v13404_v30 = vpack.c.bf16 %v3284_v24, %v3283_v26  ;;  %v3254_v27 = vld [vmem:[#allocation31 + $0x28] sm:$0xff]  ;;  %v13408_v37 = vpack.c.bf16 %v3270_v45, %v3269_v60 }
 0xb26   :  { %3120 = vmatprep.mubr.f32.mxu1 %v14417_v34  ;;  %3191 = vmatprep.mubr.f32.mxu0 %v14417_v34  ;;  %v13402_v9 = vpack.c.bf16 %v3252_v31, %v3251_v29  ;;  %v3285_v52 = vld [vmem:[#allocation31 + $0x120] sm:$0xff]  ;;  %v3271_v36 = vld [vmem:[#allocation31 + $0xb0] sm:$0xff]  ;;  %v3272_v5 = vld [vmem:[#allocation31 + $0xb8] sm:$0xff]  ;;  %v13414_v53 = vpack.c.bf16 %v3254_v27, %v3253_v40 }
 0xb27   :  { %v3303_v16 = vld [vmem:[#allocation31 + $0x1b0] sm:$0xff]  ;;  %v3304_v43 = vld [vmem:[#allocation31 + $0x1b8] sm:$0xff]  ;;  %v13420_v38 = vpack.c.bf16 %v3272_v5, %v3271_v36  ;;  %v3273_v7 = vld [vmem:[#allocation31 + $0xc0] sm:$0xff] }
 0xb28   :  { %10184 = vmatpush1.bf16.msra.mxu1 %v10183_v33  ;;  %10192 = vmatpush1.bf16.msra.mxu0 %v10191_v51  ;;  %v3301_v33 = vld [vmem:[#allocation31 + $0x1a0] sm:$0xff]  ;;  %v3302_v51 = vld [vmem:[#allocation31 + $0x1a8] sm:$0xff]  ;;  %v3255_v11 = vld [vmem:[#allocation31 + $0x30] sm:$0xff]  ;;  %v13422_v15 = vpack.c.bf16 %v3304_v43, %v3303_v16 }
 0xb29   :  { %10194 = vmatprep.subr.bf16.mxu1 %v13380_v39  ;;  %10226 = vmatprep.subr.bf16.mxu0 %v13382_v17  ;;  %v13410_v32 = vpack.c.bf16 %v3302_v51, %v3301_v33  ;;  %v3256_v0 = vld [vmem:[#allocation31 + $0x38] sm:$0xff]  ;;  %v3287_v56 = vld [vmem:[#allocation31 + $0x130] sm:$0xff]  ;;  %v3274_v54 = vld [vmem:[#allocation31 + $0xc8] sm:$0xff] }
 0xb2a   :  { %v3288_v63 = vld [vmem:[#allocation31 + $0x138] sm:$0xff]  ;;  %v3305_v49 = vld [vmem:[#allocation31 + $0x1c0] sm:$0xff]  ;;  %v3306_v21 = vld [vmem:[#allocation31 + $0x1c8] sm:$0xff]  ;;  %v13426_v13 = vpack.c.bf16 %v3256_v0, %v3255_v11  ;;  %v13432_v3 = vpack.c.bf16 %v3274_v54, %v3273_v7 }
 0xb2b   :  { %8889 = vmatmul.mubr.msk.f32.vlgmr.msra.gmra.mrb[34].mxu1 %vm641_vm3, %v14390_v10  ;;  %8890 = vmatmul.mubr.msk.f32.vlgmr.msra.gmra.mrb[42].mxu0 %vm641_vm3, %v14390_v10  ;;  %v3286_v10 = vld [vmem:[#allocation31 + $0x128] sm:$0xff]  ;;  %v13428_v42 = vpack.c.bf16 %v3288_v63, %v3287_v56  ;;  %v3257_v1 = vld [vmem:[#allocation31 + $0x40] sm:$0xff]  ;;  %v13434_v35 = vpack.c.bf16 %v3306_v21, %v3305_v49  ;;  %v3275_v48 = vld [vmem:[#allocation31 + $0xd0] sm:$0xff] }
 0xb2c   :  { %10196 = vmatpush3.bf16.msra.mxu1 %v13386_v58  ;;  %10228 = vmatpush3.bf16.msra.mxu0 %v13388_v44  ;;  %v13416_v62 = vpack.c.bf16 %v3286_v10, %v3285_v52  ;;  %v3258_v57 = vld [vmem:[#allocation31 + $0x48] sm:$0xff]  ;;  %v3289_v41 = vld [vmem:[#allocation31 + $0x140] sm:$0xff]  ;;  %v3276_v29 = vld [vmem:[#allocation31 + $0xd8] sm:$0xff] }
 0xb2d   :  { %10198 = vmatprep.subr.bf16.mxu1 %v13392_v28  ;;  %10230 = vmatprep.subr.bf16.mxu0 %v13394_v19  ;;  %v3290_v8 = vld [vmem:[#allocation31 + $0x148] sm:$0xff]  ;;  %v3307_v31 = vld [vmem:[#allocation31 + $0x1d0] sm:$0xff]  ;;  %v3308_v26 = vld [vmem:[#allocation31 + $0x1d8] sm:$0xff]  ;;  %v13438_v24 = vpack.c.bf16 %v3258_v57, %v3257_v1  ;;  %v13444_v51 = vpack.c.bf16 %v3276_v29, %v3275_v48 }
 0xb2e   :  { %v13440_v60 = vpack.c.bf16 %v3290_v8, %v3289_v41  ;;  %v3259_v45 = vld [vmem:[#allocation31 + $0x50] sm:$0xff]  ;;  %v3260_v33 = vld [vmem:[#allocation31 + $0x58] sm:$0xff]  ;;  %v13446_v40 = vpack.c.bf16 %v3308_v26, %v3307_v31  ;;  %v3277_v10 = vld [vmem:[#allocation31 + $0xe0] sm:$0xff] }
 0xb2f   :  { %v3291_v27 = vld [vmem:[#allocation31 + $0x150] sm:$0xff]  ;;  %v3292_v52 = vld [vmem:[#allocation31 + $0x158] sm:$0xff]  ;;  %v3278_v36 = vld [vmem:[#allocation31 + $0xe8] sm:$0xff]  ;;  %v13450_v43 = vpack.c.bf16 %v3260_v33, %v3259_v45 }
 0xb30   :  { %10200 = vmatpush3.bf16.msra.mxu1 %v13402_v9  ;;  %10232 = vmatpush3.bf16.msra.mxu0 %v13404_v30  ;;  %v3309_v5 = vld [vmem:[#allocation31 + $0x1e0] sm:$0xff]  ;;  %v3310_v16 = vld [vmem:[#allocation31 + $0x1e8] sm:$0xff]  ;;  %v13452_v11 = vpack.c.bf16 %v3292_v52, %v3291_v27  ;;  %v13456_v56 = vpack.c.bf16 %v3278_v36, %v3277_v10  ;;  %v3279_v57 = vld [vmem:[#allocation31 + $0xf0] sm:$0xff] }
 0xb31   :  { %10202 = vmatprep.subr.bf16.mxu1 %v13408_v37  ;;  %10234 = vmatprep.subr.bf16.mxu0 %v13410_v32  ;;  %v3261_v0 = vld [vmem:[#allocation31 + $0x60] sm:$0xff]  ;;  %v13458_v63 = vpack.c.bf16 %v3310_v16, %v3309_v5  ;;  %v3262_v7 = vld [vmem:[#allocation31 + $0x68] sm:$0xff]  ;;  %v3280_v41 = vld [vmem:[#allocation31 + $0xf8] sm:$0xff] }
 0xb32   :  { %v3293_v54 = vld [vmem:[#allocation31 + $0x160] sm:$0xff]  ;;  %v3294_v49 = vld [vmem:[#allocation31 + $0x168] sm:$0xff]  ;;  %v13462_v21 = vpack.c.bf16 %v3262_v7, %v3261_v0  ;;  %v3311_v8 = vld [vmem:[#allocation31 + $0x1f0] sm:$0xff]  ;;  %v13470_v48 = vpack.c.bf16 %v3280_v41, %v3279_v57 }
 0xb33   :  { %v13464_v1 = vpack.c.bf16 %v3294_v49, %v3293_v54  ;;  %v3312_v29 = vld [vmem:[#allocation31 + $0x1f8] sm:$0xff]  ;;  %v3263_v31 = vld [vmem:[#allocation31 + $0x70] sm:$0xff]  ;;  %v3329_v52 = vld [vmem:[#allocation31 + $0x280] sm:$0xff] }
 0xb34   :  { %10204 = vmatpush3.bf16.msra.mxu1 %v13414_v53  ;;  %10236 = vmatpush3.bf16.msra.mxu0 %v13416_v62  ;;  %14434 = vst [vmem:[#allocation96_spill] sm:$0xff] %v13470_v48  ;;  %v3264_v26 = vld [vmem:[#allocation31 + $0x78] sm:$0xff]  ;;  %v13472_v45 = vpack.c.bf16 %v3312_v29, %v3311_v8  ;;  %v3295_v33 = vld [vmem:[#allocation31 + $0x170] sm:$0xff]  ;;  %v3330_v10 = vld [vmem:[#allocation31 + $0x288] sm:$0xff] }
 0xb35   :  { %10206 = vmatprep.subr.bf16.mxu1 %v13420_v38  ;;  %10238 = vmatprep.subr.bf16.mxu0 %v13422_v15  ;;  %v3296_v27 = vld [vmem:[#allocation31 + $0x178] sm:$0xff]  ;;  %v3361_v36 = vld [vmem:[#allocation31 + $0x380] sm:$0xff]  ;;  %v13476_v5 = vpack.c.bf16 %v3264_v26, %v3263_v31  ;;  %v13480_v0 = vpack.c.bf16 %v3330_v10, %v3329_v52  ;;  %v3362_v7 = vld [vmem:[#allocation31 + $0x388] sm:$0xff] }
 0xb36   :  { %14435 = vst [vmem:[#allocation105_spill] sm:$0xff] %v13472_v45  ;;  %v13478_v16 = vpack.c.bf16 %v3296_v27, %v3295_v33  ;;  %v13482_v54 = vpack.c.bf16 %v3362_v7, %v3361_v36  ;;  %v13488_v49 = vld [vmem:[#allocation26] sm:$0xff]  ;;  %v14440_v57 = vld [vmem:[#allocation92_spill] sm:$0xff]  ;;  %v3313_v52 = vld [vmem:[#allocation31 + $0x200] sm:$0xff] }
 0xb37   :  { %14436 = vst [vmem:[#allocation97_spill] sm:$0xff] %v13476_v5  ;;  %14438 = vst [vmem:[#allocation98_spill] sm:$0xff] %v13480_v0  ;;  %v13491_v41 = vsub.s32 2, %v14440_v57  ;;  %v13494_v8 = vmul.f32 16.0, %v13488_v49  ;;  %v13497_v29 = vsub.s32 1, %v14440_v57  ;;  %v13500_v31 = vsub.s32 3, %v14440_v57 }
 0xb38   :  { %10208 = vmatpush3.bf16.msra.mxu1 %v13426_v13  ;;  %10240 = vmatpush3.bf16.msra.mxu0 %v13428_v42  ;;  %14437 = vst [vmem:[#allocation106_spill] sm:$0xff] %v13478_v16  ;;  %14439 = vst [vmem:[#allocation107_spill] sm:$0xff] %v13482_v54  ;;  %v3314_v10 = vld [vmem:[#allocation31 + $0x208] sm:$0xff]  ;;  %v14441_v36 = vld [vmem:[#allocation93_spill] sm:$0xff] }
 0xb39   :  { %10210 = vmatprep.subr.bf16.mxu1 %v13432_v3  ;;  %10242 = vmatprep.subr.bf16.mxu0 %v13434_v35  ;;  %v2827_v26 = vrot.slane %v13494_v8, %v13491_v41  ;;  %v2823_v33 = vrot.slane %v13494_v8, %v13497_v29  ;;  %v2831_v27 = vrot.slane %v13494_v8, %v13500_v31  ;;  %v3345_v47 = vld [vmem:[#allocation31 + $0x300] sm:$0xff]  ;;  %v3346_v25 = vld [vmem:[#allocation31 + $0x308] sm:$0xff]  ;;  %v3331_v46 = vld [vmem:[#allocation31 + $0x290] sm:$0xff] }
 0xb3a   :  { %v2819_v7 = vrot.slane %v13494_v8, %v14441_v36  ;;  %v3332_v20 = vld [vmem:[#allocation31 + $0x298] sm:$0xff]  ;;  %v3363_v12 = vld [vmem:[#allocation31 + $0x390] sm:$0xff]  ;;  %v13521_v23 = vpack.c.bf16 %v3314_v10, %v3313_v52  ;;  %v13523_v61 = vpack.c.bf16 %v3346_v25, %v3345_v47 }
 0xb3b   :  { %v3364_v2 = vld [vmem:[#allocation31 + $0x398] sm:$0xff]  ;;  %v3315_v4 = vld [vmem:[#allocation31 + $0x210] sm:$0xff] }
 0xb3c   :  { %10212 = vmatpush3.bf16.msra.mxu1 %v13438_v24  ;;  %10244 = vmatpush3.bf16.msra.mxu0 %v13440_v60  ;;  %v3316_v34 = vld [vmem:[#allocation31 + $0x218] sm:$0xff]  ;;  %v3335_v47 = vld [vmem:[#allocation31 + $0x2b0] sm:$0xff] }
 0xb3d   :  { %10214 = vmatprep.subr.bf16.mxu1 %v13444_v51  ;;  %10246 = vmatprep.subr.bf16.mxu0 %v13446_v40  ;;  %v13532_v25 = vpack.c.bf16 %v3316_v34, %v3315_v4  ;;  %v3367_v52 = vld [vmem:[#allocation31 + $0x3b0] sm:$0xff]  ;;  %v3368_v10 = vld [vmem:[#allocation31 + $0x3b8] sm:$0xff] }
 0xb3f   :  { %14443 = vst [vmem:[#allocation108_spill] sm:$0xff] %v13532_v25 }
 0xb40   :  { %10216 = vmatpush3.bf16.msra.mxu1 %v13450_v43  ;;  %10248 = vmatpush3.bf16.msra.mxu0 %v13452_v11 }
 0xb41   :  { %10218 = vmatprep.subr.bf16.mxu1 %v13456_v56  ;;  %10250 = vmatprep.subr.bf16.mxu0 %v13458_v63 }
 0xb44   :  { %10220 = vmatpush3.bf16.msra.mxu1 %v13462_v21  ;;  %10252 = vmatpush3.bf16.msra.mxu0 %v13464_v1 }
 0xb45   :  { %10222 = vmatprep.subr.bf16.mxu1 %v13470_v48  ;;  %10254 = vmatprep.subr.bf16.mxu0 %v13472_v45  ;;  %v3333_v45 = vld [vmem:[#allocation31 + $0x2a0] sm:$0xff] }
 0xb46   :  { %v3365_v48 = vld [vmem:[#allocation31 + $0x3a0] sm:$0xff] }
 0xb48   :  { %10224 = vmatpush3.bf16.msra.mxu1 %v13476_v5  ;;  %10256 = vmatpush3.bf16.msra.mxu0 %v13478_v16  ;;  %v13528_v16 = vpack.c.bf16 %v3364_v2, %v3363_v12  ;;  %v3348_v5 = vld [vmem:[#allocation31 + $0x318] sm:$0xff]  ;;  %v3317_v2 = vld [vmem:[#allocation31 + $0x220] sm:$0xff]  ;;  %v3318_v12 = vld [vmem:[#allocation31 + $0x228] sm:$0xff] }
 0xb49   :  { %10258 = vmatprep.subr.bf16.mxu1 %v13480_v0  ;;  %10290 = vmatprep.subr.bf16.mxu0 %v13482_v54  ;;  %v13526_v0 = vpack.c.bf16 %v3332_v20, %v3331_v46  ;;  %v3349_v46 = vld [vmem:[#allocation31 + $0x320] sm:$0xff]  ;;  %v13544_v4 = vpack.c.bf16 %v3318_v12, %v3317_v2 }
 0xb4a   :  { %14442 = vst [vmem:[#allocation99_spill] sm:$0xff] %v13528_v16 }
 0xb4b   :  { %14447 = vst [vmem:[#allocation113_spill] sm:$0xff] %v13544_v4 }
 0xbca   :  { %v13510_v50 = vpop.f32.mrb[28].mxu1  ;;  %v13512_v6 = vpop.f32.mrb[36].mxu0 }
 0xbcb   :  { %v2858_v22 = vadd.f32 %v2827_v26, %v13512_v6  ;;  %v13515_v55 = vpop.f32.mrb[29].mxu1  ;;  %v13517_v59 = vpop.f32.mrb[37].mxu0  ;;  %v2856_v54 = vadd.f32 %v2819_v7, %v13510_v50  ;;  %v3347_v26 = vld [vmem:[#allocation31 + $0x310] sm:$0xff]  ;;  %v3320_v7 = vld [vmem:[#allocation31 + $0x238] sm:$0xff] }
 0xbcc   :  { %v2857_v14 = vadd.f32 %v2823_v33, %v13515_v55  ;;  %v2859_v18 = vadd.f32 %v2831_v27, %v13517_v59  ;;  %v3334_v33 = vld [vmem:[#allocation31 + $0x2a8] sm:$0xff]  ;;  %v13534_v20 = vpack.c.bf16 %v3348_v5, %v3347_v26  ;;  %v3319_v5 = vld [vmem:[#allocation31 + $0x230] sm:$0xff] }
 0xbcd   :  { %v3366_v27 = vld [vmem:[#allocation31 + $0x3a8] sm:$0xff]  ;;  %v3351_v26 = vld [vmem:[#allocation31 + $0x330] sm:$0xff]  ;;  %v13556_v2 = vpack.c.bf16 %v3320_v7, %v3319_v5 }
 0xbce   :  { %3441 = vmatprep.mubr.f32.mxu1 %v2857_v14  ;;  %3511 = vmatprep.mubr.f32.mxu0 %v2859_v18  ;;  %14444 = vst [vmem:[#allocation100_spill] sm:$0xff] %v13534_v20  ;;  %v13538_v18 = vpack.c.bf16 %v3334_v33, %v3333_v45  ;;  %v13540_v14 = vpack.c.bf16 %v3366_v27, %v3365_v48  ;;  %v3352_v33 = vld [vmem:[#allocation31 + $0x338] sm:$0xff]  ;;  %v3337_v27 = vld [vmem:[#allocation31 + $0x2c0] sm:$0xff] }
 0xbcf   :  { %3442 = vmatmul.mubr.f32.vlgmr.msra.gmra.mrb[36].mxu1 %v2856_v54  ;;  %3512 = vmatmul.mubr.f32.vlgmr.msra.gmra.mrb[44].mxu0 %v2858_v22  ;;  %v3350_v22 = vld [vmem:[#allocation31 + $0x328] sm:$0xff]  ;;  %v3336_v54 = vld [vmem:[#allocation31 + $0x2b8] sm:$0xff]  ;;  %v13552_v45 = vpack.c.bf16 %v3368_v10, %v3367_v52  ;;  %14451 = vst [vmem:[#allocation123_spill] sm:$0xff] %v13556_v2  ;;  %v13558_v12 = vpack.c.bf16 %v3352_v33, %v3351_v26  ;;  %v3353_v52 = vld [vmem:[#allocation31 + $0x340] sm:$0xff] }
 0xbd0   :  { %10260 = vmatpush3.bf16.msra.mxu1 %v13521_v23  ;;  %10292 = vmatpush3.bf16.msra.mxu0 %v13523_v61  ;;  %14445 = vst [vmem:[#allocation109_spill] sm:$0xff] %v13538_v18  ;;  %14446 = vst [vmem:[#allocation101_spill] sm:$0xff] %v13540_v14  ;;  %v13546_v34 = vpack.c.bf16 %v3350_v22, %v3349_v46  ;;  %v13550_v48 = vpack.c.bf16 %v3336_v54, %v3335_v47  ;;  %v3321_v46 = vld [vmem:[#allocation31 + $0x240] sm:$0xff]  ;;  %v3322_v22 = vld [vmem:[#allocation31 + $0x248] sm:$0xff] }
 0xbd1   :  { %10262 = vmatprep.subr.bf16.mxu1 %v13526_v0  ;;  %10294 = vmatprep.subr.bf16.mxu0 %v13528_v16  ;;  %14450 = vst [vmem:[#allocation122_spill] sm:$0xff] %v13552_v45  ;;  %v3369_v16 = vld [vmem:[#allocation31 + $0x3c0] sm:$0xff]  ;;  %14452 = vst [vmem:[#allocation124_spill] sm:$0xff] %v13558_v12  ;;  %v3354_v10 = vld [vmem:[#allocation31 + $0x348] sm:$0xff]  ;;  %v13568_v5 = vpack.c.bf16 %v3322_v22, %v3321_v46 }
 0xbd2   :  { %14448 = vst [vmem:[#allocation120_spill] sm:$0xff] %v13546_v34  ;;  %14449 = vst [vmem:[#allocation121_spill] sm:$0xff] %v13550_v48  ;;  %v13570_v7 = vpack.c.bf16 %v3354_v10, %v3353_v52  ;;  %v3323_v26 = vld [vmem:[#allocation31 + $0x250] sm:$0xff]  ;;  %v3324_v33 = vld [vmem:[#allocation31 + $0x258] sm:$0xff] }
 0xbd3   :  { %14455 = vst [vmem:[#allocation128_spill] sm:$0xff] %v13568_v5  ;;  %v13580_v46 = vpack.c.bf16 %v3324_v33, %v3323_v26  ;;  %v3325_v52 = vld [vmem:[#allocation31 + $0x260] sm:$0xff]  ;;  %v3326_v10 = vld [vmem:[#allocation31 + $0x268] sm:$0xff] }
 0xbd4   :  { %10264 = vmatpush3.bf16.msra.mxu1 %v13532_v25  ;;  %10296 = vmatpush3.bf16.msra.mxu0 %v13534_v20  ;;  %v3338_v25 = vld [vmem:[#allocation31 + $0x2c8] sm:$0xff]  ;;  %14456 = vst [vmem:[#allocation92_spill] sm:$0xff] %v13570_v7  ;;  %v13592_v26 = vpack.c.bf16 %v3326_v10, %v3325_v52  ;;  %v13606_v52 = vsub.s32 6, %v14440_v57  ;;  %v13609_v10 = vsub.s32 5, %v14440_v57 }
 0xbd5   :  { %10266 = vmatprep.subr.bf16.mxu1 %v13538_v18  ;;  %10298 = vmatprep.subr.bf16.mxu0 %v13540_v14  ;;  %v3370_v20 = vld [vmem:[#allocation31 + $0x3c8] sm:$0xff]  ;;  %v13562_v47 = vpack.c.bf16 %v3338_v25, %v3337_v27  ;;  %v3339_v14 = vld [vmem:[#allocation31 + $0x2d0] sm:$0xff]  ;;  %v3356_v27 = vld [vmem:[#allocation31 + $0x358] sm:$0xff]  ;;  %14457 = vst [vmem:[#allocation93_spill] sm:$0xff] %v13580_v46 }
 0xbd6   :  { %v13564_v54 = vpack.c.bf16 %v3370_v20, %v3369_v16  ;;  %v3371_v18 = vld [vmem:[#allocation31 + $0x3d0] sm:$0xff]  ;;  %14461 = vst [vmem:[#allocation133_spill] sm:$0xff] %v13592_v26 }
 0xbd7   :  { %14453 = vst [vmem:[#allocation125_spill] sm:$0xff] %v13562_v47  ;;  %v3355_v20 = vld [vmem:[#allocation31 + $0x350] sm:$0xff] }
 0xbd8   :  { %10268 = vmatpush3.bf16.msra.mxu1 %v13544_v4  ;;  %10300 = vmatpush3.bf16.msra.mxu0 %v13546_v34  ;;  %14454 = vst [vmem:[#allocation127_spill] sm:$0xff] %v13564_v54  ;;  %v3340_v4 = vld [vmem:[#allocation31 + $0x2d8] sm:$0xff]  ;;  %v13582_v22 = vpack.c.bf16 %v3356_v27, %v3355_v20  ;;  %v3327_v20 = vld [vmem:[#allocation31 + $0x270] sm:$0xff] }
 0xbd9   :  { %10270 = vmatprep.subr.bf16.mxu1 %v13550_v48  ;;  %10302 = vmatprep.subr.bf16.mxu0 %v13552_v45  ;;  %v3372_v34 = vld [vmem:[#allocation31 + $0x3d8] sm:$0xff]  ;;  %v13574_v16 = vpack.c.bf16 %v3340_v4, %v3339_v14  ;;  %v3341_v45 = vld [vmem:[#allocation31 + $0x2e0] sm:$0xff] }
 0xbda   :  { %v13576_v25 = vpack.c.bf16 %v3372_v34, %v3371_v18  ;;  %v3373_v48 = vld [vmem:[#allocation31 + $0x3e0] sm:$0xff]  ;;  %14458 = vst [vmem:[#allocation130_spill] sm:$0xff] %v13582_v22  ;;  %v3358_v34 = vld [vmem:[#allocation31 + $0x368] sm:$0xff]  ;;  %v3360_v27 = vld [vmem:[#allocation31 + $0x378] sm:$0xff] }
 0xbdb   :  { %v3357_v4 = vld [vmem:[#allocation31 + $0x360] sm:$0xff] }
 0xbdc   :  { %10272 = vmatpush3.bf16.msra.mxu1 %v13556_v2  ;;  %10304 = vmatpush3.bf16.msra.mxu0 %v13558_v12  ;;  %v3342_v2 = vld [vmem:[#allocation31 + $0x2e8] sm:$0xff]  ;;  %v13594_v33 = vpack.c.bf16 %v3358_v34, %v3357_v4  ;;  %v13612_v4 = vsub.s32 7, %v14440_v57 }
 0xbdd   :  { %10274 = vmatprep.subr.bf16.mxu1 %v13562_v47  ;;  %10306 = vmatprep.subr.bf16.mxu0 %v13564_v54  ;;  %v3374_v12 = vld [vmem:[#allocation31 + $0x3e8] sm:$0xff]  ;;  %v13586_v18 = vpack.c.bf16 %v3342_v2, %v3341_v45  ;;  %v3343_v54 = vld [vmem:[#allocation31 + $0x2f0] sm:$0xff]  ;;  %v3328_v2 = vld [vmem:[#allocation31 + $0x278] sm:$0xff] }
 0xbde   :  { %v13588_v14 = vpack.c.bf16 %v3374_v12, %v3373_v48  ;;  %v3375_v47 = vld [vmem:[#allocation31 + $0x3f0] sm:$0xff]  ;;  %14462 = vst [vmem:[#allocation134_spill] sm:$0xff] %v13594_v33  ;;  %v2847_v34 = vrot.slane %v13494_v8, %v13612_v4 }
 0xbdf   :  { %14459 = vst [vmem:[#allocation131_spill] sm:$0xff] %v13586_v18  ;;  %v3359_v12 = vld [vmem:[#allocation31 + $0x370] sm:$0xff] }
 0xbe0   :  { %10276 = vmatpush3.bf16.msra.mxu1 %v13568_v5  ;;  %10308 = vmatpush3.bf16.msra.mxu0 %v13570_v7  ;;  %14460 = vst [vmem:[#allocation132_spill] sm:$0xff] %v13588_v14  ;;  %v3344_v5 = vld [vmem:[#allocation31 + $0x2f8] sm:$0xff] }
 0xbe1   :  { %10278 = vmatprep.subr.bf16.mxu1 %v13574_v16  ;;  %10310 = vmatprep.subr.bf16.mxu0 %v13576_v25  ;;  %v3376_v7 = vld [vmem:[#allocation31 + $0x3f8] sm:$0xff]  ;;  %v13598_v48 = vpack.c.bf16 %v3344_v5, %v3343_v54  ;;  %v13618_v54 = vpack.c.bf16 %v3360_v27, %v3359_v12  ;;  %v3198_v27 = vmul.f32 %v13488_v49, %v13488_v49 }
 0xbe2   :  { %v13600_v45 = vpack.c.bf16 %v3376_v7, %v3375_v47  ;;  %v13616_v47 = vpack.c.bf16 %v3328_v2, %v3327_v20  ;;  %v2843_v7 = vrot.slane %v13494_v8, %v13606_v52  ;;  %v2864_v20 = vmul.f32 2.0, %v13488_v49 }
 0xbe3   :  { %14463 = vst [vmem:[#allocation135_spill] sm:$0xff] %v13598_v48  ;;  %14466 = vst [vmem:[#allocation138_spill] sm:$0xff] %v13618_v54 }
 0xbe4   :  { %10280 = vmatpush3.bf16.msra.mxu1 %v13580_v46  ;;  %10312 = vmatpush3.bf16.msra.mxu0 %v13582_v22  ;;  %14464 = vst [vmem:[#allocation136_spill] sm:$0xff] %v13600_v45  ;;  %v13603_v46 = vsub.s32 4, %v14440_v57  ;;  %14465 = vst [vmem:[#allocation137_spill] sm:$0xff] %v13616_v47  ;;  %v2839_v57 = vrot.slane %v13494_v8, %v13609_v10  ;;  %v2881_v22 = vrot.slane %v2864_v20, %v13500_v31 }
 0xbe5   :  { %10282 = vmatprep.subr.bf16.mxu1 %v13586_v18  ;;  %10314 = vmatprep.subr.bf16.mxu0 %v13588_v14  ;;  %v2869_v18 = vrot.slane %v2864_v20, %v14441_v36 }
 0xbe6   :  { %v2835_v5 = vrot.slane %v13494_v8, %v13603_v46 }
 0xbe8   :  { %10284 = vmatpush3.bf16.msra.mxu1 %v13592_v26  ;;  %10316 = vmatpush3.bf16.msra.mxu0 %v13594_v33 }
 0xbe9   :  { %10286 = vmatprep.subr.bf16.mxu1 %v13598_v48  ;;  %10318 = vmatprep.subr.bf16.mxu0 %v13600_v45 }
 0xbec   :  { %10288 = vmatpush3.bf16.msra.mxu1 %v13616_v47  ;;  %10320 = vmatpush3.bf16.msra.mxu0 %v13618_v54  ;;  %v2877_v47 = vrot.slane %v2864_v20, %v13491_v41  ;;  %v2873_v54 = vrot.slane %v2864_v20, %v13497_v29 }
 0xbed   :  { %10322 = vmatprep.subr.bf16.mxu1 %v13380_v39  ;;  %10354 = vmatprep.subr.bf16.mxu0 %v13382_v17  ;;  %v13641_v39 = vmul.f32 16.0, %v3198_v27  ;;  %v2906_v17 = vmul.f32 %v2869_v18, %v13510_v50 }
 0xbee   :  { %v2706_v2 = vpop.f32.mrb[30].mxu1  ;;  %v2777_v12 = vpop.f32.mrb[38].mxu0  ;;  %v2908_v49 = vmul.f32 %v2877_v47, %v13512_v6 }
 0xbef   :  { %v2860_v45 = vadd.f32 %v2835_v5, %v2706_v2  ;;  %v2708_v48 = vpop.f32.mrb[31].mxu1  ;;  %v2862_v33 = vadd.f32 %v2843_v7, %v2777_v12  ;;  %v2779_v26 = vpop.f32.mrb[39].mxu0  ;;  %v2907_v5 = vmul.f32 %v2873_v54, %v13515_v55  ;;  %v2893_v55 = vrot.slane %v2864_v20, %v13606_v52 }
 0xbf0   :  { %v2861_v8 = vadd.f32 %v2839_v57, %v2708_v48  ;;  %v2863_v14 = vadd.f32 %v2847_v34, %v2779_v26 }
 0xbf1   :  { %v2912_v34 = vmul.f32 %v2893_v55, %v2777_v12  ;;  %v14478_v12 = vld [vmem:[#allocation113_spill] sm:$0xff] }
 0xbf2   :  { %3581 = vmatprep.mubr.f32.mxu1 %v2861_v8  ;;  %3651 = vmatprep.mubr.f32.mxu0 %v2863_v14  ;;  %v2909_v14 = vmul.f32 %v2881_v22, %v13517_v59  ;;  %v2885_v59 = vrot.slane %v2864_v20, %v13603_v46  ;;  %v2897_v22 = vrot.slane %v2864_v20, %v13612_v4  ;;  %v3954_v55 = vld [vmem:[#allocation32 + $0x58] sm:$0xff] }
 0xbf3   :  { %3582 = vmatmul.mubr.f32.vlgmr.msra.gmra.mrb[38].mxu1 %v2860_v45  ;;  %3652 = vmatmul.mubr.f32.vlgmr.msra.gmra.mrb[46].mxu0 %v2862_v33  ;;  %v3208_v33 = vrot.slane %v13641_v39, %v13497_v29 }
 0xbf4   :  { %10324 = vmatpush3.bf16.msra.mxu1 %v13386_v58  ;;  %10356 = vmatpush3.bf16.msra.mxu0 %v13388_v44  ;;  %v3216_v58 = vrot.slane %v13641_v39, %v13500_v31  ;;  %v2913_v27 = vmul.f32 %v2897_v22, %v2779_v26  ;;  %v14476_v26 = vld [vmem:[#allocation109_spill] sm:$0xff]  ;;  %v3220_v22 = vrot.slane %v13641_v39, %v13603_v46 }
 0xbf5   :  { %10326 = vmatprep.subr.bf16.mxu1 %v13392_v28  ;;  %10358 = vmatprep.subr.bf16.mxu0 %v13394_v19  ;;  %v2889_v19 = vrot.slane %v2864_v20, %v13609_v10 }
 0xbf6   :  { %v2980_v7 = vpop.f32.mrb[32].mxu1  ;;  %v3051_v57 = vpop.f32.mrb[40].mxu0 }
 0xbf7   :  { %v2981_v44 = vadd.f32 %v2980_v7, %v2906_v17  ;;  %v3052_v50 = vadd.f32 %v3051_v57, %v2908_v49  ;;  %v2982_v18 = vpop.f32.mrb[33].mxu1  ;;  %v3053_v6 = vpop.f32.mrb[41].mxu0  ;;  %v14484_v7 = vld [vmem:[#allocation125_spill] sm:$0xff]  ;;  %v14485_v57 = vld [vmem:[#allocation127_spill] sm:$0xff] }
 0xbf8   :  { %v2983_v45 = vadd.f32 %v2982_v18, %v2907_v5  ;;  %v3054_v28 = vadd.f32 %v3053_v6, %v2909_v14  ;;  %10328 = vmatpush3.bf16.msra.mxu1 %v13402_v9  ;;  %10360 = vmatpush3.bf16.msra.mxu0 %v13404_v30  ;;  %v2910_v9 = vmul.f32 %v2885_v59, %v2706_v2  ;;  %v14479_v5 = vld [vmem:[#allocation120_spill] sm:$0xff]  ;;  %v14482_v14 = vld [vmem:[#allocation123_spill] sm:$0xff] }
 0xbf9   :  { %10330 = vmatprep.subr.bf16.mxu1 %v13408_v37  ;;  %10362 = vmatprep.subr.bf16.mxu0 %v13410_v32  ;;  %v2911_v30 = vmul.f32 %v2889_v19, %v2708_v48  ;;  %v14477_v48 = vld [vmem:[#allocation101_spill] sm:$0xff]  ;;  %v14490_v18 = vld [vmem:[#allocation131_spill] sm:$0xff]  ;;  %v14491_v6 = vld [vmem:[#allocation132_spill] sm:$0xff] }
 0xbfa   :  { %v3242_v47 = vadd.f32 %v3208_v33, %v2983_v45  ;;  %v3244_v54 = vadd.f32 %v3216_v58, %v3054_v28  ;;  %v14486_v33 = vld [vmem:[#allocation128_spill] sm:$0xff]  ;;  %v3944_v45 = vld [vmem:[#allocation32 + $0x8] sm:$0xff]  ;;  %v14492_v19 = vld [vmem:[#allocation133_spill] sm:$0xff] }
 0xbfb   :  { %v14487_v58 = vld [vmem:[#allocation92_spill] sm:$0xff]  ;;  %v3952_v28 = vld [vmem:[#allocation32 + $0x48] sm:$0xff] }
 0xbfc   :  { %10332 = vmatpush3.bf16.msra.mxu1 %v13414_v53  ;;  %3721 = vmatprep.mubr.f32.mxu1 %v3242_v47  ;;  %v3946_v59 = vld [vmem:[#allocation32 + $0x18] sm:$0xff]  ;;  %v13728_v47 = vpack.c.bf16 %v3952_v28, %v3944_v45  ;;  %v3993_v45 = vld [vmem:[#allocation32 + $0x190] sm:$0xff] }
 0xbfd   :  { %10364 = vmatpush3.bf16.msra.mxu0 %v13416_v62  ;;  %3791 = vmatprep.mubr.f32.mxu0 %v3244_v54  ;;  %v3204_v62 = vrot.slane %v13641_v39, %v14441_v36  ;;  %v3943_v54 = vld [vmem:[#allocation32] sm:$0xff]  ;;  %v4001_v28 = vld [vmem:[#allocation32 + $0x1d0] sm:$0xff] }
 0xbfe   :  { %v3122_v8 = vpop.f32.mrb[34].mxu1  ;;  %v3193_v37 = vpop.f32.mrb[42].mxu0  ;;  %10334 = vmatprep.subr.bf16.mxu1 %v13420_v38  ;;  %10366 = vmatprep.subr.bf16.mxu0 %v13422_v15  ;;  %v14467_v38 = vld [vmem:[#allocation96_spill] sm:$0xff]  ;;  %v3212_v15 = vrot.slane %v13641_v39, %v13491_v41 }
 0xbff   :  { %v13667_v32 = vadd.f32 %v3122_v8, %v2910_v9  ;;  %v13669_v20 = vadd.f32 %v3193_v37, %v2912_v34  ;;  %v3124_v17 = vpop.f32.mrb[35].mxu1  ;;  %v3195_v53 = vpop.f32.mrb[43].mxu0  ;;  %v3951_v9 = vld [vmem:[#allocation32 + $0x40] sm:$0xff]  ;;  %v3945_v34 = vld [vmem:[#allocation32 + $0x10] sm:$0xff]  ;;  %v13733_v8 = vpack.c.bf16 %v3954_v55, %v3946_v59  ;;  %v3948_v59 = vld [vmem:[#allocation32 + $0x28] sm:$0xff]  ;;  %v13780_v55 = vpack.c.bf16 %v4001_v28, %v3993_v45 }
 0xc00   :  { %v3125_v49 = vadd.f32 %v3124_v17, %v2911_v30  ;;  %v3196_v2 = vadd.f32 %v3195_v53, %v2913_v27  ;;  %10336 = vmatpush3.bf16.msra.mxu1 %v13426_v13  ;;  %v14468_v13 = vld [vmem:[#allocation105_spill] sm:$0xff]  ;;  %v3228_v30 = vrot.slane %v13641_v39, %v13606_v52  ;;  %v14495_v27 = vld [vmem:[#allocation136_spill] sm:$0xff]  ;;  %v3960_v17 = vld [vmem:[#allocation32 + $0x88] sm:$0xff] }
 0xc01   :  { %10368 = vmatpush3.bf16.msra.mxu0 %v13428_v42  ;;  %10338 = vmatprep.subr.bf16.mxu1 %v13432_v3  ;;  %v3224_v42 = vrot.slane %v13641_v39, %v13609_v10  ;;  %v3232_v3 = vrot.slane %v13641_v39, %v13612_v4  ;;  %v3953_v37 = vld [vmem:[#allocation32 + $0x50] sm:$0xff]  ;;  %v3968_v53 = vld [vmem:[#allocation32 + $0xc8] sm:$0xff] }
 0xc02   :  { %10370 = vmatprep.subr.bf16.mxu0 %v13434_v35  ;;  %v14469_v35 = vld [vmem:[#allocation97_spill] sm:$0xff]  ;;  %v13741_v39 = vpack.c.bf16 %v3953_v37, %v3945_v34  ;;  %v3973_v45 = vld [vmem:[#allocation32 + $0xf0] sm:$0xff]  ;;  %v3980_v28 = vld [vmem:[#allocation32 + $0x128] sm:$0xff] }
 0xc04   :  { %10340 = vmatpush3.bf16.msra.mxu1 %v13438_v24  ;;  %v3241_v24 = vadd.f32 %v3204_v62, %v2981_v44  ;;  %v14488_v44 = vld [vmem:[#allocation93_spill] sm:$0xff] }
 0xc05   :  { %10372 = vmatpush3.bf16.msra.mxu0 %v13440_v60  ;;  %10342 = vmatprep.subr.bf16.mxu1 %v13444_v51  ;;  %v14470_v60 = vld [vmem:[#allocation106_spill] sm:$0xff]  ;;  %v14496_v62 = vld [vmem:[#allocation137_spill] sm:$0xff] }
 0xc06   :  { %10374 = vmatprep.subr.bf16.mxu0 %v13446_v40  ;;  %v14471_v51 = vld [vmem:[#allocation98_spill] sm:$0xff]  ;;  %v3243_v40 = vadd.f32 %v3212_v15, %v3052_v50  ;;  %v3245_v15 = vadd.f32 %v3220_v22, %v13667_v32  ;;  %v3950_v22 = vld [vmem:[#allocation32 + $0x38] sm:$0xff] }
 0xc07   :  { %v14489_v50 = vld [vmem:[#allocation130_spill] sm:$0xff] }
 0xc08   :  { %10344 = vmatpush3.bf16.msra.mxu1 %v13450_v43  ;;  %v14472_v43 = vld [vmem:[#allocation107_spill] sm:$0xff] }
 0xc09   :  { %10376 = vmatpush3.bf16.msra.mxu0 %v13452_v11  ;;  %10346 = vmatprep.subr.bf16.mxu1 %v13456_v56  ;;  %v3246_v11 = vadd.f32 %v3224_v42, %v3125_v49  ;;  %v3248_v56 = vadd.f32 %v3232_v3, %v3196_v2  ;;  %v3962_v49 = vld [vmem:[#allocation32 + $0x98] sm:$0xff]  ;;  %v13743_v42 = vpack.c.bf16 %v3968_v53, %v3960_v17  ;;  %v3959_v3 = vld [vmem:[#allocation32 + $0x80] sm:$0xff] }
 0xc0a   :  { %10378 = vmatprep.subr.bf16.mxu0 %v13458_v63  ;;  %v14473_v63 = vld [vmem:[#allocation99_spill] sm:$0xff]  ;;  %v3970_v2 = vld [vmem:[#allocation32 + $0xd8] sm:$0xff] }
 0xc0c   :  { %10348 = vmatpush3.bf16.msra.mxu1 %v13462_v21  ;;  %v14474_v21 = vld [vmem:[#allocation108_spill] sm:$0xff] }
 0xc0d   :  { %10380 = vmatpush3.bf16.msra.mxu0 %v13464_v1  ;;  %10350 = vmatprep.subr.bf16.mxu1 %v14467_v38  ;;  %v14475_v1 = vld [vmem:[#allocation100_spill] sm:$0xff]  ;;  %v13736_v38 = vpack.c.bf16 %v3951_v9, %v3943_v54 }
 0xc0e   :  { %10382 = vmatprep.subr.bf16.mxu0 %v14468_v13  ;;  %v14497_v13 = vld [vmem:[#allocation138_spill] sm:$0xff] }
 0xc10   :  { %10352 = vmatpush3.bf16.msra.mxu1 %v14469_v35  ;;  %v3967_v35 = vld [vmem:[#allocation32 + $0xc0] sm:$0xff] }
 0xc11   :  { %10384 = vmatpush3.bf16.msra.mxu0 %v14470_v60  ;;  %10386 = vmatprep.subr.bf16.mxu1 %v14471_v51  ;;  %v13747_v60 = vpack.c.bf16 %v3970_v2, %v3962_v49  ;;  %v3961_v51 = vld [vmem:[#allocation32 + $0x90] sm:$0xff]  ;;  %v13750_v32 = vpack.c.bf16 %v3967_v35, %v3959_v3  ;;  %v3947_v35 = vld [vmem:[#allocation32 + $0x20] sm:$0xff] }
 0xc12   :  { %10418 = vmatprep.subr.bf16.mxu0 %v14472_v43 }
 0xc13   :  { %3722 = vmatmul.mubr.f32.vlgmr.msra.gmra.mrb[40].mxu1 %v3241_v24  ;;  %v3247_v24 = vadd.f32 %v3228_v30, %v13669_v20  ;;  %v14498_v20 = vmov 0.0  }
 0xc14   :  { %3792 = vmatmul.mubr.f32.vlgmr.msra.gmra.mrb[48].mxu0 %v3243_v40  ;;  %10388 = vmatpush3.bf16.msra.mxu1 %v13521_v23  ;;  %v14480_v23 = vld [vmem:[#allocation121_spill] sm:$0xff]  ;;  %v3969_v40 = vld [vmem:[#allocation32 + $0xd0] sm:$0xff] }
 0xc15   :  { %3861 = vmatprep.mubr.f32.mxu1 %v3246_v11  ;;  %10420 = vmatpush3.bf16.msra.mxu0 %v13523_v61  ;;  %v14481_v61 = vld [vmem:[#allocation122_spill] sm:$0xff]  ;;  %v13754_v43 = vpack.c.bf16 %v3969_v40, %v3961_v51  ;;  %v3949_v40 = vld [vmem:[#allocation32 + $0x30] sm:$0xff] }
 0xc16   :  { %3931 = vmatprep.mubr.f32.mxu0 %v3248_v56  ;;  %10390 = vmatprep.subr.bf16.mxu1 %v13526_v0  ;;  %v14483_v0 = vld [vmem:[#allocation124_spill] sm:$0xff]  ;;  %v3976_v11 = vld [vmem:[#allocation32 + $0x108] sm:$0xff] }
 0xc17   :  { %10422 = vmatprep.subr.bf16.mxu0 %v14473_v63  ;;  %v3984_v56 = vld [vmem:[#allocation32 + $0x148] sm:$0xff]  ;;  %v3978_v63 = vld [vmem:[#allocation32 + $0x118] sm:$0xff] }
 0xc18   :  { %10392 = vmatpush3.bf16.msra.mxu1 %v14474_v21  ;;  %v13761_v21 = vpack.c.bf16 %v3984_v56, %v3976_v11  ;;  %v3957_v11 = vld [vmem:[#allocation32 + $0x70] sm:$0xff]  ;;  %v3964_v56 = vld [vmem:[#allocation32 + $0xa8] sm:$0xff] }
 0xc19   :  { %10424 = vmatpush3.bf16.msra.mxu0 %v14475_v1  ;;  %10394 = vmatprep.subr.bf16.mxu1 %v14476_v26  ;;  %v3986_v1 = vld [vmem:[#allocation32 + $0x158] sm:$0xff]  ;;  %v3975_v26 = vld [vmem:[#allocation32 + $0x100] sm:$0xff] }
 0xc1a   :  { %10426 = vmatprep.subr.bf16.mxu0 %v14477_v48  ;;  %v3983_v48 = vld [vmem:[#allocation32 + $0x140] sm:$0xff] }
 0xc1c   :  { %10396 = vmatpush3.bf16.msra.mxu1 %v14478_v12  ;;  %v13763_v12 = vpack.c.bf16 %v3986_v1, %v3978_v63  ;;  %v3972_v63 = vld [vmem:[#allocation32 + $0xe8] sm:$0xff]  ;;  %v3966_v1 = vld [vmem:[#allocation32 + $0xb8] sm:$0xff] }
 0xc1d   :  { %10428 = vmatpush3.bf16.msra.mxu0 %v14479_v5  ;;  %10398 = vmatprep.subr.bf16.mxu1 %v14480_v23  ;;  %v13765_v5 = vpack.c.bf16 %v3983_v48, %v3975_v26  ;;  %v3977_v23 = vld [vmem:[#allocation32 + $0x110] sm:$0xff]  ;;  %v3974_v26 = vld [vmem:[#allocation32 + $0xf8] sm:$0xff] }
 0xc1e   :  { %10430 = vmatprep.subr.bf16.mxu0 %v14481_v61  ;;  %v3985_v61 = vld [vmem:[#allocation32 + $0x150] sm:$0xff] }
 0xc20   :  { %10400 = vmatpush3.bf16.msra.mxu1 %v14482_v14  ;;  %v13768_v14 = vpack.c.bf16 %v3985_v61, %v3977_v23  ;;  %v13793_v61 = vpack.c.bf16 %v3957_v11, %v3949_v40  ;;  %v4003_v40 = vld [vmem:[#allocation32 + $0x1e0] sm:$0xff]  ;;  %v3997_v11 = vld [vmem:[#allocation32 + $0x1b0] sm:$0xff] }
 0xc21   :  { %10432 = vmatpush3.bf16.msra.mxu0 %v14483_v0  ;;  %10402 = vmatprep.subr.bf16.mxu1 %v14484_v7  ;;  %v3992_v0 = vld [vmem:[#allocation32 + $0x188] sm:$0xff] }
 0xc22   :  { %10434 = vmatprep.subr.bf16.mxu0 %v14485_v57  ;;  %v4000_v7 = vld [vmem:[#allocation32 + $0x1c8] sm:$0xff]  ;;  %v3994_v57 = vld [vmem:[#allocation32 + $0x198] sm:$0xff] }
 0xc24   :  { %10404 = vmatpush3.bf16.msra.mxu1 %v14486_v33  ;;  %v13773_v33 = vpack.c.bf16 %v4000_v7, %v3992_v0  ;;  %v3963_v0 = vld [vmem:[#allocation32 + $0xa0] sm:$0xff] }
 0xc25   :  { %10436 = vmatpush3.bf16.msra.mxu0 %v14487_v58  ;;  %10406 = vmatprep.subr.bf16.mxu1 %v13574_v16  ;;  %v14493_v16 = vld [vmem:[#allocation134_spill] sm:$0xff]  ;;  %v4002_v58 = vld [vmem:[#allocation32 + $0x1d8] sm:$0xff] }
 0xc26   :  { %10438 = vmatprep.subr.bf16.mxu0 %v13576_v25  ;;  %v14494_v25 = vld [vmem:[#allocation135_spill] sm:$0xff]  ;;  %v3971_v7 = vld [vmem:[#allocation32 + $0xe0] sm:$0xff] }
 0xc28   :  { %10408 = vmatpush3.bf16.msra.mxu1 %v14488_v44  ;;  %v3991_v44 = vld [vmem:[#allocation32 + $0x180] sm:$0xff] }
 0xc29   :  { %10440 = vmatpush3.bf16.msra.mxu0 %v14489_v50  ;;  %10410 = vmatprep.subr.bf16.mxu1 %v14490_v18  ;;  %v3999_v50 = vld [vmem:[#allocation32 + $0x1c0] sm:$0xff]  ;;  %v13775_v18 = vpack.c.bf16 %v4002_v58, %v3994_v57  ;;  %v13797_v58 = vpack.c.bf16 %v3972_v63, %v3964_v56  ;;  %v4005_v56 = vld [vmem:[#allocation32 + $0x1f0] sm:$0xff] }
 0xc2a   :  { %10442 = vmatprep.subr.bf16.mxu0 %v14491_v6  ;;  %v13777_v6 = vpack.c.bf16 %v3999_v50, %v3991_v44  ;;  %v13799_v44 = vpack.c.bf16 %v3974_v26, %v3966_v1  ;;  %v3965_v50 = vld [vmem:[#allocation32 + $0xb0] sm:$0xff]  ;;  %v13835_v1 = vpack.c.bf16 %v4005_v56, %v3997_v11  ;;  %v10978_v11 = vld [vmem:[#allocation34 + $0xe8] ss:$16 sps:$4 sm:$0xff]  }
 0xc2b   :  { %v10983_v56 = vld [vmem:[#allocation34 + $0x104] ss:$16 sps:$4 sm:$0xff]  }
 0xc2c   :  { %10412 = vmatpush3.bf16.msra.mxu1 %v14492_v19  ;;  %v3956_v19 = vld [vmem:[#allocation32 + $0x68] sm:$0xff] }
 0xc2d   :  { %10444 = vmatpush3.bf16.msra.mxu0 %v14493_v16  ;;  %10414 = vmatprep.subr.bf16.mxu1 %v14494_v25  ;;  %v3958_v16 = vld [vmem:[#allocation32 + $0x78] sm:$0xff]  ;;  %v13784_v25 = vpack.c.bf16 %v3956_v19, %v3948_v59  ;;  %v3988_v59 = vld [vmem:[#allocation32 + $0x168] sm:$0xff] }
 0xc2e   :  { %10446 = vmatprep.subr.bf16.mxu0 %v14495_v27  ;;  %v13786_v54 = vpack.c.bf16 %v3958_v16, %v3950_v22  ;;  %v3982_v19 = vld [vmem:[#allocation32 + $0x138] sm:$0xff]  ;;  %v13807_v16 = vpack.c.bf16 %v3971_v7, %v3963_v0 }
 0xc2f   :  { %v3990_v22 = vld [vmem:[#allocation32 + $0x178] sm:$0xff] }
 0xc30   :  { %10416 = vmatpush3.bf16.msra.mxu1 %v14496_v62 }
 0xc31   :  { %10448 = vmatpush3.bf16.msra.mxu0 %v14497_v13  ;;  %10450 = vmatprep.subr.bf16.mxu1 %v13728_v47 }
 0xc32   :  { %10466 = vmatprep.subr.bf16.mxu0 %v13733_v8 }
 0xc33   :  { %3862 = vmatmul.mubr.f32.vlgmr.msra.gmra.mrb[42].mxu1 %v3245_v15 }
 0xc34   :  { %3932 = vmatmul.mubr.f32.vlgmr.msra.gmra.mrb[50].mxu0 %v3247_v24  ;;  %10452 = vmatpush1.bf16.msra.mxu1 %v13736_v38  ;;  %v3955_v24 = vld [vmem:[#allocation32 + $0x60] sm:$0xff] }
 0xc35   :  { %10468 = vmatpush1.bf16.msra.mxu0 %v13741_v39  ;;  %10454 = vmatprep.subr.bf16.mxu1 %v13743_v42  ;;  %v13791_v23 = vpack.c.bf16 %v3955_v24, %v3947_v35  ;;  %v3995_v35 = vld [vmem:[#allocation32 + $0x1a0] sm:$0xff] }
 0xc36   :  { %10470 = vmatprep.subr.bf16.mxu0 %v13747_v60  ;;  %4074 = vmatprep.mubr.f32.mxu1 %v14498_v20  ;;  %v13833_v63 = vpack.c.bf16 %v4003_v40, %v3995_v35  ;;  %v10972_v35 = vld [vmem:[#allocation34 + $0xc8] ss:$16 sps:$4 sm:$0xff]   ;;  %v10975_v40 = vld [vmem:[#allocation34 + $0xe0] ss:$16 sps:$4 sm:$0xff]  }
 0xc37   :  { %4145 = vmatprep.mubr.f32.mxu0 %v14498_v20 }
 0xc38   :  { %10456 = vmatpush1.bf16.msra.mxu1 %v13750_v32 }
 0xc39   :  { %10472 = vmatpush1.bf16.msra.mxu0 %v13754_v43  ;;  %10458 = vmatprep.subr.bf16.mxu1 %v13761_v21 }
 0xc3a   :  { %10474 = vmatprep.subr.bf16.mxu0 %v13763_v12 }
 0xc3c   :  { %10460 = vmatpush1.bf16.msra.mxu1 %v13765_v5 }
 0xc3d   :  { %10476 = vmatpush1.bf16.msra.mxu0 %v13768_v14  ;;  %10462 = vmatprep.subr.bf16.mxu1 %v13773_v33 }
 0xc3e   :  { %10478 = vmatprep.subr.bf16.mxu0 %v13775_v18 }
 0xc40   :  { %10464 = vmatpush1.bf16.msra.mxu1 %v13777_v6 }
 0xc41   :  { %10480 = vmatpush1.bf16.msra.mxu0 %v13780_v55  ;;  %10482 = vmatprep.subr.bf16.mxu1 %v13784_v25 }
 0xc42   :  { %10498 = vmatprep.subr.bf16.mxu0 %v13786_v54 }
 0xca2   :  { %v9363_v9 = vpop.f32.mrb[36].mxu1  ;;  %v9398_v34 = vpop.f32.mrb[44].mxu0 }
 0xca3   :  { %v9364_v30 = vpop.f32.mrb[37].mxu1  ;;  %v9399_v27 = vpop.f32.mrb[45].mxu0 }
 0xca4   :  { %v9365_v37 = vadd.f32 %v9364_v30, %v9363_v9  ;;  %v9400_v17 = vadd.f32 %v9399_v27, %v9398_v34  ;;  %v13809_v9 = vpack.c.bf16 %v3973_v45, %v3965_v50  ;;  %v3979_v34 = vld [vmem:[#allocation32 + $0x120] sm:$0xff]  ;;  %v13813_v27 = vpack.c.bf16 %v3988_v59, %v3980_v28  ;;  %v10942_v50 = vld [vmem:[#allocation34 + $0x28] ss:$16 sps:$4 sm:$0xff]   ;;  %v10950_v28 = vld [vmem:[#allocation34 + $0x4c] ss:$16 sps:$4 sm:$0xff]  }
 0xca5   :  { %v3987_v30 = vld [vmem:[#allocation32 + $0x160] sm:$0xff] }
 0xca6   :  { %v3514_v53 = vadd.f32 %v9400_v17, %v9365_v37  ;;  %v13815_v37 = vpack.c.bf16 %v3990_v22, %v3982_v19  ;;  %v3981_v17 = vld [vmem:[#allocation32 + $0x130] sm:$0xff]  ;;  %v10948_v19 = vld [vmem:[#allocation34 + $0x48] ss:$16 sps:$4 sm:$0xff]  }
 0xca7   :  { %v10947_v45 = vld [vmem:[#allocation34 + $0x44] ss:$16 sps:$4 sm:$0xff]   ;;  %v10945_v59 = vld [vmem:[#allocation34 + $0x40] ss:$16 sps:$4 sm:$0xff]  }
 0xca8   :  { %v10953_v22 = vld [vmem:[#allocation34 + $0x64] ss:$16 sps:$4 sm:$0xff]  }
 0xcc6   :  { %v9433_v49 = vpop.f32.mrb[38].mxu1  ;;  %v9468_v2 = vpop.f32.mrb[46].mxu0 }
 0xcc7   :  { %v9434_v62 = vpop.f32.mrb[39].mxu1  ;;  %v9469_v15 = vpop.f32.mrb[47].mxu0 }
 0xcc8   :  { %v9435_v13 = vadd.f32 %v9434_v62, %v9433_v49  ;;  %v9470_v3 = vadd.f32 %v9469_v15, %v9468_v2  ;;  %v3996_v49 = vld [vmem:[#allocation32 + $0x1a8] sm:$0xff]  ;;  %v3998_v62 = vld [vmem:[#allocation32 + $0x1b8] sm:$0xff] }
 0xcc9   :  { %v4004_v2 = vld [vmem:[#allocation32 + $0x1e8] sm:$0xff]  ;;  %v4006_v15 = vld [vmem:[#allocation32 + $0x1f8] sm:$0xff] }
 0xcca   :  { %v3584_v51 = vadd.f32 %v9435_v13, %v3514_v53  ;;  %v3989_v53 = vld [vmem:[#allocation32 + $0x170] sm:$0xff]  ;;  %v13821_v13 = vpack.c.bf16 %v3987_v30, %v3979_v34  ;;  %v13827_v24 = vpack.c.bf16 %v4004_v2, %v3996_v49  ;;  %v10954_v34 = vld [vmem:[#allocation34 + $0x68] ss:$16 sps:$4 sm:$0xff]   ;;  %v10968_v49 = vld [vmem:[#allocation34 + $0xac] ss:$16 sps:$4 sm:$0xff]  }
 0xccb   :  { %v10959_v30 = vld [vmem:[#allocation34 + $0x84] ss:$16 sps:$4 sm:$0xff]   ;;  %v10963_v2 = vld [vmem:[#allocation34 + $0xa0] ss:$16 sps:$4 sm:$0xff]  }
 0xccc   :  { %v3654_v48 = vadd.f32 %v9470_v3, %v3584_v51  ;;  %v13823_v3 = vpack.c.bf16 %v3989_v53, %v3981_v17  ;;  %v13829_v51 = vpack.c.bf16 %v4006_v15, %v3998_v62  ;;  %v10960_v17 = vld [vmem:[#allocation34 + $0x88] ss:$16 sps:$4 sm:$0xff]   ;;  %v10965_v53 = vld [vmem:[#allocation34 + $0xa4] ss:$16 sps:$4 sm:$0xff]  }
 0xccd   :  { %v10966_v62 = vld [vmem:[#allocation34 + $0xa8] ss:$16 sps:$4 sm:$0xff]   ;;  %v10971_v15 = vld [vmem:[#allocation34 + $0xc4] ss:$16 sps:$4 sm:$0xff]  }
 0xcce   :  { %v13795_v57 = vmul.f32 0.00390625, %v3654_v48 }
 0xcd0   :  { %8891 = vmatmul.mubr.msk.f32.vlgmr.msra.gmra.mrb[44].mxu1 %vm822_vm4, %v13795_v57  ;;  %8892 = vmatmul.mubr.msk.f32.vlgmr.msra.gmra.mrb[52].mxu0 %vm822_vm4, %v13795_v57 }
 0xcd1   :  { %10484 = vmatpush1.bf16.msra.mxu1 %v13791_v23  ;;  %10500 = vmatpush1.bf16.msra.mxu0 %v13793_v61 }
 0xcd2   :  { %10486 = vmatprep.subr.bf16.mxu1 %v13797_v58  ;;  %10502 = vmatprep.subr.bf16.mxu0 %v13799_v44 }
 0xcd3   :  { %4216 = vmatprep.mubr.f32.mxu1 %v14498_v20  ;;  %4287 = vmatprep.mubr.f32.mxu0 %v14498_v20 }
 0xcd5   :  { %10488 = vmatpush1.bf16.msra.mxu1 %v13807_v16  ;;  %10504 = vmatpush1.bf16.msra.mxu0 %v13809_v9 }
 0xcd6   :  { %10490 = vmatprep.subr.bf16.mxu1 %v13813_v27  ;;  %10506 = vmatprep.subr.bf16.mxu0 %v13815_v37 }
 0xcd9   :  { %10492 = vmatpush1.bf16.msra.mxu1 %v13821_v13  ;;  %10508 = vmatpush1.bf16.msra.mxu0 %v13823_v3 }
 0xcda   :  { %10494 = vmatprep.subr.bf16.mxu1 %v13827_v24  ;;  %10510 = vmatprep.subr.bf16.mxu0 %v13829_v51 }
 0xcdd   :  { %10496 = vmatpush1.bf16.msra.mxu1 %v13833_v63  ;;  %10512 = vmatpush1.bf16.msra.mxu0 %v13835_v1 }
 0xcde   :  { %10514 = vmatprep.subr.bf16.mxu1 %v13728_v47  ;;  %10530 = vmatprep.subr.bf16.mxu0 %v13733_v8 }
 0xce0   :  { %8893 = vmatmul.mubr.msk.f32.vlgmr.msra.gmra.mrb[46].mxu1 %vm822_vm4, %v13795_v57  ;;  %8894 = vmatmul.mubr.msk.f32.vlgmr.msra.gmra.mrb[54].mxu0 %vm822_vm4, %v13795_v57 }
 0xce1   :  { %10516 = vmatpush1.bf16.msra.mxu1 %v13736_v38  ;;  %10532 = vmatpush1.bf16.msra.mxu0 %v13741_v39 }
 0xce2   :  { %10518 = vmatprep.subr.bf16.mxu1 %v13743_v42  ;;  %10534 = vmatprep.subr.bf16.mxu0 %v13747_v60 }
 0xce3   :  { %4361 = vmatprep.mubr.f32.mxu1 %v14498_v20  ;;  %4432 = vmatprep.mubr.f32.mxu0 %v14498_v20 }
 0xce5   :  { %10520 = vmatpush1.bf16.msra.mxu1 %v13750_v32  ;;  %10536 = vmatpush1.bf16.msra.mxu0 %v13754_v43 }
 0xce6   :  { %v9503_v47 = vpop.f32.mrb[40].mxu1  ;;  %10522 = vmatprep.subr.bf16.mxu1 %v13761_v21  ;;  %10538 = vmatprep.subr.bf16.mxu0 %v13763_v12 }
 0xce7   :  { %v9538_v8 = vpop.f32.mrb[48].mxu0  ;;  %v9504_v38 = vpop.f32.mrb[41].mxu1 }
 0xce8   :  { %v9505_v39 = vadd.f32 %v9504_v38, %v9503_v47  ;;  %v9539_v26 = vpop.f32.mrb[49].mxu0  ;;  %v10984_v47 = vld [vmem:[#allocation34 + $0x108] ss:$16 sps:$4 sm:$0xff]   ;;  %v10992_v38 = vld [vmem:[#allocation34 + $0x12c] ss:$16 sps:$4 sm:$0xff]  }
 0xce9   :  { %v9540_v42 = vadd.f32 %v9539_v26, %v9538_v8  ;;  %10524 = vmatpush1.bf16.msra.mxu1 %v13765_v5  ;;  %10540 = vmatpush1.bf16.msra.mxu0 %v13768_v14  ;;  %v10989_v8 = vld [vmem:[#allocation34 + $0x124] ss:$16 sps:$4 sm:$0xff]   ;;  %v10990_v26 = vld [vmem:[#allocation34 + $0x128] ss:$16 sps:$4 sm:$0xff]  }
 0xcea   :  { %10526 = vmatprep.subr.bf16.mxu1 %v13773_v33  ;;  %10542 = vmatprep.subr.bf16.mxu0 %v13775_v18  ;;  %v3939_v18 = vmul.f32 %v13795_v57, %v13795_v57  ;;  %v10941_v57 = vld [vmem:[#allocation34 + $0x24] ss:$16 sps:$4 sm:$0xff]  }
 0xceb   :  { %v3794_v60 = vadd.f32 %v9540_v42, %v9505_v39  ;;  %v10987_v39 = vld [vmem:[#allocation34 + $0x120] ss:$16 sps:$4 sm:$0xff]   ;;  %v10995_v42 = vld [vmem:[#allocation34 + $0x144] ss:$16 sps:$4 sm:$0xff]  }
 0xced   :  { %10528 = vmatpush1.bf16.msra.mxu1 %v13777_v6  ;;  %10544 = vmatpush1.bf16.msra.mxu0 %v13780_v55 }
 0xcee   :  { %10546 = vmatprep.subr.bf16.mxu1 %v13784_v25  ;;  %10562 = vmatprep.subr.bf16.mxu0 %v13786_v54  ;;  %v10933_v25 = vld [vmem:[#allocation34] ss:$16 sps:$4 sm:$0xff]   ;;  %v10935_v54 = vld [vmem:[#allocation34 + $0x4] ss:$16 sps:$4 sm:$0xff]  }
 0xd06   :  { %v9573_v32 = vpop.f32.mrb[42].mxu1 }
 0xd07   :  { %v9608_v43 = vpop.f32.mrb[50].mxu0  ;;  %v9574_v21 = vpop.f32.mrb[43].mxu1 }
 0xd08   :  { %v9575_v12 = vadd.f32 %v9574_v21, %v9573_v32  ;;  %v9609_v5 = vpop.f32.mrb[51].mxu0  ;;  %v10993_v32 = vld [vmem:[#allocation34 + $0x140] ss:$16 sps:$4 sm:$0xff]   ;;  %v11001_v21 = vld [vmem:[#allocation34 + $0x164] ss:$16 sps:$4 sm:$0xff]  }
 0xd09   :  { %v9610_v48 = vadd.f32 %v9609_v5, %v9608_v43  ;;  %v10996_v43 = vld [vmem:[#allocation34 + $0x148] ss:$16 sps:$4 sm:$0xff]   ;;  %v10999_v5 = vld [vmem:[#allocation34 + $0x160] ss:$16 sps:$4 sm:$0xff]  }
 0xd0a   :  { %v3864_v14 = vadd.f32 %v9575_v12, %v3794_v60  ;;  %v10998_v60 = vld [vmem:[#allocation34 + $0x14c] ss:$16 sps:$4 sm:$0xff]  }
 0xd0b   :  { %v11004_v12 = vld [vmem:[#allocation34 + $0x16c] ss:$16 sps:$4 sm:$0xff]  }
 0xd0c   :  { %v3934_v0 = vadd.f32 %v9610_v48, %v3864_v14  ;;  %v11002_v48 = vld [vmem:[#allocation34 + $0x168] ss:$16 sps:$4 sm:$0xff]   ;;  %v11007_v14 = vld [vmem:[#allocation34 + $0x184] ss:$16 sps:$4 sm:$0xff]  }
 0xd0e   :  { %v3938_v33 = vmul.f32 0.00390625, %v3934_v0  ;;  %v11010_v0 = vld [vmem:[#allocation34 + $0x18c] ss:$16 sps:$4 sm:$0xff]  }
 0xd10   :  { %v3940_v7 = vsub.f32 %v3938_v33, %v3939_v18  ;;  %v11005_v33 = vld [vmem:[#allocation34 + $0x180] ss:$16 sps:$4 sm:$0xff]   ;;  %v11008_v18 = vld [vmem:[#allocation34 + $0x188] ss:$16 sps:$4 sm:$0xff]  }
 0xd12   :  { %v3941_v6 = vadd.f32 1e-05, %v3940_v7  ;;  %v11011_v7 = vld [vmem:[#allocation34 + $0x1a0] ss:$16 sps:$4 sm:$0xff]  }
 0xd14   :  { %11433 = vrsqrt.f32 %v3941_v6  ;;  %v11013_v6 = vld [vmem:[#allocation34 + $0x1a4] ss:$16 sps:$4 sm:$0xff]  }
 0xd1e   :  { %v11434_v55 = vpop.eup %11433 }
 0xd1f   :  { %8895 = vmatmul.mubr.msk.f32.vlgmr.msra.gmra.mrb[48].mxu1 %vm822_vm4, %v11434_v55  ;;  %8896 = vmatmul.mubr.msk.f32.vlgmr.msra.gmra.mrb[56].mxu0 %vm822_vm4, %v11434_v55 }
 0xd20   :  { %10548 = vmatpush1.bf16.msra.mxu1 %v13791_v23  ;;  %10564 = vmatpush1.bf16.msra.mxu0 %v13793_v61  ;;  %v10936_v23 = vld [vmem:[#allocation34 + $0x8] ss:$16 sps:$4 sm:$0xff]   ;;  %v10938_v61 = vld [vmem:[#allocation34 + $0xc] ss:$16 sps:$4 sm:$0xff]  }
 0xd21   :  { %10550 = vmatprep.subr.bf16.mxu1 %v13797_v58  ;;  %10566 = vmatprep.subr.bf16.mxu0 %v13799_v44  ;;  %v10944_v58 = vld [vmem:[#allocation34 + $0x2c] ss:$16 sps:$4 sm:$0xff]   ;;  %v10939_v44 = vld [vmem:[#allocation34 + $0x20] ss:$16 sps:$4 sm:$0xff]  }
 0xd22   :  { %4503 = vmatprep.mubr.f32.mxu1 %v14498_v20  ;;  %4574 = vmatprep.mubr.f32.mxu0 %v14498_v20 }
 0xd24   :  { %10552 = vmatpush1.bf16.msra.mxu1 %v13807_v16  ;;  %10568 = vmatpush1.bf16.msra.mxu0 %v13809_v9  ;;  %v10956_v16 = vld [vmem:[#allocation34 + $0x6c] ss:$16 sps:$4 sm:$0xff]   ;;  %v10951_v9 = vld [vmem:[#allocation34 + $0x60] ss:$16 sps:$4 sm:$0xff]  }
 0xd25   :  { %10554 = vmatprep.subr.bf16.mxu1 %v13813_v27  ;;  %10570 = vmatprep.subr.bf16.mxu0 %v13815_v37  ;;  %v10962_v27 = vld [vmem:[#allocation34 + $0x8c] ss:$16 sps:$4 sm:$0xff]   ;;  %v10957_v37 = vld [vmem:[#allocation34 + $0x80] ss:$16 sps:$4 sm:$0xff]  }
 0xd28   :  { %10556 = vmatpush1.bf16.msra.mxu1 %v13821_v13  ;;  %10572 = vmatpush1.bf16.msra.mxu0 %v13823_v3  ;;  %v10974_v13 = vld [vmem:[#allocation34 + $0xcc] ss:$16 sps:$4 sm:$0xff]   ;;  %v10969_v3 = vld [vmem:[#allocation34 + $0xc0] ss:$16 sps:$4 sm:$0xff]  }
 0xd29   :  { %10558 = vmatprep.subr.bf16.mxu1 %v13827_v24  ;;  %10574 = vmatprep.subr.bf16.mxu0 %v13829_v51  ;;  %v10977_v24 = vld [vmem:[#allocation34 + $0xe4] ss:$16 sps:$4 sm:$0xff]   ;;  %v10980_v51 = vld [vmem:[#allocation34 + $0xec] ss:$16 sps:$4 sm:$0xff]  }
 0xd2c   :  { %10560 = vmatpush1.bf16.msra.mxu1 %v13833_v63  ;;  %10576 = vmatpush1.bf16.msra.mxu0 %v13835_v1  ;;  %v10986_v63 = vld [vmem:[#allocation34 + $0x10c] ss:$16 sps:$4 sm:$0xff]   ;;  %v10981_v1 = vld [vmem:[#allocation34 + $0x100] ss:$16 sps:$4 sm:$0xff]  }
 0xd2d   :  { %6641 = vmatprep.subr.bf16.mxu1 %v10935_v54  ;;  %6805 = vmatprep.subr.bf16.mxu0 %v10938_v61  ;;  %v11019_v54 = vld [vmem:[#allocation34 + $0x1c4] ss:$16 sps:$4 sm:$0xff]   ;;  %v11017_v61 = vld [vmem:[#allocation34 + $0x1c0] ss:$16 sps:$4 sm:$0xff]  }
 0xd2f   :  { %8897 = vmatmul.mubr.msk.f32.vlgmr.msra.gmra.mrb[50].mxu1 %vm822_vm4, %v11434_v55  ;;  %8898 = vmatmul.mubr.msk.f32.vlgmr.msra.gmra.mrb[58].mxu0 %vm822_vm4, %v11434_v55  ;;  %v11014_v55 = vld [vmem:[#allocation34 + $0x1a8] ss:$16 sps:$4 sm:$0xff]  }
 0xd30   :  { %6642 = vmatpush1.bf16.msra.mxu1 %v10933_v25  ;;  %6806 = vmatpush1.bf16.msra.mxu0 %v10936_v23  ;;  %v11016_v25 = vld [vmem:[#allocation34 + $0x1ac] ss:$16 sps:$4 sm:$0xff]  }
 0xd31   :  { %6643 = vmatprep.subr.bf16.mxu1 %v10941_v57  ;;  %6807 = vmatprep.subr.bf16.mxu0 %v10944_v58  ;;  %v11022_v23 = vld [vmem:[#allocation34 + $0x1cc] ss:$16 sps:$4 sm:$0xff]   ;;  %v11020_v57 = vld [vmem:[#allocation34 + $0x1c8] ss:$16 sps:$4 sm:$0xff]   ;;  %v11025_v58 = vld [vmem:[#allocation34 + $0x1e4] ss:$16 sps:$4 sm:$0xff]  }
 0xd34   :  { %6644 = vmatpush1.bf16.msra.mxu1 %v10939_v44  ;;  %6808 = vmatpush1.bf16.msra.mxu0 %v10942_v50  ;;  %v11028_v44 = vld [vmem:[#allocation34 + $0x1ec] ss:$16 sps:$4 sm:$0xff]   ;;  %v11023_v50 = vld [vmem:[#allocation34 + $0x1e0] ss:$16 sps:$4 sm:$0xff]  }
 0xd35   :  { %6645 = vmatprep.subr.bf16.mxu1 %v10947_v45  ;;  %6809 = vmatprep.subr.bf16.mxu0 %v10950_v28  ;;  %v11026_v45 = vld [vmem:[#allocation34 + $0x1e8] ss:$16 sps:$4 sm:$0xff]   ;;  %v11031_v28 = vld [vmem:[#allocation34 + $0x204] ss:$16 sps:$4 sm:$0xff]  }
 0xd38   :  { %6646 = vmatpush1.bf16.msra.mxu1 %v10945_v59  ;;  %6810 = vmatpush1.bf16.msra.mxu0 %v10948_v19  ;;  %v11034_v59 = vld [vmem:[#allocation34 + $0x20c] ss:$16 sps:$4 sm:$0xff]  }
 0xd39   :  { %6647 = vmatprep.subr.bf16.mxu1 %v10953_v22  ;;  %6811 = vmatprep.subr.bf16.mxu0 %v10956_v16 }
 0xd3c   :  { %6648 = vmatpush1.bf16.msra.mxu1 %v10951_v9  ;;  %6812 = vmatpush1.bf16.msra.mxu0 %v10954_v34 }
 0xd3d   :  { %6649 = vmatprep.subr.bf16.mxu1 %v10959_v30  ;;  %6813 = vmatprep.subr.bf16.mxu0 %v10962_v27 }
 0xd40   :  { %6650 = vmatpush1.bf16.msra.mxu1 %v10957_v37  ;;  %6814 = vmatpush1.bf16.msra.mxu0 %v10960_v17  ;;  %v13895_v17 = vld [vmem:[#allocation28] sm:$0xff] }
 0xd41   :  { %6651 = vmatprep.subr.bf16.mxu1 %v10965_v53  ;;  %6815 = vmatprep.subr.bf16.mxu0 %v10968_v49  ;;  %v13897_v53 = vld [vmem:[#allocation26] sm:$0xff] }
 0xd42   :  { %v4636_v49 = vrot.slane %v13897_v53, %v14441_v36 }
 0xd44   :  { %6652 = vmatpush1.bf16.msra.mxu1 %v10963_v2  ;;  %6816 = vmatpush1.bf16.msra.mxu0 %v10966_v62  ;;  %v4644_v2 = vrot.slane %v13897_v53, %v13491_v41  ;;  %v4586_v62 = vrot.slane %v13895_v17, %v14441_v36 }
 0xd45   :  { %6653 = vmatprep.subr.bf16.mxu1 %v10971_v15  ;;  %6817 = vmatprep.subr.bf16.mxu0 %v10974_v13  ;;  %v4594_v15 = vrot.slane %v13895_v17, %v13491_v41  ;;  %v13907_v13 = vld [vmem:[#allocation29] sm:$0xff] }
 0xd48   :  { %6654 = vmatpush1.bf16.msra.mxu1 %v10969_v3  ;;  %6818 = vmatpush1.bf16.msra.mxu0 %v10972_v35  ;;  %v4640_v3 = vrot.slane %v13897_v53, %v13497_v29  ;;  %v4648_v35 = vrot.slane %v13897_v53, %v13500_v31 }
 0xd49   :  { %6655 = vmatprep.subr.bf16.mxu1 %v10977_v24  ;;  %6819 = vmatprep.subr.bf16.mxu0 %v10980_v51  ;;  %v4590_v24 = vrot.slane %v13895_v17, %v13497_v29  ;;  %v4598_v51 = vrot.slane %v13895_v17, %v13500_v31 }
 0xd4c   :  { %6656 = vmatpush1.bf16.msra.mxu1 %v10975_v40  ;;  %6820 = vmatpush1.bf16.msra.mxu0 %v10978_v11 }
 0xd4d   :  { %6657 = vmatprep.subr.bf16.mxu1 %v10983_v56  ;;  %6821 = vmatprep.subr.bf16.mxu0 %v10986_v63  ;;  %v4697_v56 = vrot.slane %v13907_v13, %v13497_v29  ;;  %v4693_v63 = vrot.slane %v13907_v13, %v14441_v36 }
 0xd50   :  { %6658 = vmatpush1.bf16.msra.mxu1 %v10981_v1  ;;  %6822 = vmatpush1.bf16.msra.mxu0 %v10984_v47  ;;  %v4705_v1 = vrot.slane %v13907_v13, %v13500_v31  ;;  %v4701_v47 = vrot.slane %v13907_v13, %v13491_v41 }
 0xd51   :  { %6659 = vmatprep.subr.bf16.mxu1 %v10989_v8  ;;  %6823 = vmatprep.subr.bf16.mxu0 %v10992_v38 }
 0xd54   :  { %6660 = vmatpush1.bf16.msra.mxu1 %v10987_v39  ;;  %6824 = vmatpush1.bf16.msra.mxu0 %v10990_v26 }
 0xd55   :  { %6661 = vmatprep.subr.bf16.mxu1 %v10995_v42  ;;  %6825 = vmatprep.subr.bf16.mxu0 %v10998_v60 }
 0xd58   :  { %6662 = vmatpush1.bf16.msra.mxu1 %v10993_v32  ;;  %6826 = vmatpush1.bf16.msra.mxu0 %v10996_v43 }
 0xd59   :  { %6663 = vmatprep.subr.bf16.mxu1 %v11001_v21  ;;  %6827 = vmatprep.subr.bf16.mxu0 %v11004_v12 }
 0xd5c   :  { %6664 = vmatpush1.bf16.msra.mxu1 %v10999_v5  ;;  %6828 = vmatpush1.bf16.msra.mxu0 %v11002_v48  ;;  %v14499_v48 = vld [vmem:[#allocation102_spill] sm:$0xff] }
 0xd5d   :  { %6665 = vmatprep.subr.bf16.mxu1 %v11007_v14  ;;  %6829 = vmatprep.subr.bf16.mxu0 %v11010_v0  ;;  %v14500_v0 = vld [vmem:[#allocation112_spill] sm:$0xff] }
 0xd60   :  { %6666 = vmatpush1.bf16.msra.mxu1 %v11005_v33  ;;  %6830 = vmatpush1.bf16.msra.mxu0 %v11008_v18 }
 0xd61   :  { %6667 = vmatprep.subr.bf16.mxu1 %v11013_v6  ;;  %6831 = vmatprep.subr.bf16.mxu0 %v11016_v25 }
 0xd64   :  { %6668 = vmatpush1.bf16.msra.mxu1 %v11011_v7  ;;  %6832 = vmatpush1.bf16.msra.mxu0 %v11014_v55  ;;  %v14501_v7 = vld [vmem:[#allocation117_spill] sm:$0xff]  ;;  %v14502_v55 = vld [vmem:[#allocation114_spill] sm:$0xff] }
 0xd65   :  { %6669 = vmatprep.subr.bf16.mxu1 %v11019_v54  ;;  %6833 = vmatprep.subr.bf16.mxu0 %v11022_v23  ;;  %v14503_v23 = vld [vmem:[#allocation119_spill] sm:$0xff] }
 0xd68   :  { %6670 = vmatpush1.bf16.msra.mxu1 %v11017_v61  ;;  %6834 = vmatpush1.bf16.msra.mxu0 %v11020_v57  ;;  %v14504_v57 = vld [vmem:[#allocation110_spill] sm:$0xff] }
 0xd69   :  { %6671 = vmatprep.subr.bf16.mxu1 %v11025_v58  ;;  %6835 = vmatprep.subr.bf16.mxu0 %v11028_v44 }
 0xd6c   :  { %6672 = vmatpush1.bf16.msra.mxu1 %v11023_v50  ;;  %6836 = vmatpush1.bf16.msra.mxu0 %v11026_v45  ;;  %v14505_v50 = vld [vmem:[#allocation115_spill] sm:$0xff] }
 0xd6d   :  { %6682 = vmatprep.subr.bf16.mxu1 %v11031_v28  ;;  %6846 = vmatprep.subr.bf16.mxu0 %v11034_v59  ;;  %v14506_v28 = vld [vmem:[#allocation111_spill] sm:$0xff] }
 0xda3   :  { %v4076_v19 = vpop.f32.mrb[44].mxu1  ;;  %v4147_v22 = vpop.f32.mrb[52].mxu0 }
 0xda4   :  { %v4078_v16 = vpop.f32.mrb[45].mxu1  ;;  %v4149_v9 = vpop.f32.mrb[53].mxu0  ;;  %v4673_v8 = vsub.f32 %v4636_v49, %v4076_v19  ;;  %v4675_v38 = vsub.f32 %v4644_v2, %v4147_v22 }
 0xda5   :  { %v4674_v32 = vsub.f32 %v4640_v3, %v4078_v16  ;;  %v4676_v43 = vsub.f32 %v4648_v35, %v4149_v9 }
 0xdb3   :  { %v13887_v34 = vpop.f32.mrb[46].mxu1  ;;  %v13889_v30 = vpop.f32.mrb[54].mxu0 }
 0xdb4   :  { %v13891_v27 = vpop.f32.mrb[47].mxu1  ;;  %v13893_v37 = vpop.f32.mrb[55].mxu0 }
 0xdf2   :  { %v4363_v40 = vpop.f32.mrb[48].mxu1  ;;  %v4434_v11 = vpop.f32.mrb[56].mxu0 }
 0xdf3   :  { %v4623_v39 = vmul.f32 %v4586_v62, %v4363_v40  ;;  %v4625_v26 = vmul.f32 %v4594_v15, %v4434_v11  ;;  %v4365_v42 = vpop.f32.mrb[49].mxu1  ;;  %v4436_v60 = vpop.f32.mrb[57].mxu0 }
 0xdf4   :  { %v4624_v21 = vmul.f32 %v4590_v24, %v4365_v42  ;;  %v4626_v12 = vmul.f32 %v4598_v51, %v4436_v60  ;;  %v4602_v42 = vrot.slane %v13895_v17, %v13603_v46  ;;  %v4610_v60 = vrot.slane %v13895_v17, %v13606_v52 }
 0xdf5   :  { %v4681_v5 = vmul.f32 %v4673_v8, %v4623_v39  ;;  %vm4962_vm7 = vcmp.ge.f32.partialorder %v4623_v39, 0.0  ;;  %v5003_v14 = vmul.f32 %v14499_v48, %v4623_v39  ;;  %v5043_v33 = vmul.f32 %v14500_v0, %v4623_v39  ;;  %v11029_v39 = vld [vmem:[#allocation34 + $0x200] ss:$16 sps:$4 sm:$0xff]  }
 0xdf6   :  { %v4683_v18 = vmul.f32 %v4675_v38, %v4625_v26  ;;  %vm4964_vm8 = vcmp.ge.f32.partialorder %v4625_v26, 0.0  ;;  %v5005_v6 = vmul.f32 %v14501_v7, %v4625_v26  ;;  %v5045_v25 = vmul.f32 %v14502_v55, %v4625_v26  ;;  %v11032_v26 = vld [vmem:[#allocation34 + $0x208] ss:$16 sps:$4 sm:$0xff]  }
 0xdf7   :  { %v4682_v54 = vmul.f32 %v4674_v32, %v4624_v21  ;;  %v5004_v61 = vmul.f32 %v14503_v23, %v4624_v21  ;;  %v5044_v58 = vmul.f32 %v14504_v57, %v4624_v21  ;;  %v4684_v44 = vmul.f32 %v4676_v43, %v4626_v12  ;;  %v11043_v23 = vld [vmem:[#allocation34 + $0x244] ss:$16 sps:$4 sm:$0xff]  }
 0xdf8   :  { %v5006_v45 = vmul.f32 %v14505_v50, %v4626_v12  ;;  %v5046_v59 = vmul.f32 %v14506_v28, %v4626_v12  ;;  %vm4963_vm9 = vcmp.ge.f32.partialorder %v4624_v21, 0.0  ;;  %v4730_v19 = vadd.f32 %v4693_v63, %v4681_v5  ;;  %v11040_v5 = vld [vmem:[#allocation34 + $0x22c] ss:$16 sps:$4 sm:$0xff]  }
 0xdf9   :  { %v4731_v22 = vadd.f32 %v4697_v56, %v4682_v54  ;;  %v5052_v16 = vsel %vm4963_vm9, %v5004_v61, %v5044_v58  ;;  %v5051_v9 = vsel %vm4962_vm7, %v5003_v14, %v5043_v33  ;;  %v4733_v49 = vadd.f32 %v4705_v1, %v4684_v44  ;;  %v11035_v54 = vld [vmem:[#allocation34 + $0x220] ss:$16 sps:$4 sm:$0xff]   ;;  %v14507_v57 = vld [vmem:[#allocation116_spill] sm:$0xff]  ;;  %v14509_v28 = vld [vmem:[#allocation126_spill] sm:$0xff] }
 0xdfa   :  { %v5059_v2 = vadd.f32 %v5051_v9, %v4730_v19  ;;  %vm4965_vm10 = vcmp.ge.f32.partialorder %v4626_v12, 0.0  ;;  %v4732_v62 = vadd.f32 %v4701_v47, %v4683_v18  ;;  %v5053_v15 = vsel %vm4964_vm8, %v5005_v6, %v5045_v25  ;;  %v11046_v50 = vld [vmem:[#allocation34 + $0x24c] ss:$16 sps:$4 sm:$0xff]  }
 0xdfb   :  { %v5060_v3 = vadd.f32 %v5052_v16, %v4731_v22  ;;  %v5054_v35 = vsel %vm4965_vm10, %v5006_v45, %v5046_v59  ;;  %v4652_v63 = vrot.slane %v13897_v53, %v13603_v46  ;;  %v4660_v56 = vrot.slane %v13897_v53, %v13606_v52  ;;  %v14511_v16 = vld [vmem:[#allocation94_spill] sm:$0xff] }
 0xdfc   :  { %v5067_v24 = vmax.f32 %v5059_v2, 0.0  ;;  %v5062_v51 = vadd.f32 %v5054_v35, %v4733_v49  ;;  %v13935_v40 = vadd.f32 %v5053_v15, %v4732_v62  ;;  %v4656_v1 = vrot.slane %v13897_v53, %v13609_v10  ;;  %v14512_v49 = vld [vmem:[#allocation103_spill] sm:$0xff] }
 0xdfd   :  { %v5068_v11 = vmax.f32 %v5060_v3, 0.0  ;;  %v4664_v47 = vrot.slane %v13897_v53, %v13612_v4  ;;  %v4606_v43 = vrot.slane %v13895_v17, %v13609_v10  ;;  %v4614_v21 = vrot.slane %v13895_v17, %v13612_v4  ;;  %v11037_v53 = vld [vmem:[#allocation34 + $0x224] ss:$16 sps:$4 sm:$0xff]   ;;  %v11041_v15 = vld [vmem:[#allocation34 + $0x240] ss:$16 sps:$4 sm:$0xff]  }
 0xdfe   :  { %v5070_v8 = vmax.f32 %v5062_v51, 0.0  ;;  %v5075_v32 = vpack.c.bf16 %v5067_v24, %v5067_v24  ;;  %v4709_v12 = vrot.slane %v13907_v13, %v13603_v46  ;;  %v4713_v48 = vrot.slane %v13907_v13, %v13609_v10  ;;  %v14513_v3 = vld [vmem:[#allocation95_spill] sm:$0xff]  ;;  %v14514_v24 = vld [vmem:[#allocation104_spill] sm:$0xff] }
 0xdff   :  { %v5076_v38 = vpack.c.bf16 %v5068_v11, %v5068_v11  ;;  %v4721_v14 = vrot.slane %v13907_v13, %v13612_v4  ;;  %v4717_v0 = vrot.slane %v13907_v13, %v13606_v52  ;;  %v4677_v33 = vsub.f32 %v4652_v63, %v13887_v34  ;;  %v11044_v11 = vld [vmem:[#allocation34 + $0x248] ss:$16 sps:$4 sm:$0xff]   ;;  %v11049_v63 = vld [vmem:[#allocation34 + $0x264] ss:$16 sps:$4 sm:$0xff]  }
 0xe00   :  { %v4679_v17 = vsub.f32 %v4660_v56, %v13889_v30  ;;  %v5078_v46 = vpack.c.bf16 %v5070_v8, %v5070_v8  ;;  %v4678_v6 = vsub.f32 %v4656_v1, %v13891_v27  ;;  %v4680_v52 = vsub.f32 %v4664_v47, %v13893_v37  ;;  %v11038_v30 = vld [vmem:[#allocation34 + $0x228] ss:$16 sps:$4 sm:$0xff]   ;;  %v14510_v37 = vld [vmem:[#allocation129_spill] sm:$0xff] }
 0xe01   :  { %6673 = vmatprep.mubr.bf16.mxu1 %v5076_v38  ;;  %6837 = vmatprep.mubr.bf16.mxu0 %v5076_v38  ;;  %v14508_v27 = vld [vmem:[#allocation118_spill] sm:$0xff] }
 0xe02   :  { %v4505_v18 = vpop.f32.mrb[50].mxu1  ;;  %v4576_v7 = vpop.f32.mrb[58].mxu0  ;;  %6674 = vmatmul.mubr.bf16.vlgmr.msra.gmra.mrb[52].mxu1 %v5075_v32  ;;  %6838 = vmatmul.mubr.bf16.vlgmr.msra.gmra.mrb[60].mxu0 %v5075_v32  ;;  %v11052_v1 = vld [vmem:[#allocation34 + $0x26c] ss:$16 sps:$4 sm:$0xff]   ;;  %v11047_v32 = vld [vmem:[#allocation34 + $0x260] ss:$16 sps:$4 sm:$0xff]  }
 0xe03   :  { %v4627_v55 = vmul.f32 %v4602_v42, %v4505_v18  ;;  %v4629_v25 = vmul.f32 %v4610_v60, %v4576_v7  ;;  %6683 = vmatpush1.bf16.msra.mxu1 %v11029_v39  ;;  %6847 = vmatpush1.bf16.msra.mxu0 %v11032_v26  ;;  %v4507_v10 = vpop.f32.mrb[51].mxu1  ;;  %v4578_v4 = vpop.f32.mrb[59].mxu0  ;;  %v11064_v18 = vld [vmem:[#allocation34 + $0x2ac] ss:$16 sps:$4 sm:$0xff]   ;;  %v11059_v7 = vld [vmem:[#allocation34 + $0x2a0] ss:$16 sps:$4 sm:$0xff]  }
 0xe04   :  { %v4628_v13 = vmul.f32 %v4606_v43, %v4507_v10  ;;  %v4630_v34 = vmul.f32 %v4614_v21, %v4578_v4  ;;  %6714 = vmatprep.mubr.bf16.mxu1 %v5078_v46  ;;  %6878 = vmatprep.mubr.bf16.mxu0 %v5078_v46  ;;  %v11062_v46 = vld [vmem:[#allocation34 + $0x2a8] ss:$16 sps:$4 sm:$0xff]   ;;  %v11073_v4 = vld [vmem:[#allocation34 + $0x2e4] ss:$16 sps:$4 sm:$0xff]  }
 0xe05   :  { %v4685_v61 = vmul.f32 %v4677_v33, %v4627_v55  ;;  %vm4966_vm11 = vcmp.ge.f32.partialorder %v4627_v55, 0.0  ;;  %v5007_v58 = vmul.f32 %v14507_v57, %v4627_v55  ;;  %v5047_v44 = vmul.f32 %v14508_v27, %v4627_v55  ;;  %6684 = vmatprep.subr.bf16.mxu1 %v11037_v53  ;;  %6848 = vmatprep.subr.bf16.mxu0 %v11040_v5  ;;  %v11055_v53 = vld [vmem:[#allocation34 + $0x284] ss:$16 sps:$4 sm:$0xff]   ;;  %v11053_v33 = vld [vmem:[#allocation34 + $0x280] ss:$16 sps:$4 sm:$0xff]  }
 0xe06   :  { %v4687_v45 = vmul.f32 %v4679_v17, %v4629_v25  ;;  %vm4968_vm12 = vcmp.ge.f32.partialorder %v4629_v25, 0.0  ;;  %v5009_v59 = vmul.f32 %v14509_v28, %v4629_v25  ;;  %v5049_v19 = vmul.f32 %v14510_v37, %v4629_v25  ;;  %v11061_v17 = vld [vmem:[#allocation34 + $0x2a4] ss:$16 sps:$4 sm:$0xff]   ;;  %v11070_v55 = vld [vmem:[#allocation34 + $0x2cc] ss:$16 sps:$4 sm:$0xff]  }
 0xe07   :  { %v4686_v22 = vmul.f32 %v4678_v6, %v4628_v13  ;;  %v5008_v9 = vmul.f32 %v14511_v16, %v4628_v13  ;;  %v5048_v2 = vmul.f32 %v14512_v49, %v4628_v13  ;;  %v4688_v62 = vmul.f32 %v4680_v52, %v4630_v34  ;;  %6685 = vmatpush1.bf16.msra.mxu1 %v11035_v54  ;;  %v11067_v6 = vld [vmem:[#allocation34 + $0x2c4] ss:$16 sps:$4 sm:$0xff]   ;;  %v11065_v25 = vld [vmem:[#allocation34 + $0x2c0] ss:$16 sps:$4 sm:$0xff]   ;;  %v11068_v10 = vld [vmem:[#allocation34 + $0x2c8] ss:$16 sps:$4 sm:$0xff]  }
 0xe08   :  { %v5010_v35 = vmul.f32 %v14513_v3, %v4630_v34  ;;  %v5050_v51 = vmul.f32 %v14514_v24, %v4630_v34  ;;  %6849 = vmatpush1.bf16.msra.mxu0 %v11038_v30  ;;  %6686 = vmatprep.subr.bf16.mxu1 %v11043_v23  ;;  %vm4967_vm13 = vcmp.ge.f32.partialorder %v4628_v13, 0.0  ;;  %v4734_v56 = vadd.f32 %v4709_v12, %v4685_v61  ;;  %v11050_v12 = vld [vmem:[#allocation34 + $0x268] ss:$16 sps:$4 sm:$0xff]   ;;  %v11076_v54 = vld [vmem:[#allocation34 + $0x2ec] ss:$16 sps:$4 sm:$0xff]  }
 0xe09   :  { %6850 = vmatprep.subr.bf16.mxu0 %v11046_v50  ;;  %v4735_v8 = vadd.f32 %v4713_v48, %v4686_v22  ;;  %v5056_v47 = vsel %vm4967_vm13, %v5008_v9, %v5048_v2  ;;  %v5055_v38 = vsel %vm4966_vm11, %v5007_v58, %v5047_v44  ;;  %v4737_v39 = vadd.f32 %v4721_v14, %v4688_v62  ;;  %v11058_v14 = vld [vmem:[#allocation34 + $0x28c] ss:$16 sps:$4 sm:$0xff]   ;;  %v11071_v52 = vld [vmem:[#allocation34 + $0x2e0] ss:$16 sps:$4 sm:$0xff]   ;;  %v11074_v13 = vld [vmem:[#allocation34 + $0x2e8] ss:$16 sps:$4 sm:$0xff]  }
 0xe0a   :  { %v13974_v26 = vadd.f32 %v5055_v38, %v4734_v56  ;;  %vm4969_vm14 = vcmp.ge.f32.partialorder %v4630_v34, 0.0  ;;  %v4736_v42 = vadd.f32 %v4717_v0, %v4687_v45  ;;  %v5057_v60 = vsel %vm4968_vm12, %v5009_v59, %v5049_v19  ;;  %v11056_v0 = vld [vmem:[#allocation34 + $0x288] ss:$16 sps:$4 sm:$0xff]   ;;  %v11079_v34 = vld [vmem:[#allocation34 + $0x304] ss:$16 sps:$4 sm:$0xff]  }
 0xe0b   :  { %6687 = vmatpush1.bf16.msra.mxu1 %v11041_v15  ;;  %v13977_v43 = vadd.f32 %v5056_v47, %v4735_v8  ;;  %v5058_v21 = vsel %vm4969_vm14, %v5010_v35, %v5050_v51  ;;  %v11082_v30 = vld [vmem:[#allocation34 + $0x30c] ss:$16 sps:$4 sm:$0xff]   ;;  %v11077_v23 = vld [vmem:[#allocation34 + $0x300] ss:$16 sps:$4 sm:$0xff]   ;;  %v11080_v61 = vld [vmem:[#allocation34 + $0x308] ss:$16 sps:$4 sm:$0xff]  }
 0xe0c   :  { %6851 = vmatpush1.bf16.msra.mxu0 %v11044_v11  ;;  %6688 = vmatprep.subr.bf16.mxu1 %v11049_v63  ;;  %v13979_v5 = vadd.f32 %v5058_v21, %v4737_v39  ;;  %v13981_v48 = vadd.f32 %v5057_v60, %v4736_v42  ;;  %v11085_v57 = vld [vmem:[#allocation34 + $0x324] ss:$16 sps:$4 sm:$0xff]   ;;  %v11088_v58 = vld [vmem:[#allocation34 + $0x32c] ss:$16 sps:$4 sm:$0xff]   ;;  %v11083_v27 = vld [vmem:[#allocation34 + $0x320] ss:$16 sps:$4 sm:$0xff]  }
 0xe0d   :  { %6852 = vmatprep.subr.bf16.mxu0 %v11052_v1  ;;  %v11086_v44 = vld [vmem:[#allocation34 + $0x328] ss:$16 sps:$4 sm:$0xff]   ;;  %v11091_v50 = vld [vmem:[#allocation34 + $0x344] ss:$16 sps:$4 sm:$0xff]   ;;  %v11094_v45 = vld [vmem:[#allocation34 + $0x34c] ss:$16 sps:$4 sm:$0xff]  }
 0xe0e   :  { %v11089_v28 = vld [vmem:[#allocation34 + $0x340] ss:$16 sps:$4 sm:$0xff]   ;;  %v11092_v59 = vld [vmem:[#allocation34 + $0x348] ss:$16 sps:$4 sm:$0xff]   ;;  %v11097_v37 = vld [vmem:[#allocation34 + $0x364] ss:$16 sps:$4 sm:$0xff]  }
 0xe0f   :  { %6689 = vmatpush1.bf16.msra.mxu1 %v11047_v32  ;;  %v11100_v19 = vld [vmem:[#allocation34 + $0x36c] ss:$16 sps:$4 sm:$0xff]   ;;  %v11095_v22 = vld [vmem:[#allocation34 + $0x360] ss:$16 sps:$4 sm:$0xff]   ;;  %v11098_v16 = vld [vmem:[#allocation34 + $0x368] ss:$16 sps:$4 sm:$0xff]  }
 0xe10   :  { %6853 = vmatpush1.bf16.msra.mxu0 %v11050_v12  ;;  %6690 = vmatprep.subr.bf16.mxu1 %v11055_v53  ;;  %v11103_v9 = vld [vmem:[#allocation34 + $0x384] ss:$16 sps:$4 sm:$0xff]   ;;  %v11106_v49 = vld [vmem:[#allocation34 + $0x38c] ss:$16 sps:$4 sm:$0xff]   ;;  %v11101_v2 = vld [vmem:[#allocation34 + $0x380] ss:$16 sps:$4 sm:$0xff]  }
 0xe11   :  { %6854 = vmatprep.subr.bf16.mxu0 %v11058_v14  ;;  %v11104_v62 = vld [vmem:[#allocation34 + $0x388] ss:$16 sps:$4 sm:$0xff]   ;;  %v11109_v15 = vld [vmem:[#allocation34 + $0x3a4] ss:$16 sps:$4 sm:$0xff]   ;;  %v11112_v3 = vld [vmem:[#allocation34 + $0x3ac] ss:$16 sps:$4 sm:$0xff]  }
 0xe12   :  { %v11107_v35 = vld [vmem:[#allocation34 + $0x3a0] ss:$16 sps:$4 sm:$0xff]   ;;  %v11110_v24 = vld [vmem:[#allocation34 + $0x3a8] ss:$16 sps:$4 sm:$0xff]   ;;  %v11115_v51 = vld [vmem:[#allocation34 + $0x3c4] ss:$16 sps:$4 sm:$0xff]  }
 0xe13   :  { %6691 = vmatpush1.bf16.msra.mxu1 %v11053_v33  ;;  %v11118_v11 = vld [vmem:[#allocation34 + $0x3cc] ss:$16 sps:$4 sm:$0xff]   ;;  %v11113_v63 = vld [vmem:[#allocation34 + $0x3c0] ss:$16 sps:$4 sm:$0xff]   ;;  %v11116_v56 = vld [vmem:[#allocation34 + $0x3c8] ss:$16 sps:$4 sm:$0xff]  }
 0xe14   :  { %6855 = vmatpush1.bf16.msra.mxu0 %v11056_v0  ;;  %6692 = vmatprep.subr.bf16.mxu1 %v11061_v17  ;;  %v11121_v1 = vld [vmem:[#allocation34 + $0x3e4] ss:$16 sps:$4 sm:$0xff]   ;;  %v11124_v8 = vld [vmem:[#allocation34 + $0x3ec] ss:$16 sps:$4 sm:$0xff]   ;;  %v11119_v47 = vld [vmem:[#allocation34 + $0x3e0] ss:$16 sps:$4 sm:$0xff]  }
 0xe15   :  { %6856 = vmatprep.subr.bf16.mxu0 %v11064_v18  ;;  %v11122_v38 = vld [vmem:[#allocation34 + $0x3e8] ss:$16 sps:$4 sm:$0xff]   ;;  %v5069_v39 = vmax.f32 %v13935_v40, 0.0  ;;  %v11127_v42 = vld [vmem:[#allocation34 + $0x404] ss:$16 sps:$4 sm:$0xff]   ;;  %v5072_v32 = vmax.f32 %v13977_v43, 0.0 }
 0xe16   :  { %v11130_v60 = vld [vmem:[#allocation34 + $0x40c] ss:$16 sps:$4 sm:$0xff]   ;;  %v11125_v21 = vld [vmem:[#allocation34 + $0x400] ss:$16 sps:$4 sm:$0xff]   ;;  %v11128_v53 = vld [vmem:[#allocation34 + $0x408] ss:$16 sps:$4 sm:$0xff]  }
 0xe17   :  { %6693 = vmatpush1.bf16.msra.mxu1 %v11059_v7  ;;  %v5077_v12 = vpack.c.bf16 %v5069_v39, %v5069_v39  ;;  %v11133_v14 = vld [vmem:[#allocation34 + $0x424] ss:$16 sps:$4 sm:$0xff]   ;;  %v5080_v33 = vpack.c.bf16 %v5072_v32, %v5072_v32  ;;  %v11136_v0 = vld [vmem:[#allocation34 + $0x42c] ss:$16 sps:$4 sm:$0xff]   ;;  %v11131_v17 = vld [vmem:[#allocation34 + $0x420] ss:$16 sps:$4 sm:$0xff]  }
 0xe18   :  { %6857 = vmatpush1.bf16.msra.mxu0 %v11062_v46  ;;  %6694 = vmatprep.subr.bf16.mxu1 %v11067_v6  ;;  %v11134_v40 = vld [vmem:[#allocation34 + $0x428] ss:$16 sps:$4 sm:$0xff]   ;;  %v11139_v18 = vld [vmem:[#allocation34 + $0x444] ss:$16 sps:$4 sm:$0xff]   ;;  %v11142_v43 = vld [vmem:[#allocation34 + $0x44c] ss:$16 sps:$4 sm:$0xff]  }
 0xe19   :  { %6858 = vmatprep.subr.bf16.mxu0 %v11070_v55  ;;  %v11137_v7 = vld [vmem:[#allocation34 + $0x440] ss:$16 sps:$4 sm:$0xff]   ;;  %v11140_v46 = vld [vmem:[#allocation34 + $0x448] ss:$16 sps:$4 sm:$0xff]   ;;  %v11145_v6 = vld [vmem:[#allocation34 + $0x464] ss:$16 sps:$4 sm:$0xff]  }
 0xe1a   :  { %v11148_v55 = vld [vmem:[#allocation34 + $0x46c] ss:$16 sps:$4 sm:$0xff]   ;;  %v11205_v39 = vld [vmem:[#allocation34 + $0x5a4] ss:$16 sps:$4 sm:$0xff]   ;;  %v11206_v32 = vld [vmem:[#allocation34 + $0x5a8] ss:$16 sps:$4 sm:$0xff]  }
 0xe1b   :  { %6695 = vmatpush1.bf16.msra.mxu1 %v11065_v25  ;;  %v11143_v25 = vld [vmem:[#allocation34 + $0x460] ss:$16 sps:$4 sm:$0xff]  }
 0xe1c   :  { %6859 = vmatpush1.bf16.msra.mxu0 %v11068_v10  ;;  %6696 = vmatprep.subr.bf16.mxu1 %v11073_v4  ;;  %v11146_v10 = vld [vmem:[#allocation34 + $0x468] ss:$16 sps:$4 sm:$0xff]   ;;  %v11151_v4 = vld [vmem:[#allocation34 + $0x484] ss:$16 sps:$4 sm:$0xff]  }
 0xe1d   :  { %6860 = vmatprep.subr.bf16.mxu0 %v11076_v54  ;;  %v11154_v54 = vld [vmem:[#allocation34 + $0x48c] ss:$16 sps:$4 sm:$0xff]  }
 0xe1f   :  { %6697 = vmatpush1.bf16.msra.mxu1 %v11071_v52  ;;  %v11149_v52 = vld [vmem:[#allocation34 + $0x480] ss:$16 sps:$4 sm:$0xff]  }
 0xe20   :  { %6861 = vmatpush1.bf16.msra.mxu0 %v11074_v13  ;;  %6698 = vmatprep.subr.bf16.mxu1 %v11079_v34  ;;  %v11152_v13 = vld [vmem:[#allocation34 + $0x488] ss:$16 sps:$4 sm:$0xff]   ;;  %v11157_v34 = vld [vmem:[#allocation34 + $0x4a4] ss:$16 sps:$4 sm:$0xff]  }
 0xe21   :  { %6862 = vmatprep.subr.bf16.mxu0 %v11082_v30  ;;  %v11160_v30 = vld [vmem:[#allocation34 + $0x4ac] ss:$16 sps:$4 sm:$0xff]  }
 0xe23   :  { %6699 = vmatpush1.bf16.msra.mxu1 %v11077_v23  ;;  %v11155_v23 = vld [vmem:[#allocation34 + $0x4a0] ss:$16 sps:$4 sm:$0xff]  }
 0xe24   :  { %6863 = vmatpush1.bf16.msra.mxu0 %v11080_v61  ;;  %6700 = vmatprep.subr.bf16.mxu1 %v11085_v57  ;;  %v11158_v61 = vld [vmem:[#allocation34 + $0x4a8] ss:$16 sps:$4 sm:$0xff]   ;;  %v11163_v57 = vld [vmem:[#allocation34 + $0x4c4] ss:$16 sps:$4 sm:$0xff]  }
 0xe25   :  { %6864 = vmatprep.subr.bf16.mxu0 %v11088_v58  ;;  %v11166_v58 = vld [vmem:[#allocation34 + $0x4cc] ss:$16 sps:$4 sm:$0xff]  }
 0xe27   :  { %6701 = vmatpush1.bf16.msra.mxu1 %v11083_v27  ;;  %v11161_v27 = vld [vmem:[#allocation34 + $0x4c0] ss:$16 sps:$4 sm:$0xff]  }
 0xe28   :  { %6865 = vmatpush1.bf16.msra.mxu0 %v11086_v44  ;;  %6702 = vmatprep.subr.bf16.mxu1 %v11091_v50  ;;  %v11164_v44 = vld [vmem:[#allocation34 + $0x4c8] ss:$16 sps:$4 sm:$0xff]   ;;  %v11169_v50 = vld [vmem:[#allocation34 + $0x4e4] ss:$16 sps:$4 sm:$0xff]  }
 0xe29   :  { %6866 = vmatprep.subr.bf16.mxu0 %v11094_v45  ;;  %v11172_v45 = vld [vmem:[#allocation34 + $0x4ec] ss:$16 sps:$4 sm:$0xff]  }
 0xe2b   :  { %6703 = vmatpush1.bf16.msra.mxu1 %v11089_v28  ;;  %v11167_v28 = vld [vmem:[#allocation34 + $0x4e0] ss:$16 sps:$4 sm:$0xff]  }
 0xe2c   :  { %6867 = vmatpush1.bf16.msra.mxu0 %v11092_v59  ;;  %6704 = vmatprep.subr.bf16.mxu1 %v11097_v37  ;;  %v11170_v59 = vld [vmem:[#allocation34 + $0x4e8] ss:$16 sps:$4 sm:$0xff]   ;;  %v11175_v37 = vld [vmem:[#allocation34 + $0x504] ss:$16 sps:$4 sm:$0xff]  }
 0xe2d   :  { %6868 = vmatprep.subr.bf16.mxu0 %v11100_v19  ;;  %v11178_v19 = vld [vmem:[#allocation34 + $0x50c] ss:$16 sps:$4 sm:$0xff]  }
 0xe2f   :  { %6705 = vmatpush1.bf16.msra.mxu1 %v11095_v22  ;;  %v11173_v22 = vld [vmem:[#allocation34 + $0x500] ss:$16 sps:$4 sm:$0xff]  }
 0xe30   :  { %6869 = vmatpush1.bf16.msra.mxu0 %v11098_v16  ;;  %6706 = vmatprep.subr.bf16.mxu1 %v11103_v9  ;;  %v11176_v16 = vld [vmem:[#allocation34 + $0x508] ss:$16 sps:$4 sm:$0xff]   ;;  %v11181_v9 = vld [vmem:[#allocation34 + $0x524] ss:$16 sps:$4 sm:$0xff]  }
 0xe31   :  { %6870 = vmatprep.subr.bf16.mxu0 %v11106_v49  ;;  %v11184_v49 = vld [vmem:[#allocation34 + $0x52c] ss:$16 sps:$4 sm:$0xff]  }
 0xe33   :  { %6707 = vmatpush1.bf16.msra.mxu1 %v11101_v2  ;;  %v11179_v2 = vld [vmem:[#allocation34 + $0x520] ss:$16 sps:$4 sm:$0xff]  }
 0xe34   :  { %6871 = vmatpush1.bf16.msra.mxu0 %v11104_v62  ;;  %6708 = vmatprep.subr.bf16.mxu1 %v11109_v15  ;;  %v11182_v62 = vld [vmem:[#allocation34 + $0x528] ss:$16 sps:$4 sm:$0xff]   ;;  %v11187_v15 = vld [vmem:[#allocation34 + $0x544] ss:$16 sps:$4 sm:$0xff]  }
 0xe35   :  { %6872 = vmatprep.subr.bf16.mxu0 %v11112_v3  ;;  %v11190_v3 = vld [vmem:[#allocation34 + $0x54c] ss:$16 sps:$4 sm:$0xff]  }
 0xe37   :  { %6709 = vmatpush1.bf16.msra.mxu1 %v11107_v35  ;;  %v11185_v35 = vld [vmem:[#allocation34 + $0x540] ss:$16 sps:$4 sm:$0xff]  }
 0xe38   :  { %6873 = vmatpush1.bf16.msra.mxu0 %v11110_v24  ;;  %6710 = vmatprep.subr.bf16.mxu1 %v11115_v51  ;;  %v11188_v24 = vld [vmem:[#allocation34 + $0x548] ss:$16 sps:$4 sm:$0xff]   ;;  %v11193_v51 = vld [vmem:[#allocation34 + $0x564] ss:$16 sps:$4 sm:$0xff]  }
 0xe39   :  { %6874 = vmatprep.subr.bf16.mxu0 %v11118_v11  ;;  %v11196_v11 = vld [vmem:[#allocation34 + $0x56c] ss:$16 sps:$4 sm:$0xff]  }
 0xe3b   :  { %6711 = vmatpush1.bf16.msra.mxu1 %v11113_v63  ;;  %v11191_v63 = vld [vmem:[#allocation34 + $0x560] ss:$16 sps:$4 sm:$0xff]  }
 0xe3c   :  { %6875 = vmatpush1.bf16.msra.mxu0 %v11116_v56  ;;  %6712 = vmatprep.subr.bf16.mxu1 %v11121_v1  ;;  %v11194_v56 = vld [vmem:[#allocation34 + $0x568] ss:$16 sps:$4 sm:$0xff]   ;;  %v11199_v1 = vld [vmem:[#allocation34 + $0x584] ss:$16 sps:$4 sm:$0xff]  }
 0xe3d   :  { %6876 = vmatprep.subr.bf16.mxu0 %v11124_v8  ;;  %v11202_v8 = vld [vmem:[#allocation34 + $0x58c] ss:$16 sps:$4 sm:$0xff]  }
 0xe3f   :  { %6713 = vmatpush1.bf16.msra.mxu1 %v11119_v47  ;;  %v11197_v47 = vld [vmem:[#allocation34 + $0x580] ss:$16 sps:$4 sm:$0xff]  }
 0xe40   :  { %6877 = vmatpush1.bf16.msra.mxu0 %v11122_v38  ;;  %6723 = vmatprep.subr.bf16.mxu1 %v11127_v42  ;;  %v11200_v38 = vld [vmem:[#allocation34 + $0x588] ss:$16 sps:$4 sm:$0xff]   ;;  %v11208_v42 = vld [vmem:[#allocation34 + $0x5ac] ss:$16 sps:$4 sm:$0xff]  }
 0xe41   :  { %6887 = vmatprep.subr.bf16.mxu0 %v11130_v60  ;;  %v11203_v60 = vld [vmem:[#allocation34 + $0x5a0] ss:$16 sps:$4 sm:$0xff]  }
 0xe42   :  { %6715 = vmatmul.mubr.bf16.vlgmr.msra.gmra.mrb[52].mxu1 %v5077_v12 }
 0xe43   :  { %6879 = vmatmul.mubr.bf16.vlgmr.msra.gmra.mrb[60].mxu0 %v5077_v12  ;;  %6724 = vmatpush1.bf16.msra.mxu1 %v11125_v21  ;;  %v11211_v21 = vld [vmem:[#allocation34 + $0x5c4] ss:$16 sps:$4 sm:$0xff]   ;;  %v11214_v12 = vld [vmem:[#allocation34 + $0x5cc] ss:$16 sps:$4 sm:$0xff]  }
 0xe44   :  { %6755 = vmatprep.mubr.bf16.mxu1 %v5080_v33  ;;  %6888 = vmatpush1.bf16.msra.mxu0 %v11128_v53  ;;  %v11209_v53 = vld [vmem:[#allocation34 + $0x5c0] ss:$16 sps:$4 sm:$0xff]  }
 0xe45   :  { %6919 = vmatprep.mubr.bf16.mxu0 %v5080_v33  ;;  %6725 = vmatprep.subr.bf16.mxu1 %v11133_v14  ;;  %v11212_v14 = vld [vmem:[#allocation34 + $0x5c8] ss:$16 sps:$4 sm:$0xff]   ;;  %v11217_v33 = vld [vmem:[#allocation34 + $0x5e4] ss:$16 sps:$4 sm:$0xff]  }
 0xe46   :  { %6889 = vmatprep.subr.bf16.mxu0 %v11136_v0  ;;  %v11220_v0 = vld [vmem:[#allocation34 + $0x5ec] ss:$16 sps:$4 sm:$0xff]  }
 0xe47   :  { %6726 = vmatpush1.bf16.msra.mxu1 %v11131_v17  ;;  %v11215_v17 = vld [vmem:[#allocation34 + $0x5e0] ss:$16 sps:$4 sm:$0xff]  }
 0xe48   :  { %6890 = vmatpush1.bf16.msra.mxu0 %v11134_v40  ;;  %6727 = vmatprep.subr.bf16.mxu1 %v11139_v18  ;;  %v11218_v40 = vld [vmem:[#allocation34 + $0x5e8] ss:$16 sps:$4 sm:$0xff]   ;;  %v5071_v18 = vmax.f32 %v13974_v26, 0.0 }
 0xe49   :  { %6891 = vmatprep.subr.bf16.mxu0 %v11142_v43  ;;  %v11223_v43 = vld [vmem:[#allocation34 + $0x604] ss:$16 sps:$4 sm:$0xff]   ;;  %v11230_v26 = vld [vmem:[#allocation34 + $0x628] ss:$16 sps:$4 sm:$0xff]  }
 0xe4b   :  { %6728 = vmatpush1.bf16.msra.mxu1 %v11137_v7  ;;  %v11226_v7 = vld [vmem:[#allocation34 + $0x60c] ss:$16 sps:$4 sm:$0xff]  }
 0xe4c   :  { %6892 = vmatpush1.bf16.msra.mxu0 %v11140_v46  ;;  %6729 = vmatprep.subr.bf16.mxu1 %v11145_v6  ;;  %v5074_v46 = vmax.f32 %v13979_v5, 0.0  ;;  %v11221_v6 = vld [vmem:[#allocation34 + $0x600] ss:$16 sps:$4 sm:$0xff]   ;;  %v11238_v5 = vld [vmem:[#allocation34 + $0x64c] ss:$16 sps:$4 sm:$0xff]  }
 0xe4d   :  { %6893 = vmatprep.subr.bf16.mxu0 %v11148_v55  ;;  %v5079_v55 = vpack.c.bf16 %v5071_v18, %v5071_v18  ;;  %v11299_v18 = vld [vmem:[#allocation34 + $0x7a0] ss:$16 sps:$4 sm:$0xff]  }
 0xe4f   :  { %6730 = vmatpush1.bf16.msra.mxu1 %v11143_v25  ;;  %v11224_v25 = vld [vmem:[#allocation34 + $0x608] ss:$16 sps:$4 sm:$0xff]  }
 0xe50   :  { %6894 = vmatpush1.bf16.msra.mxu0 %v11146_v10  ;;  %6731 = vmatprep.subr.bf16.mxu1 %v11151_v4  ;;  %v11229_v10 = vld [vmem:[#allocation34 + $0x624] ss:$16 sps:$4 sm:$0xff]   ;;  %v5082_v4 = vpack.c.bf16 %v5074_v46, %v5074_v46  ;;  %v11310_v46 = vld [vmem:[#allocation34 + $0x7cc] ss:$16 sps:$4 sm:$0xff]  }
 0xe51   :  { %6895 = vmatprep.subr.bf16.mxu0 %v11154_v54  ;;  %v11232_v54 = vld [vmem:[#allocation34 + $0x62c] ss:$16 sps:$4 sm:$0xff]  }
 0xe53   :  { %6732 = vmatpush1.bf16.msra.mxu1 %v11149_v52  ;;  %v11227_v52 = vld [vmem:[#allocation34 + $0x620] ss:$16 sps:$4 sm:$0xff]  }
 0xe54   :  { %6896 = vmatpush1.bf16.msra.mxu0 %v11152_v13  ;;  %6733 = vmatprep.subr.bf16.mxu1 %v11157_v34  ;;  %v11235_v13 = vld [vmem:[#allocation34 + $0x644] ss:$16 sps:$4 sm:$0xff]   ;;  %v11233_v34 = vld [vmem:[#allocation34 + $0x640] ss:$16 sps:$4 sm:$0xff]  }
 0xe55   :  { %6897 = vmatprep.subr.bf16.mxu0 %v11160_v30  ;;  %v11236_v30 = vld [vmem:[#allocation34 + $0x648] ss:$16 sps:$4 sm:$0xff]  }
 0xe57   :  { %6734 = vmatpush1.bf16.msra.mxu1 %v11155_v23  ;;  %v11241_v23 = vld [vmem:[#allocation34 + $0x664] ss:$16 sps:$4 sm:$0xff]  }
 0xe58   :  { %6898 = vmatpush1.bf16.msra.mxu0 %v11158_v61  ;;  %6735 = vmatprep.subr.bf16.mxu1 %v11163_v57  ;;  %v11244_v61 = vld [vmem:[#allocation34 + $0x66c] ss:$16 sps:$4 sm:$0xff]   ;;  %v11239_v57 = vld [vmem:[#allocation34 + $0x660] ss:$16 sps:$4 sm:$0xff]  }
 0xe59   :  { %6899 = vmatprep.subr.bf16.mxu0 %v11166_v58  ;;  %v11242_v58 = vld [vmem:[#allocation34 + $0x668] ss:$16 sps:$4 sm:$0xff]  }
 0xe5b   :  { %6736 = vmatpush1.bf16.msra.mxu1 %v11161_v27  ;;  %v11247_v27 = vld [vmem:[#allocation34 + $0x684] ss:$16 sps:$4 sm:$0xff]  }
 0xe5c   :  { %6900 = vmatpush1.bf16.msra.mxu0 %v11164_v44  ;;  %6737 = vmatprep.subr.bf16.mxu1 %v11169_v50  ;;  %v11250_v44 = vld [vmem:[#allocation34 + $0x68c] ss:$16 sps:$4 sm:$0xff]   ;;  %v11245_v50 = vld [vmem:[#allocation34 + $0x680] ss:$16 sps:$4 sm:$0xff]  }
 0xe5d   :  { %6901 = vmatprep.subr.bf16.mxu0 %v11172_v45  ;;  %v11248_v45 = vld [vmem:[#allocation34 + $0x688] ss:$16 sps:$4 sm:$0xff]  }
 0xe5f   :  { %6738 = vmatpush1.bf16.msra.mxu1 %v11167_v28  ;;  %v11253_v28 = vld [vmem:[#allocation34 + $0x6a4] ss:$16 sps:$4 sm:$0xff]  }
 0xe60   :  { %6902 = vmatpush1.bf16.msra.mxu0 %v11170_v59  ;;  %6739 = vmatprep.subr.bf16.mxu1 %v11175_v37  ;;  %v11256_v59 = vld [vmem:[#allocation34 + $0x6ac] ss:$16 sps:$4 sm:$0xff]   ;;  %v11251_v37 = vld [vmem:[#allocation34 + $0x6a0] ss:$16 sps:$4 sm:$0xff]  }
 0xe61   :  { %6903 = vmatprep.subr.bf16.mxu0 %v11178_v19  ;;  %v11254_v19 = vld [vmem:[#allocation34 + $0x6a8] ss:$16 sps:$4 sm:$0xff]  }
 0xe63   :  { %6740 = vmatpush1.bf16.msra.mxu1 %v11173_v22  ;;  %v11259_v22 = vld [vmem:[#allocation34 + $0x6c4] ss:$16 sps:$4 sm:$0xff]  }
 0xe64   :  { %6904 = vmatpush1.bf16.msra.mxu0 %v11176_v16  ;;  %6741 = vmatprep.subr.bf16.mxu1 %v11181_v9  ;;  %v11262_v16 = vld [vmem:[#allocation34 + $0x6cc] ss:$16 sps:$4 sm:$0xff]   ;;  %v11257_v9 = vld [vmem:[#allocation34 + $0x6c0] ss:$16 sps:$4 sm:$0xff]  }
 0xe65   :  { %6905 = vmatprep.subr.bf16.mxu0 %v11184_v49  ;;  %v11260_v49 = vld [vmem:[#allocation34 + $0x6c8] ss:$16 sps:$4 sm:$0xff]  }
 0xe67   :  { %6742 = vmatpush1.bf16.msra.mxu1 %v11179_v2  ;;  %v11265_v2 = vld [vmem:[#allocation34 + $0x6e4] ss:$16 sps:$4 sm:$0xff]  }
 0xe68   :  { %6906 = vmatpush1.bf16.msra.mxu0 %v11182_v62  ;;  %6743 = vmatprep.subr.bf16.mxu1 %v11187_v15  ;;  %v11268_v62 = vld [vmem:[#allocation34 + $0x6ec] ss:$16 sps:$4 sm:$0xff]   ;;  %v11263_v15 = vld [vmem:[#allocation34 + $0x6e0] ss:$16 sps:$4 sm:$0xff]  }
 0xe69   :  { %6907 = vmatprep.subr.bf16.mxu0 %v11190_v3  ;;  %v11266_v3 = vld [vmem:[#allocation34 + $0x6e8] ss:$16 sps:$4 sm:$0xff]  }
 0xe6b   :  { %6744 = vmatpush1.bf16.msra.mxu1 %v11185_v35  ;;  %v11271_v35 = vld [vmem:[#allocation34 + $0x704] ss:$16 sps:$4 sm:$0xff]  }
 0xe6c   :  { %6908 = vmatpush1.bf16.msra.mxu0 %v11188_v24  ;;  %6745 = vmatprep.subr.bf16.mxu1 %v11193_v51  ;;  %v11274_v24 = vld [vmem:[#allocation34 + $0x70c] ss:$16 sps:$4 sm:$0xff]   ;;  %v11269_v51 = vld [vmem:[#allocation34 + $0x700] ss:$16 sps:$4 sm:$0xff]  }
 0xe6d   :  { %6909 = vmatprep.subr.bf16.mxu0 %v11196_v11  ;;  %v11272_v11 = vld [vmem:[#allocation34 + $0x708] ss:$16 sps:$4 sm:$0xff]  }
 0xe6f   :  { %6746 = vmatpush1.bf16.msra.mxu1 %v11191_v63  ;;  %v11277_v63 = vld [vmem:[#allocation34 + $0x724] ss:$16 sps:$4 sm:$0xff]  }
 0xe70   :  { %6910 = vmatpush1.bf16.msra.mxu0 %v11194_v56  ;;  %6747 = vmatprep.subr.bf16.mxu1 %v11199_v1  ;;  %v11280_v56 = vld [vmem:[#allocation34 + $0x72c] ss:$16 sps:$4 sm:$0xff]   ;;  %v11275_v1 = vld [vmem:[#allocation34 + $0x720] ss:$16 sps:$4 sm:$0xff]  }
 0xe71   :  { %6911 = vmatprep.subr.bf16.mxu0 %v11202_v8  ;;  %v11278_v8 = vld [vmem:[#allocation34 + $0x728] ss:$16 sps:$4 sm:$0xff]  }
 0xe73   :  { %6748 = vmatpush1.bf16.msra.mxu1 %v11197_v47  ;;  %v11283_v47 = vld [vmem:[#allocation34 + $0x744] ss:$16 sps:$4 sm:$0xff]  }
 0xe74   :  { %6912 = vmatpush1.bf16.msra.mxu0 %v11200_v38  ;;  %6749 = vmatprep.subr.bf16.mxu1 %v11205_v39  ;;  %v11286_v38 = vld [vmem:[#allocation34 + $0x74c] ss:$16 sps:$4 sm:$0xff]   ;;  %v11281_v39 = vld [vmem:[#allocation34 + $0x740] ss:$16 sps:$4 sm:$0xff]  }
 0xe75   :  { %6913 = vmatprep.subr.bf16.mxu0 %v11208_v42  ;;  %v11284_v42 = vld [vmem:[#allocation34 + $0x748] ss:$16 sps:$4 sm:$0xff]  }
 0xe77   :  { %6750 = vmatpush1.bf16.msra.mxu1 %v11203_v60  ;;  %v11289_v60 = vld [vmem:[#allocation34 + $0x764] ss:$16 sps:$4 sm:$0xff]  }
 0xe78   :  { %6914 = vmatpush1.bf16.msra.mxu0 %v11206_v32  ;;  %6751 = vmatprep.subr.bf16.mxu1 %v11211_v21  ;;  %v11292_v32 = vld [vmem:[#allocation34 + $0x76c] ss:$16 sps:$4 sm:$0xff]   ;;  %v11287_v21 = vld [vmem:[#allocation34 + $0x760] ss:$16 sps:$4 sm:$0xff]  }
 0xe79   :  { %6915 = vmatprep.subr.bf16.mxu0 %v11214_v12  ;;  %v11290_v12 = vld [vmem:[#allocation34 + $0x768] ss:$16 sps:$4 sm:$0xff]  }
 0xe7b   :  { %6752 = vmatpush1.bf16.msra.mxu1 %v11209_v53  ;;  %v11295_v53 = vld [vmem:[#allocation34 + $0x784] ss:$16 sps:$4 sm:$0xff]  }
 0xe7c   :  { %6916 = vmatpush1.bf16.msra.mxu0 %v11212_v14  ;;  %6753 = vmatprep.subr.bf16.mxu1 %v11217_v33  ;;  %v11298_v14 = vld [vmem:[#allocation34 + $0x78c] ss:$16 sps:$4 sm:$0xff]   ;;  %v11293_v33 = vld [vmem:[#allocation34 + $0x780] ss:$16 sps:$4 sm:$0xff]  }
 0xe7d   :  { %6917 = vmatprep.subr.bf16.mxu0 %v11220_v0  ;;  %v11296_v0 = vld [vmem:[#allocation34 + $0x788] ss:$16 sps:$4 sm:$0xff]  }
 0xe7f   :  { %6754 = vmatpush1.bf16.msra.mxu1 %v11215_v17  ;;  %v11301_v17 = vld [vmem:[#allocation34 + $0x7a4] ss:$16 sps:$4 sm:$0xff]  }
 0xe80   :  { %6918 = vmatpush1.bf16.msra.mxu0 %v11218_v40  ;;  %6764 = vmatprep.subr.bf16.mxu1 %v11223_v43  ;;  %v11304_v40 = vld [vmem:[#allocation34 + $0x7ac] ss:$16 sps:$4 sm:$0xff]   ;;  %v11302_v43 = vld [vmem:[#allocation34 + $0x7a8] ss:$16 sps:$4 sm:$0xff]  }
 0xe81   :  { %6928 = vmatprep.subr.bf16.mxu0 %v11226_v7  ;;  %v11307_v7 = vld [vmem:[#allocation34 + $0x7c4] ss:$16 sps:$4 sm:$0xff]  }
 0xe82   :  { %6756 = vmatmul.mubr.bf16.vlgmr.msra.gmra.mrb[52].mxu1 %v5079_v55 }
 0xe83   :  { %6920 = vmatmul.mubr.bf16.vlgmr.msra.gmra.mrb[60].mxu0 %v5079_v55  ;;  %6765 = vmatpush1.bf16.msra.mxu1 %v11221_v6  ;;  %v11305_v6 = vld [vmem:[#allocation34 + $0x7c0] ss:$16 sps:$4 sm:$0xff]   ;;  %v11308_v55 = vld [vmem:[#allocation34 + $0x7c8] ss:$16 sps:$4 sm:$0xff]  }
 0xe84   :  { %6796 = vmatprep.mubr.bf16.mxu1 %v5082_v4  ;;  %6929 = vmatpush1.bf16.msra.mxu0 %v11224_v25  ;;  %v11313_v25 = vld [vmem:[#allocation34 + $0x7e4] ss:$16 sps:$4 sm:$0xff]  }
 0xe85   :  { %6960 = vmatprep.mubr.bf16.mxu0 %v5082_v4  ;;  %6766 = vmatprep.subr.bf16.mxu1 %v11229_v10  ;;  %v11316_v10 = vld [vmem:[#allocation34 + $0x7ec] ss:$16 sps:$4 sm:$0xff]  }
 0xe86   :  { %6930 = vmatprep.subr.bf16.mxu0 %v11232_v54  ;;  %v6985_v4 = vld [vmem:[#allocation40 + $0x80] sm:$0xff]  ;;  %v6986_v54 = vld [vmem:[#allocation40 + $0x88] sm:$0xff] }
 0xe87   :  { %6767 = vmatpush1.bf16.msra.mxu1 %v11227_v52  ;;  %v7017_v52 = vld [vmem:[#allocation40 + $0x180] sm:$0xff] }
 0xe88   :  { %6931 = vmatpush1.bf16.msra.mxu0 %v11230_v26  ;;  %6768 = vmatprep.subr.bf16.mxu1 %v11235_v13  ;;  %v7018_v26 = vld [vmem:[#allocation40 + $0x188] sm:$0xff]  ;;  %v11311_v13 = vld [vmem:[#allocation34 + $0x7e0] ss:$16 sps:$4 sm:$0xff]  }
 0xe89   :  { %6932 = vmatprep.subr.bf16.mxu0 %v11238_v5  ;;  %v11314_v5 = vld [vmem:[#allocation34 + $0x7e8] ss:$16 sps:$4 sm:$0xff]  }
 0xe8b   :  { %6769 = vmatpush1.bf16.msra.mxu1 %v11233_v34  ;;  %v5073_v34 = vmax.f32 %v13981_v48, 0.0 }
 0xe8c   :  { %6933 = vmatpush1.bf16.msra.mxu0 %v11236_v30  ;;  %6770 = vmatprep.subr.bf16.mxu1 %v11241_v23  ;;  %v13988_v30 = vpack.c.bf16 %v6986_v54, %v6985_v4  ;;  %v6969_v23 = vld [vmem:[#allocation40] sm:$0xff] }
 0xe8d   :  { %6934 = vmatprep.subr.bf16.mxu0 %v11244_v61  ;;  %v6970_v61 = vld [vmem:[#allocation40 + $0x8] sm:$0xff]  ;;  %v7009_v4 = vld [vmem:[#allocation40 + $0x140] sm:$0xff] }
 0xe8f   :  { %6771 = vmatpush1.bf16.msra.mxu1 %v11239_v57  ;;  %v7001_v57 = vld [vmem:[#allocation40 + $0x100] sm:$0xff] }
 0xe90   :  { %6935 = vmatpush1.bf16.msra.mxu0 %v11242_v58  ;;  %6772 = vmatprep.subr.bf16.mxu1 %v11247_v27  ;;  %v13990_v58 = vpack.c.bf16 %v7018_v26, %v7017_v52  ;;  %v7002_v27 = vld [vmem:[#allocation40 + $0x108] sm:$0xff]  ;;  %v6995_v26 = vld [vmem:[#allocation40 + $0xd0] sm:$0xff] }
 0xe91   :  { %6936 = vmatprep.subr.bf16.mxu0 %v11250_v44  ;;  %v6987_v44 = vld [vmem:[#allocation40 + $0x90] sm:$0xff]  ;;  %v13995_v48 = vpack.c.bf16 %v7002_v27, %v7001_v57  ;;  %v7010_v52 = vld [vmem:[#allocation40 + $0x148] sm:$0xff] }
 0xe92   :  { %v6979_v27 = vld [vmem:[#allocation40 + $0x50] sm:$0xff] }
 0xe93   :  { %6773 = vmatpush1.bf16.msra.mxu1 %v11245_v50  ;;  %v6988_v50 = vld [vmem:[#allocation40 + $0x98] sm:$0xff] }
 0xe94   :  { %6937 = vmatpush1.bf16.msra.mxu0 %v11248_v45  ;;  %6774 = vmatprep.subr.bf16.mxu1 %v11253_v28  ;;  %v7019_v45 = vld [vmem:[#allocation40 + $0x190] sm:$0xff]  ;;  %v7020_v28 = vld [vmem:[#allocation40 + $0x198] sm:$0xff] }
 0xe95   :  { %6938 = vmatprep.subr.bf16.mxu0 %v11256_v59  ;;  %v13992_v59 = vpack.c.bf16 %v6970_v61, %v6969_v23  ;;  %v14043_v61 = vpack.c.bf16 %v7010_v52, %v7009_v4 }
 0xe97   :  { %6775 = vmatpush1.bf16.msra.mxu1 %v11251_v37  ;;  %v5081_v37 = vpack.c.bf16 %v5073_v34, %v5073_v34  ;;  %v7028_v34 = vld [vmem:[#allocation40 + $0x1d8] sm:$0xff] }
 0xe98   :  { %6939 = vmatpush1.bf16.msra.mxu0 %v11254_v19  ;;  %6776 = vmatprep.subr.bf16.mxu1 %v11259_v22  ;;  %v13997_v19 = vpack.c.bf16 %v6988_v50, %v6987_v44  ;;  %v6971_v22 = vld [vmem:[#allocation40 + $0x10] sm:$0xff]  ;;  %v6980_v44 = vld [vmem:[#allocation40 + $0x58] sm:$0xff] }
 0xe99   :  { %6940 = vmatprep.subr.bf16.mxu0 %v11262_v16  ;;  %v6972_v16 = vld [vmem:[#allocation40 + $0x18] sm:$0xff]  ;;  %v7011_v50 = vld [vmem:[#allocation40 + $0x150] sm:$0xff] }
 0xe9b   :  { %6777 = vmatpush1.bf16.msra.mxu1 %v11257_v9  ;;  %v7003_v9 = vld [vmem:[#allocation40 + $0x110] sm:$0xff] }
 0xe9c   :  { %6941 = vmatpush1.bf16.msra.mxu0 %v11260_v49  ;;  %6778 = vmatprep.subr.bf16.mxu1 %v11265_v2  ;;  %v14000_v49 = vpack.c.bf16 %v7020_v28, %v7019_v45  ;;  %v7004_v2 = vld [vmem:[#allocation40 + $0x118] sm:$0xff] }
 0xe9d   :  { %6942 = vmatprep.subr.bf16.mxu0 %v11268_v62  ;;  %v6989_v62 = vld [vmem:[#allocation40 + $0xa0] sm:$0xff]  ;;  %v7012_v28 = vld [vmem:[#allocation40 + $0x158] sm:$0xff] }
 0xe9f   :  { %6779 = vmatpush1.bf16.msra.mxu1 %v11263_v15  ;;  %v6990_v15 = vld [vmem:[#allocation40 + $0xa8] sm:$0xff] }
 0xea0   :  { %6943 = vmatpush1.bf16.msra.mxu0 %v11266_v3  ;;  %6780 = vmatprep.subr.bf16.mxu1 %v11271_v35  ;;  %v7021_v3 = vld [vmem:[#allocation40 + $0x1a0] sm:$0xff]  ;;  %v7022_v35 = vld [vmem:[#allocation40 + $0x1a8] sm:$0xff] }
 0xea1   :  { %6944 = vmatprep.subr.bf16.mxu0 %v11274_v24  ;;  %v14003_v24 = vpack.c.bf16 %v6972_v16, %v6971_v22  ;;  %v6998_v22 = vld [vmem:[#allocation40 + $0xe8] sm:$0xff]  ;;  %v7029_v16 = vld [vmem:[#allocation40 + $0x1e0] sm:$0xff] }
 0xea3   :  { %6781 = vmatpush1.bf16.msra.mxu1 %v11269_v51  ;;  %v14007_v51 = vpack.c.bf16 %v7004_v2, %v7003_v9  ;;  %v7030_v9 = vld [vmem:[#allocation40 + $0x1e8] sm:$0xff]  ;;  %v14051_v2 = vpack.c.bf16 %v6980_v44, %v6979_v27 }
 0xea4   :  { %6945 = vmatpush1.bf16.msra.mxu0 %v11272_v11  ;;  %6782 = vmatprep.subr.bf16.mxu1 %v11277_v63  ;;  %v14009_v11 = vpack.c.bf16 %v6990_v15, %v6989_v62  ;;  %v6973_v63 = vld [vmem:[#allocation40 + $0x20] sm:$0xff]  ;;  %v14055_v62 = vpack.c.bf16 %v7012_v28, %v7011_v50 }
 0xea5   :  { %6946 = vmatprep.subr.bf16.mxu0 %v11280_v56  ;;  %v6974_v56 = vld [vmem:[#allocation40 + $0x28] sm:$0xff] }
 0xea7   :  { %6783 = vmatpush1.bf16.msra.mxu1 %v11275_v1  ;;  %v7005_v1 = vld [vmem:[#allocation40 + $0x120] sm:$0xff] }
 0xea8   :  { %6947 = vmatpush1.bf16.msra.mxu0 %v11278_v8  ;;  %6784 = vmatprep.subr.bf16.mxu1 %v11283_v47  ;;  %v14012_v8 = vpack.c.bf16 %v7022_v35, %v7021_v3  ;;  %v7006_v47 = vld [vmem:[#allocation40 + $0x128] sm:$0xff]  ;;  %v6981_v3 = vld [vmem:[#allocation40 + $0x60] sm:$0xff] }
 0xea9   :  { %6948 = vmatprep.subr.bf16.mxu0 %v11286_v38  ;;  %v6991_v38 = vld [vmem:[#allocation40 + $0xb0] sm:$0xff]  ;;  %v6982_v35 = vld [vmem:[#allocation40 + $0x68] sm:$0xff] }
 0xeab   :  { %6785 = vmatpush1.bf16.msra.mxu1 %v11281_v39  ;;  %v6992_v39 = vld [vmem:[#allocation40 + $0xb8] sm:$0xff] }
 0xeac   :  { %6949 = vmatpush1.bf16.msra.mxu0 %v11284_v42  ;;  %6786 = vmatprep.subr.bf16.mxu1 %v11289_v60  ;;  %v7023_v42 = vld [vmem:[#allocation40 + $0x1b0] sm:$0xff]  ;;  %v7024_v60 = vld [vmem:[#allocation40 + $0x1b8] sm:$0xff] }
 0xead   :  { %6950 = vmatprep.subr.bf16.mxu0 %v11292_v32  ;;  %v14015_v32 = vpack.c.bf16 %v6974_v56, %v6973_v63  ;;  %v14060_v63 = vpack.c.bf16 %v7030_v9, %v7029_v16  ;;  %v7013_v56 = vld [vmem:[#allocation40 + $0x160] sm:$0xff] }
 0xeaf   :  { %6787 = vmatpush1.bf16.msra.mxu1 %v11287_v21  ;;  %v14019_v21 = vpack.c.bf16 %v7006_v47, %v7005_v1  ;;  %v7014_v1 = vld [vmem:[#allocation40 + $0x168] sm:$0xff]  ;;  %v14063_v47 = vpack.c.bf16 %v6982_v35, %v6981_v3 }
 0xeb0   :  { %6951 = vmatpush1.bf16.msra.mxu0 %v11290_v12  ;;  %6788 = vmatprep.subr.bf16.mxu1 %v11295_v53  ;;  %v14021_v12 = vpack.c.bf16 %v6992_v39, %v6991_v38  ;;  %v6975_v53 = vld [vmem:[#allocation40 + $0x30] sm:$0xff]  ;;  %v14067_v38 = vpack.c.bf16 %v7014_v1, %v7013_v56 }
 0xeb1   :  { %6952 = vmatprep.subr.bf16.mxu0 %v11298_v14  ;;  %v6976_v14 = vld [vmem:[#allocation40 + $0x38] sm:$0xff]  ;;  %v6999_v39 = vld [vmem:[#allocation40 + $0xf0] sm:$0xff] }
 0xeb3   :  { %6789 = vmatpush1.bf16.msra.mxu1 %v11293_v33  ;;  %v7007_v33 = vld [vmem:[#allocation40 + $0x130] sm:$0xff] }
 0xeb4   :  { %6953 = vmatpush1.bf16.msra.mxu0 %v11296_v0  ;;  %6790 = vmatprep.subr.bf16.mxu1 %v11301_v17  ;;  %v14024_v0 = vpack.c.bf16 %v7024_v60, %v7023_v42  ;;  %v7008_v17 = vld [vmem:[#allocation40 + $0x138] sm:$0xff]  ;;  %v7031_v60 = vld [vmem:[#allocation40 + $0x1f0] sm:$0xff] }
 0xeb5   :  { %6954 = vmatprep.subr.bf16.mxu0 %v11304_v40  ;;  %v6993_v40 = vld [vmem:[#allocation40 + $0xc0] sm:$0xff]  ;;  %v7000_v42 = vld [vmem:[#allocation40 + $0xf8] sm:$0xff] }
 0xeb7   :  { %6791 = vmatpush1.bf16.msra.mxu1 %v11299_v18  ;;  %v6994_v18 = vld [vmem:[#allocation40 + $0xc8] sm:$0xff] }
 0xeb8   :  { %6955 = vmatpush1.bf16.msra.mxu0 %v11302_v43  ;;  %6792 = vmatprep.subr.bf16.mxu1 %v11307_v7  ;;  %v7025_v43 = vld [vmem:[#allocation40 + $0x1c0] sm:$0xff]  ;;  %v7026_v7 = vld [vmem:[#allocation40 + $0x1c8] sm:$0xff] }
 0xeb9   :  { %6956 = vmatprep.subr.bf16.mxu0 %v11310_v46  ;;  %v14027_v46 = vpack.c.bf16 %v6976_v14, %v6975_v53  ;;  %v14036_v54 = vpack.c.bf16 %v7026_v7, %v7025_v43  ;;  %v14072_v53 = vpack.c.bf16 %v7000_v42, %v6999_v39  ;;  %v7032_v14 = vld [vmem:[#allocation40 + $0x1f8] sm:$0xff]  ;;  %v7015_v43 = vld [vmem:[#allocation40 + $0x170] sm:$0xff] }
 0xeba   :  { %v7016_v7 = vld [vmem:[#allocation40 + $0x178] sm:$0xff] }
 0xebb   :  { %6793 = vmatpush1.bf16.msra.mxu1 %v11305_v6  ;;  %v14031_v6 = vpack.c.bf16 %v7008_v17, %v7007_v33  ;;  %v6983_v33 = vld [vmem:[#allocation40 + $0x70] sm:$0xff]  ;;  %v6984_v17 = vld [vmem:[#allocation40 + $0x78] sm:$0xff] }
 0xebc   :  { %6957 = vmatpush1.bf16.msra.mxu0 %v11308_v55  ;;  %6794 = vmatprep.subr.bf16.mxu1 %v11313_v25  ;;  %v14033_v55 = vpack.c.bf16 %v6994_v18, %v6993_v40  ;;  %v6977_v25 = vld [vmem:[#allocation40 + $0x40] sm:$0xff]  ;;  %v10637_v40 = vpack.c.bf16 %v7032_v14, %v7031_v60  ;;  %v10607_v18 = vpack.c.bf16 %v6984_v17, %v6983_v33 }
 0xebd   :  { %6958 = vmatprep.subr.bf16.mxu0 %v11316_v10  ;;  %v6978_v10 = vld [vmem:[#allocation40 + $0x48] sm:$0xff] }
 0xebe   :  { %v14039_v23 = vpack.c.bf16 %v6978_v10, %v6977_v25  ;;  %v10639_v25 = vpack.c.bf16 %v7016_v7, %v7015_v43  ;;  %v5339_v10 = vld [vmem:[#allocation35] sm:$0xf]  ;;  %v11319_v17 = vld [vmem:[#allocation43 + $0x4] ss:$8 sps:$4 sm:$0xff]  }
 0xebf   :  { %6795 = vmatpush1.bf16.msra.mxu1 %v11311_v13  ;;  %v6996_v13 = vld [vmem:[#allocation40 + $0xd8] sm:$0xff]  ;;  %v5348_v4 = vrot.slane %v5339_v10, %v13497_v29  ;;  %v5344_v52 = vrot.slane %v5339_v10, %v14441_v36 }
 0xec0   :  { %6959 = vmatpush1.bf16.msra.mxu0 %v11314_v5  ;;  %10578 = vmatprep.subr.bf16.mxu1 %v13988_v30  ;;  %v7027_v5 = vld [vmem:[#allocation40 + $0x1d0] sm:$0xff]  ;;  %v14045_v57 = vpack.c.bf16 %v6996_v13, %v6995_v26  ;;  %v5356_v26 = vrot.slane %v5339_v10, %v13500_v31 }
 0xec1   :  { %10610 = vmatprep.subr.bf16.mxu0 %v13990_v58  ;;  %v14048_v45 = vpack.c.bf16 %v7028_v34, %v7027_v5  ;;  %v5352_v5 = vrot.slane %v5339_v10, %v13491_v41 }
 0xec2   :  { %6797 = vmatmul.mubr.bf16.vlgmr.msra.gmra.mrb[52].mxu1 %v5081_v37 }
 0xec3   :  { %6961 = vmatmul.mubr.bf16.vlgmr.msra.gmra.mrb[60].mxu0 %v5081_v37  ;;  %10580 = vmatpush3.bf16.msra.mxu1 %v13992_v59  ;;  %v6997_v37 = vld [vmem:[#allocation40 + $0xe0] sm:$0xff] }
 0xec4   :  { %10612 = vmatpush3.bf16.msra.mxu0 %v13995_v48  ;;  %10582 = vmatprep.subr.bf16.mxu1 %v13997_v19  ;;  %v14057_v15 = vpack.c.bf16 %v6998_v22, %v6997_v37 }
 0xec5   :  { %10614 = vmatprep.subr.bf16.mxu0 %v14000_v49 }
 0xec7   :  { %10584 = vmatpush3.bf16.msra.mxu1 %v14003_v24 }
 0xec8   :  { %10616 = vmatpush3.bf16.msra.mxu0 %v14007_v51  ;;  %10586 = vmatprep.subr.bf16.mxu1 %v14009_v11 }
 0xec9   :  { %10618 = vmatprep.subr.bf16.mxu0 %v14012_v8 }
 0xecb   :  { %10588 = vmatpush3.bf16.msra.mxu1 %v14015_v32 }
 0xecc   :  { %10620 = vmatpush3.bf16.msra.mxu0 %v14019_v21  ;;  %10590 = vmatprep.subr.bf16.mxu1 %v14021_v12 }
 0xecd   :  { %10622 = vmatprep.subr.bf16.mxu0 %v14024_v0 }
 0xecf   :  { %10592 = vmatpush3.bf16.msra.mxu1 %v14027_v46 }
 0xed0   :  { %10624 = vmatpush3.bf16.msra.mxu0 %v14031_v6  ;;  %10594 = vmatprep.subr.bf16.mxu1 %v14033_v55 }
 0xed1   :  { %10626 = vmatprep.subr.bf16.mxu0 %v14036_v54 }
 0xed3   :  { %10596 = vmatpush3.bf16.msra.mxu1 %v14039_v23 }
 0xed4   :  { %10628 = vmatpush3.bf16.msra.mxu0 %v14043_v61  ;;  %10598 = vmatprep.subr.bf16.mxu1 %v14045_v57 }
 0xed5   :  { %10630 = vmatprep.subr.bf16.mxu0 %v14048_v45 }
 0xed7   :  { %10600 = vmatpush3.bf16.msra.mxu1 %v14051_v2 }
 0xed8   :  { %10632 = vmatpush3.bf16.msra.mxu0 %v14055_v62  ;;  %10602 = vmatprep.subr.bf16.mxu1 %v14057_v15 }
 0xed9   :  { %10634 = vmatprep.subr.bf16.mxu0 %v14060_v63 }
 0xedb   :  { %10604 = vmatpush3.bf16.msra.mxu1 %v14063_v47 }
 0xedc   :  { %10636 = vmatpush3.bf16.msra.mxu0 %v14067_v38  ;;  %10606 = vmatprep.subr.bf16.mxu1 %v14072_v53 }
 0xedd   :  { %10638 = vmatprep.subr.bf16.mxu0 %v10637_v40 }
 0xedf   :  { %10608 = vmatpush3.bf16.msra.mxu1 %v10607_v18 }
 0xee0   :  { %10640 = vmatpush3.bf16.msra.mxu0 %v10639_v25  ;;  %10642 = vmatprep.subr.bf16.mxu1 %v13988_v30 }
 0xee1   :  { %10674 = vmatprep.subr.bf16.mxu0 %v13990_v58 }
 0xf95   :  { %v6798_v13 = vpop.f32.mrb[52].mxu1 }
 0xf96   :  { %v6962_v34 = vpop.f32.mrb[60].mxu0  ;;  %v6800_v27 = vpop.f32.mrb[53].mxu1  ;;  %v14083_v37 = vadd.f32 %v6798_v13, %v5344_v52 }
 0xf97   :  { %v14081_v44 = vadd.f32 %v6800_v27, %v5348_v4  ;;  %v6964_v50 = vpop.f32.mrb[61].mxu0  ;;  %v6802_v28 = vpop.f32.mrb[54].mxu1  ;;  %v14087_v16 = vadd.f32 %v6962_v34, %v5352_v5  ;;  %v11317_v34 = vld [vmem:[#allocation43] ss:$8 sps:$4 sm:$0xff]  }
 0xf98   :  { %v14085_v30 = vadd.f32 %v6964_v50, %v5356_v26  ;;  %v6966_v58 = vpop.f32.mrb[62].mxu0  ;;  %v6803_v22 = vpop.f32.mrb[55].mxu1  ;;  %v11320_v50 = vld [vmem:[#allocation43 + $0x10] ss:$8 sps:$4 sm:$0xff]   ;;  %v11322_v28 = vld [vmem:[#allocation43 + $0x14] ss:$8 sps:$4 sm:$0xff]  }
 0xf99   :  { %v6967_v9 = vpop.f32.mrb[63].mxu0  ;;  %7115 = vmatprep.mubr.f32.mxu1 %v14081_v44  ;;  %v7192_v3 = vmul.f32 %v14081_v44, %v14081_v44  ;;  %v11325_v58 = vld [vmem:[#allocation43 + $0x24] ss:$8 sps:$4 sm:$0xff]   ;;  %v11323_v22 = vld [vmem:[#allocation43 + $0x20] ss:$8 sps:$4 sm:$0xff]  }
 0xf9a   :  { %7185 = vmatprep.mubr.f32.mxu0 %v14085_v30  ;;  %7116 = vmatmul.mubr.f32.vlgmr.msra.gmra.mrb[56].mxu1 %v14083_v37  ;;  %v7194_v35 = vmul.f32 %v14085_v30, %v14085_v30  ;;  %v11328_v9 = vld [vmem:[#allocation43 + $0x34] ss:$8 sps:$4 sm:$0xff]  }
 0xf9b   :  { %7186 = vmatmul.mubr.f32.vlgmr.msra.gmra.mrb[64].mxu0 %v14087_v16  ;;  %10644 = vmatpush3.bf16.msra.mxu1 %v13992_v59  ;;  %v7191_v59 = vmul.f32 %v14083_v37, %v14083_v37 }
 0xf9c   :  { %10676 = vmatpush3.bf16.msra.mxu0 %v13995_v48  ;;  %7259 = vmatprep.mubr.f32.mxu1 %v7192_v3  ;;  %v7193_v48 = vmul.f32 %v14087_v16, %v14087_v16  ;;  %v11326_v3 = vld [vmem:[#allocation43 + $0x30] ss:$8 sps:$4 sm:$0xff]  }
 0xf9d   :  { %7329 = vmatprep.mubr.f32.mxu0 %v7194_v35  ;;  %10646 = vmatprep.subr.bf16.mxu1 %v13997_v19  ;;  %v7034_v19 = vld [vmem:[#allocation41 + $0x8] sm:$0xff] }
 0xf9e   :  { %10678 = vmatprep.subr.bf16.mxu0 %v14000_v49  ;;  %v7038_v49 = vld [vmem:[#allocation41 + $0x28] sm:$0xff] }
 0xf9f   :  { %10648 = vmatpush3.bf16.msra.mxu1 %v14003_v24  ;;  %v7036_v24 = vld [vmem:[#allocation41 + $0x18] sm:$0xff]  ;;  %v11331_v35 = vld [vmem:[#allocation43 + $0x44] ss:$8 sps:$4 sm:$0xff]  }
 0xfa0   :  { %10680 = vmatpush3.bf16.msra.mxu0 %v14007_v51  ;;  %10650 = vmatprep.subr.bf16.mxu1 %v14009_v11  ;;  %v10705_v51 = vpack.c.bf16 %v7038_v49, %v7034_v19  ;;  %v7040_v11 = vld [vmem:[#allocation41 + $0x38] sm:$0xff]  ;;  %v11337_v49 = vld [vmem:[#allocation43 + $0x64] ss:$8 sps:$4 sm:$0xff]  }
 0xfa1   :  { %10682 = vmatprep.subr.bf16.mxu0 %v14012_v8  ;;  %v10713_v8 = vpack.c.bf16 %v7040_v11, %v7036_v24  ;;  %v11332_v19 = vld [vmem:[#allocation43 + $0x50] ss:$8 sps:$4 sm:$0xff]   ;;  %v11335_v24 = vld [vmem:[#allocation43 + $0x60] ss:$8 sps:$4 sm:$0xff]  }
 0xfa2   :  { %v11338_v11 = vld [vmem:[#allocation43 + $0x70] ss:$8 sps:$4 sm:$0xff]  }
 0xfa3   :  { %10652 = vmatpush3.bf16.msra.mxu1 %v14015_v32  ;;  %v7033_v32 = vld [vmem:[#allocation41] sm:$0xff] }
 0xfa4   :  { %10684 = vmatpush3.bf16.msra.mxu0 %v14019_v21  ;;  %10654 = vmatprep.subr.bf16.mxu1 %v14021_v12  ;;  %v7037_v21 = vld [vmem:[#allocation41 + $0x20] sm:$0xff]  ;;  %v7035_v12 = vld [vmem:[#allocation41 + $0x10] sm:$0xff] }
 0xfa5   :  { %10686 = vmatprep.subr.bf16.mxu0 %v14024_v0  ;;  %v10707_v0 = vpack.c.bf16 %v7037_v21, %v7033_v32  ;;  %v11341_v32 = vld [vmem:[#allocation43 + $0x80] ss:$8 sps:$4 sm:$0xff]   ;;  %v11346_v21 = vld [vmem:[#allocation43 + $0x94] ss:$8 sps:$4 sm:$0xff]  }
 0xfa7   :  { %10656 = vmatpush3.bf16.msra.mxu1 %v14027_v46  ;;  %v7039_v46 = vld [vmem:[#allocation41 + $0x30] sm:$0xff] }
 0xfa8   :  { %10688 = vmatpush3.bf16.msra.mxu0 %v14031_v6  ;;  %10658 = vmatprep.subr.bf16.mxu1 %v14033_v55  ;;  %v7042_v6 = vld [vmem:[#allocation41 + $0x48] sm:$0xff] }
 0xfa9   :  { %10690 = vmatprep.subr.bf16.mxu0 %v14036_v54  ;;  %v7046_v55 = vld [vmem:[#allocation41 + $0x68] sm:$0xff]  ;;  %v10715_v54 = vpack.c.bf16 %v7039_v46, %v7035_v12  ;;  %v11344_v12 = vld [vmem:[#allocation43 + $0x90] ss:$8 sps:$4 sm:$0xff]  }
 0xfaa   :  { %v11347_v46 = vld [vmem:[#allocation43 + $0xa0] ss:$8 sps:$4 sm:$0xff]  }
 0xfab   :  { %10660 = vmatpush3.bf16.msra.mxu1 %v14039_v23  ;;  %v10709_v23 = vpack.c.bf16 %v7046_v55, %v7042_v6  ;;  %v11352_v6 = vld [vmem:[#allocation43 + $0xb4] ss:$8 sps:$4 sm:$0xff]   ;;  %v11350_v55 = vld [vmem:[#allocation43 + $0xb0] ss:$8 sps:$4 sm:$0xff]  }
 0xfac   :  { %10692 = vmatpush3.bf16.msra.mxu0 %v14043_v61  ;;  %10662 = vmatprep.subr.bf16.mxu1 %v14045_v57  ;;  %v7044_v61 = vld [vmem:[#allocation41 + $0x58] sm:$0xff] }
 0xfad   :  { %10694 = vmatprep.subr.bf16.mxu0 %v14048_v45  ;;  %v7048_v57 = vld [vmem:[#allocation41 + $0x78] sm:$0xff]  ;;  %v7041_v45 = vld [vmem:[#allocation41 + $0x40] sm:$0xff] }
 0xfaf   :  { %10664 = vmatpush3.bf16.msra.mxu1 %v14051_v2  ;;  %v10717_v2 = vpack.c.bf16 %v7048_v57, %v7044_v61  ;;  %v11356_v61 = vld [vmem:[#allocation43 + $0xd0] ss:$8 sps:$4 sm:$0xff]   ;;  %v11358_v57 = vld [vmem:[#allocation43 + $0xd4] ss:$8 sps:$4 sm:$0xff]  }
 0xfb0   :  { %10696 = vmatpush3.bf16.msra.mxu0 %v14055_v62  ;;  %10666 = vmatprep.subr.bf16.mxu1 %v14057_v15  ;;  %v7045_v62 = vld [vmem:[#allocation41 + $0x60] sm:$0xff]  ;;  %v7043_v15 = vld [vmem:[#allocation41 + $0x50] sm:$0xff] }
 0xfb1   :  { %10698 = vmatprep.subr.bf16.mxu0 %v14060_v63  ;;  %v7047_v63 = vld [vmem:[#allocation41 + $0x70] sm:$0xff]  ;;  %v10711_v56 = vpack.c.bf16 %v7045_v62, %v7041_v45  ;;  %v11361_v45 = vld [vmem:[#allocation43 + $0xe4] ss:$8 sps:$4 sm:$0xff]  }
 0xfb2   :  { %v10719_v1 = vpack.c.bf16 %v7047_v63, %v7043_v15  ;;  %v11364_v62 = vld [vmem:[#allocation43 + $0xf4] ss:$8 sps:$4 sm:$0xff]   ;;  %v11362_v15 = vld [vmem:[#allocation43 + $0xf0] ss:$8 sps:$4 sm:$0xff]   ;;  %v11367_v63 = vld [vmem:[#allocation43 + $0x104] ss:$8 sps:$4 sm:$0xff]  }
 0xfb3   :  { %10668 = vmatpush3.bf16.msra.mxu1 %v14063_v47 }
 0xfb4   :  { %10700 = vmatpush3.bf16.msra.mxu0 %v14067_v38  ;;  %10670 = vmatprep.subr.bf16.mxu1 %v14072_v53 }
 0xfb5   :  { %10702 = vmatprep.subr.bf16.mxu0 %v10637_v40 }
 0xfb7   :  { %10672 = vmatpush3.bf16.msra.mxu1 %v10607_v18 }
 0xfb8   :  { %10704 = vmatpush3.bf16.msra.mxu0 %v10639_v25  ;;  %10706 = vmatprep.subr.bf16.mxu1 %v10705_v51 }
 0xfb9   :  { %10714 = vmatprep.subr.bf16.mxu0 %v10713_v8 }
 0xfba   :  { %7260 = vmatmul.mubr.f32.vlgmr.msra.gmra.mrb[58].mxu1 %v7191_v59  ;;  %v11329_v59 = vld [vmem:[#allocation43 + $0x40] ss:$8 sps:$4 sm:$0xff]  }
 0xfbb   :  { %7330 = vmatmul.mubr.f32.vlgmr.msra.gmra.mrb[66].mxu0 %v7193_v48  ;;  %7409 = vmatprep.mubr.f32.mxu1 %v14498_v20  ;;  %v11334_v48 = vld [vmem:[#allocation43 + $0x54] ss:$8 sps:$4 sm:$0xff]  }
 0xfbc   :  { %7480 = vmatprep.mubr.f32.mxu0 %v14498_v20  ;;  %10708 = vmatpush1.bf16.msra.mxu1 %v10707_v0 }
 0xfbd   :  { %10716 = vmatpush1.bf16.msra.mxu0 %v10715_v54  ;;  %10710 = vmatprep.subr.bf16.mxu1 %v10709_v23 }
 0xfbe   :  { %10718 = vmatprep.subr.bf16.mxu0 %v10717_v2 }
 0xfc0   :  { %10712 = vmatpush1.bf16.msra.mxu1 %v10711_v56 }
 0xfc1   :  { %10720 = vmatpush1.bf16.msra.mxu0 %v10719_v1  ;;  %10722 = vmatprep.subr.bf16.mxu1 %v10705_v51  ;;  %v11340_v51 = vld [vmem:[#allocation43 + $0x74] ss:$8 sps:$4 sm:$0xff]  }
 0xfc2   :  { %10730 = vmatprep.subr.bf16.mxu0 %v10713_v8  ;;  %v11343_v8 = vld [vmem:[#allocation43 + $0x84] ss:$8 sps:$4 sm:$0xff]  }
0x106d   :  { %v9643_v47 = vpop.f32.mrb[56].mxu1 }
0x106e   :  { %v9678_v38 = vpop.f32.mrb[64].mxu0  ;;  %v9644_v39 = vpop.f32.mrb[57].mxu1 }
0x106f   :  { %v9645_v42 = vadd.f32 %v9644_v39, %v9643_v47  ;;  %v9679_v60 = vpop.f32.mrb[65].mxu0  ;;  %v8180_v47 = vld [vmem:[#allocation49] sm:$0xff]  ;;  %v8181_v39 = vld [vmem:[#allocation49 + $0x8] sm:$0xff] }
0x1070   :  { %v9680_v53 = vadd.f32 %v9679_v60, %v9678_v38  ;;  %v8199_v60 = vld [vmem:[#allocation49 + $0x98] sm:$0xff] }
0x1072   :  { %v7188_v14 = vadd.f32 %v9680_v53, %v9645_v42  ;;  %v8198_v42 = vld [vmem:[#allocation49 + $0x90] sm:$0xff] }
0x1074   :  { %v7336_v33 = vmul.f32 0.0625, %v7188_v14 }
0x1076   :  { %9155 = vmatmul.mubr.msk.f32.vlgmr.msra.gmra.mrb[60].mxu1 %vm641_vm3, %v7336_v33  ;;  %9156 = vmatmul.mubr.msk.f32.vlgmr.msra.gmra.mrb[68].mxu0 %vm641_vm3, %v7336_v33  ;;  %v7338_v26 = vmul.f32 %v7336_v33, %v7336_v33  ;;  %v14142_v33 = vpack.c.bf16 %v8181_v39, %v8180_v47 }
0x1077   :  { %10724 = vmatpush1.bf16.msra.mxu1 %v10707_v0  ;;  %10732 = vmatpush1.bf16.msra.mxu0 %v10715_v54  ;;  %v11349_v0 = vld [vmem:[#allocation43 + $0xa4] ss:$8 sps:$4 sm:$0xff]  }
0x1078   :  { %10726 = vmatprep.subr.bf16.mxu1 %v10709_v23  ;;  %10734 = vmatprep.subr.bf16.mxu0 %v10717_v2  ;;  %v11355_v54 = vld [vmem:[#allocation43 + $0xc4] ss:$8 sps:$4 sm:$0xff]   ;;  %v11353_v23 = vld [vmem:[#allocation43 + $0xc0] ss:$8 sps:$4 sm:$0xff]  }
0x1079   :  { %7554 = vmatprep.mubr.f32.mxu1 %v14498_v20  ;;  %7625 = vmatprep.mubr.f32.mxu0 %v14498_v20  ;;  %v11359_v2 = vld [vmem:[#allocation43 + $0xe0] ss:$8 sps:$4 sm:$0xff]  }
0x107b   :  { %10728 = vmatpush1.bf16.msra.mxu1 %v10711_v56  ;;  %10736 = vmatpush1.bf16.msra.mxu0 %v10719_v1  ;;  %v8196_v56 = vld [vmem:[#allocation49 + $0x80] sm:$0xff]  ;;  %v8197_v1 = vld [vmem:[#allocation49 + $0x88] sm:$0xff] }
0x107c   :  { %8098 = vmatprep.subr.bf16.mxu1 %v11319_v17  ;;  %v14136_v38 = vpack.c.bf16 %v8197_v1, %v8196_v56  ;;  %v14144_v17 = vpack.c.bf16 %v8199_v60, %v8198_v42 }
0x107e   :  { %10738 = vmatprep.subr.bf16.mxu0 %v14136_v38 }
0x108d   :  { %v9713_v40 = vpop.f32.mrb[58].mxu1 }
0x108e   :  { %v9748_v18 = vpop.f32.mrb[66].mxu0  ;;  %v9714_v43 = vpop.f32.mrb[59].mxu1 }
0x108f   :  { %v9715_v7 = vadd.f32 %v9714_v43, %v9713_v40  ;;  %v9749_v25 = vpop.f32.mrb[67].mxu0  ;;  %v8182_v40 = vld [vmem:[#allocation49 + $0x10] sm:$0xff]  ;;  %v8200_v43 = vld [vmem:[#allocation49 + $0xa0] sm:$0xff] }
0x1090   :  { %v9750_v10 = vadd.f32 %v9749_v25, %v9748_v18  ;;  %v8183_v18 = vld [vmem:[#allocation49 + $0x18] sm:$0xff] }
0x1092   :  { %v7332_v4 = vadd.f32 %v9750_v10, %v9715_v7  ;;  %v8201_v10 = vld [vmem:[#allocation49 + $0xa8] sm:$0xff] }
0x1094   :  { %v7337_v52 = vmul.f32 0.0625, %v7332_v4  ;;  %v14152_v4 = vpack.c.bf16 %v8183_v18, %v8182_v40 }
0x1096   :  { %v7339_v13 = vsub.f32 %v7337_v52, %v7338_v26  ;;  %v14155_v52 = vpack.c.bf16 %v8201_v10, %v8200_v43  ;;  %v8184_v26 = vld [vmem:[#allocation49 + $0x20] sm:$0xff] }
0x1098   :  { %v7340_v5 = vadd.f32 1e-05, %v7339_v13  ;;  %v8185_v13 = vld [vmem:[#allocation49 + $0x28] sm:$0xff] }
0x109a   :  { %11435 = vrsqrt.f32 %v7340_v5  ;;  %v8202_v5 = vld [vmem:[#allocation49 + $0xb0] sm:$0xff] }
0x10a4   :  { %v11436_v27 = vpop.eup %11435 }
0x10a5   :  { %9157 = vmatmul.mubr.msk.f32.vlgmr.msra.gmra.mrb[62].mxu1 %vm641_vm3, %v11436_v27  ;;  %9158 = vmatmul.mubr.msk.f32.vlgmr.msra.gmra.mrb[70].mxu0 %vm641_vm3, %v11436_v27  ;;  %v14158_v27 = vpack.c.bf16 %v8185_v13, %v8184_v26 }
0x10a6   :  { %8099 = vmatpush1.bf16.msra.mxu1 %v11317_v34  ;;  %10740 = vmatpush3.bf16.msra.mxu0 %v14142_v33  ;;  %v8203_v34 = vld [vmem:[#allocation49 + $0xb8] sm:$0xff] }
0x10a7   :  { %8100 = vmatprep.subr.bf16.mxu1 %v11322_v28  ;;  %10742 = vmatprep.subr.bf16.mxu0 %v14144_v17  ;;  %v8186_v28 = vld [vmem:[#allocation49 + $0x30] sm:$0xff] }
0x10aa   :  { %8101 = vmatpush1.bf16.msra.mxu1 %v11320_v50  ;;  %10744 = vmatpush3.bf16.msra.mxu0 %v14152_v4  ;;  %v14161_v50 = vpack.c.bf16 %v8203_v34, %v8202_v5 }
0x10ab   :  { %8102 = vmatprep.subr.bf16.mxu1 %v11325_v58  ;;  %10746 = vmatprep.subr.bf16.mxu0 %v14155_v52  ;;  %v8187_v58 = vld [vmem:[#allocation49 + $0x38] sm:$0xff] }
0x10ae   :  { %8103 = vmatpush1.bf16.msra.mxu1 %v11323_v22  ;;  %v8204_v22 = vld [vmem:[#allocation49 + $0xc0] sm:$0xff]  ;;  %10748 = vmatpush3.bf16.msra.mxu0 %v14158_v27 }
0x10af   :  { %8104 = vmatprep.subr.bf16.mxu1 %v11328_v9  ;;  %v8205_v9 = vld [vmem:[#allocation49 + $0xc8] sm:$0xff]  ;;  %10750 = vmatprep.subr.bf16.mxu0 %v14161_v50 }
0x10b2   :  { %8105 = vmatpush1.bf16.msra.mxu1 %v11326_v3  ;;  %v14164_v3 = vpack.c.bf16 %v8187_v58, %v8186_v28 }
0x10b3   :  { %8106 = vmatprep.subr.bf16.mxu1 %v11331_v35  ;;  %v14167_v35 = vpack.c.bf16 %v8205_v9, %v8204_v22 }
0x10b4   :  { %10752 = vmatpush3.bf16.msra.mxu0 %v14164_v3 }
0x10b5   :  { %10754 = vmatprep.subr.bf16.mxu0 %v14167_v35 }
0x10b6   :  { %8107 = vmatpush1.bf16.msra.mxu1 %v11329_v59  ;;  %v8188_v59 = vld [vmem:[#allocation49 + $0x40] sm:$0xff] }
0x10b7   :  { %8108 = vmatprep.subr.bf16.mxu1 %v11334_v48  ;;  %v8189_v48 = vld [vmem:[#allocation49 + $0x48] sm:$0xff] }
0x10ba   :  { %8109 = vmatpush1.bf16.msra.mxu1 %v11332_v19  ;;  %v8206_v19 = vld [vmem:[#allocation49 + $0xd0] sm:$0xff] }
0x10bb   :  { %8110 = vmatprep.subr.bf16.mxu1 %v11337_v49  ;;  %v8207_v49 = vld [vmem:[#allocation49 + $0xd8] sm:$0xff] }
0x10be   :  { %8111 = vmatpush1.bf16.msra.mxu1 %v11335_v24  ;;  %v14170_v24 = vpack.c.bf16 %v8189_v48, %v8188_v59 }
0x10bf   :  { %8112 = vmatprep.subr.bf16.mxu1 %v11340_v51  ;;  %v14173_v51 = vpack.c.bf16 %v8207_v49, %v8206_v19 }
0x10c0   :  { %10756 = vmatpush3.bf16.msra.mxu0 %v14170_v24 }
0x10c1   :  { %10758 = vmatprep.subr.bf16.mxu0 %v14173_v51 }
0x10c2   :  { %8113 = vmatpush1.bf16.msra.mxu1 %v11338_v11  ;;  %v8190_v11 = vld [vmem:[#allocation49 + $0x50] sm:$0xff] }
0x10c3   :  { %8114 = vmatprep.subr.bf16.mxu1 %v11343_v8  ;;  %v8191_v8 = vld [vmem:[#allocation49 + $0x58] sm:$0xff] }
0x10c6   :  { %8115 = vmatpush1.bf16.msra.mxu1 %v11341_v32  ;;  %v8208_v32 = vld [vmem:[#allocation49 + $0xe0] sm:$0xff] }
0x10c7   :  { %8116 = vmatprep.subr.bf16.mxu1 %v11346_v21  ;;  %v8209_v21 = vld [vmem:[#allocation49 + $0xe8] sm:$0xff] }
0x10ca   :  { %8117 = vmatpush1.bf16.msra.mxu1 %v11344_v12  ;;  %v14176_v12 = vpack.c.bf16 %v8191_v8, %v8190_v11  ;;  %v11365_v8 = vld [vmem:[#allocation43 + $0x100] ss:$8 sps:$4 sm:$0xff]  }
0x10cb   :  { %8118 = vmatprep.subr.bf16.mxu1 %v11349_v0  ;;  %v14179_v0 = vpack.c.bf16 %v8209_v21, %v8208_v32  ;;  %v11370_v32 = vld [vmem:[#allocation43 + $0x114] ss:$8 sps:$4 sm:$0xff]   ;;  %v11371_v21 = vld [vmem:[#allocation43 + $0x120] ss:$8 sps:$4 sm:$0xff]  }
0x10cc   :  { %10760 = vmatpush3.bf16.msra.mxu0 %v14176_v12 }
0x10cd   :  { %10762 = vmatprep.subr.bf16.mxu0 %v14179_v0 }
0x10ce   :  { %8119 = vmatpush1.bf16.msra.mxu1 %v11347_v46  ;;  %v8192_v46 = vld [vmem:[#allocation49 + $0x60] sm:$0xff] }
0x10cf   :  { %8120 = vmatprep.subr.bf16.mxu1 %v11352_v6  ;;  %v8193_v6 = vld [vmem:[#allocation49 + $0x68] sm:$0xff] }
0x10d2   :  { %8121 = vmatpush1.bf16.msra.mxu1 %v11350_v55  ;;  %v14182_v55 = vpack.c.bf16 %v8193_v6, %v8192_v46  ;;  %v11376_v46 = vld [vmem:[#allocation43 + $0x134] ss:$8 sps:$4 sm:$0xff]   ;;  %v11374_v6 = vld [vmem:[#allocation43 + $0x130] ss:$8 sps:$4 sm:$0xff]  }
0x10d3   :  { %8122 = vmatprep.subr.bf16.mxu1 %v11355_v54  ;;  %v7049_v54 = vld [vmem:[#allocation37] sm:$0xf] }
0x10d4   :  { %10764 = vmatpush3.bf16.msra.mxu0 %v14182_v55 }
0x10d6   :  { %8123 = vmatpush1.bf16.msra.mxu1 %v11353_v23  ;;  %v7636_v23 = vrot.slane %v7049_v54, %v14441_v36 }
0x10d7   :  { %8124 = vmatprep.subr.bf16.mxu1 %v11358_v57  ;;  %v7050_v57 = vld [vmem:[#allocation38] sm:$0xf] }
0x10d8   :  { %v7665_v56 = vrot.slane %v7050_v57, %v14441_v36  ;;  %v7673_v47 = vrot.slane %v7050_v57, %v13491_v41  ;;  %v7669_v40 = vrot.slane %v7050_v57, %v13497_v29  ;;  %v7677_v43 = vrot.slane %v7050_v57, %v13500_v31  ;;  %v11380_v57 = vld [vmem:[#allocation43 + $0x150] ss:$8 sps:$4 sm:$0xff]  }
0x10da   :  { %8125 = vmatpush1.bf16.msra.mxu1 %v11356_v61  ;;  %v7644_v61 = vrot.slane %v7049_v54, %v13491_v41 }
0x10db   :  { %8126 = vmatprep.subr.bf16.mxu1 %v11361_v45  ;;  %v7640_v45 = vrot.slane %v7049_v54, %v13497_v29 }
0x10de   :  { %8127 = vmatpush1.bf16.msra.mxu1 %v11359_v2  ;;  %v7648_v2 = vrot.slane %v7049_v54, %v13500_v31  ;;  %v11379_v54 = vld [vmem:[#allocation43 + $0x144] ss:$8 sps:$4 sm:$0xff]  }
0x10df   :  { %8128 = vmatprep.subr.bf16.mxu1 %v11364_v62 }
0x10e2   :  { %8129 = vmatpush1.bf16.msra.mxu1 %v11362_v15 }
0x10e3   :  { %8139 = vmatprep.subr.bf16.mxu1 %v11367_v63 }
0x1149   :  { %v14138_v53 = vpop.f32.mrb[60].mxu1  ;;  %v14140_v14 = vpop.f32.mrb[68].mxu0 }
0x114a   :  { %v14146_v7 = vpop.f32.mrb[61].mxu1  ;;  %v14148_v25 = vpop.f32.mrb[69].mxu0 }
0x1178   :  { %v7556_v62 = vpop.f32.mrb[62].mxu1  ;;  %v7627_v15 = vpop.f32.mrb[70].mxu0 }
0x1179   :  { %v7653_v63 = vmul.f32 %v7636_v23, %v7556_v62  ;;  %v7655_v1 = vmul.f32 %v7644_v61, %v7627_v15  ;;  %v7558_v39 = vpop.f32.mrb[63].mxu1  ;;  %v7629_v42 = vpop.f32.mrb[71].mxu0  ;;  %v11377_v23 = vld [vmem:[#allocation43 + $0x140] ss:$8 sps:$4 sm:$0xff]   ;;  %v11382_v61 = vld [vmem:[#allocation43 + $0x154] ss:$8 sps:$4 sm:$0xff]  }
0x117a   :  { %v7654_v60 = vmul.f32 %v7640_v45, %v7558_v39  ;;  %v7656_v18 = vmul.f32 %v7648_v2, %v7629_v42  ;;  %v11385_v45 = vld [vmem:[#allocation43 + $0x164] ss:$8 sps:$4 sm:$0xff]   ;;  %v11383_v2 = vld [vmem:[#allocation43 + $0x160] ss:$8 sps:$4 sm:$0xff]   ;;  %v11388_v62 = vld [vmem:[#allocation43 + $0x174] ss:$8 sps:$4 sm:$0xff]  }
0x117b   :  { %v7657_v10 = vmul.f32 %v7653_v63, %v14138_v53  ;;  %v7659_v26 = vmul.f32 %v7655_v1, %v14140_v14  ;;  %v7686_v28 = vmul.f32 %v14083_v37, %v7653_v63  ;;  %v7688_v58 = vmul.f32 %v14087_v16, %v7655_v1  ;;  %v11386_v15 = vld [vmem:[#allocation43 + $0x170] ss:$8 sps:$4 sm:$0xff]   ;;  %v11391_v63 = vld [vmem:[#allocation43 + $0x184] ss:$8 sps:$4 sm:$0xff]   ;;  %v11394_v1 = vld [vmem:[#allocation43 + $0x194] ss:$8 sps:$4 sm:$0xff]  }
0x117c   :  { %v7658_v13 = vmul.f32 %v7654_v60, %v14146_v7  ;;  %v7660_v5 = vmul.f32 %v7656_v18, %v14148_v25  ;;  %v7687_v9 = vmul.f32 %v14081_v44, %v7654_v60  ;;  %v7689_v31 = vmul.f32 %v14085_v30, %v7656_v18  ;;  %v11368_v44 = vld [vmem:[#allocation43 + $0x110] ss:$8 sps:$4 sm:$0xff]   ;;  %v11373_v30 = vld [vmem:[#allocation43 + $0x124] ss:$8 sps:$4 sm:$0xff]   ;;  %v11395_v42 = vld [vmem:[#allocation43 + $0x1a0] ss:$8 sps:$4 sm:$0xff]  }
0x117d   :  { %v7682_v34 = vsub.f32 %v7665_v56, %v7657_v10  ;;  %v7684_v41 = vsub.f32 %v7673_v47, %v7659_v26  ;;  %v11389_v56 = vld [vmem:[#allocation43 + $0x180] ss:$8 sps:$4 sm:$0xff]   ;;  %v11392_v47 = vld [vmem:[#allocation43 + $0x190] ss:$8 sps:$4 sm:$0xff]   ;;  %v11397_v39 = vld [vmem:[#allocation43 + $0x1a4] ss:$8 sps:$4 sm:$0xff]  }
0x117e   :  { %v7683_v22 = vsub.f32 %v7669_v40, %v7658_v13  ;;  %v7685_v59 = vsub.f32 %v7677_v43, %v7660_v5  ;;  %v11400_v60 = vld [vmem:[#allocation43 + $0x1b4] ss:$8 sps:$4 sm:$0xff]   ;;  %v11398_v40 = vld [vmem:[#allocation43 + $0x1b0] ss:$8 sps:$4 sm:$0xff]   ;;  %v11403_v18 = vld [vmem:[#allocation43 + $0x1c4] ss:$8 sps:$4 sm:$0xff]  }
0x117f   :  { %v7690_v48 = vadd.f32 %v7686_v28, %v7682_v34  ;;  %v14202_v53 = vadd.f32 %v7688_v58, %v7684_v41  ;;  %v11401_v43 = vld [vmem:[#allocation43 + $0x1c0] ss:$8 sps:$4 sm:$0xff]   ;;  %v11406_v10 = vld [vmem:[#allocation43 + $0x1d4] ss:$8 sps:$4 sm:$0xff]   ;;  %v11404_v26 = vld [vmem:[#allocation43 + $0x1d0] ss:$8 sps:$4 sm:$0xff]  }
0x1180   :  { %v7691_v14 = vadd.f32 %v7687_v9, %v7683_v22  ;;  %v7693_v19 = vadd.f32 %v7689_v31, %v7685_v59  ;;  %v11409_v13 = vld [vmem:[#allocation43 + $0x1e4] ss:$8 sps:$4 sm:$0xff]   ;;  %v11407_v5 = vld [vmem:[#allocation43 + $0x1e0] ss:$8 sps:$4 sm:$0xff]   ;;  %v11412_v34 = vld [vmem:[#allocation43 + $0x1f4] ss:$8 sps:$4 sm:$0xff]  }
0x1181   :  { %v7694_v7 = vmax.f32 %v7690_v48, 0.0  ;;  %v11410_v28 = vld [vmem:[#allocation43 + $0x1f0] ss:$8 sps:$4 sm:$0xff]   ;;  %v7696_v41 = vmax.f32 %v14202_v53, 0.0  ;;  %v8211_v9 = vld [vmem:[#allocation49 + $0xf8] sm:$0xff] }
0x1182   :  { %v7695_v49 = vmax.f32 %v7691_v14, 0.0  ;;  %v7697_v25 = vmax.f32 %v7693_v19, 0.0  ;;  %v8210_v22 = vld [vmem:[#allocation49 + $0xf0] sm:$0xff]  ;;  %v8195_v48 = vld [vmem:[#allocation49 + $0x78] sm:$0xff] }
0x1183   :  { %v7698_v37 = vpack.c.bf16 %v7694_v7, %v7694_v7  ;;  %v7700_v58 = vpack.c.bf16 %v7696_v41, %v7696_v41  ;;  %v8194_v59 = vld [vmem:[#allocation49 + $0x70] sm:$0xff]  ;;  %v10765_v31 = vpack.c.bf16 %v8211_v9, %v8210_v22  ;;  %v7766_v19 = vld [vmem:[#allocation44] sm:$0x3] }
0x1184   :  { %v7699_v11 = vpack.c.bf16 %v7695_v49, %v7695_v49  ;;  %v7701_v16 = vpack.c.bf16 %v7697_v25, %v7697_v25  ;;  %v10767_v14 = vpack.c.bf16 %v8195_v48, %v8194_v59  ;;  %v7775_v7 = vrot.slane %v7766_v19, %v13497_v29 }
0x1185   :  { %10766 = vmatprep.subr.bf16.mxu0 %v10765_v31  ;;  %v7771_v49 = vrot.slane %v7766_v19, %v14441_v36 }
0x1186   :  { %8130 = vmatprep.mubr.bf16.mxu1 %v7699_v11  ;;  %10768 = vmatpush3.bf16.msra.mxu0 %v10767_v14 }
0x1187   :  { %8131 = vmatmul.mubr.bf16.vlgmr.msra.gmra.mrb[64].mxu1 %v7698_v37  ;;  %10770 = vmatprep.subr.bf16.mxu0 %v14136_v38 }
0x1188   :  { %8140 = vmatpush1.bf16.msra.mxu1 %v11365_v8  ;;  %8171 = vmatprep.mubr.bf16.mxu1 %v7701_v16 }
0x1189   :  { %8141 = vmatprep.subr.bf16.mxu1 %v11370_v32 }
0x118c   :  { %8142 = vmatpush1.bf16.msra.mxu1 %v11368_v44 }
0x118d   :  { %8143 = vmatprep.subr.bf16.mxu1 %v11373_v30 }
0x1190   :  { %8144 = vmatpush1.bf16.msra.mxu1 %v11371_v21 }
0x1191   :  { %8145 = vmatprep.subr.bf16.mxu1 %v11376_v46 }
0x1194   :  { %8146 = vmatpush1.bf16.msra.mxu1 %v11374_v6 }
0x1195   :  { %8147 = vmatprep.subr.bf16.mxu1 %v11379_v54  ;;  %v11413_v54 = vld [vmem:[#allocation52 + $0x40] sm:$0xff]  }
0x1198   :  { %8148 = vmatpush1.bf16.msra.mxu1 %v11377_v23  ;;  %v11414_v23 = vld [vmem:[#allocation52] sm:$0xff]  }
0x1199   :  { %8149 = vmatprep.subr.bf16.mxu1 %v11382_v61  ;;  %v11415_v61 = vld [vmem:[#allocation52 + $0x48] sm:$0xff]  }
0x119c   :  { %8150 = vmatpush1.bf16.msra.mxu1 %v11380_v57  ;;  %v11416_v57 = vld [vmem:[#allocation52 + $0x8] sm:$0xff]  }
0x119d   :  { %8151 = vmatprep.subr.bf16.mxu1 %v11385_v45  ;;  %v11417_v45 = vld [vmem:[#allocation52 + $0x50] sm:$0xff]  }
0x11a0   :  { %8152 = vmatpush1.bf16.msra.mxu1 %v11383_v2  ;;  %v11419_v2 = vld [vmem:[#allocation52 + $0x58] sm:$0xff]  }
0x11a1   :  { %8153 = vmatprep.subr.bf16.mxu1 %v11388_v62  ;;  %v11420_v62 = vld [vmem:[#allocation52 + $0x18] sm:$0xff]  }
0x11a4   :  { %8154 = vmatpush1.bf16.msra.mxu1 %v11386_v15  ;;  %v11421_v15 = vld [vmem:[#allocation52 + $0x60] sm:$0xff]  }
0x11a5   :  { %8155 = vmatprep.subr.bf16.mxu1 %v11391_v63  ;;  %v11422_v63 = vld [vmem:[#allocation52 + $0x20] sm:$0xff]  }
0x11a8   :  { %8156 = vmatpush1.bf16.msra.mxu1 %v11389_v56  ;;  %v11423_v56 = vld [vmem:[#allocation52 + $0x68] sm:$0xff]  }
0x11a9   :  { %8157 = vmatprep.subr.bf16.mxu1 %v11394_v1  ;;  %v11424_v1 = vld [vmem:[#allocation52 + $0x28] sm:$0xff]  }
0x11ac   :  { %8158 = vmatpush1.bf16.msra.mxu1 %v11392_v47  ;;  %v11425_v47 = vld [vmem:[#allocation52 + $0x70] sm:$0xff]  }
0x11ad   :  { %8159 = vmatprep.subr.bf16.mxu1 %v11397_v39  ;;  %v11426_v39 = vld [vmem:[#allocation52 + $0x30] sm:$0xff]  }
0x11b0   :  { %8160 = vmatpush1.bf16.msra.mxu1 %v11395_v42  ;;  %v11427_v42 = vld [vmem:[#allocation52 + $0x78] sm:$0xff]  }
0x11b1   :  { %8161 = vmatprep.subr.bf16.mxu1 %v11400_v60  ;;  %v11428_v60 = vld [vmem:[#allocation52 + $0x38] sm:$0xff]  }
0x11b4   :  { %8162 = vmatpush1.bf16.msra.mxu1 %v11398_v40 }
0x11b5   :  { %8163 = vmatprep.subr.bf16.mxu1 %v11403_v18 }
0x11b8   :  { %8164 = vmatpush1.bf16.msra.mxu1 %v11401_v43  ;;  %v8216_v43 = vld [vmem:[#allocation46] sm:$0x3] }
0x11b9   :  { %8165 = vmatprep.subr.bf16.mxu1 %v11406_v10  ;;  %v8519_v10 = vrot.slane %v8216_v43, %v14441_v36 }
0x11bc   :  { %8166 = vmatpush1.bf16.msra.mxu1 %v11404_v26  ;;  %v8217_v26 = vld [vmem:[#allocation47] sm:$0x3] }
0x11bd   :  { %8167 = vmatprep.subr.bf16.mxu1 %v11409_v13  ;;  %v8523_v13 = vrot.slane %v8216_v43, %v13497_v29  ;;  %v8538_v22 = vrot.slane %v8217_v26, %v13497_v29 }
0x11c0   :  { %8168 = vmatpush1.bf16.msra.mxu1 %v11407_v5 }
0x11c1   :  { %8169 = vmatprep.subr.bf16.mxu1 %v11412_v34 }
0x11c4   :  { %8170 = vmatpush1.bf16.msra.mxu1 %v11410_v28  ;;  %v8534_v28 = vrot.slane %v8217_v26, %v14441_v36 }
0x11c7   :  { %8172 = vmatmul.mubr.bf16.vlgmr.msra.gmra.mrb[64].mxu1 %v7700_v58 }
0x129a   :  { %v8173_v53 = vpop.f32.mrb[64].mxu1 }
0x129b   :  { %v8175_v25 = vpop.f32.mrb[65].mxu1  ;;  %v14210_v37 = vadd.f32 %v8173_v53, %v7771_v49 }
0x129c   :  { %v14208_v11 = vadd.f32 %v8175_v25, %v7775_v7  ;;  %v8177_v8 = vpop.f32.mrb[66].mxu1 }
0x129d   :  { %v8178_v32 = vpop.f32.mrb[67].mxu1  ;;  %v8288_v38 = vmul.f32 %v14210_v37, %v14210_v37 }
0x129e   :  { %8282 = vmatprep.mubr.f32.mxu0 %v14208_v11  ;;  %v8289_v16 = vmul.f32 %v14208_v11, %v14208_v11 }
0x129f   :  { %8283 = vmatmul.mubr.f32.vlgmr.msra.gmra.mrb[72].mxu0 %v14210_v37 }
0x12a0   :  { %10772 = vmatpush3.bf16.msra.mxu0 %v14142_v33  ;;  %8354 = vmatprep.mubr.f32.mxu0 %v8289_v16  ;;  %v8213_v33 = vld [vmem:[#allocation50 + $0x8] sm:$0xff]  ;;  %v9225_v16 = vld [vmem:[#allocation53] ss:$0 sm:$0xff] }
0x12a1   :  { %10774 = vmatprep.subr.bf16.mxu0 %v14144_v17  ;;  %v8215_v17 = vld [vmem:[#allocation50 + $0x18] sm:$0xff] }
0x12a4   :  { %10776 = vmatpush3.bf16.msra.mxu0 %v14152_v4  ;;  %v8212_v4 = vld [vmem:[#allocation50] sm:$0xff] }
0x12a5   :  { %10778 = vmatprep.subr.bf16.mxu0 %v14155_v52  ;;  %v10801_v52 = vpack.c.bf16 %v8215_v17, %v8213_v33 }
0x12a8   :  { %10780 = vmatpush3.bf16.msra.mxu0 %v14158_v27  ;;  %v8214_v27 = vld [vmem:[#allocation50 + $0x10] sm:$0xff] }
0x12a9   :  { %10782 = vmatprep.subr.bf16.mxu0 %v14161_v50  ;;  %v10803_v50 = vpack.c.bf16 %v8214_v27, %v8212_v4 }
0x12ac   :  { %10784 = vmatpush3.bf16.msra.mxu0 %v14164_v3 }
0x12ad   :  { %10786 = vmatprep.subr.bf16.mxu0 %v14167_v35 }
0x12b0   :  { %10788 = vmatpush3.bf16.msra.mxu0 %v14170_v24 }
0x12b1   :  { %10790 = vmatprep.subr.bf16.mxu0 %v14173_v51 }
0x12b4   :  { %10792 = vmatpush3.bf16.msra.mxu0 %v14176_v12 }
0x12b5   :  { %10794 = vmatprep.subr.bf16.mxu0 %v14179_v0 }
0x12b8   :  { %10796 = vmatpush3.bf16.msra.mxu0 %v14182_v55 }
0x12b9   :  { %10798 = vmatprep.subr.bf16.mxu0 %v10765_v31 }
0x12bc   :  { %10800 = vmatpush3.bf16.msra.mxu0 %v10767_v14 }
0x12bd   :  { %10802 = vmatprep.subr.bf16.mxu0 %v10801_v52 }
0x12bf   :  { %8355 = vmatmul.mubr.f32.vlgmr.msra.gmra.mrb[74].mxu0 %v8288_v38 }
0x12c0   :  { %8434 = vmatprep.mubr.f32.mxu0 %v14498_v20  ;;  %10804 = vmatpush1.bf16.msra.mxu0 %v10803_v50 }
0x12c1   :  { %10806 = vmatprep.subr.bf16.mxu0 %v10801_v52 }
0x1372   :  { %v9783_v3 = vpop.f32.mrb[72].mxu0 }
0x1373   :  { %v9784_v35 = vpop.f32.mrb[73].mxu0 }
0x1374   :  { %v9785_v24 = vadd.f32 %v9784_v35, %v9783_v3 }
0x1376   :  { %v8360_v51 = vmul.f32 0.0625, %v9785_v24 }
0x1378   :  { %9223 = vmatmul.mubr.msk.f32.vlgmr.msra.gmra.mrb[76].mxu0 %vm8366_vm15, %v8360_v51  ;;  %v8362_v44 = vmul.f32 %v8360_v51, %v8360_v51 }
0x1379   :  { %10808 = vmatpush1.bf16.msra.mxu0 %v10803_v50  ;;  %8508 = vmatprep.mubr.f32.mxu0 %v14498_v20  ;;  %v11418_v20 = vld [vmem:[#allocation52 + $0x10] sm:$0xff]  }
0x137a   :  { %9821 = vmatprep.subr.bf16.mxu0 %v11413_v54 }
0x1392   :  { %v9818_v12 = vpop.f32.mrb[74].mxu0 }
0x1393   :  { %v9819_v0 = vpop.f32.mrb[75].mxu0 }
0x1394   :  { %v9820_v55 = vadd.f32 %v9819_v0, %v9818_v12 }
0x1396   :  { %v8361_v30 = vmul.f32 0.0625, %v9820_v55 }
0x1398   :  { %v8363_v21 = vsub.f32 %v8361_v30, %v8362_v44 }
0x139a   :  { %v8364_v46 = vadd.f32 1e-05, %v8363_v21 }
0x139c   :  { %11437 = vrsqrt.f32 %v8364_v46 }
0x13a6   :  { %v11438_v6 = vpop.eup %11437 }
0x13a7   :  { %9224 = vmatmul.mubr.msk.f32.vlgmr.msra.gmra.mrb[78].mxu0 %vm8366_vm15, %v11438_v6 }
0x13a8   :  { %9822 = vmatpush3.bf16.msra.mxu0 %v11414_v23 }
0x13a9   :  { %9823 = vmatprep.subr.bf16.mxu0 %v11415_v61 }
0x13ac   :  { %9824 = vmatpush3.bf16.msra.mxu0 %v11416_v57 }
0x13ad   :  { %9825 = vmatprep.subr.bf16.mxu0 %v11417_v45 }
0x13b0   :  { %9826 = vmatpush3.bf16.msra.mxu0 %v11418_v20 }
0x13b1   :  { %9827 = vmatprep.subr.bf16.mxu0 %v11419_v2 }
0x13b4   :  { %9828 = vmatpush3.bf16.msra.mxu0 %v11420_v62 }
0x13b5   :  { %9829 = vmatprep.subr.bf16.mxu0 %v11421_v15 }
0x13b8   :  { %9830 = vmatpush3.bf16.msra.mxu0 %v11422_v63 }
0x13b9   :  { %9831 = vmatprep.subr.bf16.mxu0 %v11423_v56 }
0x13bc   :  { %9832 = vmatpush3.bf16.msra.mxu0 %v11424_v1 }
0x13bd   :  { %9833 = vmatprep.subr.bf16.mxu0 %v11425_v47 }
0x13c0   :  { %9834 = vmatpush3.bf16.msra.mxu0 %v11426_v39 }
0x13c1   :  { %9835 = vmatprep.subr.bf16.mxu0 %v11427_v42 }
0x13c4   :  { %9836 = vmatpush3.bf16.msra.mxu0 %v11428_v60 }
0x144b   :  { %v8436_v40 = vpop.f32.mrb[76].mxu0 }
0x144c   :  { %v8438_v18 = vpop.f32.mrb[77].mxu0 }
0x147a   :  { %v8510_v5 = vpop.f32.mrb[78].mxu0 }
0x147b   :  { %v8526_v34 = vmul.f32 %v8519_v10, %v8510_v5  ;;  %v8512_v41 = vpop.f32.mrb[79].mxu0 }
0x147c   :  { %v8527_v58 = vmul.f32 %v8523_v13, %v8512_v41 }
0x147d   :  { %v8528_v9 = vmul.f32 %v8526_v34, %v8436_v40  ;;  %v8543_v48 = vmul.f32 %v14210_v37, %v8526_v34 }
0x147e   :  { %v8529_v59 = vmul.f32 %v8527_v58, %v8438_v18  ;;  %v8544_v19 = vmul.f32 %v14208_v11, %v8527_v58 }
0x147f   :  { %v8541_v31 = vsub.f32 %v8534_v28, %v8528_v9 }
0x1480   :  { %v8542_v14 = vsub.f32 %v8538_v22, %v8529_v59 }
0x1481   :  { %v8545_v7 = vadd.f32 %v8543_v48, %v8541_v31 }
0x1482   :  { %v8546_v49 = vadd.f32 %v8544_v19, %v8542_v14 }
0x1483   :  { %v8547_v53 = vmax.f32 %v8545_v7, 0.0 }
0x1484   :  { %v8548_v25 = vmax.f32 %v8546_v49, 0.0 }
0x1485   :  { %v8549_v32 = vpack.c.bf16 %v8547_v53, %v8547_v53 }
0x1486   :  { %v8550_v8 = vpack.c.bf16 %v8548_v25, %v8548_v25 }
0x1488   :  { %8718 = vmatprep.mubr.bf16.mxu0 %v8550_v8 }
0x1489   :  { %8719 = vmatmul.mubr.bf16.vlgmr.msra.gmra.mrb[80].mxu0 %v8549_v32 }
0x155c   :  { %v9837_v36 = vpop.f32.mrb[80].mxu0 }
0x155d   :  { %v9838_v38 = vpop.f32.mrb[81].mxu0 }
0x155e   :  { %v9839_v29 = vadd.f32 %v9838_v38, %v9837_v36  ;;  %v9840_v33 = vpop.f32.mrb[82].mxu0 }
0x155f   :  { %v9841_v17 = vpop.f32.mrb[83].mxu0 }
0x1560   :  { %v8721_v37 = vadd.f32 %v9839_v29, %v9225_v16 }
0x1562   :  { %8726 = vst [vmem:[#allocation55] sm:$0x3] %v8721_v37 }
0x1563   :  { %12200 = shalt.err (!%p12197_p10)
}
0x1564   :  { %s12201_s11 = scalar_lea.hbm %s12510_s12, 32 }
0x1565   :  { %p12202_p11 = scmp.ne.s32.totalorder %s12510_s12, %s12201_s11  ;;  %p12205_p12 = scmp.lt.u32.totalorder %s12201_s11, %s12510_s12 }
0x1567   :  { %p12207_p13 = pnand %p12205_p12, %p12202_p11 }
0x1569   :  { %12210 = shalt.err (!%p12207_p13)
}
0x156a   :  { %8736 = dma.vmem_to_hbm [thread:$0]  %s8734_s27, 32, %s12510_s12, [#allocation4]  }
0x156b   :  { %12247 = dma.done.wait [#allocation4], 32  }
0x156c   :  { %12248 = vsyncadd [#allocation4], 4294967264 }
0x156d   :  { %8740 = vsyncpa [#allocation3], 1 }
0x156e   :  { %8741 = vsyncpa [#allocation6], 1 }
0x156f   :  { %8742 = vsyncpa [#allocation9], 1 }
0x1570   :  { %8743 = vsyncpa [#allocation12], 1 }
0x1571   :  { %8744 = vsyncpa [#allocation15], 1 }
0x1572   :  { %8745 = vsyncpa [#allocation18], 1 }
0x1573   :  { %8746 = vsyncpa [#allocation21], 1 }
0x1574   :  { %8747 = vsyncpa [#allocation24], 1 }
0x1575   :  { %8748 = vsyncpa [#allocation27], 1 }
0x1576   :  { %8749 = vsyncpa [#allocation30], 1 }
0x1577   :  { %8750 = vsyncpa [#allocation33], 1 }
0x1578   :  { %8751 = vsyncpa [#allocation36], 1 }
0x1579   :  { %8752 = vsyncpa [#allocation39], 1 }
0x157a   :  { %8753 = vsyncpa [#allocation42], 1 }
0x157b   :  { %8754 = vsyncpa [#allocation45], 1 }
0x157c   :  { %8755 = vsyncpa [#allocation48], 1 }
0x157d   :  { %8756 = vsyncpa [#allocation51], 1 }
0x157e   :  { %8757 = vsyncpa [#allocation54], 1 }
0x157f   :  { %8758 = vsyncpa [#allocation4], 1 }

</bundles_post_ra>
